<compile_context>
chip_gen: v7x
topology: tpu7x:2x2x1
jax: 0.10.0
libtpu: 0.0.40
codegen_flags: <defaults>
</compile_context>

<pallas_src>
import functools

import jax
import jax.numpy as jnp
import numpy as np
from jax.experimental import pallas as pl
from jax.experimental.pallas import tpu as pltpu


# ----------------------------------------------------------------------------
# Small helpers
# ----------------------------------------------------------------------------
def _round_up(x, m):
    return ((x + m - 1) // m) * m


def _pick_tm(M, tm_max=512):
    """Pick an M tile: as large as tm_max, multiple of 16 (bf16 sublane packing),
    but prefer >=2 grid steps so both v7x TensorCores get work on small layers."""
    half = _round_up(max(M // 2, 1), 16)
    return max(16, min(tm_max, half, _round_up(M, 16)))


# ----------------------------------------------------------------------------
# Pallas kernels
# ----------------------------------------------------------------------------
def _gemm_bias_act_kernel(x_ref, w_ref, b_ref, o_ref, *, apply_relu):
    # bf16 x bf16 -> f32 accumulate on the MXU; epilogue in f32; store bf16/f32.
    acc = jnp.dot(x_ref[...], w_ref[...], preferred_element_type=jnp.float32)
    acc = acc + b_ref[...]
    if apply_relu:
        acc = jnp.maximum(acc, 0.0)
    o_ref[...] = acc.astype(o_ref.dtype)


def gemm_bias_act(x, w, b, *, apply_relu, out_dtype=jnp.bfloat16, tm_max=512):
    """(M, K) @ (K, N) + b with optional ReLU, Pallas-tiled over M (bf16 operands)."""
    M, K = x.shape
    K2, N = w.shape
    assert K == K2, (K, K2)
    tm = _pick_tm(M, tm_max)
    grid_m = pl.cdiv(M, tm)
    x = x.astype(jnp.bfloat16)
    w = w.astype(jnp.bfloat16)
    b2 = b.reshape(1, N).astype(jnp.float32)
    return pl.pallas_call(
        functools.partial(_gemm_bias_act_kernel, apply_relu=apply_relu),
        out_shape=jax.ShapeDtypeStruct((M, N), out_dtype),
        grid_spec=pltpu.PrefetchScalarGridSpec(
            num_scalar_prefetch=0,
            grid=(grid_m,),
            in_specs=[
                pl.BlockSpec((tm, K), lambda i: (i, 0)),
                pl.BlockSpec((K, N), lambda i: (0, 0)),
                pl.BlockSpec((1, N), lambda i: (0, 0)),
            ],
            out_specs=pl.BlockSpec((tm, N), lambda i: (i, 0)),
        ),
        compiler_params=pltpu.CompilerParams(
            dimension_semantics=("parallel",),
            vmem_limit_bytes=32 * 1024 * 1024,   # explicit budget; tiles use ~4 MB
        ),
    )(x, w, b2)


def _head_kernel(x_ref, w1_ref, b1_ref, w2_ref, b2_ref, o_ref):
    h = jnp.dot(x_ref[...], w1_ref[...], preferred_element_type=jnp.float32)
    h = jnp.maximum(h + b1_ref[...], 0.0)                       # linear1 + ReLU
    logits = jnp.dot(h.astype(w2_ref.dtype), w2_ref[...],
                     preferred_element_type=jnp.float32) + b2_ref[...]
    m = jnp.max(logits, axis=-1, keepdims=True)                 # stable softmax
    e = jnp.exp(logits - m)
    s = jnp.sum(e, axis=-1, keepdims=True)
    o_ref[...] = (e / s).astype(o_ref.dtype)


def head(x, w1, b1, w2, b2):
    M, F = x.shape
    H = w1.shape[1]
    C = w2.shape[1]
    return pl.pallas_call(
        _head_kernel,
        out_shape=jax.ShapeDtypeStruct((M, C), jnp.float32),
        grid_spec=pltpu.PrefetchScalarGridSpec(
            num_scalar_prefetch=0,
            grid=(1,),
            in_specs=[
                pl.BlockSpec((M, F), lambda i: (0, 0)),
                pl.BlockSpec((F, H), lambda i: (0, 0)),
                pl.BlockSpec((1, H), lambda i: (0, 0)),
                pl.BlockSpec((H, C), lambda i: (0, 0)),
                pl.BlockSpec((1, C), lambda i: (0, 0)),
            ],
            out_specs=pl.BlockSpec((M, C), lambda i: (0, 0)),
        ),
        compiler_params=pltpu.CompilerParams(vmem_limit_bytes=32 * 1024 * 1024),
    )(x.astype(jnp.bfloat16), w1.astype(jnp.bfloat16), b1.reshape(1, H),
      w2.astype(jnp.bfloat16), b2.reshape(1, C))


# ----------------------------------------------------------------------------
# JAX glue (runs inside jit): im2col, maxpool
# ----------------------------------------------------------------------------
def im2col(x, k):
    """x: (N, H, W, C) NHWC, stride 1, 'valid'. Returns (N*OH*OW, Kp) with the
    feature dim zero-padded to a multiple of 128 (lane-aligned loads)."""
    N, H, W, C = x.shape
    OH, OW = H - k + 1, W - k + 1
    cols = [x[:, kh:kh + OH, kw:kw + OW, :] for kh in range(k) for kw in range(k)]
    K = k * k * C
    Kp = _round_up(K, 128)
    if Kp != K:
        cols.append(jnp.zeros((N, OH, OW, Kp - K), x.dtype))
    patches = jnp.concatenate(cols, axis=-1)            # (N, OH, OW, Kp)
    return patches.reshape(N * OH * OW, Kp), (N, OH, OW)


def maxpool2d(x, pool):
    if pool == 1:
        return x
    N, H, W, C = x.shape
    assert H % pool == 0 and W % pool == 0
    x = x.reshape(N, H // pool, pool, W // pool, pool, C)
    return jnp.max(x, axis=(2, 4))


def conv_block(x, w_flat, b, k, cout, pool):
    """Conv2d(valid, stride=1) -> ReLU -> (Dropout: identity) -> MaxPool."""
    cols, (N, OH, OW) = im2col(x, k)
    assert cols.shape[1] == w_flat.shape[0]
    y = gemm_bias_act(cols, w_flat, b, apply_relu=True, out_dtype=jnp.bfloat16)
    y = y.reshape(N, OH, OW, cout)
    return maxpool2d(y, pool)


# ----------------------------------------------------------------------------
# Parameters
# ----------------------------------------------------------------------------
CONV_CFG = [  # (out_channels, kernel, pool) -- mirrors ConvNetSimple.__init__
    (128, 5, 2),
    (128, 3, 2),
    (256, 3, 2),
    (128, 1, 1),
    (256, 3, 2),
    (256, 3, 1),
]


def init_params(key, input_dim, num_classes):
    """PyTorch-layout parameters: conv weights OIHW, linear weights (in, out)."""
    C0, H0, W0 = input_dim
    params = {"conv": []}
    cin, h, w = C0, H0, W0
    for (cout, k, pool) in CONV_CFG:
        key, sub = jax.random.split(key)
        fan_in = cin * k * k
        wgt = jax.random.normal(sub, (cout, cin, k, k), jnp.float32) / np.sqrt(fan_in)
        bias = jnp.zeros((cout,), jnp.float32)
        params["conv"].append((wgt, bias))
        h = (h - k + 1) // pool
        w = (w - k + 1) // pool
        cin = cout
    feat = cin * h * w
    key, k1, k2 = jax.random.split(key, 3)
    params["w1"] = jax.random.normal(k1, (feat, 128), jnp.float32) / np.sqrt(feat)
    params["b1"] = jnp.zeros((128,), jnp.float32)
    params["w2"] = jax.random.normal(k2, (128, num_classes), jnp.float32) / np.sqrt(128)
    params["b2"] = jnp.zeros((num_classes,), jnp.float32)
    return params


def prepare_params(params):
    """One-time (outside jit): flatten conv weights to im2col order (kh, kw, cin),
    zero-pad K to a multiple of 128, cast matmul operands to bf16."""
    conv = []
    for (w, b), (cout, k, _) in zip(params["conv"], CONV_CFG):
        cin = w.shape[1]
        w_flat = jnp.transpose(w, (2, 3, 1, 0)).reshape(k * k * cin, cout)
        Kp = _round_up(k * k * cin, 128)
        if Kp != w_flat.shape[0]:
            w_flat = jnp.pad(w_flat, ((0, Kp - w_flat.shape[0]), (0, 0)))
        conv.append((w_flat.astype(jnp.bfloat16), b.astype(jnp.float32)))
    return {
        "conv": conv,
        "w1": params["w1"].astype(jnp.bfloat16),
        "b1": params["b1"].astype(jnp.float32),
        "w2": params["w2"].astype(jnp.bfloat16),
        "b2": params["b2"].astype(jnp.float32),
    }


# ----------------------------------------------------------------------------
# Forward pass (jitted)
# ----------------------------------------------------------------------------
@jax.jit
def convnet_forward(x_nchw, kparams):
    x = jnp.transpose(x_nchw, (0, 2, 3, 1)).astype(jnp.bfloat16)   # NCHW -> NHWC, bf16
    for (w_flat, b), (cout, k, pool) in zip(kparams["conv"], CONV_CFG):
        x = conv_block(x, w_flat, b, k, cout, pool)
    # PyTorch x.view(N, -1) flattens NCHW (channel-major) -> transpose back first.
    feat = jnp.transpose(x, (0, 3, 1, 2)).reshape(x.shape[0], -1)
    return head(feat, kparams["w1"], kparams["b1"], kparams["w2"], kparams["b2"])


# ----------------------------------------------------------------------------
if __name__ == "__main__":
    num_classes = 10
    input_dim = (3, 80, 80)   # smallest spatial size that survives the conv/pool stack
    batch = 2

    key = jax.random.PRNGKey(0)
    key, kx = jax.random.split(key)
    x = jax.random.normal(kx, (batch,) + input_dim, jnp.float32)

    params = init_params(key, input_dim, num_classes)
    kparams = prepare_params(params)

    probs = convnet_forward(x, kparams)
    probs = jax.block_until_ready(probs)

    assert probs.shape == (batch, num_classes)
    row_sums = np.asarray(jnp.sum(probs, axis=1))
    assert np.allclose(row_sums, 1.0, atol=1e-4), row_sums
    assert np.all(np.isfinite(np.asarray(probs)))

    print("KERNEL_OK")
</pallas_src>

<mosaic_0001>
module attributes {stable_mosaic.version = 11 : i64} {
  func.func @_gemm_bias_act_kernel(%arg0: i32, %arg1: memref<512x128xbf16, #tpu.memory_space<vmem>>, %arg2: memref<128x128xbf16, #tpu.memory_space<vmem>>, %arg3: memref<1x128xf32, #tpu.memory_space<vmem>>, %arg4: memref<512x128xbf16, #tpu.memory_space<vmem>>) attributes {dimension_semantics = [#tpu.dimension_semantics<parallel>], iteration_bounds = array<i64: 23>, scalar_prefetch = 0 : i64, scratch_operands = 0 : i64, tpu.core_type = #tpu.core_type<tc>, window_params = [{transform_indices = @transform_0, window_bounds = array<i64: 512, 128>}, {pipeline_mode = #tpu.pipeline_mode<synchronous>, transform_indices = @transform_1, window_bounds = array<i64: 128, 128>}, {pipeline_mode = #tpu.pipeline_mode<synchronous>, transform_indices = @transform_2, window_bounds = array<i64: 1, 128>}, {transform_indices = @transform_3, window_bounds = array<i64: 512, 128>}]} {
    %c0 = arith.constant 0 : index
    %c0_0 = arith.constant 0 : index
    %0 = vector.load %arg1[%c0, %c0_0] : memref<512x128xbf16, #tpu.memory_space<vmem>>, vector<512x128xbf16>
    %c0_1 = arith.constant 0 : index
    %c0_2 = arith.constant 0 : index
    %1 = vector.load %arg2[%c0_1, %c0_2] : memref<128x128xbf16, #tpu.memory_space<vmem>>, vector<128x128xbf16>
    %cst = arith.constant dense<0.000000e+00> : vector<512x128xf32>
    %2 = tpu.matmul %0, %1, %cst {dimension_numbers = #tpu.dot_dimension_numbers<[1], [0], [0], [1], [0, 0, 1, 1], [], []>} : vector<512x128xbf16>, vector<128x128xbf16>, vector<512x128xf32> -> vector<512x128xf32>
    %c0_3 = arith.constant 0 : index
    %c0_4 = arith.constant 0 : index
    %3 = vector.load %arg3[%c0_3, %c0_4] : memref<1x128xf32, #tpu.memory_space<vmem>>, vector<1x128xf32>
    %4 = vector.broadcast %3 : vector<1x128xf32> to vector<512x128xf32>
    %5 = arith.addf %2, %4 : vector<512x128xf32>
    %cst_5 = arith.constant 0.000000e+00 : f32
    %6 = vector.broadcast %cst_5 : f32 to vector<512x128xf32>
    %7 = arith.maximumf %5, %6 : vector<512x128xf32>
    %8 = arith.truncf %7 : vector<512x128xf32> to vector<512x128xbf16>
    %c0_6 = arith.constant 0 : index
    %c0_7 = arith.constant 0 : index
    %9 = vector.load %arg4[%c0_6, %c0_7] : memref<512x128xbf16, #tpu.memory_space<vmem>>, vector<512x128xbf16>
    tpu.vector_store %arg4[%c0_6, %c0_7], %8 {strides = array<i32>} : memref<512x128xbf16, #tpu.memory_space<vmem>>, vector<512x128xbf16>,
    return
  }
  func.func @transform_0(%arg0: i32) -> (i32, i32) {
    %c0_i32 = arith.constant 0 : i32
    %c0_i32_0 = arith.constant 0 : i32
    return %arg0, %c0_i32 : i32, i32
  }
  func.func @transform_1(%arg0: i32) -> (i32, i32) {
    %c0_i32 = arith.constant 0 : i32
    %c0_i32_0 = arith.constant 0 : i32
    %c0_i32_1 = arith.constant 0 : i32
    return %c0_i32, %c0_i32_0 : i32, i32
  }
  func.func @transform_2(%arg0: i32) -> (i32, i32) {
    %c0_i32 = arith.constant 0 : i32
    %c0_i32_0 = arith.constant 0 : i32
    %c0_i32_1 = arith.constant 0 : i32
    return %c0_i32, %c0_i32_0 : i32, i32
  }
  func.func @transform_3(%arg0: i32) -> (i32, i32) {
    %c0_i32 = arith.constant 0 : i32
    %c0_i32_0 = arith.constant 0 : i32
    return %arg0, %c0_i32 : i32, i32
  }
}

module attributes {stable_mosaic.version = 11 : i64} {
  func.func @_gemm_bias_act_kernel(%arg0: i32, %arg1: memref<512x1152xbf16, #tpu.memory_space<vmem>>, %arg2: memref<1152x128xbf16, #tpu.memory_space<vmem>>, %arg3: memref<1x128xf32, #tpu.memory_space<vmem>>, %arg4: memref<512x128xbf16, #tpu.memory_space<vmem>>) attributes {dimension_semantics = [#tpu.dimension_semantics<parallel>], iteration_bounds = array<i64: 6>, scalar_prefetch = 0 : i64, scratch_operands = 0 : i64, tpu.core_type = #tpu.core_type<tc>, window_params = [{transform_indices = @transform_0, window_bounds = array<i64: 512, 1152>}, {pipeline_mode = #tpu.pipeline_mode<synchronous>, transform_indices = @transform_1, window_bounds = array<i64: 1152, 128>}, {pipeline_mode = #tpu.pipeline_mode<synchronous>, transform_indices = @transform_2, window_bounds = array<i64: 1, 128>}, {transform_indices = @transform_3, window_bounds = array<i64: 512, 128>}]} {
    %c0 = arith.constant 0 : index
    %c0_0 = arith.constant 0 : index
    %0 = vector.load %arg1[%c0, %c0_0] : memref<512x1152xbf16, #tpu.memory_space<vmem>>, vector<512x1152xbf16>
    %c0_1 = arith.constant 0 : index
    %c0_2 = arith.constant 0 : index
    %1 = vector.load %arg2[%c0_1, %c0_2] : memref<1152x128xbf16, #tpu.memory_space<vmem>>, vector<1152x128xbf16>
    %cst = arith.constant dense<0.000000e+00> : vector<512x128xf32>
    %2 = tpu.matmul %0, %1, %cst {dimension_numbers = #tpu.dot_dimension_numbers<[1], [0], [0], [1], [0, 0, 1, 1], [], []>} : vector<512x1152xbf16>, vector<1152x128xbf16>, vector<512x128xf32> -> vector<512x128xf32>
    %c0_3 = arith.constant 0 : index
    %c0_4 = arith.constant 0 : index
    %3 = vector.load %arg3[%c0_3, %c0_4] : memref<1x128xf32, #tpu.memory_space<vmem>>, vector<1x128xf32>
    %4 = vector.broadcast %3 : vector<1x128xf32> to vector<512x128xf32>
    %5 = arith.addf %2, %4 : vector<512x128xf32>
    %cst_5 = arith.constant 0.000000e+00 : f32
    %6 = vector.broadcast %cst_5 : f32 to vector<512x128xf32>
    %7 = arith.maximumf %5, %6 : vector<512x128xf32>
    %8 = arith.truncf %7 : vector<512x128xf32> to vector<512x128xbf16>
    %c0_6 = arith.constant 0 : index
    %c0_7 = arith.constant 0 : index
    %9 = vector.load %arg4[%c0_6, %c0_7] : memref<512x128xbf16, #tpu.memory_space<vmem>>, vector<512x128xbf16>
    tpu.vector_store %arg4[%c0_6, %c0_7], %8 {strides = array<i32>} : memref<512x128xbf16, #tpu.memory_space<vmem>>, vector<512x128xbf16>,
    return
  }
  func.func @transform_0(%arg0: i32) -> (i32, i32) {
    %c0_i32 = arith.constant 0 : i32
    %c0_i32_0 = arith.constant 0 : i32
    return %arg0, %c0_i32 : i32, i32
  }
  func.func @transform_1(%arg0: i32) -> (i32, i32) {
    %c0_i32 = arith.constant 0 : i32
    %c0_i32_0 = arith.constant 0 : i32
    %c0_i32_1 = arith.constant 0 : i32
    return %c0_i32, %c0_i32_0 : i32, i32
  }
  func.func @transform_2(%arg0: i32) -> (i32, i32) {
    %c0_i32 = arith.constant 0 : i32
    %c0_i32_0 = arith.constant 0 : i32
    %c0_i32_1 = arith.constant 0 : i32
    return %c0_i32, %c0_i32_0 : i32, i32
  }
  func.func @transform_3(%arg0: i32) -> (i32, i32) {
    %c0_i32 = arith.constant 0 : i32
    %c0_i32_0 = arith.constant 0 : i32
    return %arg0, %c0_i32 : i32, i32
  }
}

module attributes {stable_mosaic.version = 11 : i64} {
  func.func @_gemm_bias_act_kernel(%arg0: i32, %arg1: memref<256x1152xbf16, #tpu.memory_space<vmem>>, %arg2: memref<1152x256xbf16, #tpu.memory_space<vmem>>, %arg3: memref<1x256xf32, #tpu.memory_space<vmem>>, %arg4: memref<256x256xbf16, #tpu.memory_space<vmem>>) attributes {dimension_semantics = [#tpu.dimension_semantics<parallel>], iteration_bounds = array<i64: 2>, scalar_prefetch = 0 : i64, scratch_operands = 0 : i64, tpu.core_type = #tpu.core_type<tc>, window_params = [{transform_indices = @transform_0, window_bounds = array<i64: 256, 1152>}, {pipeline_mode = #tpu.pipeline_mode<synchronous>, transform_indices = @transform_1, window_bounds = array<i64: 1152, 256>}, {pipeline_mode = #tpu.pipeline_mode<synchronous>, transform_indices = @transform_2, window_bounds = array<i64: 1, 256>}, {transform_indices = @transform_3, window_bounds = array<i64: 256, 256>}]} {
    %c0 = arith.constant 0 : index
    %c0_0 = arith.constant 0 : index
    %0 = vector.load %arg1[%c0, %c0_0] : memref<256x1152xbf16, #tpu.memory_space<vmem>>, vector<256x1152xbf16>
    %c0_1 = arith.constant 0 : index
    %c0_2 = arith.constant 0 : index
    %1 = vector.load %arg2[%c0_1, %c0_2] : memref<1152x256xbf16, #tpu.memory_space<vmem>>, vector<1152x256xbf16>
    %cst = arith.constant dense<0.000000e+00> : vector<256x256xf32>
    %2 = tpu.matmul %0, %1, %cst {dimension_numbers = #tpu.dot_dimension_numbers<[1], [0], [0], [1], [0, 0, 1, 1], [], []>} : vector<256x1152xbf16>, vector<1152x256xbf16>, vector<256x256xf32> -> vector<256x256xf32>
    %c0_3 = arith.constant 0 : index
    %c0_4 = arith.constant 0 : index
    %3 = vector.load %arg3[%c0_3, %c0_4] : memref<1x256xf32, #tpu.memory_space<vmem>>, vector<1x256xf32>
    %4 = vector.broadcast %3 : vector<1x256xf32> to vector<256x256xf32>
    %5 = arith.addf %2, %4 : vector<256x256xf32>
    %cst_5 = arith.constant 0.000000e+00 : f32
    %6 = vector.broadcast %cst_5 : f32 to vector<256x256xf32>
    %7 = arith.maximumf %5, %6 : vector<256x256xf32>
    %8 = arith.truncf %7 : vector<256x256xf32> to vector<256x256xbf16>
    %c0_6 = arith.constant 0 : index
    %c0_7 = arith.constant 0 : index
    %9 = vector.load %arg4[%c0_6, %c0_7] : memref<256x256xbf16, #tpu.memory_space<vmem>>, vector<256x256xbf16>
    tpu.vector_store %arg4[%c0_6, %c0_7], %8 {strides = array<i32>} : memref<256x256xbf16, #tpu.memory_space<vmem>>, vector<256x256xbf16>,
    return
  }
  func.func @transform_0(%arg0: i32) -> (i32, i32) {
    %c0_i32 = arith.constant 0 : i32
    %c0_i32_0 = arith.constant 0 : i32
    return %arg0, %c0_i32 : i32, i32
  }
  func.func @transform_1(%arg0: i32) -> (i32, i32) {
    %c0_i32 = arith.constant 0 : i32
    %c0_i32_0 = arith.constant 0 : i32
    %c0_i32_1 = arith.constant 0 : i32
    return %c0_i32, %c0_i32_0 : i32, i32
  }
  func.func @transform_2(%arg0: i32) -> (i32, i32) {
    %c0_i32 = arith.constant 0 : i32
    %c0_i32_0 = arith.constant 0 : i32
    %c0_i32_1 = arith.constant 0 : i32
    return %c0_i32, %c0_i32_0 : i32, i32
  }
  func.func @transform_3(%arg0: i32) -> (i32, i32) {
    %c0_i32 = arith.constant 0 : i32
    %c0_i32_0 = arith.constant 0 : i32
    return %arg0, %c0_i32 : i32, i32
  }
}

module attributes {stable_mosaic.version = 11 : i64} {
  func.func @_gemm_bias_act_kernel(%arg0: i32, %arg1: memref<64x256xbf16, #tpu.memory_space<vmem>>, %arg2: memref<256x128xbf16, #tpu.memory_space<vmem>>, %arg3: memref<1x128xf32, #tpu.memory_space<vmem>>, %arg4: memref<64x128xbf16, #tpu.memory_space<vmem>>) attributes {dimension_semantics = [#tpu.dimension_semantics<parallel>], iteration_bounds = array<i64: 2>, scalar_prefetch = 0 : i64, scratch_operands = 0 : i64, tpu.core_type = #tpu.core_type<tc>, window_params = [{transform_indices = @transform_0, window_bounds = array<i64: 64, 256>}, {pipeline_mode = #tpu.pipeline_mode<synchronous>, transform_indices = @transform_1, window_bounds = array<i64: 256, 128>}, {pipeline_mode = #tpu.pipeline_mode<synchronous>, transform_indices = @transform_2, window_bounds = array<i64: 1, 128>}, {transform_indices = @transform_3, window_bounds = array<i64: 64, 128>}]} {
    %c0 = arith.constant 0 : index
    %c0_0 = arith.constant 0 : index
    %0 = vector.load %arg1[%c0, %c0_0] : memref<64x256xbf16, #tpu.memory_space<vmem>>, vector<64x256xbf16>
    %c0_1 = arith.constant 0 : index
    %c0_2 = arith.constant 0 : index
    %1 = vector.load %arg2[%c0_1, %c0_2] : memref<256x128xbf16, #tpu.memory_space<vmem>>, vector<256x128xbf16>
    %cst = arith.constant dense<0.000000e+00> : vector<64x128xf32>
    %2 = tpu.matmul %0, %1, %cst {dimension_numbers = #tpu.dot_dimension_numbers<[1], [0], [0], [1], [0, 0, 1, 1], [], []>} : vector<64x256xbf16>, vector<256x128xbf16>, vector<64x128xf32> -> vector<64x128xf32>
    %c0_3 = arith.constant 0 : index
    %c0_4 = arith.constant 0 : index
    %3 = vector.load %arg3[%c0_3, %c0_4] : memref<1x128xf32, #tpu.memory_space<vmem>>, vector<1x128xf32>
    %4 = vector.broadcast %3 : vector<1x128xf32> to vector<64x128xf32>
    %5 = arith.addf %2, %4 : vector<64x128xf32>
    %cst_5 = arith.constant 0.000000e+00 : f32
    %6 = vector.broadcast %cst_5 : f32 to vector<64x128xf32>
    %7 = arith.maximumf %5, %6 : vector<64x128xf32>
    %8 = arith.truncf %7 : vector<64x128xf32> to vector<64x128xbf16>
    %c0_6 = arith.constant 0 : index
    %c0_7 = arith.constant 0 : index
    %9 = vector.load %arg4[%c0_6, %c0_7] : memref<64x128xbf16, #tpu.memory_space<vmem>>, vector<64x128xbf16>
    tpu.vector_store %arg4[%c0_6, %c0_7], %8 {strides = array<i32>} : memref<64x128xbf16, #tpu.memory_space<vmem>>, vector<64x128xbf16>,
    return
  }
  func.func @transform_0(%arg0: i32) -> (i32, i32) {
    %c0_i32 = arith.constant 0 : i32
    %c0_i32_0 = arith.constant 0 : i32
    return %arg0, %c0_i32 : i32, i32
  }
  func.func @transform_1(%arg0: i32) -> (i32, i32) {
    %c0_i32 = arith.constant 0 : i32
    %c0_i32_0 = arith.constant 0 : i32
    %c0_i32_1 = arith.constant 0 : i32
    return %c0_i32, %c0_i32_0 : i32, i32
  }
  func.func @transform_2(%arg0: i32) -> (i32, i32) {
    %c0_i32 = arith.constant 0 : i32
    %c0_i32_0 = arith.constant 0 : i32
    %c0_i32_1 = arith.constant 0 : i32
    return %c0_i32, %c0_i32_0 : i32, i32
  }
  func.func @transform_3(%arg0: i32) -> (i32, i32) {
    %c0_i32 = arith.constant 0 : i32
    %c0_i32_0 = arith.constant 0 : i32
    return %arg0, %c0_i32 : i32, i32
  }
}

module attributes {stable_mosaic.version = 11 : i64} {
  func.func @_gemm_bias_act_kernel(%arg0: i32, %arg1: memref<48x1152xbf16, #tpu.memory_space<vmem>>, %arg2: memref<1152x256xbf16, #tpu.memory_space<vmem>>, %arg3: memref<1x256xf32, #tpu.memory_space<vmem>>, %arg4: memref<48x256xbf16, #tpu.memory_space<vmem>>) attributes {dimension_semantics = [#tpu.dimension_semantics<parallel>], iteration_bounds = array<i64: 2>, scalar_prefetch = 0 : i64, scratch_operands = 0 : i64, tpu.core_type = #tpu.core_type<tc>, window_params = [{transform_indices = @transform_0, window_bounds = array<i64: 48, 1152>}, {pipeline_mode = #tpu.pipeline_mode<synchronous>, transform_indices = @transform_1, window_bounds = array<i64: 1152, 256>}, {pipeline_mode = #tpu.pipeline_mode<synchronous>, transform_indices = @transform_2, window_bounds = array<i64: 1, 256>}, {transform_indices = @transform_3, window_bounds = array<i64: 48, 256>}]} {
    %c0 = arith.constant 0 : index
    %c0_0 = arith.constant 0 : index
    %0 = vector.load %arg1[%c0, %c0_0] : memref<48x1152xbf16, #tpu.memory_space<vmem>>, vector<48x1152xbf16>
    %c0_1 = arith.constant 0 : index
    %c0_2 = arith.constant 0 : index
    %1 = vector.load %arg2[%c0_1, %c0_2] : memref<1152x256xbf16, #tpu.memory_space<vmem>>, vector<1152x256xbf16>
    %cst = arith.constant dense<0.000000e+00> : vector<48x256xf32>
    %2 = tpu.matmul %0, %1, %cst {dimension_numbers = #tpu.dot_dimension_numbers<[1], [0], [0], [1], [0, 0, 1, 1], [], []>} : vector<48x1152xbf16>, vector<1152x256xbf16>, vector<48x256xf32> -> vector<48x256xf32>
    %c0_3 = arith.constant 0 : index
    %c0_4 = arith.constant 0 : index
    %3 = vector.load %arg3[%c0_3, %c0_4] : memref<1x256xf32, #tpu.memory_space<vmem>>, vector<1x256xf32>
    %4 = vector.broadcast %3 : vector<1x256xf32> to vector<48x256xf32>
    %5 = arith.addf %2, %4 : vector<48x256xf32>
    %cst_5 = arith.constant 0.000000e+00 : f32
    %6 = vector.broadcast %cst_5 : f32 to vector<48x256xf32>
    %7 = arith.maximumf %5, %6 : vector<48x256xf32>
    %8 = arith.truncf %7 : vector<48x256xf32> to vector<48x256xbf16>
    %c0_6 = arith.constant 0 : index
    %c0_7 = arith.constant 0 : index
    %9 = vector.load %arg4[%c0_6, %c0_7] : memref<48x256xbf16, #tpu.memory_space<vmem>>, vector<48x256xbf16>
    tpu.vector_store %arg4[%c0_6, %c0_7], %8 {strides = array<i32>} : memref<48x256xbf16, #tpu.memory_space<vmem>>, vector<48x256xbf16>,
    return
  }
  func.func @transform_0(%arg0: i32) -> (i32, i32) {
    %c0_i32 = arith.constant 0 : i32
    %c0_i32_0 = arith.constant 0 : i32
    return %arg0, %c0_i32 : i32, i32
  }
  func.func @transform_1(%arg0: i32) -> (i32, i32) {
    %c0_i32 = arith.constant 0 : i32
    %c0_i32_0 = arith.constant 0 : i32
    %c0_i32_1 = arith.constant 0 : i32
    return %c0_i32, %c0_i32_0 : i32, i32
  }
  func.func @transform_2(%arg0: i32) -> (i32, i32) {
    %c0_i32 = arith.constant 0 : i32
    %c0_i32_0 = arith.constant 0 : i32
    %c0_i32_1 = arith.constant 0 : i32
    return %c0_i32, %c0_i32_0 : i32, i32
  }
  func.func @transform_3(%arg0: i32) -> (i32, i32) {
    %c0_i32 = arith.constant 0 : i32
    %c0_i32_0 = arith.constant 0 : i32
    return %arg0, %c0_i32 : i32, i32
  }
}

module attributes {stable_mosaic.version = 11 : i64} {
  func.func @_gemm_bias_act_kernel(%arg0: i32, %arg1: memref<16x2304xbf16, #tpu.memory_space<vmem>>, %arg2: memref<2304x256xbf16, #tpu.memory_space<vmem>>, %arg3: memref<1x256xf32, #tpu.memory_space<vmem>>, %arg4: memref<16x256xbf16, #tpu.memory_space<vmem>>) attributes {dimension_semantics = [#tpu.dimension_semantics<parallel>], iteration_bounds = array<i64: 1>, scalar_prefetch = 0 : i64, scratch_operands = 0 : i64, tpu.core_type = #tpu.core_type<tc>, window_params = [{transform_indices = @transform_0, window_bounds = array<i64: 16, 2304>}, {pipeline_mode = #tpu.pipeline_mode<synchronous>, transform_indices = @transform_1, window_bounds = array<i64: 2304, 256>}, {pipeline_mode = #tpu.pipeline_mode<synchronous>, transform_indices = @transform_2, window_bounds = array<i64: 1, 256>}, {transform_indices = @transform_3, window_bounds = array<i64: 16, 256>}]} {
    %c0 = arith.constant 0 : index
    %c0_0 = arith.constant 0 : index
    %0 = vector.load %arg1[%c0, %c0_0] : memref<16x2304xbf16, #tpu.memory_space<vmem>>, vector<16x2304xbf16>
    %c0_1 = arith.constant 0 : index
    %c0_2 = arith.constant 0 : index
    %1 = vector.load %arg2[%c0_1, %c0_2] : memref<2304x256xbf16, #tpu.memory_space<vmem>>, vector<2304x256xbf16>
    %cst = arith.constant dense<0.000000e+00> : vector<16x256xf32>
    %2 = tpu.matmul %0, %1, %cst {dimension_numbers = #tpu.dot_dimension_numbers<[1], [0], [0], [1], [0, 0, 1, 1], [], []>} : vector<16x2304xbf16>, vector<2304x256xbf16>, vector<16x256xf32> -> vector<16x256xf32>
    %c0_3 = arith.constant 0 : index
    %c0_4 = arith.constant 0 : index
    %3 = vector.load %arg3[%c0_3, %c0_4] : memref<1x256xf32, #tpu.memory_space<vmem>>, vector<1x256xf32>
    %4 = vector.broadcast %3 : vector<1x256xf32> to vector<16x256xf32>
    %5 = arith.addf %2, %4 : vector<16x256xf32>
    %cst_5 = arith.constant 0.000000e+00 : f32
    %6 = vector.broadcast %cst_5 : f32 to vector<16x256xf32>
    %7 = arith.maximumf %5, %6 : vector<16x256xf32>
    %8 = arith.truncf %7 : vector<16x256xf32> to vector<16x256xbf16>
    %c0_6 = arith.constant 0 : index
    %c0_7 = arith.constant 0 : index
    %9 = vector.load %arg4[%c0_6, %c0_7] : memref<16x256xbf16, #tpu.memory_space<vmem>>, vector<16x256xbf16>
    tpu.vector_store %arg4[%c0_6, %c0_7], %8 {strides = array<i32>} : memref<16x256xbf16, #tpu.memory_space<vmem>>, vector<16x256xbf16>,
    return
  }
  func.func @transform_0(%arg0: i32) -> (i32, i32) {
    %c0_i32 = arith.constant 0 : i32
    %c0_i32_0 = arith.constant 0 : i32
    return %arg0, %c0_i32 : i32, i32
  }
  func.func @transform_1(%arg0: i32) -> (i32, i32) {
    %c0_i32 = arith.constant 0 : i32
    %c0_i32_0 = arith.constant 0 : i32
    %c0_i32_1 = arith.constant 0 : i32
    return %c0_i32, %c0_i32_0 : i32, i32
  }
  func.func @transform_2(%arg0: i32) -> (i32, i32) {
    %c0_i32 = arith.constant 0 : i32
    %c0_i32_0 = arith.constant 0 : i32
    %c0_i32_1 = arith.constant 0 : i32
    return %c0_i32, %c0_i32_0 : i32, i32
  }
  func.func @transform_3(%arg0: i32) -> (i32, i32) {
    %c0_i32 = arith.constant 0 : i32
    %c0_i32_0 = arith.constant 0 : i32
    return %arg0, %c0_i32 : i32, i32
  }
}

module attributes {stable_mosaic.version = 11 : i64} {
  func.func @_head_kernel(%arg0: i32, %arg1: memref<2x256xbf16, #tpu.memory_space<vmem>>, %arg2: memref<256x128xbf16, #tpu.memory_space<vmem>>, %arg3: memref<1x128xf32, #tpu.memory_space<vmem>>, %arg4: memref<128x10xbf16, #tpu.memory_space<vmem>>, %arg5: memref<1x10xf32, #tpu.memory_space<vmem>>, %arg6: memref<2x10xf32, #tpu.memory_space<vmem>>) attributes {dimension_semantics = [#tpu.dimension_semantics<arbitrary>], iteration_bounds = array<i64: 1>, scalar_prefetch = 0 : i64, scratch_operands = 0 : i64, tpu.core_type = #tpu.core_type<tc>, window_params = [{pipeline_mode = #tpu.pipeline_mode<synchronous>, transform_indices = @transform_0, window_bounds = array<i64: 2, 256>}, {pipeline_mode = #tpu.pipeline_mode<synchronous>, transform_indices = @transform_1, window_bounds = array<i64: 256, 128>}, {pipeline_mode = #tpu.pipeline_mode<synchronous>, transform_indices = @transform_2, window_bounds = array<i64: 1, 128>}, {pipeline_mode = #tpu.pipeline_mode<synchronous>, transform_indices = @transform_3, window_bounds = array<i64: 128, 10>}, {pipeline_mode = #tpu.pipeline_mode<synchronous>, transform_indices = @transform_4, window_bounds = array<i64: 1, 10>}, {pipeline_mode = #tpu.pipeline_mode<synchronous>, transform_indices = @transform_5, window_bounds = array<i64: 2, 10>}]} {
    %c0 = arith.constant 0 : index
    %c0_0 = arith.constant 0 : index
    %0 = vector.load %arg1[%c0, %c0_0] : memref<2x256xbf16, #tpu.memory_space<vmem>>, vector<2x256xbf16>
    %c0_1 = arith.constant 0 : index
    %c0_2 = arith.constant 0 : index
    %1 = vector.load %arg2[%c0_1, %c0_2] : memref<256x128xbf16, #tpu.memory_space<vmem>>, vector<256x128xbf16>
    %cst = arith.constant dense<0.000000e+00> : vector<2x128xf32>
    %2 = tpu.matmul %0, %1, %cst {dimension_numbers = #tpu.dot_dimension_numbers<[1], [0], [0], [1], [0, 0, 1, 1], [], []>} : vector<2x256xbf16>, vector<256x128xbf16>, vector<2x128xf32> -> vector<2x128xf32>
    %c0_3 = arith.constant 0 : index
    %c0_4 = arith.constant 0 : index
    %3 = vector.load %arg3[%c0_3, %c0_4] : memref<1x128xf32, #tpu.memory_space<vmem>>, vector<1x128xf32>
    %4 = vector.broadcast %3 : vector<1x128xf32> to vector<2x128xf32>
    %5 = arith.addf %2, %4 : vector<2x128xf32>
    %cst_5 = arith.constant 0.000000e+00 : f32
    %6 = vector.broadcast %cst_5 : f32 to vector<2x128xf32>
    %7 = arith.maximumf %5, %6 : vector<2x128xf32>
    %8 = arith.truncf %7 : vector<2x128xf32> to vector<2x128xbf16>
    %c0_6 = arith.constant 0 : index
    %c0_7 = arith.constant 0 : index
    %9 = vector.load %arg4[%c0_6, %c0_7] : memref<128x10xbf16, #tpu.memory_space<vmem>>, vector<128x10xbf16>
    %cst_8 = arith.constant dense<0.000000e+00> : vector<2x10xf32>
    %10 = tpu.matmul %8, %9, %cst_8 {dimension_numbers = #tpu.dot_dimension_numbers<[1], [0], [0], [1], [0, 0, 1, 1], [], []>} : vector<2x128xbf16>, vector<128x10xbf16>, vector<2x10xf32> -> vector<2x10xf32>
    %c0_9 = arith.constant 0 : index
    %c0_10 = arith.constant 0 : index
    %11 = vector.load %arg5[%c0_9, %c0_10] : memref<1x10xf32, #tpu.memory_space<vmem>>, vector<1x10xf32>
    %12 = vector.broadcast %11 : vector<1x10xf32> to vector<2x10xf32>
    %13 = arith.addf %10, %12 : vector<2x10xf32>
    %cst_11 = arith.constant dense<0xFF800000> : vector<2xf32>
    %14 = vector.multi_reduction <maximumf>, %13, %cst_11 [1] : vector<2x10xf32> to vector<2xf32>
    %15 = vector.shape_cast %14 : vector<2xf32> to vector<2x1xf32>
    %16 = vector.broadcast %15 : vector<2x1xf32> to vector<2x10xf32>
    %17 = arith.subf %13, %16 : vector<2x10xf32>
    %18 = math.exp %17 : vector<2x10xf32>
    %cst_12 = arith.constant dense<0.000000e+00> : vector<2xf32>
    %19 = vector.multi_reduction <add>, %18, %cst_12 [1] : vector<2x10xf32> to vector<2xf32>
    %20 = vector.shape_cast %19 : vector<2xf32> to vector<2x1xf32>
    %21 = vector.broadcast %20 : vector<2x1xf32> to vector<2x10xf32>
    %22 = arith.divf %18, %21 : vector<2x10xf32>
    %c0_13 = arith.constant 0 : index
    %c0_14 = arith.constant 0 : index
    %23 = vector.load %arg6[%c0_13, %c0_14] : memref<2x10xf32, #tpu.memory_space<vmem>>, vector<2x10xf32>
    tpu.vector_store %arg6[%c0_13, %c0_14], %22 {strides = array<i32>} : memref<2x10xf32, #tpu.memory_space<vmem>>, vector<2x10xf32>,
    return
  }
  func.func @transform_0(%arg0: i32) -> (i32, i32) {
    %c0_i32 = arith.constant 0 : i32
    %c0_i32_0 = arith.constant 0 : i32
    %c0_i32_1 = arith.constant 0 : i32
    return %c0_i32, %c0_i32_0 : i32, i32
  }
  func.func @transform_1(%arg0: i32) -> (i32, i32) {
    %c0_i32 = arith.constant 0 : i32
    %c0_i32_0 = arith.constant 0 : i32
    %c0_i32_1 = arith.constant 0 : i32
    return %c0_i32, %c0_i32_0 : i32, i32
  }
  func.func @transform_2(%arg0: i32) -> (i32, i32) {
    %c0_i32 = arith.constant 0 : i32
    %c0_i32_0 = arith.constant 0 : i32
    %c0_i32_1 = arith.constant 0 : i32
    return %c0_i32, %c0_i32_0 : i32, i32
  }
  func.func @transform_3(%arg0: i32) -> (i32, i32) {
    %c0_i32 = arith.constant 0 : i32
    %c0_i32_0 = arith.constant 0 : i32
    %c0_i32_1 = arith.constant 0 : i32
    return %c0_i32, %c0_i32_0 : i32, i32
  }
  func.func @transform_4(%arg0: i32) -> (i32, i32) {
    %c0_i32 = arith.constant 0 : i32
    %c0_i32_0 = arith.constant 0 : i32
    %c0_i32_1 = arith.constant 0 : i32
    return %c0_i32, %c0_i32_0 : i32, i32
  }
  func.func @transform_5(%arg0: i32) -> (i32, i32) {
    %c0_i32 = arith.constant 0 : i32
    %c0_i32_0 = arith.constant 0 : i32
    %c0_i32_1 = arith.constant 0 : i32
    return %c0_i32, %c0_i32_0 : i32, i32
  }
}

</mosaic_0001>

<bundles_post_ra>
// kernel: convnet_forward.7
= control target key start
LH: loop header
LB: loop body
LE: loop exit
PB: predicated region body
PF: predicated region fallthrough
CT: control target
= control target key end

     0   :  { %s2418_s12 = smov 0   ;;  %s2420_s13 = smov 0   ;;  %s2816_s0 = inlined_call_operand.vmem [shape: bf16[11552,128], index: 0, kind: input, shape index: {}]   ;;  %s2817_s1 = inlined_call_operand.vmem [shape: bf16[128,128], index: 1, kind: input, shape index: {}]   ;;  %s2818_s2 = inlined_call_operand.vmem [shape: f32[1,128], index: 2, kind: input, shape index: {}]   ;;  %s2819_s3 = inlined_call_operand.vmem [shape: bf16[11552,128], index: 3, kind: output, shape index: {}]  }
   0x1   :  { %s2422_s14 = smov 0  }
   0x2 LB: > { %s2431_s15 = sadd.s32 4294967295, %s2364_s14   ;;  %s2433_s16 = sadd.s32 1, %s2364_s14   ;;  %s2364_s14 = sphi %s2422_s14, %s2826_s14   ;;  %s2360_s13 = sphi %s2420_s13, %s2825_s13   ;;  %s2356_s12 = sphi %s2418_s12, %s2824_s12  }
   0x3   : > { %s85_s17 = ssub.s32 %s2364_s14, %s2433_s16  ;;  %s88_s18 = sadd.s32 1, %s2360_s13 }
   0x4   : > { %p86_p0 = scmp.eq.s32.totalorder %s85_s17, 0  ;;  %p98_p1 = scmp.ne.s32.totalorder %s2360_s13, %s2356_s12 }
   0x5   : > { %p99_p2 = scmp.eq.s32.totalorder %s2431_s15, 22  ;;  %p1662_p3 = scmp.ge.s32.totalorder %s2364_s14, 1 }
   0x6   : > { %s2441_s19 = scalar_select %p86_p0, %s2360_s13, %s88_s18  }
   0x7   : > { %p2443_p4 = por %p99_p2, %p98_p1  ;;  %p146_p5 = scmp.lt.s32.totalorder %s2364_s14, 24 }
   0x9   : > { %p147_p6 = pnand %p1662_p3, %p146_p5 }
   0xa   : > { %v2270_v0 = vld [vmem:[%s2817_s1] sm:$0xff] (!%p147_p6)   ;;  %s2451_s23 = sshll.u32 (!%p147_p6), %s2431_s15, 6  ;;  %v2271_v1 = vld [vmem:[%s2817_s1 + $0x8] sm:$0xff] (!%p147_p6)   ;;  %v2272_v2 = vld [vmem:[%s2817_s1 + $0x10] sm:$0xff] (!%p147_p6)   ;;  %s170_s25 = sand.u32 (!%p147_p6), 1, %s2356_s12  }
   0xb   : > { %150 = sbr.rel (%p147_p6) target bundleno = 413 (0x19d), region = 32  ;;  %p178_p7 = scmp.lt.s32.totalorder (!%p147_p6), %s2451_s23, 1443  ;;  %2086 = vmatprep.subr.bf16.mxu0 (!%p147_p6), %v2270_v0  ;;  %2166 = vmatprep.subr.bf16.mxu1 (!%p147_p6), %v2270_v0  ;;  %v2273_v3 = vld [vmem:[%s2817_s1 + $0x18] sm:$0xff] (!%p147_p6)   ;;  %v2274_v6 = vld [vmem:[%s2817_s1 + $0x20] sm:$0xff] (!%p147_p6)   ;;  %v2275_v7 = vld [vmem:[%s2817_s1 + $0x28] sm:$0xff] (!%p147_p6)  }
   0xc   : > { %2087 = vmatpush3.bf16.msra.mxu0 (!%p147_p6), %v2270_v0  ;;  %2174 = vmatpush3.bf16.msra.mxu1 (!%p147_p6), %v2270_v0  ;;  %v2276_v8 = vld [vmem:[%s2817_s1 + $0x30] sm:$0xff] (!%p147_p6)   ;;  %v2277_v9 = vld [vmem:[%s2817_s1 + $0x38] sm:$0xff] (!%p147_p6)   ;;  %v2516_v40 = vld [vmem:[%s2818_s2] ss:$0 sm:$0xff] (!%p147_p6) }
   0xd   : > { %2088 = vmatprep.subr.bf16.mxu0 (!%p147_p6), %v2271_v1  ;;  %2167 = vmatprep.subr.bf16.mxu1 (!%p147_p6), %v2271_v1 }
  0x10   : > { %2089 = vmatpush3.bf16.msra.mxu0 (!%p147_p6), %v2271_v1  ;;  %2175 = vmatpush3.bf16.msra.mxu1 (!%p147_p6), %v2271_v1 }
  0x11   : > { %2090 = vmatprep.subr.bf16.mxu0 (!%p147_p6), %v2272_v2  ;;  %2168 = vmatprep.subr.bf16.mxu1 (!%p147_p6), %v2272_v2 }
  0x12   : > { %s179_s26 = scalar_select %p178_p7, %s2451_s23, 1443 }
  0x13   : > { %s1201_s27 = ssub.s32 (%p2443_p4), 1444, %s2451_s23  ;;  %s1852_s28 = sshll.u32 (%p2443_p4), %s2431_s15, 8 }
  0x14   : > { %s1665_s29 = sshll.u32 %s179_s26, 2  ;;  %2091 = vmatpush3.bf16.msra.mxu0 %v2272_v2  ;;  %2176 = vmatpush3.bf16.msra.mxu1 %v2272_v2  ;;  %s1663_s26 = sshll.u32 %s170_s25, 8 }
  0x15   : > { %s2464_s5 = scalar_lea.vmem %s2816_s0, %s1665_s29  ;;  %2092 = vmatprep.subr.bf16.mxu0 %v2273_v3  ;;  %2169 = vmatprep.subr.bf16.mxu1 %v2273_v3  ;;  %s2527_s12 = scalar_lea.vmem [#allocation2], %s1663_s26  }
  0x16   : > { %v2278_v4 = vld [vmem:[%s2464_s5] sm:$0xff]   ;;  %v2280_v10 = vld [vmem:[%s2464_s5 + $0x8] sm:$0xff]   ;;  %v2282_v12 = vld [vmem:[%s2464_s5 + $0x10] sm:$0xff]   ;;  %p1202_p8 = scmp.lt.s32.totalorder (%p2443_p4), %s1201_s27, 64  ;;  %s2624_s4 = scalar_lea.vmem (%p2443_p4), %s2819_s3, %s1852_s28  }
  0x17   : > { %v2279_v5 = vld [vmem:[%s2464_s5 + $0x80] sm:$0xff]   ;;  %2102 = vmatprep.mubr.bf16.mxu0 %v2278_v4  ;;  %v2281_v11 = vld [vmem:[%s2464_s5 + $0x88] sm:$0xff]   ;;  %v2283_v13 = vld [vmem:[%s2464_s5 + $0x90] sm:$0xff]  }
  0x18   : > { %2134 = vmatprep.mubr.bf16.mxu1 %v2279_v5  ;;  %2093 = vmatpush3.bf16.msra.mxu0 %v2273_v3  ;;  %v2284_v14 = vld [vmem:[%s2464_s5 + $0x18] sm:$0xff]   ;;  %v2286_v16 = vld [vmem:[%s2464_s5 + $0x20] sm:$0xff]   ;;  %v2288_v18 = vld [vmem:[%s2464_s5 + $0x28] sm:$0xff]  }
  0x19   : > { %2177 = vmatpush3.bf16.msra.mxu1 %v2273_v3  ;;  %2094 = vmatprep.subr.bf16.mxu0 %v2274_v6  ;;  %v2285_v15 = vld [vmem:[%s2464_s5 + $0x98] sm:$0xff]   ;;  %v2287_v17 = vld [vmem:[%s2464_s5 + $0xa0] sm:$0xff]   ;;  %v2289_v19 = vld [vmem:[%s2464_s5 + $0xa8] sm:$0xff]  }
  0x1a   : > { %2170 = vmatprep.subr.bf16.mxu1 %v2274_v6  ;;  %v2290_v20 = vld [vmem:[%s2464_s5 + $0x30] sm:$0xff]   ;;  %v2292_v22 = vld [vmem:[%s2464_s5 + $0x38] sm:$0xff]   ;;  %v2294_v24 = vld [vmem:[%s2464_s5 + $0x40] sm:$0xff]  }
  0x1b   : > { %v2291_v21 = vld [vmem:[%s2464_s5 + $0xb0] sm:$0xff]   ;;  %v2293_v23 = vld [vmem:[%s2464_s5 + $0xb8] sm:$0xff]   ;;  %v2295_v25 = vld [vmem:[%s2464_s5 + $0xc0] sm:$0xff]  }
  0x1c   : > { %2095 = vmatpush3.bf16.msra.mxu0 %v2274_v6  ;;  %v2296_v26 = vld [vmem:[%s2464_s5 + $0x48] sm:$0xff]   ;;  %v2298_v28 = vld [vmem:[%s2464_s5 + $0x50] sm:$0xff]   ;;  %v2300_v30 = vld [vmem:[%s2464_s5 + $0x58] sm:$0xff]  }
  0x1d   : > { %2178 = vmatpush3.bf16.msra.mxu1 %v2274_v6  ;;  %2096 = vmatprep.subr.bf16.mxu0 %v2275_v7  ;;  %v2297_v27 = vld [vmem:[%s2464_s5 + $0xc8] sm:$0xff]   ;;  %v2299_v29 = vld [vmem:[%s2464_s5 + $0xd0] sm:$0xff]   ;;  %v2301_v31 = vld [vmem:[%s2464_s5 + $0xd8] sm:$0xff]  }
  0x1e   : > { %2171 = vmatprep.subr.bf16.mxu1 %v2275_v7  ;;  %v2302_v32 = vld [vmem:[%s2464_s5 + $0x60] sm:$0xff]   ;;  %v2304_v34 = vld [vmem:[%s2464_s5 + $0x68] sm:$0xff]   ;;  %v2306_v36 = vld [vmem:[%s2464_s5 + $0x70] sm:$0xff]  }
  0x1f   : > { %v2303_v33 = vld [vmem:[%s2464_s5 + $0xe0] sm:$0xff]   ;;  %v2305_v35 = vld [vmem:[%s2464_s5 + $0xe8] sm:$0xff]   ;;  %v2307_v37 = vld [vmem:[%s2464_s5 + $0xf0] sm:$0xff]  }
  0x20   : > { %2097 = vmatpush3.bf16.msra.mxu0 %v2275_v7  ;;  %v2308_v38 = vld [vmem:[%s2464_s5 + $0x78] sm:$0xff]  }
  0x21   : > { %2179 = vmatpush3.bf16.msra.mxu1 %v2275_v7  ;;  %2098 = vmatprep.subr.bf16.mxu0 %v2276_v8  ;;  %v2309_v39 = vld [vmem:[%s2464_s5 + $0xf8] sm:$0xff]  }
  0x22   : > { %2172 = vmatprep.subr.bf16.mxu1 %v2276_v8 }
  0x24   : > { %2099 = vmatpush3.bf16.msra.mxu0 %v2276_v8 }
  0x25   : > { %2180 = vmatpush3.bf16.msra.mxu1 %v2276_v8  ;;  %2100 = vmatprep.subr.bf16.mxu0 %v2277_v9 }
  0x26   : > { %2173 = vmatprep.subr.bf16.mxu1 %v2277_v9 }
  0x28   : > { %2101 = vmatpush3.bf16.msra.mxu0 %v2277_v9 }
  0x29   : > { %2181 = vmatpush3.bf16.msra.mxu1 %v2277_v9 }
  0x2b   : > { %2103 = vmatmul.mubr.bf16.vlgmr.msra.gmra.mrb[0].mxu0 %v2280_v10 }
  0x2c   : > { %2135 = vmatmul.mubr.bf16.vlgmr.msra.gmra.mrb[0].mxu1 %v2281_v11  ;;  %2106 = vmatprep.mubr.bf16.mxu0 %v2282_v12 }
  0x2d   : > { %2138 = vmatprep.mubr.bf16.mxu1 %v2283_v13 }
  0x33   : > { %2107 = vmatmul.mubr.bf16.gmra.mrb[4].mxu0 %v2284_v14 }
  0x34   : > { %2139 = vmatmul.mubr.bf16.gmra.mrb[4].mxu1 %v2285_v15  ;;  %2110 = vmatprep.mubr.bf16.mxu0 %v2286_v16 }
  0x35   : > { %2142 = vmatprep.mubr.bf16.mxu1 %v2287_v17 }
  0x3b   : > { %2111 = vmatmul.mubr.bf16.gmra.mrb[8].mxu0 %v2288_v18 }
  0x3c   : > { %2143 = vmatmul.mubr.bf16.gmra.mrb[8].mxu1 %v2289_v19  ;;  %2114 = vmatprep.mubr.bf16.mxu0 %v2290_v20 }
  0x3d   : > { %2146 = vmatprep.mubr.bf16.mxu1 %v2291_v21 }
  0x43   : > { %2115 = vmatmul.mubr.bf16.gmra.mrb[12].mxu0 %v2292_v22 }
  0x44   : > { %2147 = vmatmul.mubr.bf16.gmra.mrb[12].mxu1 %v2293_v23  ;;  %2118 = vmatprep.mubr.bf16.mxu0 %v2294_v24 }
  0x45   : > { %2150 = vmatprep.mubr.bf16.mxu1 %v2295_v25 }
  0x4b   : > { %2119 = vmatmul.mubr.bf16.gmra.mrb[16].mxu0 %v2296_v26 }
  0x4c   : > { %2151 = vmatmul.mubr.bf16.gmra.mrb[16].mxu1 %v2297_v27  ;;  %2122 = vmatprep.mubr.bf16.mxu0 %v2298_v28 }
  0x4d   : > { %2154 = vmatprep.mubr.bf16.mxu1 %v2299_v29 }
  0x53   : > { %2123 = vmatmul.mubr.bf16.gmra.mrb[20].mxu0 %v2300_v30 }
  0x54   : > { %2155 = vmatmul.mubr.bf16.gmra.mrb[20].mxu1 %v2301_v31  ;;  %2126 = vmatprep.mubr.bf16.mxu0 %v2302_v32 }
  0x55   : > { %2158 = vmatprep.mubr.bf16.mxu1 %v2303_v33 }
  0x5b   : > { %2127 = vmatmul.mubr.bf16.gmra.mrb[24].mxu0 %v2304_v34 }
  0x5c   : > { %2159 = vmatmul.mubr.bf16.gmra.mrb[24].mxu1 %v2305_v35  ;;  %2130 = vmatprep.mubr.bf16.mxu0 %v2306_v36 }
  0x5d   : > { %2162 = vmatprep.mubr.bf16.mxu1 %v2307_v37 }
  0x63   : > { %2131 = vmatmul.mubr.bf16.gmra.mrb[28].mxu0 %v2308_v38 }
  0x64   : > { %2163 = vmatmul.mubr.bf16.gmra.mrb[28].mxu1 %v2309_v39 }
  0xfe   : > { %v2104_v41 = vpop.f32.mrb[0].mxu0 }
  0xff   : > { %v2136_v42 = vpop.f32.mrb[0].mxu1  ;;  %v563_v43 = vadd.f32 %v2104_v41, %v2516_v40  ;;  %v554_v45 = vpop.f32.mrb[1].mxu0 }
 0x100   : > { %v691_v44 = vadd.f32 %v2136_v42, %v2516_v40  ;;  %v682_v46 = vpop.f32.mrb[1].mxu1  ;;  %v555_v47 = vadd.f32 %v2516_v40, %v554_v45  ;;  %v2105_v49 = vpop.f32.mrb[2].mxu0 }
 0x101   : > { %v683_v48 = vadd.f32 %v2516_v40, %v682_v46  ;;  %v2137_v50 = vpop.f32.mrb[2].mxu1  ;;  %v566_v51 = vadd.f32 %v2105_v49, %v2516_v40  ;;  %v557_v53 = vpop.f32.mrb[3].mxu0  ;;  %v811_v57 = vmax.f32 %v563_v43, 0.0 }
 0x102   : > { %v694_v52 = vadd.f32 %v2137_v50, %v2516_v40  ;;  %v685_v54 = vpop.f32.mrb[3].mxu1  ;;  %v558_v55 = vadd.f32 %v2516_v40, %v557_v53  ;;  %v843_v58 = vmax.f32 %v691_v44, 0.0  ;;  %v809_v61 = vmax.f32 %v555_v47, 0.0 }
 0x103   : > { %v686_v56 = vadd.f32 %v2516_v40, %v685_v54  ;;  %v812_v59 = vmax.f32 %v566_v51, 0.0  ;;  %v841_v62 = vmax.f32 %v683_v48, 0.0 }
 0x104   : > { %v844_v60 = vmax.f32 %v694_v52, 0.0  ;;  %v810_v63 = vmax.f32 %v558_v55, 0.0 }
 0x105   : > { %v842_v0 = vmax.f32 %v686_v56, 0.0  ;;  %v1863_v1 = vpack.c.bf16 %v812_v59, %v811_v57 }
 0x106   : > { %v1943_v2 = vpack.c.bf16 %v844_v60, %v843_v58  ;;  %v1858_v3 = vpack.c.bf16 %v810_v63, %v809_v61  ;;  %v2108_v5 = vpop.f32.mrb[4].mxu0 }
 0x107   : > { %v1938_v4 = vpack.c.bf16 %v842_v0, %v841_v62  ;;  %v2140_v6 = vpop.f32.mrb[4].mxu1  ;;  %2015 = vst [vmem:[%s2527_s12 + $0x8] sm:$0xff] %v1863_v1   ;;  %v579_v7 = vadd.f32 %v2108_v5, %v2516_v40  ;;  %v570_v9 = vpop.f32.mrb[5].mxu0 }
 0x108   : > { %2031 = vst [vmem:[%s2527_s12 + $0x88] sm:$0xff] %v1943_v2   ;;  %v707_v8 = vadd.f32 %v2140_v6, %v2516_v40  ;;  %v698_v10 = vpop.f32.mrb[5].mxu1  ;;  %1859 = vst [vmem:[%s2527_s12] sm:$0xff] %v1858_v3   ;;  %v571_v11 = vadd.f32 %v2516_v40, %v570_v9  ;;  %v2109_v13 = vpop.f32.mrb[6].mxu0 }
 0x109   : > { %2030 = vst [vmem:[%s2527_s12 + $0x80] sm:$0xff] %v1938_v4   ;;  %v699_v12 = vadd.f32 %v2516_v40, %v698_v10  ;;  %v2141_v14 = vpop.f32.mrb[6].mxu1  ;;  %v582_v15 = vadd.f32 %v2109_v13, %v2516_v40  ;;  %v573_v17 = vpop.f32.mrb[7].mxu0  ;;  %v815_v21 = vmax.f32 %v579_v7, 0.0 }
 0x10a   : > { %v710_v16 = vadd.f32 %v2141_v14, %v2516_v40  ;;  %v701_v18 = vpop.f32.mrb[7].mxu1  ;;  %v574_v19 = vadd.f32 %v2516_v40, %v573_v17  ;;  %v847_v22 = vmax.f32 %v707_v8, 0.0  ;;  %v813_v25 = vmax.f32 %v571_v11, 0.0 }
 0x10b   : > { %v702_v20 = vadd.f32 %v2516_v40, %v701_v18  ;;  %v816_v23 = vmax.f32 %v582_v15, 0.0  ;;  %v845_v26 = vmax.f32 %v699_v12, 0.0 }
 0x10c   : > { %v848_v24 = vmax.f32 %v710_v16, 0.0  ;;  %v814_v27 = vmax.f32 %v574_v19, 0.0 }
 0x10d   : > { %v846_v28 = vmax.f32 %v702_v20, 0.0  ;;  %v1873_v29 = vpack.c.bf16 %v816_v23, %v815_v21 }
 0x10e   : > { %v1953_v30 = vpack.c.bf16 %v848_v24, %v847_v22  ;;  %v1868_v31 = vpack.c.bf16 %v814_v27, %v813_v25  ;;  %v2112_v33 = vpop.f32.mrb[8].mxu0 }
 0x10f   : > { %v1948_v32 = vpack.c.bf16 %v846_v28, %v845_v26  ;;  %v2144_v34 = vpop.f32.mrb[8].mxu1  ;;  %2017 = vst [vmem:[%s2527_s12 + $0x18] sm:$0xff] %v1873_v29   ;;  %v595_v35 = vadd.f32 %v2112_v33, %v2516_v40  ;;  %v586_v37 = vpop.f32.mrb[9].mxu0 }
 0x110   : > { %2033 = vst [vmem:[%s2527_s12 + $0x98] sm:$0xff] %v1953_v30   ;;  %v723_v36 = vadd.f32 %v2144_v34, %v2516_v40  ;;  %v714_v38 = vpop.f32.mrb[9].mxu1  ;;  %2016 = vst [vmem:[%s2527_s12 + $0x10] sm:$0xff] %v1868_v31   ;;  %v587_v39 = vadd.f32 %v2516_v40, %v586_v37  ;;  %v2113_v42 = vpop.f32.mrb[10].mxu0 }
 0x111   : > { %2032 = vst [vmem:[%s2527_s12 + $0x90] sm:$0xff] %v1948_v32   ;;  %v715_v41 = vadd.f32 %v2516_v40, %v714_v38  ;;  %v2145_v43 = vpop.f32.mrb[10].mxu1  ;;  %v598_v44 = vadd.f32 %v2113_v42, %v2516_v40  ;;  %v589_v46 = vpop.f32.mrb[11].mxu0  ;;  %v819_v50 = vmax.f32 %v595_v35, 0.0 }
 0x112   : > { %v726_v45 = vadd.f32 %v2145_v43, %v2516_v40  ;;  %v717_v47 = vpop.f32.mrb[11].mxu1  ;;  %v590_v48 = vadd.f32 %v2516_v40, %v589_v46  ;;  %v851_v51 = vmax.f32 %v723_v36, 0.0  ;;  %v817_v54 = vmax.f32 %v587_v39, 0.0 }
 0x113   : > { %v718_v49 = vadd.f32 %v2516_v40, %v717_v47  ;;  %v820_v52 = vmax.f32 %v598_v44, 0.0  ;;  %v849_v55 = vmax.f32 %v715_v41, 0.0 }
 0x114   : > { %v852_v53 = vmax.f32 %v726_v45, 0.0  ;;  %v818_v56 = vmax.f32 %v590_v48, 0.0 }
 0x115   : > { %v850_v57 = vmax.f32 %v718_v49, 0.0  ;;  %v1883_v58 = vpack.c.bf16 %v820_v52, %v819_v50 }
 0x116   : > { %v1963_v59 = vpack.c.bf16 %v852_v53, %v851_v51  ;;  %v1878_v60 = vpack.c.bf16 %v818_v56, %v817_v54  ;;  %v2116_v62 = vpop.f32.mrb[12].mxu0 }
 0x117   : > { %v1958_v61 = vpack.c.bf16 %v850_v57, %v849_v55  ;;  %v2148_v63 = vpop.f32.mrb[12].mxu1  ;;  %2019 = vst [vmem:[%s2527_s12 + $0x28] sm:$0xff] %v1883_v58   ;;  %v611_v0 = vadd.f32 %v2116_v62, %v2516_v40  ;;  %v602_v2 = vpop.f32.mrb[13].mxu0 }
 0x118   : > { %2035 = vst [vmem:[%s2527_s12 + $0xa8] sm:$0xff] %v1963_v59   ;;  %v739_v1 = vadd.f32 %v2148_v63, %v2516_v40  ;;  %v730_v3 = vpop.f32.mrb[13].mxu1  ;;  %2018 = vst [vmem:[%s2527_s12 + $0x20] sm:$0xff] %v1878_v60   ;;  %v603_v4 = vadd.f32 %v2516_v40, %v602_v2  ;;  %v2117_v6 = vpop.f32.mrb[14].mxu0 }
 0x119   : > { %2034 = vst [vmem:[%s2527_s12 + $0xa0] sm:$0xff] %v1958_v61   ;;  %v731_v5 = vadd.f32 %v2516_v40, %v730_v3  ;;  %v2149_v7 = vpop.f32.mrb[14].mxu1  ;;  %v614_v8 = vadd.f32 %v2117_v6, %v2516_v40  ;;  %v605_v10 = vpop.f32.mrb[15].mxu0  ;;  %v823_v14 = vmax.f32 %v611_v0, 0.0 }
 0x11a   : > { %v742_v9 = vadd.f32 %v2149_v7, %v2516_v40  ;;  %v733_v11 = vpop.f32.mrb[15].mxu1  ;;  %v606_v12 = vadd.f32 %v2516_v40, %v605_v10  ;;  %v855_v15 = vmax.f32 %v739_v1, 0.0  ;;  %v821_v18 = vmax.f32 %v603_v4, 0.0 }
 0x11b   : > { %v734_v13 = vadd.f32 %v2516_v40, %v733_v11  ;;  %v824_v16 = vmax.f32 %v614_v8, 0.0  ;;  %v853_v19 = vmax.f32 %v731_v5, 0.0 }
 0x11c   : > { %v856_v17 = vmax.f32 %v742_v9, 0.0  ;;  %v822_v20 = vmax.f32 %v606_v12, 0.0 }
 0x11d   : > { %v854_v21 = vmax.f32 %v734_v13, 0.0  ;;  %v1893_v22 = vpack.c.bf16 %v824_v16, %v823_v14 }
 0x11e   : > { %v1973_v23 = vpack.c.bf16 %v856_v17, %v855_v15  ;;  %v1888_v24 = vpack.c.bf16 %v822_v20, %v821_v18  ;;  %v2120_v26 = vpop.f32.mrb[16].mxu0 }
 0x11f   : > { %v1968_v25 = vpack.c.bf16 %v854_v21, %v853_v19  ;;  %v2152_v27 = vpop.f32.mrb[16].mxu1  ;;  %2021 = vst [vmem:[%s2527_s12 + $0x38] sm:$0xff] %v1893_v22   ;;  %v627_v28 = vadd.f32 %v2120_v26, %v2516_v40  ;;  %v618_v30 = vpop.f32.mrb[17].mxu0 }
 0x120   : > { %2037 = vst [vmem:[%s2527_s12 + $0xb8] sm:$0xff] %v1973_v23   ;;  %v755_v29 = vadd.f32 %v2152_v27, %v2516_v40  ;;  %v746_v31 = vpop.f32.mrb[17].mxu1  ;;  %2020 = vst [vmem:[%s2527_s12 + $0x30] sm:$0xff] %v1888_v24   ;;  %v619_v32 = vadd.f32 %v2516_v40, %v618_v30  ;;  %v2121_v34 = vpop.f32.mrb[18].mxu0 }
 0x121   : > { %2036 = vst [vmem:[%s2527_s12 + $0xb0] sm:$0xff] %v1968_v25   ;;  %v747_v33 = vadd.f32 %v2516_v40, %v746_v31  ;;  %v2153_v35 = vpop.f32.mrb[18].mxu1  ;;  %v630_v36 = vadd.f32 %v2121_v34, %v2516_v40  ;;  %v621_v38 = vpop.f32.mrb[19].mxu0  ;;  %v827_v43 = vmax.f32 %v627_v28, 0.0 }
 0x122   : > { %v758_v37 = vadd.f32 %v2153_v35, %v2516_v40  ;;  %v749_v39 = vpop.f32.mrb[19].mxu1  ;;  %v622_v41 = vadd.f32 %v2516_v40, %v621_v38  ;;  %v859_v44 = vmax.f32 %v755_v29, 0.0  ;;  %v825_v47 = vmax.f32 %v619_v32, 0.0 }
 0x123   : > { %v750_v42 = vadd.f32 %v2516_v40, %v749_v39  ;;  %v828_v45 = vmax.f32 %v630_v36, 0.0  ;;  %v857_v48 = vmax.f32 %v747_v33, 0.0 }
 0x124   : > { %v860_v46 = vmax.f32 %v758_v37, 0.0  ;;  %v826_v49 = vmax.f32 %v622_v41, 0.0 }
 0x125   : > { %v858_v50 = vmax.f32 %v750_v42, 0.0  ;;  %v1903_v51 = vpack.c.bf16 %v828_v45, %v827_v43 }
 0x126   : > { %v1983_v52 = vpack.c.bf16 %v860_v46, %v859_v44  ;;  %v1898_v53 = vpack.c.bf16 %v826_v49, %v825_v47  ;;  %v2124_v55 = vpop.f32.mrb[20].mxu0 }
 0x127   : > { %v1978_v54 = vpack.c.bf16 %v858_v50, %v857_v48  ;;  %v2156_v56 = vpop.f32.mrb[20].mxu1  ;;  %2023 = vst [vmem:[%s2527_s12 + $0x48] sm:$0xff] %v1903_v51   ;;  %v643_v57 = vadd.f32 %v2124_v55, %v2516_v40  ;;  %v634_v59 = vpop.f32.mrb[21].mxu0 }
 0x128   : > { %2039 = vst [vmem:[%s2527_s12 + $0xc8] sm:$0xff] %v1983_v52   ;;  %v771_v58 = vadd.f32 %v2156_v56, %v2516_v40  ;;  %v762_v60 = vpop.f32.mrb[21].mxu1  ;;  %2022 = vst [vmem:[%s2527_s12 + $0x40] sm:$0xff] %v1898_v53   ;;  %v635_v61 = vadd.f32 %v2516_v40, %v634_v59  ;;  %v2125_v63 = vpop.f32.mrb[22].mxu0 }
 0x129   : > { %2038 = vst [vmem:[%s2527_s12 + $0xc0] sm:$0xff] %v1978_v54   ;;  %v763_v62 = vadd.f32 %v2516_v40, %v762_v60  ;;  %v2157_v0 = vpop.f32.mrb[22].mxu1  ;;  %v646_v1 = vadd.f32 %v2125_v63, %v2516_v40  ;;  %v637_v3 = vpop.f32.mrb[23].mxu0  ;;  %v831_v7 = vmax.f32 %v643_v57, 0.0 }
 0x12a   : > { %v774_v2 = vadd.f32 %v2157_v0, %v2516_v40  ;;  %v765_v4 = vpop.f32.mrb[23].mxu1  ;;  %v638_v5 = vadd.f32 %v2516_v40, %v637_v3  ;;  %v863_v8 = vmax.f32 %v771_v58, 0.0  ;;  %v829_v11 = vmax.f32 %v635_v61, 0.0 }
 0x12b   : > { %v766_v6 = vadd.f32 %v2516_v40, %v765_v4  ;;  %v832_v9 = vmax.f32 %v646_v1, 0.0  ;;  %v861_v12 = vmax.f32 %v763_v62, 0.0 }
 0x12c   : > { %v864_v10 = vmax.f32 %v774_v2, 0.0  ;;  %v830_v13 = vmax.f32 %v638_v5, 0.0 }
 0x12d   : > { %v862_v14 = vmax.f32 %v766_v6, 0.0  ;;  %v1913_v15 = vpack.c.bf16 %v832_v9, %v831_v7 }
 0x12e   : > { %v1993_v16 = vpack.c.bf16 %v864_v10, %v863_v8  ;;  %v1908_v17 = vpack.c.bf16 %v830_v13, %v829_v11  ;;  %v2128_v19 = vpop.f32.mrb[24].mxu0 }
 0x12f   : > { %v1988_v18 = vpack.c.bf16 %v862_v14, %v861_v12  ;;  %v2160_v20 = vpop.f32.mrb[24].mxu1  ;;  %2025 = vst [vmem:[%s2527_s12 + $0x58] sm:$0xff] %v1913_v15   ;;  %v659_v21 = vadd.f32 %v2128_v19, %v2516_v40  ;;  %v650_v23 = vpop.f32.mrb[25].mxu0 }
 0x130   : > { %2041 = vst [vmem:[%s2527_s12 + $0xd8] sm:$0xff] %v1993_v16   ;;  %v787_v22 = vadd.f32 %v2160_v20, %v2516_v40  ;;  %v778_v24 = vpop.f32.mrb[25].mxu1  ;;  %2024 = vst [vmem:[%s2527_s12 + $0x50] sm:$0xff] %v1908_v17   ;;  %v651_v25 = vadd.f32 %v2516_v40, %v650_v23  ;;  %v2129_v27 = vpop.f32.mrb[26].mxu0 }
 0x131   : > { %2040 = vst [vmem:[%s2527_s12 + $0xd0] sm:$0xff] %v1988_v18   ;;  %v779_v26 = vadd.f32 %v2516_v40, %v778_v24  ;;  %v2161_v28 = vpop.f32.mrb[26].mxu1  ;;  %v662_v29 = vadd.f32 %v2129_v27, %v2516_v40  ;;  %v653_v31 = vpop.f32.mrb[27].mxu0  ;;  %v835_v35 = vmax.f32 %v659_v21, 0.0 }
 0x132   : > { %v790_v30 = vadd.f32 %v2161_v28, %v2516_v40  ;;  %v781_v32 = vpop.f32.mrb[27].mxu1  ;;  %v654_v33 = vadd.f32 %v2516_v40, %v653_v31  ;;  %v867_v36 = vmax.f32 %v787_v22, 0.0  ;;  %v833_v39 = vmax.f32 %v651_v25, 0.0 }
 0x133   : > { %v782_v34 = vadd.f32 %v2516_v40, %v781_v32  ;;  %v836_v37 = vmax.f32 %v662_v29, 0.0  ;;  %v865_v41 = vmax.f32 %v779_v26, 0.0 }
 0x134   : > { %v868_v38 = vmax.f32 %v790_v30, 0.0  ;;  %v834_v42 = vmax.f32 %v654_v33, 0.0 }
 0x135   : > { %v866_v43 = vmax.f32 %v782_v34, 0.0  ;;  %v1923_v44 = vpack.c.bf16 %v836_v37, %v835_v35 }
 0x136   : > { %v2003_v45 = vpack.c.bf16 %v868_v38, %v867_v36  ;;  %v1918_v46 = vpack.c.bf16 %v834_v42, %v833_v39  ;;  %v2132_v48 = vpop.f32.mrb[28].mxu0 }
 0x137   : > { %v1998_v47 = vpack.c.bf16 %v866_v43, %v865_v41  ;;  %v2164_v49 = vpop.f32.mrb[28].mxu1  ;;  %2027 = vst [vmem:[%s2527_s12 + $0x68] sm:$0xff] %v1923_v44   ;;  %v675_v50 = vadd.f32 %v2132_v48, %v2516_v40  ;;  %v666_v52 = vpop.f32.mrb[29].mxu0 }
 0x138   : > { %2043 = vst [vmem:[%s2527_s12 + $0xe8] sm:$0xff] %v2003_v45   ;;  %v803_v51 = vadd.f32 %v2164_v49, %v2516_v40  ;;  %v794_v53 = vpop.f32.mrb[29].mxu1  ;;  %2026 = vst [vmem:[%s2527_s12 + $0x60] sm:$0xff] %v1918_v46   ;;  %v667_v54 = vadd.f32 %v2516_v40, %v666_v52  ;;  %v2133_v56 = vpop.f32.mrb[30].mxu0 }
 0x139   : > { %2042 = vst [vmem:[%s2527_s12 + $0xe0] sm:$0xff] %v1998_v47   ;;  %v795_v55 = vadd.f32 %v2516_v40, %v794_v53  ;;  %v2165_v57 = vpop.f32.mrb[30].mxu1  ;;  %v678_v58 = vadd.f32 %v2133_v56, %v2516_v40  ;;  %v669_v60 = vpop.f32.mrb[31].mxu0  ;;  %v839_v0 = vmax.f32 %v675_v50, 0.0 }
 0x13a   : > { %v806_v59 = vadd.f32 %v2165_v57, %v2516_v40  ;;  %v797_v61 = vpop.f32.mrb[31].mxu1  ;;  %v670_v62 = vadd.f32 %v2516_v40, %v669_v60  ;;  %v871_v1 = vmax.f32 %v803_v51, 0.0  ;;  %v837_v4 = vmax.f32 %v667_v54, 0.0 }
 0x13b   : > { %v798_v63 = vadd.f32 %v2516_v40, %v797_v61  ;;  %v840_v2 = vmax.f32 %v678_v58, 0.0  ;;  %v869_v5 = vmax.f32 %v795_v55, 0.0  ;;  %1199 = sbr.rel (!%p2443_p4) target bundleno = 413 (0x19d), region = 36 }
 0x13c   : > { %v872_v3 = vmax.f32 %v806_v59, 0.0  ;;  %v838_v6 = vmax.f32 %v670_v62, 0.0 }
 0x13d   : > { %v870_v7 = vmax.f32 %v798_v63, 0.0  ;;  %v1933_v8 = vpack.c.bf16 %v840_v2, %v839_v0 }
 0x13e   : > { %v2013_v9 = vpack.c.bf16 %v872_v3, %v871_v1  ;;  %v1928_v10 = vpack.c.bf16 %v838_v6, %v837_v4 }
 0x13f   : > { %v2008_v11 = vpack.c.bf16 %v870_v7, %v869_v5  ;;  %2029 = vst [vmem:[%s2527_s12 + $0x78] sm:$0xff] %v1933_v8  }
 0x140   : > { %2045 = vst [vmem:[%s2527_s12 + $0xf8] sm:$0xff] %v2013_v9   ;;  %2028 = vst [vmem:[%s2527_s12 + $0x70] sm:$0xff] %v1928_v10  }
 0x141   : > { %2044 = vst [vmem:[%s2527_s12 + $0xf0] sm:$0xff] %v2008_v11  }
 0x142   : > { %s2828_s27 = smov (!%p1202_p8, %s1201_s27), 64 }
 0x143   : > { %s1773_s5 = sshll.u32 %s2828_s27, 6 }
 0x144   : > { %p1776_p9 = scmp.eq.s32.totalorder %s1773_s5, 0 }
 0x145   : > { %s2630_s6 = sshrl.u32 (!%p1776_p9), %s2828_s27, 6 }
 0x146   : > { %1210 = sbr.rel (%p1776_p9) target bundleno = 413 (0x19d), region = 40  ;;  %p1777_p10 = scmp.le.s32.totalorder (!%p1776_p9), %s2630_s6, 0 }
 0x14d   : > { %1615 = sbr.rel (%p1777_p10) target bundleno = 392 (0x188), region = 112  ;;  %s2821_s15 = smov (!%p1777_p10), %s2624_s4 }
 0x14e   : > { %s2822_s20 = smov (!%p1777_p10), %s2527_s12  ;;  %s2639_s23 = smov (!%p1777_p10), 0  }
 0x14f   : > { %s2641_s7 = smov (!%p1777_p10), 0  }
 0x154 LB: >> { %v1226_v40 = vld [vmem:[%s2372_s20] sm:$0xf]  ;;  %v1228_v12 = vld [vmem:[%s2372_s20 + $0x4] sm:$0xf]  ;;  %v1230_v13 = vld [vmem:[%s2372_s20 + $0x8] sm:$0xf]  ;;  %s2380_s7 = sphi %s2641_s7, %s1220_s7   ;;  %s2376_s23 = sphi %s2639_s23, %s2823_s23   ;;  %s2372_s20 = sphi %s2822_s20, %s1359_s20   ;;  %s2368_s15 = sphi %s2821_s15, %s1360_s15  }
 0x155   : >> { %1227 = vst [vmem:[%s2368_s15] sm:$0xf] %v1226_v40  ;;  %1229 = vst [vmem:[%s2368_s15 + $0x4] sm:$0xf] %v1228_v12  ;;  %v1232_v14 = vld [vmem:[%s2372_s20 + $0xc] sm:$0xf]  ;;  %s1354_s8 = sadd.s32 1, %s2376_s23 }
 0x156   : >> { %1231 = vst [vmem:[%s2368_s15 + $0x8] sm:$0xf] %v1230_v13  ;;  %v1234_v15 = vld [vmem:[%s2372_s20 + $0x10] sm:$0xf]  ;;  %v1236_v16 = vld [vmem:[%s2372_s20 + $0x14] sm:$0xf]  ;;  %p1355_p11 = scmp.ge.s32.totalorder %s1354_s8, %s2630_s6 }
 0x157   : >> { %1233 = vst [vmem:[%s2368_s15 + $0xc] sm:$0xf] %v1232_v14  ;;  %1235 = vst [vmem:[%s2368_s15 + $0x10] sm:$0xf] %v1234_v15  ;;  %v1238_v17 = vld [vmem:[%s2372_s20 + $0x18] sm:$0xf] }
 0x158   : >> { %1237 = vst [vmem:[%s2368_s15 + $0x14] sm:$0xf] %v1236_v16  ;;  %v1240_v18 = vld [vmem:[%s2372_s20 + $0x1c] sm:$0xf]  ;;  %v1242_v19 = vld [vmem:[%s2372_s20 + $0x20] sm:$0xf] }
 0x159   : >> { %1239 = vst [vmem:[%s2368_s15 + $0x18] sm:$0xf] %v1238_v17  ;;  %1241 = vst [vmem:[%s2368_s15 + $0x1c] sm:$0xf] %v1240_v18  ;;  %v1244_v20 = vld [vmem:[%s2372_s20 + $0x24] sm:$0xf] }
 0x15a   : >> { %1243 = vst [vmem:[%s2368_s15 + $0x20] sm:$0xf] %v1242_v19  ;;  %v1246_v21 = vld [vmem:[%s2372_s20 + $0x28] sm:$0xf]  ;;  %v1248_v22 = vld [vmem:[%s2372_s20 + $0x2c] sm:$0xf] }
 0x15b   : >> { %1245 = vst [vmem:[%s2368_s15 + $0x24] sm:$0xf] %v1244_v20  ;;  %1247 = vst [vmem:[%s2368_s15 + $0x28] sm:$0xf] %v1246_v21  ;;  %v1250_v23 = vld [vmem:[%s2372_s20 + $0x30] sm:$0xf] }
 0x15c   : >> { %1249 = vst [vmem:[%s2368_s15 + $0x2c] sm:$0xf] %v1248_v22  ;;  %v1252_v24 = vld [vmem:[%s2372_s20 + $0x34] sm:$0xf]  ;;  %v1254_v25 = vld [vmem:[%s2372_s20 + $0x38] sm:$0xf] }
 0x15d   : >> { %1251 = vst [vmem:[%s2368_s15 + $0x30] sm:$0xf] %v1250_v23  ;;  %1253 = vst [vmem:[%s2368_s15 + $0x34] sm:$0xf] %v1252_v24  ;;  %v1256_v26 = vld [vmem:[%s2372_s20 + $0x3c] sm:$0xf] }
 0x15e   : >> { %1255 = vst [vmem:[%s2368_s15 + $0x38] sm:$0xf] %v1254_v25  ;;  %v1258_v27 = vld [vmem:[%s2372_s20 + $0x40] sm:$0xf]  ;;  %v1260_v28 = vld [vmem:[%s2372_s20 + $0x44] sm:$0xf] }
 0x15f   : >> { %1257 = vst [vmem:[%s2368_s15 + $0x3c] sm:$0xf] %v1256_v26  ;;  %1259 = vst [vmem:[%s2368_s15 + $0x40] sm:$0xf] %v1258_v27  ;;  %v1262_v29 = vld [vmem:[%s2372_s20 + $0x48] sm:$0xf] }
 0x160   : >> { %1261 = vst [vmem:[%s2368_s15 + $0x44] sm:$0xf] %v1260_v28  ;;  %v1264_v30 = vld [vmem:[%s2372_s20 + $0x4c] sm:$0xf]  ;;  %v1266_v31 = vld [vmem:[%s2372_s20 + $0x50] sm:$0xf] }
 0x161   : >> { %1263 = vst [vmem:[%s2368_s15 + $0x48] sm:$0xf] %v1262_v29  ;;  %1265 = vst [vmem:[%s2368_s15 + $0x4c] sm:$0xf] %v1264_v30  ;;  %v1268_v32 = vld [vmem:[%s2372_s20 + $0x54] sm:$0xf] }
 0x162   : >> { %1267 = vst [vmem:[%s2368_s15 + $0x50] sm:$0xf] %v1266_v31  ;;  %v1270_v33 = vld [vmem:[%s2372_s20 + $0x58] sm:$0xf]  ;;  %v1272_v34 = vld [vmem:[%s2372_s20 + $0x5c] sm:$0xf] }
 0x163   : >> { %1269 = vst [vmem:[%s2368_s15 + $0x54] sm:$0xf] %v1268_v32  ;;  %1271 = vst [vmem:[%s2368_s15 + $0x58] sm:$0xf] %v1270_v33  ;;  %v1274_v35 = vld [vmem:[%s2372_s20 + $0x60] sm:$0xf] }
 0x164   : >> { %1273 = vst [vmem:[%s2368_s15 + $0x5c] sm:$0xf] %v1272_v34  ;;  %v1276_v36 = vld [vmem:[%s2372_s20 + $0x64] sm:$0xf]  ;;  %v1278_v37 = vld [vmem:[%s2372_s20 + $0x68] sm:$0xf] }
 0x165   : >> { %1275 = vst [vmem:[%s2368_s15 + $0x60] sm:$0xf] %v1274_v35  ;;  %1277 = vst [vmem:[%s2368_s15 + $0x64] sm:$0xf] %v1276_v36  ;;  %v1280_v38 = vld [vmem:[%s2372_s20 + $0x6c] sm:$0xf] }
 0x166   : >> { %1279 = vst [vmem:[%s2368_s15 + $0x68] sm:$0xf] %v1278_v37  ;;  %v1282_v39 = vld [vmem:[%s2372_s20 + $0x70] sm:$0xf]  ;;  %v1284_v41 = vld [vmem:[%s2372_s20 + $0x74] sm:$0xf] }
 0x167   : >> { %1281 = vst [vmem:[%s2368_s15 + $0x6c] sm:$0xf] %v1280_v38  ;;  %1283 = vst [vmem:[%s2368_s15 + $0x70] sm:$0xf] %v1282_v39  ;;  %v1286_v42 = vld [vmem:[%s2372_s20 + $0x78] sm:$0xf] }
 0x168   : >> { %1285 = vst [vmem:[%s2368_s15 + $0x74] sm:$0xf] %v1284_v41  ;;  %v1288_v43 = vld [vmem:[%s2372_s20 + $0x7c] sm:$0xf]  ;;  %v1290_v44 = vld [vmem:[%s2372_s20 + $0x80] sm:$0xf] }
 0x169   : >> { %1287 = vst [vmem:[%s2368_s15 + $0x78] sm:$0xf] %v1286_v42  ;;  %1289 = vst [vmem:[%s2368_s15 + $0x7c] sm:$0xf] %v1288_v43  ;;  %v1292_v45 = vld [vmem:[%s2372_s20 + $0x84] sm:$0xf] }
 0x16a   : >> { %1291 = vst [vmem:[%s2368_s15 + $0x80] sm:$0xf] %v1290_v44  ;;  %v1294_v46 = vld [vmem:[%s2372_s20 + $0x88] sm:$0xf]  ;;  %v1296_v47 = vld [vmem:[%s2372_s20 + $0x8c] sm:$0xf] }
 0x16b   : >> { %1293 = vst [vmem:[%s2368_s15 + $0x84] sm:$0xf] %v1292_v45  ;;  %1295 = vst [vmem:[%s2368_s15 + $0x88] sm:$0xf] %v1294_v46  ;;  %v1298_v48 = vld [vmem:[%s2372_s20 + $0x90] sm:$0xf] }
 0x16c   : >> { %1297 = vst [vmem:[%s2368_s15 + $0x8c] sm:$0xf] %v1296_v47  ;;  %v1300_v49 = vld [vmem:[%s2372_s20 + $0x94] sm:$0xf]  ;;  %v1302_v50 = vld [vmem:[%s2372_s20 + $0x98] sm:$0xf] }
 0x16d   : >> { %1299 = vst [vmem:[%s2368_s15 + $0x90] sm:$0xf] %v1298_v48  ;;  %1301 = vst [vmem:[%s2368_s15 + $0x94] sm:$0xf] %v1300_v49  ;;  %v1304_v51 = vld [vmem:[%s2372_s20 + $0x9c] sm:$0xf] }
 0x16e   : >> { %1303 = vst [vmem:[%s2368_s15 + $0x98] sm:$0xf] %v1302_v50  ;;  %v1306_v52 = vld [vmem:[%s2372_s20 + $0xa0] sm:$0xf]  ;;  %v1308_v53 = vld [vmem:[%s2372_s20 + $0xa4] sm:$0xf] }
 0x16f   : >> { %1305 = vst [vmem:[%s2368_s15 + $0x9c] sm:$0xf] %v1304_v51  ;;  %1307 = vst [vmem:[%s2368_s15 + $0xa0] sm:$0xf] %v1306_v52  ;;  %v1310_v54 = vld [vmem:[%s2372_s20 + $0xa8] sm:$0xf] }
 0x170   : >> { %1309 = vst [vmem:[%s2368_s15 + $0xa4] sm:$0xf] %v1308_v53  ;;  %v1312_v55 = vld [vmem:[%s2372_s20 + $0xac] sm:$0xf]  ;;  %v1314_v56 = vld [vmem:[%s2372_s20 + $0xb0] sm:$0xf] }
 0x171   : >> { %1311 = vst [vmem:[%s2368_s15 + $0xa8] sm:$0xf] %v1310_v54  ;;  %1313 = vst [vmem:[%s2368_s15 + $0xac] sm:$0xf] %v1312_v55  ;;  %v1316_v57 = vld [vmem:[%s2372_s20 + $0xb4] sm:$0xf] }
 0x172   : >> { %1315 = vst [vmem:[%s2368_s15 + $0xb0] sm:$0xf] %v1314_v56  ;;  %v1318_v58 = vld [vmem:[%s2372_s20 + $0xb8] sm:$0xf]  ;;  %v1320_v59 = vld [vmem:[%s2372_s20 + $0xbc] sm:$0xf] }
 0x173   : >> { %1317 = vst [vmem:[%s2368_s15 + $0xb4] sm:$0xf] %v1316_v57  ;;  %1319 = vst [vmem:[%s2368_s15 + $0xb8] sm:$0xf] %v1318_v58  ;;  %v1322_v60 = vld [vmem:[%s2372_s20 + $0xc0] sm:$0xf] }
 0x174   : >> { %1321 = vst [vmem:[%s2368_s15 + $0xbc] sm:$0xf] %v1320_v59  ;;  %v1324_v61 = vld [vmem:[%s2372_s20 + $0xc4] sm:$0xf]  ;;  %v1326_v62 = vld [vmem:[%s2372_s20 + $0xc8] sm:$0xf] }
 0x175   : >> { %1323 = vst [vmem:[%s2368_s15 + $0xc0] sm:$0xf] %v1322_v60  ;;  %1325 = vst [vmem:[%s2368_s15 + $0xc4] sm:$0xf] %v1324_v61  ;;  %v1328_v63 = vld [vmem:[%s2372_s20 + $0xcc] sm:$0xf] }
 0x176   : >> { %1327 = vst [vmem:[%s2368_s15 + $0xc8] sm:$0xf] %v1326_v62  ;;  %v1330_v0 = vld [vmem:[%s2372_s20 + $0xd0] sm:$0xf]  ;;  %v1332_v1 = vld [vmem:[%s2372_s20 + $0xd4] sm:$0xf] }
 0x177   : >> { %1329 = vst [vmem:[%s2368_s15 + $0xcc] sm:$0xf] %v1328_v63  ;;  %1331 = vst [vmem:[%s2368_s15 + $0xd0] sm:$0xf] %v1330_v0  ;;  %v1334_v2 = vld [vmem:[%s2372_s20 + $0xd8] sm:$0xf] }
 0x178   : >> { %1333 = vst [vmem:[%s2368_s15 + $0xd4] sm:$0xf] %v1332_v1  ;;  %v1336_v3 = vld [vmem:[%s2372_s20 + $0xdc] sm:$0xf]  ;;  %v1338_v4 = vld [vmem:[%s2372_s20 + $0xe0] sm:$0xf] }
 0x179   : >> { %1335 = vst [vmem:[%s2368_s15 + $0xd8] sm:$0xf] %v1334_v2  ;;  %1337 = vst [vmem:[%s2368_s15 + $0xdc] sm:$0xf] %v1336_v3  ;;  %v1340_v5 = vld [vmem:[%s2372_s20 + $0xe4] sm:$0xf] }
 0x17a   : >> { %1339 = vst [vmem:[%s2368_s15 + $0xe0] sm:$0xf] %v1338_v4  ;;  %v1342_v6 = vld [vmem:[%s2372_s20 + $0xe8] sm:$0xf]  ;;  %v1344_v7 = vld [vmem:[%s2372_s20 + $0xec] sm:$0xf] }
 0x17b   : >> { %1341 = vst [vmem:[%s2368_s15 + $0xe4] sm:$0xf] %v1340_v5  ;;  %1343 = vst [vmem:[%s2368_s15 + $0xe8] sm:$0xf] %v1342_v6  ;;  %v1346_v8 = vld [vmem:[%s2372_s20 + $0xf0] sm:$0xf] }
 0x17c   : >> { %1345 = vst [vmem:[%s2368_s15 + $0xec] sm:$0xf] %v1344_v7  ;;  %v1348_v9 = vld [vmem:[%s2372_s20 + $0xf4] sm:$0xf]  ;;  %v1350_v10 = vld [vmem:[%s2372_s20 + $0xf8] sm:$0xf] }
 0x17d   : >> { %1347 = vst [vmem:[%s2368_s15 + $0xf0] sm:$0xf] %v1346_v8  ;;  %1349 = vst [vmem:[%s2368_s15 + $0xf4] sm:$0xf] %v1348_v9  ;;  %v1352_v11 = vld [vmem:[%s2372_s20 + $0xfc] sm:$0xf] }
 0x17e   : >> { %1351 = vst [vmem:[%s2368_s15 + $0xf8] sm:$0xf] %v1350_v10  ;;  %1353 = vst [vmem:[%s2368_s15 + $0xfc] sm:$0xf] %v1352_v11  ;;  %s2830_s8 = smov (%p1355_p11, %s1354_s8), 0  ;;  %s1220_s7 = sadd.s32 1, %s2380_s7  }
 0x17f   : >> { %s1778_s9 = sshll.u32 %s2830_s8, 8  ;;  %p1219_p12 = scmp.ge.s32.totalorder %s1220_s7, %s2630_s6 }
 0x180   : >> { %s1359_s20 = scalar_lea.vmem %s2527_s12, %s1778_s9 [#allocation2]   ;;  %s1360_s15 = scalar_lea.vmem %s2624_s4, %s1778_s9  }
 0x181   : >> { %s2823_s23 = smov %s2830_s8  ;;  %1222 = sbr.rel (!%p1219_p12) target bundleno = 340 (0x154), region = 118 }
 0x188 PF: > { %s2798_s10 = sand.u32 63, %s2828_s27   ;;  %s1853_s11 = sshll.u32 %s2630_s6, 8 }
 0x189   : > { %s1365_s14 = scalar_lea.vmem %s2527_s12, %s1853_s11 [#allocation2]   ;;  %s1367_s17 = scalar_lea.vmem %s2624_s4, %s1853_s11  }
 0x18a   : > { %p1783_p13 = scmp.le.s32.totalorder %s2798_s10, 0 }
 0x18b   : > { %s2382_s18 = smov (!%p1783_p13), %s1367_s17   ;;  %s2386_s21 = smov (!%p1783_p13), %s1365_s14  }
 0x18c   : > { %1629 = sbr.rel (%p1783_p13) target bundleno = 413 (0x19d), region = 123  ;;  %s2390_s22 = smov (!%p1783_p13), 0  }
 0x18d   : > { %s2394_s24 = smov (!%p1783_p13), 0  }
 0x193 LB: >> { %v1377_v40 = vld [vmem:[%s2388_s21] sm:$0xf]  ;;  %s1379_s25 = sadd.s32 1, %s2392_s22  ;;  %s1371_s24 = sadd.s32 1, %s2396_s24   ;;  %s2396_s24 = sphi %s2394_s24, %s1371_s24   ;;  %s2392_s22 = sphi %s2390_s22, %s2391_s22   ;;  %s2388_s21 = sphi %s2386_s21, %s1384_s21   ;;  %s2384_s18 = sphi %s2382_s18, %s1385_s18  }
 0x194   : >> { %1378 = vst [vmem:[%s2384_s18] sm:$0xf] %v1377_v40  ;;  %p1380_p0 = scmp.ge.s32.totalorder %s1379_s25, %s2798_s10  ;;  %p1370_p1 = scmp.ge.s32.totalorder %s1371_s24, %s2798_s10 }
 0x196   : >> { %s2832_s25 = smov (%p1380_p0, %s1379_s25), 0  ;;  %1373 = sbr.rel (!%p1370_p1) target bundleno = 403 (0x193), region = 129 }
 0x197   : >> { %s1784_s26 = sshll.u32 %s2832_s25, 2  ;;  %s2391_s22 = smov %s2832_s25  }
 0x198   : >> { %s1384_s21 = scalar_lea.vmem %s1365_s14, %s1784_s26 [#allocation2]   ;;  %s1385_s18 = scalar_lea.vmem %s1367_s17, %s1784_s26  }
 0x19d PF: > { %p10_p2 = scmp.ge.s32.totalorder %s2433_s16, 25   ;;  %s2824_s12 = smov %s2360_s13 }
 0x19e   : > { %s2825_s13 = smov %s2441_s19  ;;  %s2826_s14 = smov %s2433_s16 }
 0x19f   :  { %12 = sbr.rel (!%p10_p2) target bundleno = 2 (0x2), region = 140 }

// kernel: convnet_forward.8
= control target key start
LH: loop header
LB: loop body
LE: loop exit
PB: predicated region body
PF: predicated region fallthrough
CT: control target
= control target key end

     0   :  { %s6802_s12 = smov 0   ;;  %s6804_s13 = smov 0   ;;  %s8155_s0 = inlined_call_operand.vmem [shape: bf16[2592,1152], index: 0, kind: input, shape index: {}]   ;;  %s8156_s1 = inlined_call_operand.vmem [shape: bf16[1152,128], index: 1, kind: input, shape index: {}]   ;;  %s8157_s2 = inlined_call_operand.vmem [shape: f32[1,128], index: 2, kind: input, shape index: {}]   ;;  %s8158_s3 = inlined_call_operand.vmem [shape: bf16[2592,128], index: 3, kind: output, shape index: {}]  }
   0x1   :  { %s6806_s14 = smov 0  }
   0x2 LB: > { %s6815_s15 = sadd.s32 4294967295, %s6747_s14   ;;  %s6817_s16 = sadd.s32 1, %s6747_s14   ;;  %s6747_s14 = sphi %s6806_s14, %s8199_s14   ;;  %s6743_s13 = sphi %s6804_s13, %s8198_s13   ;;  %s6739_s12 = sphi %s6802_s12, %s8197_s12  }
   0x3   : > { %s85_s17 = ssub.s32 %s6747_s14, %s6817_s16  ;;  %s88_s18 = sadd.s32 1, %s6743_s13 }
   0x4   : > { %p86_p0 = scmp.eq.s32.totalorder %s85_s17, 0  ;;  %p98_p1 = scmp.ne.s32.totalorder %s6743_s13, %s6739_s12 }
   0x5   : > { %p99_p2 = scmp.eq.s32.totalorder %s6815_s15, 5  ;;  %p4874_p3 = scmp.ge.s32.totalorder %s6747_s14, 1 }
   0x6   : > { %s6825_s19 = scalar_select %p86_p0, %s6743_s13, %s88_s18  }
   0x7   : > { %p6827_p4 = por %p99_p2, %p98_p1  ;;  %p149_p5 = scmp.lt.s32.totalorder %s6747_s14, 7 }
   0x9   : > { %p150_p6 = pnand %p4874_p3, %p149_p5 }
   0xb   : > { %153 = sbr.rel (%p150_p6) target bundleno = 966 (0x3c6), region = 32 }
  0x12   : > { %v6204_v0 = vld [vmem:[%s8156_s1] sm:$0xff]   ;;  %v6781_v1 = vmov 0   ;;  %v6206_v3 = vld [vmem:[%s8156_s1 + $0x8] sm:$0xff]   ;;  %v6208_v5 = vld [vmem:[%s8156_s1 + $0x10] sm:$0xff]   ;;  %s6885_s18 = sshll.u32 %s6815_s15, 6  ;;  %s5384_s22 = sshll.u32 (%p6827_p4), %s6815_s15, 8 }
  0x13   : > { %2576 = vmatprep.subr.bf16.mxu1 %v6781_v1  ;;  %2865 = vmatprep.subr.bf16.mxu0 %v6781_v1  ;;  %v6839_v2 = vld [vmem:[%s8156_s1 + $0x80] sm:$0xff]   ;;  %v6849_v4 = vld [vmem:[%s8156_s1 + $0x88] sm:$0xff]   ;;  %v6860_v6 = vld [vmem:[%s8156_s1 + $0x90] sm:$0xff]   ;;  %p184_p7 = scmp.lt.s32.totalorder %s6885_s18, 323  ;;  %s4413_s21 = ssub.s32 (%p6827_p4), 324, %s6885_s18 }
  0x14   : > { %2577 = vmatpush1.bf16.msra.mxu1 %v6204_v0  ;;  %2866 = vmatpush1.bf16.msra.mxu0 %v6839_v2  ;;  %v6210_v7 = vld [vmem:[%s8156_s1 + $0x18] sm:$0xff]   ;;  %v6212_v9 = vld [vmem:[%s8156_s1 + $0x20] sm:$0xff]   ;;  %v6214_v11 = vld [vmem:[%s8156_s1 + $0x28] sm:$0xff]   ;;  %p4414_p8 = scmp.lt.s32.totalorder (%p6827_p4), %s4413_s21, 64  ;;  %s7963_s25 = scalar_lea.vmem (%p6827_p4), %s8158_s3, %s5384_s22  }
  0x15   : > { %2578 = vmatprep.subr.bf16.mxu1 %v6781_v1  ;;  %2867 = vmatprep.subr.bf16.mxu0 %v6781_v1  ;;  %v6871_v8 = vld [vmem:[%s8156_s1 + $0x98] sm:$0xff]   ;;  %v6882_v10 = vld [vmem:[%s8156_s1 + $0xa0] sm:$0xff]   ;;  %v6897_v12 = vld [vmem:[%s8156_s1 + $0xa8] sm:$0xff]   ;;  %s185_s27 = scalar_select %p184_p7, %s6885_s18, 323 }
  0x16   : > { %v6216_v13 = vld [vmem:[%s8156_s1 + $0x30] sm:$0xff]   ;;  %v6218_v15 = vld [vmem:[%s8156_s1 + $0x38] sm:$0xff]   ;;  %v6220_v17 = vld [vmem:[%s8156_s1 + $0x40] sm:$0xff]  }
  0x17   : > { %v6909_v14 = vld [vmem:[%s8156_s1 + $0xb0] sm:$0xff]   ;;  %s6114_s5 = smul.u32 36, %s185_s27  ;;  %v6920_v16 = vld [vmem:[%s8156_s1 + $0xb8] sm:$0xff]   ;;  %v6936_v18 = vld [vmem:[%s8156_s1 + $0xc0] sm:$0xff]  }
  0x18   : > { %2579 = vmatpush1.bf16.msra.mxu1 %v6206_v3  ;;  %2868 = vmatpush1.bf16.msra.mxu0 %v6849_v4  ;;  %v6222_v20 = vld [vmem:[%s8156_s1 + $0x48] sm:$0xff]   ;;  %v6224_v23 = vld [vmem:[%s8156_s1 + $0x50] sm:$0xff]   ;;  %v6226_v25 = vld [vmem:[%s8156_s1 + $0x58] sm:$0xff]  }
  0x19   : > { %2580 = vmatprep.subr.bf16.mxu1 %v6781_v1  ;;  %2869 = vmatprep.subr.bf16.mxu0 %v6781_v1  ;;  %s6929_s14 = scalar_lea.vmem %s8155_s0, %s6114_s5  ;;  %v6949_v22 = vld [vmem:[%s8156_s1 + $0xc8] sm:$0xff]   ;;  %v6960_v24 = vld [vmem:[%s8156_s1 + $0xd0] sm:$0xff]   ;;  %v6971_v26 = vld [vmem:[%s8156_s1 + $0xd8] sm:$0xff]  }
  0x1a   : > { %v6238_v19 = vld [vmem:[%s6929_s14 + $0x4] ss:$36 sps:$4 sm:$0xff]   ;;  %v6241_v21 = vld [vmem:[%s6929_s14 + $0xc] ss:$36 sps:$4 sm:$0xff]   ;;  %v6234_v33 = vld [vmem:[%s8156_s1 + $0x78] sm:$0xff]  }
  0x1b   : > { %2608 = vmatprep.mubr.bf16.mxu1 %v6238_v19  ;;  %2897 = vmatprep.mubr.bf16.mxu0 %v6241_v21  ;;  %v6228_v27 = vld [vmem:[%s8156_s1 + $0x60] sm:$0xff]   ;;  %v6230_v29 = vld [vmem:[%s8156_s1 + $0x68] sm:$0xff]   ;;  %v6232_v31 = vld [vmem:[%s8156_s1 + $0x70] sm:$0xff]  }
  0x1c   : > { %2581 = vmatpush1.bf16.msra.mxu1 %v6208_v5  ;;  %2870 = vmatpush1.bf16.msra.mxu0 %v6860_v6  ;;  %v6982_v28 = vld [vmem:[%s8156_s1 + $0xe0] sm:$0xff]   ;;  %v6993_v30 = vld [vmem:[%s8156_s1 + $0xe8] sm:$0xff]   ;;  %v7004_v32 = vld [vmem:[%s8156_s1 + $0xf0] sm:$0xff]  }
  0x1d   : > { %2582 = vmatprep.subr.bf16.mxu1 %v6781_v1  ;;  %2871 = vmatprep.subr.bf16.mxu0 %v6781_v1  ;;  %v7015_v34 = vld [vmem:[%s8156_s1 + $0xf8] sm:$0xff]   ;;  %v6236_v35 = vld [vmem:[%s6929_s14] ss:$36 sps:$4 sm:$0xff]   ;;  %v6239_v36 = vld [vmem:[%s6929_s14 + $0x8] ss:$36 sps:$4 sm:$0xff]  }
  0x1e   : > { %v6242_v37 = vld [vmem:[%s8156_s1 + $0x100] sm:$0xff]   ;;  %v6244_v38 = vld [vmem:[%s6929_s14 + $0x4c] ss:$36 sps:$4 sm:$0xff]   ;;  %v6246_v39 = vld [vmem:[%s6929_s14 + $0x54] ss:$36 sps:$4 sm:$0xff]  }
  0x1f   : > { %v6243_v40 = vld [vmem:[%s8156_s1 + $0x108] sm:$0xff]   ;;  %v6249_v42 = vld [vmem:[%s6929_s14 + $0x50] ss:$36 sps:$4 sm:$0xff]   ;;  %v6254_v45 = vld [vmem:[%s6929_s14 + $0x9c] ss:$36 sps:$4 sm:$0xff]  }
  0x20   : > { %2583 = vmatpush1.bf16.msra.mxu1 %v6210_v7  ;;  %2872 = vmatpush1.bf16.msra.mxu0 %v6871_v8  ;;  %v6248_v41 = vld [vmem:[%s6929_s14 + $0x48] ss:$36 sps:$4 sm:$0xff]   ;;  %v6252_v43 = vld [vmem:[%s6929_s14 + $0x94] ss:$36 sps:$4 sm:$0xff]   ;;  %v6258_v49 = vld [vmem:[%s8156_s1 + $0x120] sm:$0xff]  }
  0x21   : > { %2584 = vmatprep.subr.bf16.mxu1 %v6781_v1  ;;  %2873 = vmatprep.subr.bf16.mxu0 %v6781_v1  ;;  %v6250_v44 = vld [vmem:[%s8156_s1 + $0x110] sm:$0xff]   ;;  %v6251_v46 = vld [vmem:[%s8156_s1 + $0x118] sm:$0xff]   ;;  %v6262_v51 = vld [vmem:[%s6929_s14 + $0xe4] ss:$36 sps:$4 sm:$0xff]  }
  0x22   : > { %v6256_v47 = vld [vmem:[%s6929_s14 + $0x90] ss:$36 sps:$4 sm:$0xff]   ;;  %v6257_v48 = vld [vmem:[%s6929_s14 + $0x98] ss:$36 sps:$4 sm:$0xff]   ;;  %v6259_v52 = vld [vmem:[%s8156_s1 + $0x128] sm:$0xff]  }
  0x23   : > { %v6260_v50 = vld [vmem:[%s6929_s14 + $0xdc] ss:$36 sps:$4 sm:$0xff]   ;;  %v6268_v55 = vld [vmem:[%s6929_s14 + $0x124] ss:$36 sps:$4 sm:$0xff]   ;;  %v6266_v56 = vld [vmem:[%s8156_s1 + $0x130] sm:$0xff]  }
  0x24   : > { %2585 = vmatpush1.bf16.msra.mxu1 %v6212_v9  ;;  %2874 = vmatpush1.bf16.msra.mxu0 %v6882_v10  ;;  %v6264_v53 = vld [vmem:[%s6929_s14 + $0xd8] ss:$36 sps:$4 sm:$0xff]   ;;  %v6265_v54 = vld [vmem:[%s6929_s14 + $0xe0] ss:$36 sps:$4 sm:$0xff]   ;;  %v6270_v57 = vld [vmem:[%s6929_s14 + $0x12c] ss:$36 sps:$4 sm:$0xff]  }
  0x25   : > { %2586 = vmatprep.subr.bf16.mxu1 %v6781_v1  ;;  %2875 = vmatprep.subr.bf16.mxu0 %v6781_v1  ;;  %v6267_v58 = vld [vmem:[%s8156_s1 + $0x138] sm:$0xff]   ;;  %v6272_v59 = vld [vmem:[%s6929_s14 + $0x120] ss:$36 sps:$4 sm:$0xff]   ;;  %v6273_v60 = vld [vmem:[%s6929_s14 + $0x128] ss:$36 sps:$4 sm:$0xff]  }
  0x26   : > { %v6274_v61 = vld [vmem:[%s8156_s1 + $0x140] sm:$0xff]   ;;  %v6276_v62 = vld [vmem:[%s6929_s14 + $0x16c] ss:$36 sps:$4 sm:$0xff]   ;;  %v6278_v63 = vld [vmem:[%s6929_s14 + $0x174] ss:$36 sps:$4 sm:$0xff]  }
  0x27   : > { %v6275_v0 = vld [vmem:[%s8156_s1 + $0x148] sm:$0xff]   ;;  %v6281_v3 = vld [vmem:[%s6929_s14 + $0x170] ss:$36 sps:$4 sm:$0xff]   ;;  %v6283_v7 = vld [vmem:[%s8156_s1 + $0x158] sm:$0xff]  }
  0x28   : > { %2587 = vmatpush1.bf16.msra.mxu1 %v6214_v11  ;;  %2876 = vmatpush1.bf16.msra.mxu0 %v6897_v12  ;;  %v6282_v5 = vld [vmem:[%s8156_s1 + $0x150] sm:$0xff]   ;;  %v6289_v9 = vld [vmem:[%s6929_s14 + $0x1b8] ss:$36 sps:$4 sm:$0xff]  }
  0x29   : > { %2588 = vmatprep.subr.bf16.mxu1 %v6781_v1  ;;  %2877 = vmatprep.subr.bf16.mxu0 %v6781_v1  ;;  %v6292_v11 = vld [vmem:[%s6929_s14 + $0x1fc] ss:$36 sps:$4 sm:$0xff]   ;;  %v6302_v21 = vld [vmem:[%s6929_s14 + $0x10] ss:$36 sps:$4 sm:$0xff]  }
  0x2a   : > { %v6299_v19 = vld [vmem:[%s8156_s1 + $0x178] sm:$0xff]  }
  0x2c   : > { %2589 = vmatpush1.bf16.msra.mxu1 %v6216_v13  ;;  %2878 = vmatpush1.bf16.msra.mxu0 %v6909_v14  ;;  %v6291_v13 = vld [vmem:[%s8156_s1 + $0x168] sm:$0xff]  }
  0x2d   : > { %2590 = vmatprep.subr.bf16.mxu1 %v6781_v1  ;;  %2879 = vmatprep.subr.bf16.mxu0 %v6781_v1 }
  0x30   : > { %2591 = vmatpush1.bf16.msra.mxu1 %v6218_v15  ;;  %2880 = vmatpush1.bf16.msra.mxu0 %v6920_v16  ;;  %v6297_v15 = vld [vmem:[%s6929_s14 + $0x200] ss:$36 sps:$4 sm:$0xff]  }
  0x31   : > { %2592 = vmatprep.subr.bf16.mxu1 %v6781_v1  ;;  %2881 = vmatprep.subr.bf16.mxu0 %v6781_v1 }
  0x34   : > { %2593 = vmatpush1.bf16.msra.mxu1 %v6220_v17  ;;  %2882 = vmatpush1.bf16.msra.mxu0 %v6936_v18  ;;  %v6298_v17 = vld [vmem:[%s8156_s1 + $0x170] sm:$0xff]  }
  0x35   : > { %2594 = vmatprep.subr.bf16.mxu1 %v6781_v1  ;;  %2883 = vmatprep.subr.bf16.mxu0 %v6781_v1 }
  0x38   : > { %2595 = vmatpush1.bf16.msra.mxu1 %v6222_v20  ;;  %2884 = vmatpush1.bf16.msra.mxu0 %v6949_v22  ;;  %v6305_v20 = vld [vmem:[%s6929_s14 + $0x240] ss:$36 sps:$4 sm:$0xff]  }
  0x39   : > { %2596 = vmatprep.subr.bf16.mxu1 %v6781_v1  ;;  %2885 = vmatprep.subr.bf16.mxu0 %v6781_v1 }
  0x3c   : > { %2597 = vmatpush1.bf16.msra.mxu1 %v6224_v23  ;;  %2886 = vmatpush1.bf16.msra.mxu0 %v6960_v24  ;;  %v6306_v23 = vld [vmem:[%s8156_s1 + $0x180] sm:$0xff]  }
  0x3d   : > { %2598 = vmatprep.subr.bf16.mxu1 %v6781_v1  ;;  %2887 = vmatprep.subr.bf16.mxu0 %v6781_v1 }
  0x40   : > { %2599 = vmatpush1.bf16.msra.mxu1 %v6226_v25  ;;  %2888 = vmatpush1.bf16.msra.mxu0 %v6971_v26  ;;  %v6311_v25 = vld [vmem:[%s6929_s14 + $0x288] ss:$36 sps:$4 sm:$0xff]  }
  0x41   : > { %2600 = vmatprep.subr.bf16.mxu1 %v6781_v1  ;;  %2889 = vmatprep.subr.bf16.mxu0 %v6781_v1 }
  0x44   : > { %2601 = vmatpush1.bf16.msra.mxu1 %v6228_v27  ;;  %2890 = vmatpush1.bf16.msra.mxu0 %v6982_v28  ;;  %v6312_v27 = vld [vmem:[%s6929_s14 + $0x58] ss:$36 sps:$4 sm:$0xff]  }
  0x45   : > { %2602 = vmatprep.subr.bf16.mxu1 %v6781_v1  ;;  %2891 = vmatprep.subr.bf16.mxu0 %v6781_v1 }
  0x48   : > { %2603 = vmatpush1.bf16.msra.mxu1 %v6230_v29  ;;  %2892 = vmatpush1.bf16.msra.mxu0 %v6993_v30  ;;  %v6315_v29 = vld [vmem:[%s6929_s14 + $0xa4] ss:$36 sps:$4 sm:$0xff]  }
  0x49   : > { %2604 = vmatprep.subr.bf16.mxu1 %v6781_v1  ;;  %2893 = vmatprep.subr.bf16.mxu0 %v6781_v1 }
  0x4c   : > { %2605 = vmatpush1.bf16.msra.mxu1 %v6232_v31  ;;  %2894 = vmatpush1.bf16.msra.mxu0 %v7004_v32  ;;  %v6317_v31 = vld [vmem:[%s6929_s14 + $0x2d0] ss:$36 sps:$4 sm:$0xff]  }
  0x4d   : > { %2606 = vmatprep.subr.bf16.mxu1 %v6781_v1  ;;  %2895 = vmatprep.subr.bf16.mxu0 %v6781_v1 }
  0x50   : > { %2607 = vmatpush1.bf16.msra.mxu1 %v6234_v33  ;;  %2896 = vmatpush1.bf16.msra.mxu0 %v7015_v34  ;;  %v6318_v33 = vld [vmem:[%s6929_s14 + $0xa0] ss:$36 sps:$4 sm:$0xff]  }
  0x51   : > { %5698 = vmatprep.subr.bf16.mxu1 %v6781_v1  ;;  %3154 = vmatprep.subr.bf16.mxu0 %v6781_v1 }
  0x53   : > { %2609 = vmatmul.mubr.bf16.vlgmr.msra.gmra.mrb[0].mxu1 %v6236_v35  ;;  %2898 = vmatmul.mubr.bf16.vlgmr.msra.gmra.mrb[0].mxu0 %v6239_v36  ;;  %v6322_v35 = vld [vmem:[%s6929_s14 + $0xec] ss:$36 sps:$4 sm:$0xff]   ;;  %v6358_v36 = vld [vmem:[%s8156_s1 + $0x1a0] sm:$0xff]  }
  0x54   : > { %5714 = vmatpush1.bf16.msra.mxu1 %v6839_v2  ;;  %3155 = vmatpush1.bf16.msra.mxu0 %v6242_v37  ;;  %v6280_v2 = vld [vmem:[%s6929_s14 + $0x168] ss:$36 sps:$4 sm:$0xff]  }
  0x55   : > { %2616 = vmatprep.mubr.bf16.mxu1 %v6244_v38  ;;  %3156 = vmatprep.subr.bf16.mxu0 %v6781_v1  ;;  %v6371_v37 = vld [vmem:[%s8156_s1 + $0x1a8] sm:$0xff]   ;;  %v6324_v38 = vld [vmem:[%s6929_s14 + $0x318] ss:$36 sps:$4 sm:$0xff]  }
  0x56   : > { %2905 = vmatprep.mubr.bf16.mxu0 %v6246_v39  ;;  %5699 = vmatprep.subr.bf16.mxu1 %v6781_v1  ;;  %v6325_v39 = vld [vmem:[%s6929_s14 + $0xe8] ss:$36 sps:$4 sm:$0xff]  }
  0x58   : > { %5715 = vmatpush1.bf16.msra.mxu1 %v6849_v4  ;;  %3157 = vmatpush1.bf16.msra.mxu0 %v6243_v40  ;;  %v6284_v4 = vld [vmem:[%s6929_s14 + $0x1b4] ss:$36 sps:$4 sm:$0xff]   ;;  %v6326_v40 = vld [vmem:[%s6929_s14 + $0x364] ss:$36 sps:$4 sm:$0xff]  }
  0x59   : > { %5700 = vmatprep.subr.bf16.mxu1 %v6781_v1  ;;  %3158 = vmatprep.subr.bf16.mxu0 %v6781_v1 }
  0x5b   : > { %2617 = vmatmul.mubr.bf16.gmra.mrb[4].mxu1 %v6248_v41  ;;  %2906 = vmatmul.mubr.bf16.gmra.mrb[4].mxu0 %v6249_v42  ;;  %v6328_v41 = vld [vmem:[%s6929_s14 + $0x134] ss:$36 sps:$4 sm:$0xff]  }
  0x5c   : > { %2624 = vmatprep.mubr.bf16.mxu1 %v6252_v43  ;;  %3159 = vmatpush1.bf16.msra.mxu0 %v6250_v44  ;;  %v6384_v42 = vld [vmem:[%s8156_s1 + $0x1b0] sm:$0xff]   ;;  %v6397_v43 = vld [vmem:[%s8156_s1 + $0x1b8] sm:$0xff]   ;;  %v6330_v44 = vld [vmem:[%s6929_s14 + $0x360] ss:$36 sps:$4 sm:$0xff]  }
  0x5d   : > { %2913 = vmatprep.mubr.bf16.mxu0 %v6254_v45  ;;  %3160 = vmatprep.subr.bf16.mxu0 %v6781_v1  ;;  %v6331_v45 = vld [vmem:[%s6929_s14 + $0x130] ss:$36 sps:$4 sm:$0xff]  }
  0x5e   : > { %5716 = vmatpush1.bf16.msra.mxu1 %v6860_v6  ;;  %v6286_v6 = vld [vmem:[%s6929_s14 + $0x1bc] ss:$36 sps:$4 sm:$0xff]  }
  0x5f   : > { %5701 = vmatprep.subr.bf16.mxu1 %v6781_v1 }
  0x60   : > { %3161 = vmatpush1.bf16.msra.mxu0 %v6251_v46  ;;  %v6333_v46 = vld [vmem:[%s6929_s14 + $0x3ac] ss:$36 sps:$4 sm:$0xff]  }
  0x61   : > { %3162 = vmatprep.subr.bf16.mxu0 %v6781_v1 }
  0x62   : > { %5717 = vmatpush1.bf16.msra.mxu1 %v6871_v8  ;;  %v6288_v8 = vld [vmem:[%s6929_s14 + $0x1b0] ss:$36 sps:$4 sm:$0xff]  }
  0x63   : > { %2625 = vmatmul.mubr.bf16.gmra.mrb[8].mxu1 %v6256_v47  ;;  %5702 = vmatprep.subr.bf16.mxu1 %v6781_v1  ;;  %v6335_v47 = vld [vmem:[%s6929_s14 + $0x17c] ss:$36 sps:$4 sm:$0xff]  }
  0x64   : > { %2914 = vmatmul.mubr.bf16.gmra.mrb[8].mxu0 %v6257_v48  ;;  %2632 = vmatprep.mubr.bf16.mxu1 %v6260_v50  ;;  %v6410_v48 = vld [vmem:[%s8156_s1 + $0x1c0] sm:$0xff]   ;;  %v6337_v50 = vld [vmem:[%s6929_s14 + $0x3a8] ss:$36 sps:$4 sm:$0xff]  }
  0x65   : > { %3163 = vmatpush1.bf16.msra.mxu0 %v6258_v49  ;;  %2921 = vmatprep.mubr.bf16.mxu0 %v6262_v51  ;;  %v6423_v49 = vld [vmem:[%s8156_s1 + $0x1c8] sm:$0xff]   ;;  %v6338_v51 = vld [vmem:[%s6929_s14 + $0x178] ss:$36 sps:$4 sm:$0xff]  }
  0x66   : > { %3164 = vmatprep.subr.bf16.mxu0 %v6781_v1  ;;  %5718 = vmatpush1.bf16.msra.mxu1 %v6882_v10  ;;  %v6290_v10 = vld [vmem:[%s8156_s1 + $0x160] sm:$0xff]  }
  0x67   : > { %5703 = vmatprep.subr.bf16.mxu1 %v6781_v1 }
  0x69   : > { %3165 = vmatpush1.bf16.msra.mxu0 %v6259_v52  ;;  %v6339_v52 = vld [vmem:[%s6929_s14 + $0x3f4] ss:$36 sps:$4 sm:$0xff]  }
  0x6a   : > { %3166 = vmatprep.subr.bf16.mxu0 %v6781_v1  ;;  %5719 = vmatpush1.bf16.msra.mxu1 %v6897_v12  ;;  %v6294_v12 = vld [vmem:[%s6929_s14 + $0x204] ss:$36 sps:$4 sm:$0xff]  }
  0x6b   : > { %2633 = vmatmul.mubr.bf16.gmra.mrb[12].mxu1 %v6264_v53  ;;  %5704 = vmatprep.subr.bf16.mxu1 %v6781_v1  ;;  %v6341_v53 = vld [vmem:[%s6929_s14 + $0x1c4] ss:$36 sps:$4 sm:$0xff]  }
  0x6c   : > { %2922 = vmatmul.mubr.bf16.gmra.mrb[12].mxu0 %v6265_v54  ;;  %2640 = vmatprep.mubr.bf16.mxu1 %v6268_v55  ;;  %v6436_v54 = vld [vmem:[%s8156_s1 + $0x1d0] sm:$0xff]  }
  0x6d   : > { %3167 = vmatpush1.bf16.msra.mxu0 %v6266_v56  ;;  %2929 = vmatprep.mubr.bf16.mxu0 %v6270_v57  ;;  %v6343_v55 = vld [vmem:[%s6929_s14 + $0x3f0] ss:$36 sps:$4 sm:$0xff]   ;;  %v6344_v56 = vld [vmem:[%s6929_s14 + $0x1c0] ss:$36 sps:$4 sm:$0xff]  }
  0x6e   : > { %3168 = vmatprep.subr.bf16.mxu0 %v6781_v1  ;;  %5720 = vmatpush1.bf16.msra.mxu1 %v6909_v14  ;;  %v6296_v14 = vld [vmem:[%s6929_s14 + $0x1f8] ss:$36 sps:$4 sm:$0xff]  }
  0x6f   : > { %5705 = vmatprep.subr.bf16.mxu1 %v6781_v1  ;;  %v6346_v57 = vld [vmem:[%s6929_s14 + $0x43c] ss:$36 sps:$4 sm:$0xff]  }
  0x71   : > { %3169 = vmatpush1.bf16.msra.mxu0 %v6267_v58  ;;  %v6348_v58 = vld [vmem:[%s6929_s14 + $0x20c] ss:$36 sps:$4 sm:$0xff]  }
  0x72   : > { %3170 = vmatprep.subr.bf16.mxu0 %v6781_v1  ;;  %5721 = vmatpush1.bf16.msra.mxu1 %v6920_v16  ;;  %v6300_v16 = vld [vmem:[%s6929_s14 + $0x244] ss:$36 sps:$4 sm:$0xff]  }
  0x73   : > { %2641 = vmatmul.mubr.bf16.gmra.mrb[16].mxu1 %v6272_v59  ;;  %5706 = vmatprep.subr.bf16.mxu1 %v6781_v1  ;;  %v6449_v59 = vld [vmem:[%s8156_s1 + $0x1d8] sm:$0xff]  }
  0x74   : > { %2930 = vmatmul.mubr.bf16.gmra.mrb[16].mxu0 %v6273_v60  ;;  %2648 = vmatprep.mubr.bf16.mxu1 %v6276_v62  ;;  %v6350_v60 = vld [vmem:[%s6929_s14 + $0x438] ss:$36 sps:$4 sm:$0xff]   ;;  %v6352_v62 = vld [vmem:[%s6929_s14 + $0x484] ss:$36 sps:$4 sm:$0xff]  }
  0x75   : > { %3171 = vmatpush1.bf16.msra.mxu0 %v6274_v61  ;;  %2937 = vmatprep.mubr.bf16.mxu0 %v6278_v63  ;;  %v6351_v61 = vld [vmem:[%s6929_s14 + $0x208] ss:$36 sps:$4 sm:$0xff]   ;;  %v6354_v63 = vld [vmem:[%s6929_s14 + $0x254] ss:$36 sps:$4 sm:$0xff]  }
  0x76   : > { %3172 = vmatprep.subr.bf16.mxu0 %v6781_v1  ;;  %5722 = vmatpush1.bf16.msra.mxu1 %v6936_v18  ;;  %v6304_v18 = vld [vmem:[%s6929_s14 + $0x14] ss:$36 sps:$4 sm:$0xff]  }
  0x77   : > { %5707 = vmatprep.subr.bf16.mxu1 %v6781_v1 }
  0x79   : > { %3173 = vmatpush1.bf16.msra.mxu0 %v6275_v0  ;;  %v6356_v0 = vld [vmem:[%s6929_s14 + $0x480] ss:$36 sps:$4 sm:$0xff]  }
  0x7a   : > { %3174 = vmatprep.subr.bf16.mxu0 %v6781_v1  ;;  %5723 = vmatpush1.bf16.msra.mxu1 %v6949_v22  ;;  %v6307_v22 = vld [vmem:[%s6929_s14 + $0x28c] ss:$36 sps:$4 sm:$0xff]  }
  0x7b   : > { %2649 = vmatmul.mubr.bf16.gmra.mrb[20].mxu1 %v6280_v2  ;;  %5708 = vmatprep.subr.bf16.mxu1 %v6781_v1  ;;  %v6357_v2 = vld [vmem:[%s6929_s14 + $0x250] ss:$36 sps:$4 sm:$0xff]  }
  0x7c   : > { %2938 = vmatmul.mubr.bf16.gmra.mrb[20].mxu0 %v6281_v3  ;;  %2656 = vmatprep.mubr.bf16.mxu1 %v6284_v4  ;;  %v6359_v3 = vld [vmem:[%s6929_s14 + $0x4cc] ss:$36 sps:$4 sm:$0xff]   ;;  %v6361_v4 = vld [vmem:[%s6929_s14 + $0x29c] ss:$36 sps:$4 sm:$0xff]  }
  0x7d   : > { %3175 = vmatpush1.bf16.msra.mxu0 %v6282_v5  ;;  %2945 = vmatprep.mubr.bf16.mxu0 %v6286_v6  ;;  %v6462_v5 = vld [vmem:[%s8156_s1 + $0x1e0] sm:$0xff]  }
  0x7e   : > { %3176 = vmatprep.subr.bf16.mxu0 %v6781_v1  ;;  %5724 = vmatpush1.bf16.msra.mxu1 %v6960_v24  ;;  %v6309_v24 = vld [vmem:[%s6929_s14 + $0x5c] ss:$36 sps:$4 sm:$0xff]  }
  0x7f   : > { %5709 = vmatprep.subr.bf16.mxu1 %v6781_v1  ;;  %v7238_v6 = vld [vmem:[%s8156_s1 + $0x200] sm:$0xff]  }
  0x81   : > { %3177 = vmatpush1.bf16.msra.mxu0 %v6283_v7  ;;  %v6363_v7 = vld [vmem:[%s6929_s14 + $0x4c8] ss:$36 sps:$4 sm:$0xff]  }
  0x82   : > { %3178 = vmatprep.subr.bf16.mxu0 %v6781_v1  ;;  %5725 = vmatpush1.bf16.msra.mxu1 %v6971_v26  ;;  %v6319_v26 = vld [vmem:[%s8156_s1 + $0x188] sm:$0xff]  }
  0x83   : > { %2657 = vmatmul.mubr.bf16.gmra.mrb[24].mxu1 %v6288_v8  ;;  %5710 = vmatprep.subr.bf16.mxu1 %v6781_v1  ;;  %v6364_v8 = vld [vmem:[%s6929_s14 + $0x298] ss:$36 sps:$4 sm:$0xff]  }
  0x84   : > { %2946 = vmatmul.mubr.bf16.gmra.mrb[24].mxu0 %v6289_v9  ;;  %2664 = vmatprep.mubr.bf16.mxu1 %v6292_v11  ;;  %v6365_v9 = vld [vmem:[%s6929_s14 + $0x514] ss:$36 sps:$4 sm:$0xff]  }
  0x85   : > { %3179 = vmatpush1.bf16.msra.mxu0 %v6290_v10  ;;  %2953 = vmatprep.mubr.bf16.mxu0 %v6294_v12  ;;  %v6367_v10 = vld [vmem:[%s6929_s14 + $0x2e4] ss:$36 sps:$4 sm:$0xff]   ;;  %v6369_v11 = vld [vmem:[%s6929_s14 + $0x510] ss:$36 sps:$4 sm:$0xff]  }
  0x86   : > { %3180 = vmatprep.subr.bf16.mxu0 %v6781_v1  ;;  %5726 = vmatpush1.bf16.msra.mxu1 %v6982_v28  ;;  %v6313_v28 = vld [vmem:[%s6929_s14 + $0x2d4] ss:$36 sps:$4 sm:$0xff]   ;;  %v6370_v12 = vld [vmem:[%s6929_s14 + $0x2e0] ss:$36 sps:$4 sm:$0xff]  }
  0x87   : > { %5711 = vmatprep.subr.bf16.mxu1 %v6781_v1 }
  0x89   : > { %3181 = vmatpush1.bf16.msra.mxu0 %v6291_v13  ;;  %v6372_v13 = vld [vmem:[%s6929_s14 + $0x55c] ss:$36 sps:$4 sm:$0xff]  }
  0x8a   : > { %3182 = vmatprep.subr.bf16.mxu0 %v6781_v1  ;;  %5727 = vmatpush1.bf16.msra.mxu1 %v6993_v30  ;;  %v6332_v30 = vld [vmem:[%s8156_s1 + $0x190] sm:$0xff]  }
  0x8b   : > { %2665 = vmatmul.mubr.bf16.gmra.mrb[28].mxu1 %v6296_v14  ;;  %5712 = vmatprep.subr.bf16.mxu1 %v6781_v1  ;;  %v6374_v14 = vld [vmem:[%s6929_s14 + $0x32c] ss:$36 sps:$4 sm:$0xff]  }
  0x8c   : > { %2954 = vmatmul.mubr.bf16.gmra.mrb[28].mxu0 %v6297_v15  ;;  %2672 = vmatprep.mubr.bf16.mxu1 %v6300_v16  ;;  %v6476_v15 = vld [vmem:[%s8156_s1 + $0x1e8] sm:$0xff]   ;;  %v6376_v16 = vld [vmem:[%s6929_s14 + $0x558] ss:$36 sps:$4 sm:$0xff]  }
  0x8d   : > { %3183 = vmatpush1.bf16.msra.mxu0 %v6298_v17  ;;  %3186 = vmatprep.mubr.bf16.mxu0 %v6304_v18  ;;  %v6377_v17 = vld [vmem:[%s6929_s14 + $0x328] ss:$36 sps:$4 sm:$0xff]  }
  0x8e   : > { %3184 = vmatprep.subr.bf16.mxu0 %v6781_v1  ;;  %5728 = vmatpush1.bf16.msra.mxu1 %v7004_v32  ;;  %v6345_v32 = vld [vmem:[%s8156_s1 + $0x198] sm:$0xff]   ;;  %v6378_v18 = vld [vmem:[%s6929_s14 + $0x5a4] ss:$36 sps:$4 sm:$0xff]  }
  0x8f   : > { %5713 = vmatprep.subr.bf16.mxu1 %v6781_v1 }
  0x91   : > { %3185 = vmatpush1.bf16.msra.mxu0 %v6299_v19  ;;  %v6380_v19 = vld [vmem:[%s6929_s14 + $0x374] ss:$36 sps:$4 sm:$0xff]  }
  0x92   : > { %3443 = vmatprep.subr.bf16.mxu0 %v6781_v1  ;;  %5729 = vmatpush1.bf16.msra.mxu1 %v7015_v34  ;;  %v6320_v34 = vld [vmem:[%s6929_s14 + $0x31c] ss:$36 sps:$4 sm:$0xff]  }
  0x93   : > { %2673 = vmatmul.mubr.bf16.gmra.mrb[32].mxu1 %v6305_v20  ;;  %5618 = vmatprep.subr.bf16.mxu1 %v7238_v6  ;;  %v6382_v20 = vld [vmem:[%s6929_s14 + $0x5a0] ss:$36 sps:$4 sm:$0xff]  }
  0x94   : > { %3187 = vmatmul.mubr.bf16.vlgmr.msra.gmra.mrb[0].mxu0 %v6302_v21  ;;  %2680 = vmatprep.mubr.bf16.mxu1 %v6307_v22  ;;  %v6383_v21 = vld [vmem:[%s6929_s14 + $0x370] ss:$36 sps:$4 sm:$0xff]  }
  0x95   : > { %3444 = vmatpush1.bf16.msra.mxu0 %v6306_v23  ;;  %3194 = vmatprep.mubr.bf16.mxu0 %v6309_v24  ;;  %v6385_v22 = vld [vmem:[%s6929_s14 + $0x5ec] ss:$36 sps:$4 sm:$0xff]   ;;  %v6387_v23 = vld [vmem:[%s6929_s14 + $0x3bc] ss:$36 sps:$4 sm:$0xff]  }
  0x96   : > { %3445 = vmatprep.subr.bf16.mxu0 %v6781_v1  ;;  %v6490_v24 = vld [vmem:[%s8156_s1 + $0x1f0] sm:$0xff]  }
  0x99   : > { %3446 = vmatpush1.bf16.msra.mxu0 %v6319_v26  ;;  %v6390_v26 = vld [vmem:[%s6929_s14 + $0x3b8] ss:$36 sps:$4 sm:$0xff]  }
  0x9a   : > { %3447 = vmatprep.subr.bf16.mxu0 %v6781_v1 }
  0x9b   : > { %2681 = vmatmul.mubr.bf16.gmra.mrb[36].mxu1 %v6311_v25  ;;  %v6389_v25 = vld [vmem:[%s6929_s14 + $0x5e8] ss:$36 sps:$4 sm:$0xff]  }
  0x9c   : > { %3195 = vmatmul.mubr.bf16.gmra.mrb[4].mxu0 %v6312_v27  ;;  %2688 = vmatprep.mubr.bf16.mxu1 %v6313_v28  ;;  %v6391_v27 = vld [vmem:[%s6929_s14 + $0x634] ss:$36 sps:$4 sm:$0xff]   ;;  %v6393_v28 = vld [vmem:[%s6929_s14 + $0x404] ss:$36 sps:$4 sm:$0xff]  }
  0x9d   : > { %3202 = vmatprep.mubr.bf16.mxu0 %v6315_v29  ;;  %3448 = vmatpush1.bf16.msra.mxu0 %v6332_v30  ;;  %v6395_v29 = vld [vmem:[%s6929_s14 + $0x630] ss:$36 sps:$4 sm:$0xff]   ;;  %v6396_v30 = vld [vmem:[%s6929_s14 + $0x400] ss:$36 sps:$4 sm:$0xff]  }
  0x9e   : > { %3449 = vmatprep.subr.bf16.mxu0 %v6781_v1 }
  0xa1   : > { %3450 = vmatpush1.bf16.msra.mxu0 %v6345_v32  ;;  %v6400_v32 = vld [vmem:[%s6929_s14 + $0x44c] ss:$36 sps:$4 sm:$0xff]  }
  0xa2   : > { %3451 = vmatprep.subr.bf16.mxu0 %v6781_v1 }
  0xa3   : > { %2689 = vmatmul.mubr.bf16.gmra.mrb[40].mxu1 %v6317_v31  ;;  %v6398_v31 = vld [vmem:[%s6929_s14 + $0x67c] ss:$36 sps:$4 sm:$0xff]  }
  0xa4   : > { %3203 = vmatmul.mubr.bf16.gmra.mrb[8].mxu0 %v6318_v33  ;;  %2696 = vmatprep.mubr.bf16.mxu1 %v6320_v34  ;;  %v6402_v33 = vld [vmem:[%s6929_s14 + $0x678] ss:$36 sps:$4 sm:$0xff]   ;;  %v6403_v34 = vld [vmem:[%s6929_s14 + $0x448] ss:$36 sps:$4 sm:$0xff]  }
  0xa5   : > { %3210 = vmatprep.mubr.bf16.mxu0 %v6322_v35  ;;  %3452 = vmatpush1.bf16.msra.mxu0 %v6358_v36  ;;  %v6404_v35 = vld [vmem:[%s6929_s14 + $0x6c4] ss:$36 sps:$4 sm:$0xff]   ;;  %v6406_v36 = vld [vmem:[%s6929_s14 + $0x494] ss:$36 sps:$4 sm:$0xff]  }
  0xa6   : > { %3453 = vmatprep.subr.bf16.mxu0 %v6781_v1 }
  0xa9   : > { %3454 = vmatpush1.bf16.msra.mxu0 %v6371_v37  ;;  %v6408_v37 = vld [vmem:[%s6929_s14 + $0x6c0] ss:$36 sps:$4 sm:$0xff]  }
  0xaa   : > { %3455 = vmatprep.subr.bf16.mxu0 %v6781_v1 }
  0xab   : > { %2697 = vmatmul.mubr.bf16.gmra.mrb[44].mxu1 %v6324_v38  ;;  %v6409_v38 = vld [vmem:[%s6929_s14 + $0x490] ss:$36 sps:$4 sm:$0xff]  }
  0xac   : > { %3211 = vmatmul.mubr.bf16.gmra.mrb[12].mxu0 %v6325_v39  ;;  %2704 = vmatprep.mubr.bf16.mxu1 %v6326_v40  ;;  %v6411_v39 = vld [vmem:[%s6929_s14 + $0x70c] ss:$36 sps:$4 sm:$0xff]   ;;  %v6413_v40 = vld [vmem:[%s6929_s14 + $0x4dc] ss:$36 sps:$4 sm:$0xff]  }
  0xad   : > { %3218 = vmatprep.mubr.bf16.mxu0 %v6328_v41  ;;  %3456 = vmatpush1.bf16.msra.mxu0 %v6384_v42  ;;  %v6415_v41 = vld [vmem:[%s6929_s14 + $0x708] ss:$36 sps:$4 sm:$0xff]   ;;  %v6416_v42 = vld [vmem:[%s6929_s14 + $0x4d8] ss:$36 sps:$4 sm:$0xff]  }
  0xae   : > { %3457 = vmatprep.subr.bf16.mxu0 %v6781_v1 }
  0xb1   : > { %3458 = vmatpush1.bf16.msra.mxu0 %v6397_v43  ;;  %v6417_v43 = vld [vmem:[%s6929_s14 + $0x754] ss:$36 sps:$4 sm:$0xff]  }
  0xb2   : > { %3459 = vmatprep.subr.bf16.mxu0 %v6781_v1 }
  0xb3   : > { %2705 = vmatmul.mubr.bf16.gmra.mrb[48].mxu1 %v6330_v44  ;;  %v6419_v44 = vld [vmem:[%s6929_s14 + $0x524] ss:$36 sps:$4 sm:$0xff]  }
  0xb4   : > { %3219 = vmatmul.mubr.bf16.gmra.mrb[16].mxu0 %v6331_v45  ;;  %2712 = vmatprep.mubr.bf16.mxu1 %v6333_v46  ;;  %v6421_v45 = vld [vmem:[%s6929_s14 + $0x750] ss:$36 sps:$4 sm:$0xff]   ;;  %v6422_v46 = vld [vmem:[%s6929_s14 + $0x520] ss:$36 sps:$4 sm:$0xff]  }
  0xb5   : > { %3226 = vmatprep.mubr.bf16.mxu0 %v6335_v47  ;;  %3460 = vmatpush1.bf16.msra.mxu0 %v6410_v48  ;;  %v6424_v47 = vld [vmem:[%s6929_s14 + $0x79c] ss:$36 sps:$4 sm:$0xff]   ;;  %v6426_v48 = vld [vmem:[%s6929_s14 + $0x56c] ss:$36 sps:$4 sm:$0xff]  }
  0xb6   : > { %3461 = vmatprep.subr.bf16.mxu0 %v6781_v1 }
  0xb9   : > { %3462 = vmatpush1.bf16.msra.mxu0 %v6423_v49 }
  0xba   : > { %3463 = vmatprep.subr.bf16.mxu0 %v6781_v1 }
  0xbb   : > { %2713 = vmatmul.mubr.bf16.gmra.mrb[52].mxu1 %v6337_v50 }
  0xbc   : > { %3227 = vmatmul.mubr.bf16.gmra.mrb[20].mxu0 %v6338_v51  ;;  %2720 = vmatprep.mubr.bf16.mxu1 %v6339_v52  ;;  %v6428_v51 = vld [vmem:[%s6929_s14 + $0x798] ss:$36 sps:$4 sm:$0xff]  }
  0xbd   : > { %3234 = vmatprep.mubr.bf16.mxu0 %v6341_v53  ;;  %3464 = vmatpush1.bf16.msra.mxu0 %v6436_v54  ;;  %v6429_v53 = vld [vmem:[%s6929_s14 + $0x568] ss:$36 sps:$4 sm:$0xff]  }
  0xbe   : > { %3465 = vmatprep.subr.bf16.mxu0 %v6781_v1  ;;  %v6430_v54 = vld [vmem:[%s6929_s14 + $0x7e4] ss:$36 sps:$4 sm:$0xff]  }
  0xc1   : > { %3466 = vmatpush1.bf16.msra.mxu0 %v6449_v59  ;;  %v6434_v59 = vld [vmem:[%s6929_s14 + $0x7e0] ss:$36 sps:$4 sm:$0xff]  }
  0xc2   : > { %3467 = vmatprep.subr.bf16.mxu0 %v6781_v1 }
  0xc3   : > { %2721 = vmatmul.mubr.bf16.gmra.mrb[56].mxu1 %v6343_v55 }
  0xc4   : > { %3235 = vmatmul.mubr.bf16.gmra.mrb[24].mxu0 %v6344_v56  ;;  %2728 = vmatprep.mubr.bf16.mxu1 %v6346_v57  ;;  %v6432_v56 = vld [vmem:[%s6929_s14 + $0x5b4] ss:$36 sps:$4 sm:$0xff]  }
  0xc5   : > { %3242 = vmatprep.mubr.bf16.mxu0 %v6348_v58  ;;  %3468 = vmatpush1.bf16.msra.mxu0 %v6462_v5 }
  0xc6   : > { %3469 = vmatprep.subr.bf16.mxu0 %v6781_v1 }
  0xc9   : > { %3470 = vmatpush1.bf16.msra.mxu0 %v6476_v15  ;;  %v6448_v15 = vld [vmem:[%s6929_s14 + $0x640] ss:$36 sps:$4 sm:$0xff]  }
  0xca   : > { %3471 = vmatprep.subr.bf16.mxu0 %v6781_v1 }
  0xcb   : > { %2729 = vmatmul.mubr.bf16.gmra.mrb[60].mxu1 %v6350_v60 }
  0xcc   : > { %3243 = vmatmul.mubr.bf16.gmra.mrb[28].mxu0 %v6351_v61  ;;  %2736 = vmatprep.mubr.bf16.mxu1 %v6352_v62  ;;  %v6435_v61 = vld [vmem:[%s6929_s14 + $0x5b0] ss:$36 sps:$4 sm:$0xff]  }
  0xcd   : > { %3250 = vmatprep.mubr.bf16.mxu0 %v6354_v63  ;;  %3472 = vmatpush1.bf16.msra.mxu0 %v6490_v24  ;;  %v6437_v62 = vld [vmem:[%s6929_s14 + $0x82c] ss:$36 sps:$4 sm:$0xff]  }
  0xce   : > { %3473 = vmatprep.subr.bf16.mxu0 %v6781_v1  ;;  %v6503_v1 = vld [vmem:[%s8156_s1 + $0x1f8] sm:$0xff]   ;;  %v6458_v24 = vld [vmem:[%s6929_s14 + $0x24c] ss:$36 sps:$4 sm:$0xff]  }
  0xd1   : > { %3474 = vmatpush1.bf16.msra.mxu0 %v6503_v1  ;;  %v6464_v1 = vld [vmem:[%s6929_s14 + $0x294] ss:$36 sps:$4 sm:$0xff]  }
  0xd3   : > { %2737 = vmatmul.mubr.bf16.gmra.mrb[64].mxu1 %v6356_v0  ;;  %v6439_v0 = vld [vmem:[%s6929_s14 + $0x5fc] ss:$36 sps:$4 sm:$0xff]  }
  0xd4   : > { %3251 = vmatmul.mubr.bf16.gmra.mrb[32].mxu0 %v6357_v2  ;;  %2744 = vmatprep.mubr.bf16.mxu1 %v6359_v3 }
  0xd5   : > { %3258 = vmatprep.mubr.bf16.mxu0 %v6361_v4  ;;  %v6441_v4 = vld [vmem:[%s6929_s14 + $0x828] ss:$36 sps:$4 sm:$0xff]  }
  0xdb   : > { %2745 = vmatmul.mubr.bf16.gmra.mrb[68].mxu1 %v6363_v7  ;;  %v6442_v7 = vld [vmem:[%s6929_s14 + $0x5f8] ss:$36 sps:$4 sm:$0xff]  }
  0xdc   : > { %3259 = vmatmul.mubr.bf16.gmra.mrb[36].mxu0 %v6364_v8  ;;  %2752 = vmatprep.mubr.bf16.mxu1 %v6365_v9  ;;  %v6443_v8 = vld [vmem:[%s6929_s14 + $0x874] ss:$36 sps:$4 sm:$0xff]  }
  0xdd   : > { %3266 = vmatprep.mubr.bf16.mxu0 %v6367_v10  ;;  %v6445_v10 = vld [vmem:[%s6929_s14 + $0x644] ss:$36 sps:$4 sm:$0xff]  }
  0xe3   : > { %2753 = vmatmul.mubr.bf16.gmra.mrb[72].mxu1 %v6369_v11 }
  0xe4   : > { %3267 = vmatmul.mubr.bf16.gmra.mrb[40].mxu0 %v6370_v12  ;;  %2760 = vmatprep.mubr.bf16.mxu1 %v6372_v13  ;;  %v6447_v13 = vld [vmem:[%s6929_s14 + $0x870] ss:$36 sps:$4 sm:$0xff]  }
  0xe5   : > { %3274 = vmatprep.mubr.bf16.mxu0 %v6374_v14 }
  0xeb   : > { %2761 = vmatmul.mubr.bf16.gmra.mrb[76].mxu1 %v6376_v16  ;;  %v6450_v16 = vld [vmem:[%s6929_s14 + $0x8bc] ss:$36 sps:$4 sm:$0xff]  }
  0xec   : > { %3275 = vmatmul.mubr.bf16.gmra.mrb[44].mxu0 %v6377_v17  ;;  %2768 = vmatprep.mubr.bf16.mxu1 %v6378_v18  ;;  %v6452_v18 = vld [vmem:[%s6929_s14 + $0x68c] ss:$36 sps:$4 sm:$0xff]  }
  0xed   : > { %3282 = vmatprep.mubr.bf16.mxu0 %v6380_v19 }
  0xf3   : > { %2769 = vmatmul.mubr.bf16.gmra.mrb[80].mxu1 %v6382_v20 }
  0xf4   : > { %3283 = vmatmul.mubr.bf16.gmra.mrb[48].mxu0 %v6383_v21  ;;  %2776 = vmatprep.mubr.bf16.mxu1 %v6385_v22  ;;  %v6454_v21 = vld [vmem:[%s6929_s14 + $0x8b8] ss:$36 sps:$4 sm:$0xff]  }
  0xf5   : > { %3290 = vmatprep.mubr.bf16.mxu0 %v6387_v23  ;;  %v6455_v23 = vld [vmem:[%s6929_s14 + $0x688] ss:$36 sps:$4 sm:$0xff]  }
  0xfb   : > { %2777 = vmatmul.mubr.bf16.gmra.mrb[84].mxu1 %v6389_v25 }
  0xfc   : > { %3291 = vmatmul.mubr.bf16.gmra.mrb[52].mxu0 %v6390_v26  ;;  %2784 = vmatprep.mubr.bf16.mxu1 %v6391_v27  ;;  %v6459_v26 = vld [vmem:[%s6929_s14 + $0x6d4] ss:$36 sps:$4 sm:$0xff]  }
  0xfd   : > { %3298 = vmatprep.mubr.bf16.mxu0 %v6393_v28 }
 0x103   : > { %2785 = vmatmul.mubr.bf16.gmra.mrb[88].mxu1 %v6395_v29  ;;  %v6456_v29 = vld [vmem:[%s6929_s14 + $0x248] ss:$36 sps:$4 sm:$0xff]  }
 0x104   : > { %3299 = vmatmul.mubr.bf16.gmra.mrb[56].mxu0 %v6396_v30  ;;  %2792 = vmatprep.mubr.bf16.mxu1 %v6398_v31  ;;  %v6461_v31 = vld [vmem:[%s6929_s14 + $0x6d0] ss:$36 sps:$4 sm:$0xff]  }
 0x105   : > { %3306 = vmatprep.mubr.bf16.mxu0 %v6400_v32 }
 0x10b   : > { %2793 = vmatmul.mubr.bf16.gmra.mrb[92].mxu1 %v6402_v33  ;;  %v6466_v33 = vld [vmem:[%s6929_s14 + $0x71c] ss:$36 sps:$4 sm:$0xff]  }
 0x10c   : > { %3307 = vmatmul.mubr.bf16.gmra.mrb[60].mxu0 %v6403_v34  ;;  %2800 = vmatprep.mubr.bf16.mxu1 %v6404_v35  ;;  %v6483_v34 = vld [vmem:[%s8156_s1 + $0x208] sm:$0xff]   ;;  %v6504_v35 = vld [vmem:[%s8156_s1 + $0x210] sm:$0xff]  }
 0x10d   : > { %3314 = vmatprep.mubr.bf16.mxu0 %v6406_v36 }
 0x113   : > { %2801 = vmatmul.mubr.bf16.gmra.mrb[96].mxu1 %v6408_v37 }
 0x114   : > { %3315 = vmatmul.mubr.bf16.gmra.mrb[64].mxu0 %v6409_v38  ;;  %2808 = vmatprep.mubr.bf16.mxu1 %v6411_v39  ;;  %v6468_v38 = vld [vmem:[%s6929_s14 + $0x290] ss:$36 sps:$4 sm:$0xff]  }
 0x115   : > { %3322 = vmatprep.mubr.bf16.mxu0 %v6413_v40  ;;  %v6469_v40 = vld [vmem:[%s6929_s14 + $0x718] ss:$36 sps:$4 sm:$0xff]  }
 0x11b   : > { %2809 = vmatmul.mubr.bf16.gmra.mrb[100].mxu1 %v6415_v41  ;;  %v6470_v41 = vld [vmem:[%s6929_s14 + $0x2dc] ss:$36 sps:$4 sm:$0xff]  }
 0x11c   : > { %3323 = vmatmul.mubr.bf16.gmra.mrb[68].mxu0 %v6416_v42  ;;  %2816 = vmatprep.mubr.bf16.mxu1 %v6417_v43  ;;  %v6523_v43 = vld [vmem:[%s8156_s1 + $0x218] sm:$0xff]  }
 0x11d   : > { %3330 = vmatprep.mubr.bf16.mxu0 %v6419_v44 }
 0x123   : > { %2817 = vmatmul.mubr.bf16.gmra.mrb[104].mxu1 %v6421_v45  ;;  %v6542_v45 = vld [vmem:[%s8156_s1 + $0x220] sm:$0xff]  }
 0x124   : > { %3331 = vmatmul.mubr.bf16.gmra.mrb[72].mxu0 %v6422_v46  ;;  %2824 = vmatprep.mubr.bf16.mxu1 %v6424_v47  ;;  %v6474_v47 = vld [vmem:[%s6929_s14 + $0x2d8] ss:$36 sps:$4 sm:$0xff]  }
 0x125   : > { %3338 = vmatprep.mubr.bf16.mxu0 %v6426_v48 }
 0x126   : > { %v7293_v49 = vpop.f32.mrb[0].mxu1 }
 0x127   : > { %v2612_v50 = vpop.f32.mrb[1].mxu1 }
 0x128   : > { %v7296_v52 = vpop.f32.mrb[2].mxu1  ;;  %v6475_v50 = vld [vmem:[%s6929_s14 + $0x760] ss:$36 sps:$4 sm:$0xff]  }
 0x129   : > { %v2615_v55 = vpop.f32.mrb[3].mxu1 }
 0x12a   : > { %v6561_v55 = vld [vmem:[%s8156_s1 + $0x228] sm:$0xff]  }
 0x12b   : > { %2825 = vmatmul.mubr.bf16.gmra.mrb[108].mxu1 %v6428_v51  ;;  %v6477_v51 = vld [vmem:[%s6929_s14 + $0x324] ss:$36 sps:$4 sm:$0xff]  }
 0x12c   : > { %3339 = vmatmul.mubr.bf16.gmra.mrb[76].mxu0 %v6429_v53  ;;  %2832 = vmatprep.mubr.bf16.mxu1 %v6430_v54  ;;  %v6479_v54 = vld [vmem:[%s6929_s14 + $0x7ac] ss:$36 sps:$4 sm:$0xff]  }
 0x12d   : > { %3346 = vmatprep.mubr.bf16.mxu0 %v6432_v56  ;;  %v6580_v56 = vld [vmem:[%s8156_s1 + $0x230] sm:$0xff]  }
 0x12e   : > { %v7301_v57 = vpop.f32.mrb[4].mxu1 }
 0x12f   : > { %v2620_v58 = vpop.f32.mrb[5].mxu1 }
 0x130   : > { %v7304_v60 = vpop.f32.mrb[6].mxu1  ;;  %v6481_v58 = vld [vmem:[%s6929_s14 + $0x320] ss:$36 sps:$4 sm:$0xff]  }
 0x131   : > { %v2623_v63 = vpop.f32.mrb[7].mxu1 }
 0x132   : > { %v6488_v63 = vld [vmem:[%s6929_s14 + $0x368] ss:$36 sps:$4 sm:$0xff]  }
 0x133   : > { %2833 = vmatmul.mubr.bf16.gmra.mrb[112].mxu1 %v6434_v59  ;;  %v6482_v59 = vld [vmem:[%s6929_s14 + $0x7a8] ss:$36 sps:$4 sm:$0xff]  }
 0x134   : > { %3347 = vmatmul.mubr.bf16.gmra.mrb[80].mxu0 %v6435_v61  ;;  %2840 = vmatprep.mubr.bf16.mxu1 %v6437_v62  ;;  %v6484_v61 = vld [vmem:[%s6929_s14 + $0x36c] ss:$36 sps:$4 sm:$0xff]   ;;  %v6486_v62 = vld [vmem:[%s6929_s14 + $0x7f4] ss:$36 sps:$4 sm:$0xff]  }
 0x135   : > { %3354 = vmatprep.mubr.bf16.mxu0 %v6439_v0  ;;  %v6489_v0 = vld [vmem:[%s6929_s14 + $0x7f0] ss:$36 sps:$4 sm:$0xff]  }
 0x136   : > { %v7309_v2 = vpop.f32.mrb[8].mxu1 }
 0x137   : > { %v2628_v3 = vpop.f32.mrb[9].mxu1 }
 0x138   : > { %v7312_v5 = vpop.f32.mrb[10].mxu1  ;;  %v6491_v3 = vld [vmem:[%s6929_s14 + $0x3b4] ss:$36 sps:$4 sm:$0xff]  }
 0x139   : > { %v2631_v9 = vpop.f32.mrb[11].mxu1 }
 0x13a   : > { %v6497_v9 = vld [vmem:[%s6929_s14 + $0x3fc] ss:$36 sps:$4 sm:$0xff]  }
 0x13b   : > { %2841 = vmatmul.mubr.bf16.gmra.mrb[116].mxu1 %v6441_v4  ;;  %v6493_v4 = vld [vmem:[%s6929_s14 + $0x83c] ss:$36 sps:$4 sm:$0xff]  }
 0x13c   : > { %3355 = vmatmul.mubr.bf16.gmra.mrb[84].mxu0 %v6442_v7  ;;  %2848 = vmatprep.mubr.bf16.mxu1 %v6443_v8  ;;  %v6495_v7 = vld [vmem:[%s6929_s14 + $0x3b0] ss:$36 sps:$4 sm:$0xff]   ;;  %v6496_v8 = vld [vmem:[%s6929_s14 + $0x838] ss:$36 sps:$4 sm:$0xff]  }
 0x13d   : > { %3362 = vmatprep.mubr.bf16.mxu0 %v6445_v10  ;;  %v6499_v10 = vld [vmem:[%s6929_s14 + $0x884] ss:$36 sps:$4 sm:$0xff]  }
 0x13e   : > { %v7317_v11 = vpop.f32.mrb[12].mxu1 }
 0x13f   : > { %v2636_v12 = vpop.f32.mrb[13].mxu1 }
 0x140   : > { %v7320_v14 = vpop.f32.mrb[14].mxu1  ;;  %v6599_v12 = vld [vmem:[%s8156_s1 + $0x238] sm:$0xff]  }
 0x141   : > { %v2639_v17 = vpop.f32.mrb[15].mxu1 }
 0x142   : > { %v6507_v17 = vld [vmem:[%s6929_s14 + $0x8cc] ss:$36 sps:$4 sm:$0xff]  }
 0x143   : > { %2849 = vmatmul.mubr.bf16.gmra.mrb[120].mxu1 %v6447_v13  ;;  %v6501_v13 = vld [vmem:[%s6929_s14 + $0x3f8] ss:$36 sps:$4 sm:$0xff]  }
 0x144   : > { %3363 = vmatmul.mubr.bf16.gmra.mrb[88].mxu0 %v6448_v15  ;;  %2856 = vmatprep.mubr.bf16.mxu1 %v6450_v16  ;;  %v6502_v15 = vld [vmem:[%s6929_s14 + $0x880] ss:$36 sps:$4 sm:$0xff]  }
 0x145   : > { %3370 = vmatprep.mubr.bf16.mxu0 %v6452_v18  ;;  %v6505_v16 = vld [vmem:[%s6929_s14 + $0x444] ss:$36 sps:$4 sm:$0xff]  }
 0x146   : > { %v7325_v19 = vpop.f32.mrb[16].mxu1  ;;  %v6509_v18 = vld [vmem:[%s6929_s14 + $0x440] ss:$36 sps:$4 sm:$0xff]  }
 0x147   : > { %v2644_v20 = vpop.f32.mrb[17].mxu1 }
 0x148   : > { %v7328_v22 = vpop.f32.mrb[18].mxu1  ;;  %v6510_v20 = vld [vmem:[%s6929_s14 + $0x8c8] ss:$36 sps:$4 sm:$0xff]  }
 0x149   : > { %v2647_v25 = vpop.f32.mrb[19].mxu1 }
 0x14a   : > { %v6513_v25 = vld [vmem:[%s6929_s14 + $0x18] ss:$36 sps:$4 sm:$0xff]  }
 0x14b   : > { %2857 = vmatmul.mubr.bf16.gmra.mrb[124].mxu1 %v6454_v21  ;;  %v6511_v21 = vld [vmem:[%s6929_s14 + $0x48c] ss:$36 sps:$4 sm:$0xff]  }
 0x14c   : > { %3371 = vmatmul.mubr.bf16.gmra.mrb[92].mxu0 %v6455_v23  ;;  %2961 = vmatprep.mubr.bf16.mxu1 %v6458_v24  ;;  %v6515_v23 = vld [vmem:[%s6929_s14 + $0x1c] ss:$36 sps:$4 sm:$0xff]   ;;  %v6516_v24 = vld [vmem:[%s6929_s14 + $0x488] ss:$36 sps:$4 sm:$0xff]  }
 0x14d   : > { %3378 = vmatprep.mubr.bf16.mxu0 %v6459_v26  ;;  %v6517_v26 = vld [vmem:[%s6929_s14 + $0x4d4] ss:$36 sps:$4 sm:$0xff]  }
 0x14e   : > { %v7333_v27 = vpop.f32.mrb[20].mxu1 }
 0x14f   : > { %v2652_v28 = vpop.f32.mrb[21].mxu1 }
 0x150   : > { %v7336_v30 = vpop.f32.mrb[22].mxu1  ;;  %v6519_v28 = vld [vmem:[%s6929_s14 + $0x64] ss:$36 sps:$4 sm:$0xff]  }
 0x151   : > { %v2655_v32 = vpop.f32.mrb[23].mxu1 }
 0x152   : > { %v6524_v32 = vld [vmem:[%s6929_s14 + $0x51c] ss:$36 sps:$4 sm:$0xff]  }
 0x153   : > { %2962 = vmatmul.mubr.bf16.vlgmr.msra.gmra.mrb[32].mxu1 %v6456_v29  ;;  %v6521_v29 = vld [vmem:[%s6929_s14 + $0x4d0] ss:$36 sps:$4 sm:$0xff]  }
 0x154   : > { %3379 = vmatmul.mubr.bf16.gmra.mrb[96].mxu0 %v6461_v31  ;;  %5619 = vmatpush3.bf16.msra.mxu1 %v7238_v6  ;;  %v6472_v6 = vld [vmem:[%s6929_s14 + $0x764] ss:$36 sps:$4 sm:$0xff]  }
 0x155   : > { %2969 = vmatprep.mubr.bf16.mxu1 %v6464_v1  ;;  %3386 = vmatprep.mubr.bf16.mxu0 %v6466_v33  ;;  %v6522_v31 = vld [vmem:[%s6929_s14 + $0x60] ss:$36 sps:$4 sm:$0xff]   ;;  %v6526_v1 = vld [vmem:[%s6929_s14 + $0xac] ss:$36 sps:$4 sm:$0xff]   ;;  %v6528_v33 = vld [vmem:[%s6929_s14 + $0x518] ss:$36 sps:$4 sm:$0xff]  }
 0x156   : > { %v7348_v36 = vpop.f32.mrb[24].mxu1  ;;  %5620 = vmatprep.subr.bf16.mxu1 %v6483_v34 }
 0x157   : > { %v2660_v37 = vpop.f32.mrb[25].mxu1 }
 0x158   : > { %v7351_v39 = vpop.f32.mrb[26].mxu1  ;;  %5621 = vmatpush3.bf16.msra.mxu1 %v6483_v34  ;;  %v6529_v34 = vld [vmem:[%s6929_s14 + $0xa8] ss:$36 sps:$4 sm:$0xff]   ;;  %v6532_v37 = vld [vmem:[%s6929_s14 + $0xf4] ss:$36 sps:$4 sm:$0xff]  }
 0x159   : > { %v2663_v42 = vpop.f32.mrb[27].mxu1  ;;  %5622 = vmatprep.subr.bf16.mxu1 %v6504_v35 }
 0x15a   : > { %v6538_v42 = vld [vmem:[%s6929_s14 + $0x13c] ss:$36 sps:$4 sm:$0xff]  }
 0x15b   : > { %2970 = vmatmul.mubr.bf16.gmra.mrb[36].mxu1 %v6468_v38  ;;  %v6534_v38 = vld [vmem:[%s6929_s14 + $0x560] ss:$36 sps:$4 sm:$0xff]  }
 0x15c   : > { %3387 = vmatmul.mubr.bf16.gmra.mrb[100].mxu0 %v6469_v40  ;;  %2977 = vmatprep.mubr.bf16.mxu1 %v6470_v41  ;;  %v6535_v40 = vld [vmem:[%s6929_s14 + $0xf0] ss:$36 sps:$4 sm:$0xff]  }
 0x15d   : > { %3394 = vmatprep.mubr.bf16.mxu0 %v6472_v6  ;;  %5623 = vmatpush3.bf16.msra.mxu1 %v6504_v35  ;;  %v6530_v35 = vld [vmem:[%s6929_s14 + $0x564] ss:$36 sps:$4 sm:$0xff]   ;;  %v6536_v41 = vld [vmem:[%s6929_s14 + $0x5ac] ss:$36 sps:$4 sm:$0xff]  }
 0x15e   : > { %v7359_v44 = vpop.f32.mrb[28].mxu1  ;;  %5624 = vmatprep.subr.bf16.mxu1 %v6523_v43  ;;  %v6540_v6 = vld [vmem:[%s6929_s14 + $0x5a8] ss:$36 sps:$4 sm:$0xff]  }
 0x15f   : > { %v2668_v46 = vpop.f32.mrb[29].mxu1 }
 0x160   : > { %v7365_v48 = vpop.f32.mrb[30].mxu1  ;;  %v6545_v46 = vld [vmem:[%s6929_s14 + $0x184] ss:$36 sps:$4 sm:$0xff]  }
 0x161   : > { %v2671_v53 = vpop.f32.mrb[31].mxu1  ;;  %5625 = vmatpush3.bf16.msra.mxu1 %v6523_v43  ;;  %v6541_v43 = vld [vmem:[%s6929_s14 + $0x138] ss:$36 sps:$4 sm:$0xff]  }
 0x162   : > { %5626 = vmatprep.subr.bf16.mxu1 %v6542_v45  ;;  %v6551_v53 = vld [vmem:[%s6929_s14 + $0x1cc] ss:$36 sps:$4 sm:$0xff]  }
 0x163   : > { %2978 = vmatmul.mubr.bf16.gmra.mrb[40].mxu1 %v6474_v47  ;;  %v6547_v47 = vld [vmem:[%s6929_s14 + $0x5f0] ss:$36 sps:$4 sm:$0xff]  }
 0x164   : > { %3395 = vmatmul.mubr.bf16.gmra.mrb[104].mxu0 %v6475_v50  ;;  %2985 = vmatprep.mubr.bf16.mxu1 %v6477_v51  ;;  %v6548_v50 = vld [vmem:[%s6929_s14 + $0x180] ss:$36 sps:$4 sm:$0xff]  }
 0x165   : > { %3402 = vmatprep.mubr.bf16.mxu0 %v6479_v54  ;;  %5627 = vmatpush3.bf16.msra.mxu1 %v6542_v45  ;;  %v6543_v45 = vld [vmem:[%s6929_s14 + $0x5f4] ss:$36 sps:$4 sm:$0xff]   ;;  %v6549_v51 = vld [vmem:[%s6929_s14 + $0x63c] ss:$36 sps:$4 sm:$0xff]  }
 0x166   : > { %5628 = vmatprep.subr.bf16.mxu1 %v6561_v55  ;;  %v6553_v54 = vld [vmem:[%s6929_s14 + $0x638] ss:$36 sps:$4 sm:$0xff]  }
 0x169   : > { %5629 = vmatpush3.bf16.msra.mxu1 %v6561_v55  ;;  %v6554_v55 = vld [vmem:[%s6929_s14 + $0x1c8] ss:$36 sps:$4 sm:$0xff]  }
 0x16a   : > { %5630 = vmatprep.subr.bf16.mxu1 %v6580_v56 }
 0x16b   : > { %2986 = vmatmul.mubr.bf16.gmra.mrb[44].mxu1 %v6481_v58  ;;  %v6557_v58 = vld [vmem:[%s6929_s14 + $0x214] ss:$36 sps:$4 sm:$0xff]  }
 0x16c   : > { %3403 = vmatmul.mubr.bf16.gmra.mrb[108].mxu0 %v6482_v59  ;;  %2993 = vmatprep.mubr.bf16.mxu1 %v6484_v61  ;;  %v6559_v59 = vld [vmem:[%s6929_s14 + $0x680] ss:$36 sps:$4 sm:$0xff]   ;;  %v6560_v61 = vld [vmem:[%s6929_s14 + $0x210] ss:$36 sps:$4 sm:$0xff]  }
 0x16d   : > { %3410 = vmatprep.mubr.bf16.mxu0 %v6486_v62  ;;  %5631 = vmatpush3.bf16.msra.mxu1 %v6580_v56  ;;  %v6555_v56 = vld [vmem:[%s6929_s14 + $0x684] ss:$36 sps:$4 sm:$0xff]   ;;  %v6562_v62 = vld [vmem:[%s6929_s14 + $0x6cc] ss:$36 sps:$4 sm:$0xff]  }
 0x16e   : > { %5632 = vmatprep.subr.bf16.mxu1 %v6599_v12 }
 0x171   : > { %5633 = vmatpush3.bf16.msra.mxu1 %v6599_v12  ;;  %v6576_v12 = vld [vmem:[%s6929_s14 + $0x2ec] ss:$36 sps:$4 sm:$0xff]  }
 0x173   : > { %2994 = vmatmul.mubr.bf16.gmra.mrb[48].mxu1 %v6488_v63  ;;  %v6564_v63 = vld [vmem:[%s6929_s14 + $0x25c] ss:$36 sps:$4 sm:$0xff]  }
 0x174   : > { %3411 = vmatmul.mubr.bf16.gmra.mrb[112].mxu0 %v6489_v0  ;;  %3001 = vmatprep.mubr.bf16.mxu1 %v6491_v3  ;;  %v6566_v0 = vld [vmem:[%s6929_s14 + $0x6c8] ss:$36 sps:$4 sm:$0xff]   ;;  %v6567_v3 = vld [vmem:[%s6929_s14 + $0x258] ss:$36 sps:$4 sm:$0xff]  }
 0x175   : > { %3418 = vmatprep.mubr.bf16.mxu0 %v6493_v4  ;;  %v6568_v4 = vld [vmem:[%s6929_s14 + $0x714] ss:$36 sps:$4 sm:$0xff]  }
 0x17b   : > { %3002 = vmatmul.mubr.bf16.gmra.mrb[52].mxu1 %v6495_v7  ;;  %v6570_v7 = vld [vmem:[%s6929_s14 + $0x2a4] ss:$36 sps:$4 sm:$0xff]  }
 0x17c   : > { %3419 = vmatmul.mubr.bf16.gmra.mrb[116].mxu0 %v6496_v8  ;;  %3009 = vmatprep.mubr.bf16.mxu1 %v6497_v9  ;;  %v6572_v8 = vld [vmem:[%s6929_s14 + $0x710] ss:$36 sps:$4 sm:$0xff]   ;;  %v6573_v9 = vld [vmem:[%s6929_s14 + $0x2a0] ss:$36 sps:$4 sm:$0xff]  }
 0x17d   : > { %3426 = vmatprep.mubr.bf16.mxu0 %v6499_v10  ;;  %v6574_v10 = vld [vmem:[%s6929_s14 + $0x75c] ss:$36 sps:$4 sm:$0xff]  }
 0x183   : > { %3010 = vmatmul.mubr.bf16.gmra.mrb[56].mxu1 %v6501_v13  ;;  %v6578_v13 = vld [vmem:[%s6929_s14 + $0x758] ss:$36 sps:$4 sm:$0xff]  }
 0x184   : > { %3427 = vmatmul.mubr.bf16.gmra.mrb[120].mxu0 %v6502_v15  ;;  %3017 = vmatprep.mubr.bf16.mxu1 %v6505_v16  ;;  %v6579_v15 = vld [vmem:[%s6929_s14 + $0x2e8] ss:$36 sps:$4 sm:$0xff]  }
 0x185   : > { %3434 = vmatprep.mubr.bf16.mxu0 %v6507_v17  ;;  %v6581_v16 = vld [vmem:[%s6929_s14 + $0x7a4] ss:$36 sps:$4 sm:$0xff]   ;;  %v6583_v17 = vld [vmem:[%s6929_s14 + $0x334] ss:$36 sps:$4 sm:$0xff]  }
 0x18b   : > { %3018 = vmatmul.mubr.bf16.gmra.mrb[60].mxu1 %v6509_v18  ;;  %v6585_v18 = vld [vmem:[%s6929_s14 + $0x7a0] ss:$36 sps:$4 sm:$0xff]  }
 0x18c   : > { %3435 = vmatmul.mubr.bf16.gmra.mrb[124].mxu0 %v6510_v20  ;;  %3025 = vmatprep.mubr.bf16.mxu1 %v6511_v21  ;;  %v6586_v20 = vld [vmem:[%s6929_s14 + $0x330] ss:$36 sps:$4 sm:$0xff]  }
 0x18d   : > { %3475 = vmatprep.mubr.bf16.mxu0 %v6515_v23  ;;  %v6587_v21 = vld [vmem:[%s6929_s14 + $0x7ec] ss:$36 sps:$4 sm:$0xff]   ;;  %v6589_v23 = vld [vmem:[%s6929_s14 + $0x37c] ss:$36 sps:$4 sm:$0xff]  }
 0x193   : > { %3026 = vmatmul.mubr.bf16.gmra.mrb[64].mxu1 %v6516_v24  ;;  %v6591_v24 = vld [vmem:[%s6929_s14 + $0x7e8] ss:$36 sps:$4 sm:$0xff]  }
 0x194   : > { %3476 = vmatmul.mubr.bf16.vlgmr.msra.gmra.mrb[0].mxu0 %v6513_v25  ;;  %3033 = vmatprep.mubr.bf16.mxu1 %v6517_v26  ;;  %v6592_v25 = vld [vmem:[%s6929_s14 + $0x378] ss:$36 sps:$4 sm:$0xff]  }
 0x195   : > { %3483 = vmatprep.mubr.bf16.mxu0 %v6519_v28  ;;  %v6593_v26 = vld [vmem:[%s6929_s14 + $0x834] ss:$36 sps:$4 sm:$0xff]   ;;  %v6595_v28 = vld [vmem:[%s6929_s14 + $0x3c4] ss:$36 sps:$4 sm:$0xff]  }
 0x19b   : > { %3034 = vmatmul.mubr.bf16.gmra.mrb[68].mxu1 %v6521_v29  ;;  %v6597_v29 = vld [vmem:[%s6929_s14 + $0x830] ss:$36 sps:$4 sm:$0xff]  }
 0x19c   : > { %3484 = vmatmul.mubr.bf16.gmra.mrb[4].mxu0 %v6522_v31  ;;  %3041 = vmatprep.mubr.bf16.mxu1 %v6524_v32  ;;  %v6598_v31 = vld [vmem:[%s6929_s14 + $0x3c0] ss:$36 sps:$4 sm:$0xff]  }
 0x19d   : > { %3491 = vmatprep.mubr.bf16.mxu0 %v6526_v1  ;;  %v6600_v32 = vld [vmem:[%s6929_s14 + $0x87c] ss:$36 sps:$4 sm:$0xff]   ;;  %v6602_v1 = vld [vmem:[%s6929_s14 + $0x40c] ss:$36 sps:$4 sm:$0xff]  }
 0x1a3   : > { %3042 = vmatmul.mubr.bf16.gmra.mrb[72].mxu1 %v6528_v33  ;;  %v6604_v33 = vld [vmem:[%s6929_s14 + $0x878] ss:$36 sps:$4 sm:$0xff]  }
 0x1a4   : > { %3492 = vmatmul.mubr.bf16.gmra.mrb[8].mxu0 %v6529_v34  ;;  %3049 = vmatprep.mubr.bf16.mxu1 %v6530_v35  ;;  %v6605_v34 = vld [vmem:[%s6929_s14 + $0x408] ss:$36 sps:$4 sm:$0xff]  }
 0x1a5   : > { %3499 = vmatprep.mubr.bf16.mxu0 %v6532_v37  ;;  %v6606_v35 = vld [vmem:[%s6929_s14 + $0x8c4] ss:$36 sps:$4 sm:$0xff]   ;;  %v6608_v37 = vld [vmem:[%s6929_s14 + $0x454] ss:$36 sps:$4 sm:$0xff]  }
 0x1ab   : > { %3050 = vmatmul.mubr.bf16.gmra.mrb[76].mxu1 %v6534_v38  ;;  %v6610_v38 = vld [vmem:[%s6929_s14 + $0x8c0] ss:$36 sps:$4 sm:$0xff]  }
 0x1ac   : > { %3500 = vmatmul.mubr.bf16.gmra.mrb[12].mxu0 %v6535_v40  ;;  %3057 = vmatprep.mubr.bf16.mxu1 %v6536_v41  ;;  %v6611_v40 = vld [vmem:[%s6929_s14 + $0x450] ss:$36 sps:$4 sm:$0xff]   ;;  %v6614_v41 = vld [vmem:[%s6929_s14 + $0x20] ss:$36 sps:$4 sm:$0xff]  }
 0x1ad   : > { %3507 = vmatprep.mubr.bf16.mxu0 %v6538_v42  ;;  %v6612_v42 = vld [vmem:[%s6929_s14 + $0x49c] ss:$36 sps:$4 sm:$0xff]  }
 0x1b3   : > { %3058 = vmatmul.mubr.bf16.gmra.mrb[80].mxu1 %v6540_v6  ;;  %v6616_v6 = vld [vmem:[%s6929_s14 + $0x68] ss:$36 sps:$4 sm:$0xff]  }
 0x1b4   : > { %3508 = vmatmul.mubr.bf16.gmra.mrb[16].mxu0 %v6541_v43  ;;  %3065 = vmatprep.mubr.bf16.mxu1 %v6543_v45  ;;  %v6615_v43 = vld [vmem:[%s6929_s14 + $0x498] ss:$36 sps:$4 sm:$0xff]   ;;  %v6619_v45 = vld [vmem:[%s6929_s14 + $0xb0] ss:$36 sps:$4 sm:$0xff]  }
 0x1b5   : > { %3515 = vmatprep.mubr.bf16.mxu0 %v6545_v46  ;;  %v6617_v46 = vld [vmem:[%s6929_s14 + $0x4e4] ss:$36 sps:$4 sm:$0xff]  }
 0x1bb   : > { %3066 = vmatmul.mubr.bf16.gmra.mrb[84].mxu1 %v6547_v47  ;;  %v6621_v47 = vld [vmem:[%s6929_s14 + $0xf8] ss:$36 sps:$4 sm:$0xff]  }
 0x1bc   : > { %3516 = vmatmul.mubr.bf16.gmra.mrb[20].mxu0 %v6548_v50  ;;  %3073 = vmatprep.mubr.bf16.mxu1 %v6549_v51  ;;  %v6620_v50 = vld [vmem:[%s6929_s14 + $0x4e0] ss:$36 sps:$4 sm:$0xff]  }
 0x1bd   : > { %3523 = vmatprep.mubr.bf16.mxu0 %v6551_v53  ;;  %v6624_v51 = vld [vmem:[%s6929_s14 + $0x140] ss:$36 sps:$4 sm:$0xff]   ;;  %v6622_v53 = vld [vmem:[%s6929_s14 + $0x52c] ss:$36 sps:$4 sm:$0xff]  }
 0x1c3   : > { %3074 = vmatmul.mubr.bf16.gmra.mrb[88].mxu1 %v6553_v54  ;;  %v6626_v54 = vld [vmem:[%s6929_s14 + $0x188] ss:$36 sps:$4 sm:$0xff]  }
 0x1c4   : > { %3524 = vmatmul.mubr.bf16.gmra.mrb[24].mxu0 %v6554_v55  ;;  %3081 = vmatprep.mubr.bf16.mxu1 %v6555_v56  ;;  %v6625_v55 = vld [vmem:[%s6929_s14 + $0x528] ss:$36 sps:$4 sm:$0xff]   ;;  %v6629_v56 = vld [vmem:[%s6929_s14 + $0x1d0] ss:$36 sps:$4 sm:$0xff]  }
 0x1c5   : > { %3531 = vmatprep.mubr.bf16.mxu0 %v6557_v58  ;;  %v6627_v58 = vld [vmem:[%s6929_s14 + $0x574] ss:$36 sps:$4 sm:$0xff]  }
 0x1cb   : > { %3082 = vmatmul.mubr.bf16.gmra.mrb[92].mxu1 %v6559_v59 }
 0x1cc   : > { %3532 = vmatmul.mubr.bf16.gmra.mrb[28].mxu0 %v6560_v61  ;;  %3089 = vmatprep.mubr.bf16.mxu1 %v6562_v62  ;;  %v6631_v62 = vld [vmem:[%s6929_s14 + $0x218] ss:$36 sps:$4 sm:$0xff]  }
 0x1cd   : > { %3539 = vmatprep.mubr.bf16.mxu0 %v6564_v63 }
 0x1d3   : > { %3090 = vmatmul.mubr.bf16.gmra.mrb[96].mxu1 %v6566_v0  ;;  %v6630_v0 = vld [vmem:[%s6929_s14 + $0x570] ss:$36 sps:$4 sm:$0xff]  }
 0x1d4   : > { %3540 = vmatmul.mubr.bf16.gmra.mrb[32].mxu0 %v6567_v3  ;;  %3097 = vmatprep.mubr.bf16.mxu1 %v6568_v4  ;;  %v6634_v3 = vld [vmem:[%s6929_s14 + $0x260] ss:$36 sps:$4 sm:$0xff]  }
 0x1d5   : > { %3547 = vmatprep.mubr.bf16.mxu0 %v6570_v7  ;;  %v6632_v7 = vld [vmem:[%s6929_s14 + $0x5bc] ss:$36 sps:$4 sm:$0xff]  }
 0x1db   : > { %3098 = vmatmul.mubr.bf16.gmra.mrb[100].mxu1 %v6572_v8 }
 0x1dc   : > { %3548 = vmatmul.mubr.bf16.gmra.mrb[36].mxu0 %v6573_v9  ;;  %3105 = vmatprep.mubr.bf16.mxu1 %v6574_v10  ;;  %v6636_v10 = vld [vmem:[%s6929_s14 + $0x2a8] ss:$36 sps:$4 sm:$0xff]  }
 0x1dd   : > { %3555 = vmatprep.mubr.bf16.mxu0 %v6576_v12 }
 0x1e3   : > { %3106 = vmatmul.mubr.bf16.gmra.mrb[104].mxu1 %v6578_v13  ;;  %v6635_v13 = vld [vmem:[%s6929_s14 + $0x5b8] ss:$36 sps:$4 sm:$0xff]  }
 0x1e4   : > { %3556 = vmatmul.mubr.bf16.gmra.mrb[40].mxu0 %v6579_v15  ;;  %3113 = vmatprep.mubr.bf16.mxu1 %v6581_v16  ;;  %v6639_v15 = vld [vmem:[%s6929_s14 + $0x2f0] ss:$36 sps:$4 sm:$0xff]  }
 0x1e5   : > { %3563 = vmatprep.mubr.bf16.mxu0 %v6583_v17  ;;  %v6637_v17 = vld [vmem:[%s6929_s14 + $0x604] ss:$36 sps:$4 sm:$0xff]  }
 0x1eb   : > { %3114 = vmatmul.mubr.bf16.gmra.mrb[108].mxu1 %v6585_v18 }
 0x1ec   : > { %3564 = vmatmul.mubr.bf16.gmra.mrb[44].mxu0 %v6586_v20  ;;  %3121 = vmatprep.mubr.bf16.mxu1 %v6587_v21  ;;  %v6641_v21 = vld [vmem:[%s6929_s14 + $0x338] ss:$36 sps:$4 sm:$0xff]  }
 0x1ed   : > { %3571 = vmatprep.mubr.bf16.mxu0 %v6589_v23 }
 0x1f3   : > { %3122 = vmatmul.mubr.bf16.gmra.mrb[112].mxu1 %v6591_v24  ;;  %v6640_v24 = vld [vmem:[%s6929_s14 + $0x600] ss:$36 sps:$4 sm:$0xff]  }
 0x1f4   : > { %3572 = vmatmul.mubr.bf16.gmra.mrb[48].mxu0 %v6592_v25  ;;  %3129 = vmatprep.mubr.bf16.mxu1 %v6593_v26  ;;  %v6644_v25 = vld [vmem:[%s6929_s14 + $0x380] ss:$36 sps:$4 sm:$0xff]  }
 0x1f5   : > { %3579 = vmatprep.mubr.bf16.mxu0 %v6595_v28  ;;  %v6642_v28 = vld [vmem:[%s6929_s14 + $0x64c] ss:$36 sps:$4 sm:$0xff]  }
 0x1fb   : > { %3130 = vmatmul.mubr.bf16.gmra.mrb[116].mxu1 %v6597_v29 }
 0x1fc   : > { %3580 = vmatmul.mubr.bf16.gmra.mrb[52].mxu0 %v6598_v31  ;;  %3137 = vmatprep.mubr.bf16.mxu1 %v6600_v32  ;;  %v6646_v32 = vld [vmem:[%s6929_s14 + $0x3c8] ss:$36 sps:$4 sm:$0xff]  }
 0x1fd   : > { %3587 = vmatprep.mubr.bf16.mxu0 %v6602_v1 }
 0x203   : > { %3138 = vmatmul.mubr.bf16.gmra.mrb[120].mxu1 %v6604_v33  ;;  %v6645_v33 = vld [vmem:[%s6929_s14 + $0x648] ss:$36 sps:$4 sm:$0xff]  }
 0x204   : > { %3588 = vmatmul.mubr.bf16.gmra.mrb[56].mxu0 %v6605_v34  ;;  %3145 = vmatprep.mubr.bf16.mxu1 %v6606_v35  ;;  %v6649_v34 = vld [vmem:[%s6929_s14 + $0x410] ss:$36 sps:$4 sm:$0xff]  }
 0x205   : > { %3595 = vmatprep.mubr.bf16.mxu0 %v6608_v37  ;;  %v6647_v37 = vld [vmem:[%s6929_s14 + $0x694] ss:$36 sps:$4 sm:$0xff]  }
 0x20b   : > { %3146 = vmatmul.mubr.bf16.gmra.mrb[124].mxu1 %v6610_v38 }
 0x20c   : > { %3596 = vmatmul.mubr.bf16.gmra.mrb[60].mxu0 %v6611_v40  ;;  %5634 = vmatprep.mubr.bf16.mxu1 %v6614_v41  ;;  %v6651_v41 = vld [vmem:[%s6929_s14 + $0x458] ss:$36 sps:$4 sm:$0xff]  }
 0x20d   : > { %3603 = vmatprep.mubr.bf16.mxu0 %v6612_v42 }
 0x213   : > { %5635 = vmatmul.mubr.bf16.vlgmr.msra.gmra.mrb[128].mxu1 %v6616_v6  ;;  %v6650_v6 = vld [vmem:[%s6929_s14 + $0x690] ss:$36 sps:$4 sm:$0xff]  }
 0x214   : > { %3604 = vmatmul.mubr.bf16.gmra.mrb[64].mxu0 %v6615_v43  ;;  %5638 = vmatprep.mubr.bf16.mxu1 %v6619_v45  ;;  %v6654_v43 = vld [vmem:[%s6929_s14 + $0x4a0] ss:$36 sps:$4 sm:$0xff]  }
 0x215   : > { %3611 = vmatprep.mubr.bf16.mxu0 %v6617_v46  ;;  %v6652_v46 = vld [vmem:[%s6929_s14 + $0x6dc] ss:$36 sps:$4 sm:$0xff]  }
 0x21b   : > { %5639 = vmatmul.mubr.bf16.gmra.mrb[132].mxu1 %v6621_v47 }
 0x21c   : > { %3612 = vmatmul.mubr.bf16.gmra.mrb[68].mxu0 %v6620_v50  ;;  %5642 = vmatprep.mubr.bf16.mxu1 %v6624_v51  ;;  %v6656_v51 = vld [vmem:[%s6929_s14 + $0x4e8] ss:$36 sps:$4 sm:$0xff]  }
 0x21d   : > { %3619 = vmatprep.mubr.bf16.mxu0 %v6622_v53 }
 0x223   : > { %5643 = vmatmul.mubr.bf16.gmra.mrb[136].mxu1 %v6626_v54  ;;  %v6655_v54 = vld [vmem:[%s6929_s14 + $0x6d8] ss:$36 sps:$4 sm:$0xff]  }
 0x224   : > { %3620 = vmatmul.mubr.bf16.gmra.mrb[72].mxu0 %v6625_v55  ;;  %5646 = vmatprep.mubr.bf16.mxu1 %v6629_v56  ;;  %v6659_v55 = vld [vmem:[%s6929_s14 + $0x530] ss:$36 sps:$4 sm:$0xff]  }
 0x225   : > { %3627 = vmatprep.mubr.bf16.mxu0 %v6627_v58  ;;  %v6657_v58 = vld [vmem:[%s6929_s14 + $0x724] ss:$36 sps:$4 sm:$0xff]  }
 0x226   : > { %v7475_v59 = vpop.f32.mrb[32].mxu1 }
 0x227   : > { %v2965_v61 = vpop.f32.mrb[33].mxu1 }
 0x228   : > { %v7478_v63 = vpop.f32.mrb[34].mxu1 }
 0x229   : > { %v2968_v4 = vpop.f32.mrb[35].mxu1 }
 0x22a   : > { %v6660_v4 = vld [vmem:[%s6929_s14 + $0x720] ss:$36 sps:$4 sm:$0xff]  }
 0x22b   : > { %5647 = vmatmul.mubr.bf16.gmra.mrb[140].mxu1 %v6631_v62 }
 0x22c   : > { %3628 = vmatmul.mubr.bf16.gmra.mrb[76].mxu0 %v6630_v0  ;;  %5650 = vmatprep.mubr.bf16.mxu1 %v6634_v3  ;;  %v6661_v0 = vld [vmem:[%s6929_s14 + $0x578] ss:$36 sps:$4 sm:$0xff]  }
 0x22d   : > { %3635 = vmatprep.mubr.bf16.mxu0 %v6632_v7  ;;  %v6664_v7 = vld [vmem:[%s6929_s14 + $0x5c0] ss:$36 sps:$4 sm:$0xff]  }
 0x22e   : > { %v7483_v8 = vpop.f32.mrb[36].mxu1 }
 0x22f   : > { %v2973_v9 = vpop.f32.mrb[37].mxu1 }
 0x230   : > { %v7486_v12 = vpop.f32.mrb[38].mxu1 }
 0x231   : > { %v2976_v16 = vpop.f32.mrb[39].mxu1 }
 0x232   : > { %v6666_v16 = vld [vmem:[%s6929_s14 + $0x608] ss:$36 sps:$4 sm:$0xff]  }
 0x233   : > { %5651 = vmatmul.mubr.bf16.gmra.mrb[144].mxu1 %v6636_v10  ;;  %v6662_v10 = vld [vmem:[%s6929_s14 + $0x76c] ss:$36 sps:$4 sm:$0xff]  }
 0x234   : > { %3636 = vmatmul.mubr.bf16.gmra.mrb[80].mxu0 %v6635_v13  ;;  %5654 = vmatprep.mubr.bf16.mxu1 %v6639_v15 }
 0x235   : > { %3643 = vmatprep.mubr.bf16.mxu0 %v6637_v17 }
 0x236   : > { %v7491_v18 = vpop.f32.mrb[40].mxu1 }
 0x237   : > { %v2981_v20 = vpop.f32.mrb[41].mxu1 }
 0x238   : > { %v7494_v23 = vpop.f32.mrb[42].mxu1  ;;  %v6665_v20 = vld [vmem:[%s6929_s14 + $0x768] ss:$36 sps:$4 sm:$0xff]  }
 0x239   : > { %v2984_v26 = vpop.f32.mrb[43].mxu1 }
 0x23a   : > { %v7542_v26 = vld [vmem:[%s8157_s2] ss:$0 sm:$0xff] }
 0x23b   : > { %5655 = vmatmul.mubr.bf16.gmra.mrb[148].mxu1 %v6641_v21  ;;  %v6669_v21 = vld [vmem:[%s6929_s14 + $0x650] ss:$36 sps:$4 sm:$0xff]  }
 0x23c   : > { %3644 = vmatmul.mubr.bf16.gmra.mrb[84].mxu0 %v6640_v24  ;;  %5658 = vmatprep.mubr.bf16.mxu1 %v6644_v25  ;;  %v6667_v25 = vld [vmem:[%s6929_s14 + $0x7b4] ss:$36 sps:$4 sm:$0xff]  }
 0x23d   : > { %3651 = vmatprep.mubr.bf16.mxu0 %v6642_v28  ;;  %v2611_v28 = vadd.f32 %v7542_v26, %v7293_v49 }
 0x23e   : > { %v7499_v29 = vpop.f32.mrb[44].mxu1 }
 0x23f   : > { %v2989_v31 = vpop.f32.mrb[45].mxu1 }
 0x240   : > { %v7502_v1 = vpop.f32.mrb[46].mxu1 }
 0x241   : > { %v2992_v35 = vpop.f32.mrb[47].mxu1 }
 0x242   : > { %v2614_v35 = vadd.f32 %v7542_v26, %v7296_v52  ;;  %v2619_v52 = vadd.f32 %v7542_v26, %v7301_v57 }
 0x243   : > { %5659 = vmatmul.mubr.bf16.gmra.mrb[152].mxu1 %v6646_v32 }
 0x244   : > { %3652 = vmatmul.mubr.bf16.gmra.mrb[88].mxu0 %v6645_v33  ;;  %5662 = vmatprep.mubr.bf16.mxu1 %v6649_v34  ;;  %v6671_v34 = vld [vmem:[%s6929_s14 + $0x698] ss:$36 sps:$4 sm:$0xff]  }
 0x245   : > { %3659 = vmatprep.mubr.bf16.mxu0 %v6647_v37 }
 0x246   : > { %v7507_v38 = vpop.f32.mrb[48].mxu1 }
 0x247   : > { %v2997_v40 = vpop.f32.mrb[49].mxu1 }
 0x248   : > { %v7510_v42 = vpop.f32.mrb[50].mxu1 }
 0x249   : > { %v3000_v45 = vpop.f32.mrb[51].mxu1 }
 0x24b   : > { %5663 = vmatmul.mubr.bf16.gmra.mrb[156].mxu1 %v6651_v41 }
 0x24c   : > { %3660 = vmatmul.mubr.bf16.gmra.mrb[92].mxu0 %v6650_v6  ;;  %5666 = vmatprep.mubr.bf16.mxu1 %v6654_v43  ;;  %v6670_v6 = vld [vmem:[%s6929_s14 + $0x7b0] ss:$36 sps:$4 sm:$0xff]   ;;  %v6674_v43 = vld [vmem:[%s6929_s14 + $0x6e0] ss:$36 sps:$4 sm:$0xff]  }
 0x24d   : > { %3667 = vmatprep.mubr.bf16.mxu0 %v6652_v46 }
 0x24e   : > { %v7515_v47 = vpop.f32.mrb[52].mxu1 }
 0x24f   : > { %v3005_v50 = vpop.f32.mrb[53].mxu1 }
 0x250   : > { %v7518_v53 = vpop.f32.mrb[54].mxu1  ;;  %v6672_v50 = vld [vmem:[%s6929_s14 + $0x7fc] ss:$36 sps:$4 sm:$0xff]  }
 0x251   : > { %v3008_v56 = vpop.f32.mrb[55].mxu1 }
 0x253   : > { %5667 = vmatmul.mubr.bf16.gmra.mrb[160].mxu1 %v6656_v51 }
 0x254   : > { %3668 = vmatmul.mubr.bf16.gmra.mrb[96].mxu0 %v6655_v54  ;;  %5670 = vmatprep.mubr.bf16.mxu1 %v6659_v55 }
 0x255   : > { %3675 = vmatprep.mubr.bf16.mxu0 %v6657_v58  ;;  %v6676_v58 = vld [vmem:[%s6929_s14 + $0x728] ss:$36 sps:$4 sm:$0xff]  }
 0x256   : > { %v7523_v61 = vpop.f32.mrb[56].mxu1 }
 0x257   : > { %v3013_v62 = vpop.f32.mrb[57].mxu1 }
 0x258   : > { %v7526_v3 = vpop.f32.mrb[58].mxu1  ;;  %v2622_v62 = vadd.f32 %v7542_v26, %v7304_v60  ;;  %v2627_v60 = vadd.f32 %v7542_v26, %v7309_v2 }
 0x259   : > { %v3016_v9 = vpop.f32.mrb[59].mxu1 }
 0x25a   : > { %v6675_v9 = vld [vmem:[%s6929_s14 + $0x7f8] ss:$36 sps:$4 sm:$0xff]  }
 0x25b   : > { %5671 = vmatmul.mubr.bf16.gmra.mrb[164].mxu1 %v6661_v0 }
 0x25c   : > { %3676 = vmatmul.mubr.bf16.gmra.mrb[100].mxu0 %v6660_v4  ;;  %5674 = vmatprep.mubr.bf16.mxu1 %v6664_v7 }
 0x25d   : > { %3683 = vmatprep.mubr.bf16.mxu0 %v6662_v10  ;;  %v6679_v10 = vld [vmem:[%s6929_s14 + $0x770] ss:$36 sps:$4 sm:$0xff]  }
 0x25e   : > { %v7531_v13 = vpop.f32.mrb[60].mxu1 }
 0x25f   : > { %v3021_v15 = vpop.f32.mrb[61].mxu1 }
 0x260   : > { %v7534_v17 = vpop.f32.mrb[62].mxu1 }
 0x261   : > { %v3024_v24 = vpop.f32.mrb[63].mxu1 }
 0x263   : > { %5675 = vmatmul.mubr.bf16.gmra.mrb[168].mxu1 %v6666_v16 }
 0x264   : > { %3684 = vmatmul.mubr.bf16.gmra.mrb[104].mxu0 %v6665_v20  ;;  %5678 = vmatprep.mubr.bf16.mxu1 %v6669_v21  ;;  %v6677_v20 = vld [vmem:[%s6929_s14 + $0x844] ss:$36 sps:$4 sm:$0xff]  }
 0x265   : > { %3691 = vmatprep.mubr.bf16.mxu0 %v6667_v25 }
 0x266   : > { %v7546_v31 = vpop.f32.mrb[64].mxu1 }
 0x267   : > { %v3477_v32 = vpop.f32.mrb[0].mxu0  ;;  %v3029_v33 = vpop.f32.mrb[65].mxu1 }
 0x268   : > { %v7551_v37 = vadd.f32 %v3477_v32, %v2611_v28  ;;  %v3479_v40 = vpop.f32.mrb[1].mxu0  ;;  %v7553_v41 = vpop.f32.mrb[66].mxu1  ;;  %v6681_v32 = vld [vmem:[%s6929_s14 + $0x7b8] ss:$36 sps:$4 sm:$0xff]   ;;  %v2630_v33 = vadd.f32 %v7542_v26, %v7312_v5  ;;  %v2635_v5 = vadd.f32 %v7542_v26, %v7317_v11 }
 0x269   : > { %v3480_v45 = vpop.f32.mrb[2].mxu0  ;;  %v3032_v46 = vpop.f32.mrb[67].mxu1 }
 0x26a   : > { %v7558_v49 = vadd.f32 %v3480_v45, %v2614_v35  ;;  %v3482_v51 = vpop.f32.mrb[3].mxu0 }
 0x26b   : > { %5679 = vmatmul.mubr.bf16.gmra.mrb[172].mxu1 %v6671_v34 }
 0x26c   : > { %3692 = vmatmul.mubr.bf16.gmra.mrb[108].mxu0 %v6670_v6  ;;  %5682 = vmatprep.mubr.bf16.mxu1 %v6674_v43  ;;  %v6680_v6 = vld [vmem:[%s6929_s14 + $0x840] ss:$36 sps:$4 sm:$0xff]  }
 0x26d   : > { %3699 = vmatprep.mubr.bf16.mxu0 %v6672_v50  ;;  %v6684_v43 = vld [vmem:[%s6929_s14 + $0x800] ss:$36 sps:$4 sm:$0xff]   ;;  %v6682_v50 = vld [vmem:[%s6929_s14 + $0x88c] ss:$36 sps:$4 sm:$0xff]  }
 0x26e   : > { %v7562_v54 = vpop.f32.mrb[68].mxu1 }
 0x26f   : > { %v3485_v55 = vpop.f32.mrb[4].mxu0  ;;  %v3037_v56 = vpop.f32.mrb[69].mxu1 }
 0x270   : > { %v7567_v0 = vadd.f32 %v3485_v55, %v2619_v52  ;;  %v3487_v4 = vpop.f32.mrb[5].mxu0  ;;  %v7569_v7 = vpop.f32.mrb[70].mxu1 }
 0x271   : > { %v3488_v15 = vpop.f32.mrb[6].mxu0  ;;  %v3040_v16 = vpop.f32.mrb[71].mxu1 }
 0x272   : > { %v7574_v57 = vadd.f32 %v3488_v15, %v2622_v62  ;;  %v3490_v21 = vpop.f32.mrb[7].mxu0  ;;  %v2638_v62 = vadd.f32 %v7542_v26, %v7320_v14  ;;  %v6685_v15 = vld [vmem:[%s6929_s14 + $0x888] ss:$36 sps:$4 sm:$0xff]   ;;  %v6689_v16 = vld [vmem:[%s6929_s14 + $0x890] ss:$36 sps:$4 sm:$0xff]   ;;  %v2643_v14 = vadd.f32 %v7542_v26, %v7325_v19  ;;  %v2651_v19 = vadd.f32 %v7542_v26, %v7333_v27 }
 0x273   : > { %5683 = vmatmul.mubr.bf16.gmra.mrb[176].mxu1 %v6676_v58  ;;  %v6686_v58 = vld [vmem:[%s6929_s14 + $0x848] ss:$36 sps:$4 sm:$0xff]   ;;  %v2659_v27 = vadd.f32 %v7542_v26, %v7348_v36  ;;  %v2667_v36 = vadd.f32 %v7542_v26, %v7359_v44  ;;  %v5762_v44 = vadd.f32 %v7542_v26, %v7475_v59  ;;  %v5766_v59 = vadd.f32 %v7542_v26, %v7483_v8 }
 0x274   : > { %3700 = vmatmul.mubr.bf16.gmra.mrb[112].mxu0 %v6675_v9  ;;  %5686 = vmatprep.mubr.bf16.mxu1 %v6679_v10  ;;  %v5770_v8 = vadd.f32 %v7542_v26, %v7491_v18  ;;  %v5774_v18 = vadd.f32 %v7542_v26, %v7499_v29  ;;  %v5778_v29 = vadd.f32 %v7542_v26, %v7507_v38 }
 0x275   : > { %3707 = vmatprep.mubr.bf16.mxu0 %v6677_v20  ;;  %v5782_v38 = vadd.f32 %v7542_v26, %v7515_v47  ;;  %v5786_v47 = vadd.f32 %v7542_v26, %v7523_v61  ;;  %v5790_v61 = vadd.f32 %v7542_v26, %v7531_v13  ;;  %v5794_v13 = vadd.f32 %v7542_v26, %v7546_v31 }
 0x276   : > { %v7578_v24 = vpop.f32.mrb[72].mxu1 }
 0x277   : > { %v3493_v25 = vpop.f32.mrb[8].mxu0  ;;  %v3045_v28 = vpop.f32.mrb[73].mxu1 }
 0x278   : > { %v7583_v34 = vadd.f32 %v3493_v25, %v2627_v60  ;;  %v3495_v35 = vpop.f32.mrb[9].mxu0  ;;  %v7585_v40 = vpop.f32.mrb[74].mxu1  ;;  %v6687_v60 = vld [vmem:[%s6929_s14 + $0x8d4] ss:$36 sps:$4 sm:$0xff]  }
 0x279   : > { %v3496_v45 = vpop.f32.mrb[10].mxu0  ;;  %v3048_v46 = vpop.f32.mrb[75].mxu1  ;;  %v6691_v35 = vld [vmem:[%s6929_s14 + $0x8d8] ss:$36 sps:$4 sm:$0xff]  }
 0x27a   : > { %v7590_v2 = vadd.f32 %v3496_v45, %v2630_v33  ;;  %v3498_v51 = vpop.f32.mrb[11].mxu0 }
 0x27b   : > { %5687 = vmatmul.mubr.bf16.gmra.mrb[180].mxu1 %v6681_v32 }
 0x27c   : > { %3708 = vmatmul.mubr.bf16.gmra.mrb[116].mxu0 %v6680_v6  ;;  %5690 = vmatprep.mubr.bf16.mxu1 %v6684_v43  ;;  %v2646_v6 = vadd.f32 %v7542_v26, %v7328_v22 }
 0x27d   : > { %3715 = vmatprep.mubr.bf16.mxu0 %v6682_v50  ;;  %v6690_v50 = vld [vmem:[%s6929_s14 + $0x8d0] ss:$36 sps:$4 sm:$0xff]   ;;  %s175_s14 = sand.u32 1, %s6739_s12  }
 0x27e   : > { %v7594_v52 = vpop.f32.mrb[76].mxu1  ;;  %s4875_s10 = sshll.u32 %s175_s14, 8 }
 0x27f   : > { %v3501_v55 = vpop.f32.mrb[12].mxu0  ;;  %v3053_v56 = vpop.f32.mrb[77].mxu1  ;;  %s7769_s12 = scalar_lea.vmem [#allocation2], %s4875_s10  }
 0x280   : > { %v7599_v4 = vadd.f32 %v3501_v55, %v2635_v5  ;;  %v3503_v9 = vpop.f32.mrb[13].mxu0  ;;  %v7601_v10 = vpop.f32.mrb[78].mxu1 }
 0x281   : > { %v3504_v20 = vpop.f32.mrb[14].mxu0  ;;  %v3056_v21 = vpop.f32.mrb[79].mxu1  ;;  %v2654_v9 = vadd.f32 %v7542_v26, %v7336_v30  ;;  %v2662_v30 = vadd.f32 %v7542_v26, %v7351_v39  ;;  %v2670_v39 = vadd.f32 %v7542_v26, %v7365_v48  ;;  %v5764_v48 = vadd.f32 %v7542_v26, %v7478_v63 }
 0x282   : > { %v7606_v11 = vadd.f32 %v3504_v20, %v2638_v62  ;;  %v3506_v25 = vpop.f32.mrb[15].mxu0  ;;  %v5768_v63 = vadd.f32 %v7542_v26, %v7486_v12  ;;  %v5772_v12 = vadd.f32 %v7542_v26, %v7494_v23  ;;  %v5776_v23 = vadd.f32 %v7542_v26, %v7502_v1 }
 0x283   : > { %5691 = vmatmul.mubr.bf16.gmra.mrb[184].mxu1 %v6686_v58  ;;  %v5780_v1 = vadd.f32 %v7542_v26, %v7510_v42  ;;  %v5784_v42 = vadd.f32 %v7542_v26, %v7518_v53  ;;  %v5788_v53 = vadd.f32 %v7542_v26, %v7526_v3  ;;  %v5792_v3 = vadd.f32 %v7542_v26, %v7534_v17 }
 0x284   : > { %3716 = vmatmul.mubr.bf16.gmra.mrb[120].mxu0 %v6685_v15  ;;  %5694 = vmatprep.mubr.bf16.mxu1 %v6689_v16  ;;  %v5796_v17 = vadd.f32 %v7542_v26, %v7553_v41 }
 0x285   : > { %3723 = vmatprep.mubr.bf16.mxu0 %v6687_v60 }
 0x286   : > { %v7610_v28 = vpop.f32.mrb[80].mxu1 }
 0x287   : > { %v3509_v32 = vpop.f32.mrb[16].mxu0  ;;  %v3061_v33 = vpop.f32.mrb[81].mxu1 }
 0x288   : > { %v7615_v43 = vadd.f32 %v3509_v32, %v2643_v14  ;;  %v3511_v45 = vpop.f32.mrb[17].mxu0  ;;  %v7617_v46 = vpop.f32.mrb[82].mxu1 }
 0x289   : > { %v3512_v51 = vpop.f32.mrb[18].mxu0  ;;  %v3064_v5 = vpop.f32.mrb[83].mxu1 }
 0x28a   : > { %v7620_v55 = vadd.f32 %v3512_v51, %v2646_v6  ;;  %v3514_v56 = vpop.f32.mrb[19].mxu0 }
 0x28b   : > { %5695 = vmatmul.mubr.bf16.gmra.mrb[188].mxu1 %v6691_v35 }
 0x28c   : > { %3724 = vmatmul.mubr.bf16.gmra.mrb[124].mxu0 %v6690_v50 }
 0x28e   : > { %v7624_v58 = vpop.f32.mrb[84].mxu1 }
 0x28f   : > { %v3517_v62 = vpop.f32.mrb[20].mxu0  ;;  %v3069_v22 = vpop.f32.mrb[85].mxu1 }
 0x290   : > { %v7628_v15 = vadd.f32 %v3517_v62, %v2651_v19  ;;  %v3519_v16 = vpop.f32.mrb[21].mxu0  ;;  %v7630_v20 = vpop.f32.mrb[86].mxu1 }
 0x291   : > { %v3520_v21 = vpop.f32.mrb[22].mxu0  ;;  %v3072_v60 = vpop.f32.mrb[87].mxu1 }
 0x292   : > { %v7632_v25 = vadd.f32 %v3520_v21, %v2654_v9  ;;  %v3522_v14 = vpop.f32.mrb[23].mxu0 }
 0x296   : > { %v7636_v32 = vpop.f32.mrb[88].mxu1 }
 0x297   : > { %v3525_v33 = vpop.f32.mrb[24].mxu0  ;;  %v3077_v35 = vpop.f32.mrb[89].mxu1 }
 0x298   : > { %v7640_v6 = vadd.f32 %v3525_v33, %v2659_v27  ;;  %v3527_v45 = vpop.f32.mrb[25].mxu0  ;;  %v7642_v50 = vpop.f32.mrb[90].mxu1 }
 0x299   : > { %v3528_v51 = vpop.f32.mrb[26].mxu0  ;;  %v3080_v5 = vpop.f32.mrb[91].mxu1 }
 0x29a   : > { %v7644_v56 = vadd.f32 %v3528_v51, %v2662_v30  ;;  %v3530_v19 = vpop.f32.mrb[27].mxu0 }
 0x29e   : > { %v7648_v62 = vpop.f32.mrb[92].mxu1 }
 0x29f   : > { %v3533_v22 = vpop.f32.mrb[28].mxu0  ;;  %v3085_v9 = vpop.f32.mrb[93].mxu1 }
 0x2a0   : > { %v7652_v16 = vadd.f32 %v3533_v22, %v2667_v36  ;;  %v3535_v21 = vpop.f32.mrb[29].mxu0  ;;  %v7654_v60 = vpop.f32.mrb[94].mxu1 }
 0x2a1   : > { %v3536_v14 = vpop.f32.mrb[30].mxu0  ;;  %v3088_v27 = vpop.f32.mrb[95].mxu1 }
 0x2a2   : > { %v7656_v33 = vadd.f32 %v3536_v14, %v2670_v39  ;;  %v3538_v35 = vpop.f32.mrb[31].mxu0 }
 0x2a6   : > { %v7660_v30 = vpop.f32.mrb[96].mxu1 }
 0x2a7   : > { %8160 = vst [vmem:[#allocation3_spill] sm:$0xff] %v7660_v30  ;;  %v3541_v45 = vpop.f32.mrb[32].mxu0  ;;  %v3093_v51 = vpop.f32.mrb[97].mxu1 }
 0x2a8   : > { %v7664_v5 = vadd.f32 %v5762_v44, %v3541_v45  ;;  %v3543_v19 = vpop.f32.mrb[33].mxu0  ;;  %v7666_v36 = vpop.f32.mrb[98].mxu1 }
 0x2a9   : > { %8161 = vst [vmem:[#allocation4_spill] sm:$0xff] %v7666_v36  ;;  %v3544_v22 = vpop.f32.mrb[34].mxu0  ;;  %v3096_v9 = vpop.f32.mrb[99].mxu1 }
 0x2aa   : > { %v7668_v39 = vadd.f32 %v5764_v48, %v3544_v22  ;;  %v3546_v21 = vpop.f32.mrb[35].mxu0 }
 0x2ae   : > { %v7672_v14 = vpop.f32.mrb[100].mxu1 }
 0x2af   : > { %8162 = vst [vmem:[#allocation5_spill] sm:$0xff] %v7672_v14  ;;  %v3549_v27 = vpop.f32.mrb[36].mxu0  ;;  %v3101_v35 = vpop.f32.mrb[101].mxu1 }
 0x2b0   : > { %v7676_v44 = vadd.f32 %v5766_v59, %v3549_v27  ;;  %v3551_v45 = vpop.f32.mrb[37].mxu0  ;;  %v7678_v51 = vpop.f32.mrb[102].mxu1 }
 0x2b1   : > { %8163 = vst [vmem:[#allocation6_spill] sm:$0xff] %v7678_v51  ;;  %v3552_v19 = vpop.f32.mrb[38].mxu0  ;;  %v3104_v9 = vpop.f32.mrb[103].mxu1 }
 0x2b2   : > { %v7680_v48 = vadd.f32 %v5768_v63, %v3552_v19  ;;  %v3554_v22 = vpop.f32.mrb[39].mxu0 }
 0x2b6   : > { %v7684_v21 = vpop.f32.mrb[104].mxu1 }
 0x2b7   : > { %8164 = vst [vmem:[#allocation7_spill] sm:$0xff] %v7684_v21  ;;  %v3557_v14 = vpop.f32.mrb[40].mxu0  ;;  %v3109_v35 = vpop.f32.mrb[105].mxu1 }
 0x2b8   : > { %v7688_v59 = vadd.f32 %v5770_v8, %v3557_v14  ;;  %v3559_v27 = vpop.f32.mrb[41].mxu0  ;;  %v7690_v45 = vpop.f32.mrb[106].mxu1 }
 0x2b9   : > { %8165 = vst [vmem:[#allocation8_spill] sm:$0xff] %v7690_v45  ;;  %v3560_v51 = vpop.f32.mrb[42].mxu0  ;;  %v3112_v9 = vpop.f32.mrb[107].mxu1 }
 0x2ba   : > { %v7692_v63 = vadd.f32 %v5772_v12, %v3560_v51  ;;  %v3562_v19 = vpop.f32.mrb[43].mxu0 }
 0x2be   : > { %v7696_v22 = vpop.f32.mrb[108].mxu1 }
 0x2bf   : > { %8166 = vst [vmem:[#allocation9_spill] sm:$0xff] %v7696_v22  ;;  %v3565_v21 = vpop.f32.mrb[44].mxu0  ;;  %v3117_v35 = vpop.f32.mrb[109].mxu1 }
 0x2c0   : > { %v7700_v14 = vadd.f32 %v5774_v18, %v3565_v21  ;;  %v3567_v8 = vpop.f32.mrb[45].mxu0  ;;  %v7702_v27 = vpop.f32.mrb[110].mxu1 }
 0x2c1   : > { %8167 = vst [vmem:[#allocation10_spill] sm:$0xff] %v7702_v27  ;;  %v3568_v45 = vpop.f32.mrb[46].mxu0  ;;  %v3120_v9 = vpop.f32.mrb[111].mxu1 }
 0x2c2   : > { %v7704_v51 = vadd.f32 %v5776_v23, %v3568_v45  ;;  %v3570_v12 = vpop.f32.mrb[47].mxu0 }
 0x2c6   : > { %v7708_v19 = vpop.f32.mrb[112].mxu1 }
 0x2c7   : > { %8168 = vst [vmem:[#allocation11_spill] sm:$0xff] %v7708_v19  ;;  %v3573_v22 = vpop.f32.mrb[48].mxu0  ;;  %v3125_v35 = vpop.f32.mrb[113].mxu1 }
 0x2c8   : > { %v7712_v21 = vadd.f32 %v5778_v29, %v3573_v22  ;;  %v3575_v18 = vpop.f32.mrb[49].mxu0  ;;  %v7714_v8 = vpop.f32.mrb[114].mxu1 }
 0x2c9   : > { %8169 = vst [vmem:[#allocation12_spill] sm:$0xff] %v7714_v8  ;;  %v3576_v27 = vpop.f32.mrb[50].mxu0  ;;  %v3128_v9 = vpop.f32.mrb[115].mxu1 }
 0x2ca   : > { %v7716_v45 = vadd.f32 %v5780_v1, %v3576_v27  ;;  %v3578_v23 = vpop.f32.mrb[51].mxu0 }
 0x2ce   : > { %v7720_v12 = vpop.f32.mrb[116].mxu1 }
 0x2cf   : > { %8170 = vst [vmem:[#allocation13_spill] sm:$0xff] %v7720_v12  ;;  %v3581_v19 = vpop.f32.mrb[52].mxu0  ;;  %v3133_v35 = vpop.f32.mrb[117].mxu1 }
 0x2d0   : > { %v7724_v22 = vadd.f32 %v5782_v38, %v3581_v19  ;;  %v3583_v29 = vpop.f32.mrb[53].mxu0  ;;  %v7726_v18 = vpop.f32.mrb[118].mxu1 }
 0x2d1   : > { %8171 = vst [vmem:[#allocation14_spill] sm:$0xff] %v7726_v18  ;;  %v3584_v8 = vpop.f32.mrb[54].mxu0  ;;  %v3136_v9 = vpop.f32.mrb[119].mxu1 }
 0x2d2   : > { %v7728_v27 = vadd.f32 %v5784_v42, %v3584_v8  ;;  %v3586_v1 = vpop.f32.mrb[55].mxu0 }
 0x2d6   : > { %v7732_v23 = vpop.f32.mrb[120].mxu1 }
 0x2d7   : > { %8172 = vst [vmem:[#allocation15_spill] sm:$0xff] %v7732_v23  ;;  %v3589_v12 = vpop.f32.mrb[56].mxu0  ;;  %v3141_v35 = vpop.f32.mrb[121].mxu1 }
 0x2d8   : > { %v7736_v19 = vadd.f32 %v5786_v47, %v3589_v12  ;;  %v3591_v38 = vpop.f32.mrb[57].mxu0  ;;  %v7738_v29 = vpop.f32.mrb[122].mxu1 }
 0x2d9   : > { %8173 = vst [vmem:[#allocation16_spill] sm:$0xff] %v7738_v29  ;;  %v3592_v18 = vpop.f32.mrb[58].mxu0  ;;  %v3144_v9 = vpop.f32.mrb[123].mxu1 }
 0x2da   : > { %v7740_v8 = vadd.f32 %v5788_v53, %v3592_v18  ;;  %v3594_v42 = vpop.f32.mrb[59].mxu0 }
 0x2dc   : > { %8174 = vst [vmem:[#allocation17_spill] sm:$0xff] %v7740_v8 }
 0x2de   : > { %v7744_v1 = vpop.f32.mrb[124].mxu1 }
 0x2df   : > { %8175 = vst [vmem:[#allocation18_spill] sm:$0xff] %v7744_v1  ;;  %v3597_v35 = vpop.f32.mrb[60].mxu0  ;;  %v3149_v23 = vpop.f32.mrb[125].mxu1 }
 0x2e0   : > { %v7748_v12 = vadd.f32 %v5790_v61, %v3597_v35  ;;  %v3599_v47 = vpop.f32.mrb[61].mxu0  ;;  %v7750_v38 = vpop.f32.mrb[126].mxu1 }
 0x2e1   : > { %8176 = vst [vmem:[#allocation19_spill] sm:$0xff] %v7750_v38  ;;  %v3600_v9 = vpop.f32.mrb[62].mxu0  ;;  %v3152_v18 = vpop.f32.mrb[127].mxu1 }
 0x2e2   : > { %v7752_v53 = vadd.f32 %v5792_v3, %v3600_v9  ;;  %v3602_v42 = vpop.f32.mrb[63].mxu0 }
 0x2e6   : > { %v5636_v29 = vpop.f32.mrb[128].mxu1 }
 0x2e7   : > { %v3605_v1 = vpop.f32.mrb[64].mxu0  ;;  %v3775_v23 = vadd.f32 %v7567_v0, %v5636_v29  ;;  %v3766_v36 = vpop.f32.mrb[129].mxu1 }
 0x2e8   : > { %v7760_v61 = vadd.f32 %v5794_v13, %v3605_v1  ;;  %v3607_v35 = vpop.f32.mrb[65].mxu0  ;;  %v3767_v47 = vadd.f32 %v7551_v37, %v3766_v36  ;;  %v5637_v3 = vpop.f32.mrb[130].mxu1  ;;  %v5798_v13 = vadd.f32 %v7542_v26, %v7562_v54 }
 0x2e9   : > { %v3608_v9 = vpop.f32.mrb[66].mxu0  ;;  %v3778_v18 = vadd.f32 %v7574_v57, %v5637_v3  ;;  %v3769_v31 = vpop.f32.mrb[131].mxu1  ;;  %v4023_v29 = vmax.f32 %v3775_v23, 0.0 }
 0x2ea   : > { %v7764_v42 = vadd.f32 %v5796_v17, %v3608_v9  ;;  %v3610_v38 = vpop.f32.mrb[67].mxu0  ;;  %v3770_v0 = vadd.f32 %v7558_v49, %v3769_v31  ;;  %v4021_v8 = vmax.f32 %v3767_v47, 0.0  ;;  %v5800_v49 = vadd.f32 %v7542_v26, %v7569_v7 }
 0x2eb   : > { %v4024_v30 = vmax.f32 %v3778_v18, 0.0 }
 0x2ec   : > { %v4022_v41 = vmax.f32 %v3770_v0, 0.0 }
 0x2ed   : > { %v5395_v1 = vpack.c.bf16 %v4024_v30, %v4023_v29 }
 0x2ee   : > { %v5390_v37 = vpack.c.bf16 %v4022_v41, %v4021_v8  ;;  %v5640_v36 = vpop.f32.mrb[132].mxu1 }
 0x2ef   : > { %5547 = vst [vmem:[%s7769_s12 + $0x8] sm:$0xff] %v5395_v1   ;;  %v3613_v57 = vpop.f32.mrb[68].mxu0  ;;  %v3791_v38 = vadd.f32 %v7599_v4, %v5640_v36  ;;  %v3782_v17 = vpop.f32.mrb[133].mxu1 }
 0x2f0   : > { %5391 = vst [vmem:[%s7769_s12] sm:$0xff] %v5390_v37   ;;  %v7776_v23 = vadd.f32 %v5798_v13, %v3613_v57  ;;  %v3615_v30 = vpop.f32.mrb[69].mxu0  ;;  %v3783_v54 = vadd.f32 %v7583_v34, %v3782_v17  ;;  %v5641_v8 = vpop.f32.mrb[134].mxu1  ;;  %v5802_v34 = vadd.f32 %v7542_v26, %v7578_v24  ;;  %v5804_v57 = vadd.f32 %v7542_v26, %v7585_v40 }
 0x2f1   : > { %v3616_v35 = vpop.f32.mrb[70].mxu0  ;;  %v3794_v47 = vadd.f32 %v7606_v11, %v5641_v8  ;;  %v3785_v3 = vpop.f32.mrb[135].mxu1  ;;  %v4027_v31 = vmax.f32 %v3791_v38, 0.0 }
 0x2f2   : > { %v7780_v9 = vadd.f32 %v5800_v49, %v3616_v35  ;;  %v3618_v4 = vpop.f32.mrb[71].mxu0  ;;  %v3786_v18 = vadd.f32 %v7590_v2, %v3785_v3  ;;  %v4025_v0 = vmax.f32 %v3783_v54, 0.0 }
 0x2f3   : > { %v4028_v7 = vmax.f32 %v3794_v47, 0.0 }
 0x2f4   : > { %v4026_v29 = vmax.f32 %v3786_v18, 0.0 }
 0x2f5   : > { %v5405_v41 = vpack.c.bf16 %v4028_v7, %v4027_v31 }
 0x2f6   : > { %v5400_v1 = vpack.c.bf16 %v4026_v29, %v4025_v0  ;;  %v5644_v13 = vpop.f32.mrb[136].mxu1 }
 0x2f7   : > { %5549 = vst [vmem:[%s7769_s12 + $0x18] sm:$0xff] %v5405_v41   ;;  %v3621_v37 = vpop.f32.mrb[72].mxu0  ;;  %v3807_v11 = vadd.f32 %v7628_v15, %v5644_v13  ;;  %v3798_v36 = vpop.f32.mrb[137].mxu1  ;;  %v5808_v41 = vadd.f32 %v7542_v26, %v7601_v10 }
 0x2f8   : > { %5548 = vst [vmem:[%s7769_s12 + $0x10] sm:$0xff] %v5400_v1   ;;  %v7790_v2 = vadd.f32 %v5802_v34, %v3621_v37  ;;  %v3623_v38 = vpop.f32.mrb[73].mxu0  ;;  %v3799_v17 = vadd.f32 %v7615_v43, %v3798_v36  ;;  %v5645_v49 = vpop.f32.mrb[138].mxu1  ;;  %v5806_v43 = vadd.f32 %v7542_v26, %v7594_v52 }
 0x2f9   : > { %v3624_v30 = vpop.f32.mrb[74].mxu0  ;;  %v3810_v24 = vadd.f32 %v7632_v25, %v5645_v49  ;;  %v3801_v54 = vpop.f32.mrb[139].mxu1  ;;  %v4031_v47 = vmax.f32 %v3807_v11, 0.0 }
 0x2fa   : > { %v7794_v8 = vadd.f32 %v5804_v57, %v3624_v30  ;;  %v3626_v15 = vpop.f32.mrb[75].mxu0  ;;  %v3802_v35 = vadd.f32 %v7620_v55, %v3801_v54  ;;  %v4029_v3 = vmax.f32 %v3799_v17, 0.0 }
 0x2fb   : > { %v4032_v40 = vmax.f32 %v3810_v24, 0.0 }
 0x2fc   : > { %v4030_v4 = vmax.f32 %v3802_v35, 0.0 }
 0x2fd   : > { %v5415_v18 = vpack.c.bf16 %v4032_v40, %v4031_v47  ;;  %v5812_v47 = vadd.f32 %v7542_v26, %v7617_v46 }
 0x2fe   : > { %v5410_v31 = vpack.c.bf16 %v4030_v4, %v4029_v3  ;;  %v5648_v7 = vpop.f32.mrb[140].mxu1 }
 0x2ff   : > { %5551 = vst [vmem:[%s7769_s12 + $0x28] sm:$0xff] %v5415_v18   ;;  %v3629_v0 = vpop.f32.mrb[76].mxu0  ;;  %v3823_v25 = vadd.f32 %v7652_v16, %v5648_v7  ;;  %v3814_v29 = vpop.f32.mrb[141].mxu1 }
 0x300   : > { %5550 = vst [vmem:[%s7769_s12 + $0x20] sm:$0xff] %v5410_v31   ;;  %v7804_v55 = vadd.f32 %v5806_v43, %v3629_v0  ;;  %v3631_v34 = vpop.f32.mrb[77].mxu0  ;;  %v3815_v1 = vadd.f32 %v7640_v6, %v3814_v29  ;;  %v5649_v13 = vpop.f32.mrb[142].mxu1  ;;  %v5810_v6 = vadd.f32 %v7542_v26, %v7610_v28 }
 0x301   : > { %v3632_v37 = vpop.f32.mrb[78].mxu0  ;;  %v3826_v52 = vadd.f32 %v7656_v33, %v5649_v13  ;;  %v3817_v11 = vpop.f32.mrb[143].mxu1  ;;  %v4035_v38 = vmax.f32 %v3823_v25, 0.0 }
 0x302   : > { %v7808_v36 = vadd.f32 %v5808_v41, %v3632_v37  ;;  %v3634_v16 = vpop.f32.mrb[79].mxu0  ;;  %v3818_v57 = vadd.f32 %v7644_v56, %v3817_v11  ;;  %v4033_v17 = vmax.f32 %v3815_v1, 0.0 }
 0x303   : > { %v4036_v10 = vmax.f32 %v3826_v52, 0.0  ;;  %v5816_v52 = vadd.f32 %v7542_v26, %v7630_v20 }
 0x304   : > { %v4034_v49 = vmax.f32 %v3818_v57, 0.0 }
 0x305   : > { %v5425_v30 = vpack.c.bf16 %v4036_v10, %v4035_v38 }
 0x306   : > { %v5420_v24 = vpack.c.bf16 %v4034_v49, %v4033_v17  ;;  %v5652_v54 = vpop.f32.mrb[144].mxu1 }
 0x307   : > { %5553 = vst [vmem:[%s7769_s12 + $0x38] sm:$0xff] %v5425_v30   ;;  %v3637_v15 = vpop.f32.mrb[80].mxu0  ;;  %v3839_v33 = vadd.f32 %v7676_v44, %v5652_v54  ;;  %v3830_v35 = vpop.f32.mrb[145].mxu1 }
 0x308   : > { %5552 = vst [vmem:[%s7769_s12 + $0x30] sm:$0xff] %v5420_v24   ;;  %v7818_v56 = vadd.f32 %v5810_v6, %v3637_v15  ;;  %v3639_v40 = vpop.f32.mrb[81].mxu0  ;;  %v3831_v3 = vadd.f32 %v7664_v5, %v3830_v35  ;;  %v5653_v4 = vpop.f32.mrb[146].mxu1  ;;  %v5814_v5 = vadd.f32 %v7542_v26, %v7624_v58 }
 0x309   : > { %v3640_v18 = vpop.f32.mrb[82].mxu0  ;;  %v3842_v28 = vadd.f32 %v7680_v48, %v5653_v4  ;;  %v3833_v43 = vpop.f32.mrb[147].mxu1  ;;  %v4039_v0 = vmax.f32 %v3839_v33, 0.0  ;;  %v5820_v40 = vadd.f32 %v7542_v26, %v7642_v50 }
 0x30a   : > { %v7822_v31 = vadd.f32 %v5812_v47, %v3640_v18  ;;  %v3642_v44 = vpop.f32.mrb[83].mxu0  ;;  %v3834_v7 = vadd.f32 %v7668_v39, %v3833_v43  ;;  %v4037_v25 = vmax.f32 %v3831_v3, 0.0 }
 0x30b   : > { %v4040_v46 = vmax.f32 %v3842_v28, 0.0 }
 0x30c   : > { %v4038_v29 = vmax.f32 %v3834_v7, 0.0 }
 0x30d   : > { %v5435_v41 = vpack.c.bf16 %v4040_v46, %v4039_v0 }
 0x30e   : > { %v5430_v34 = vpack.c.bf16 %v4038_v29, %v4037_v25  ;;  %v5656_v1 = vpop.f32.mrb[148].mxu1 }
 0x30f   : > { %5555 = vst [vmem:[%s7769_s12 + $0x48] sm:$0xff] %v5435_v41   ;;  %v3645_v13 = vpop.f32.mrb[84].mxu0  ;;  %v3855_v48 = vadd.f32 %v7700_v14, %v5656_v1  ;;  %v3846_v37 = vpop.f32.mrb[149].mxu1 }
 0x310   : > { %5554 = vst [vmem:[%s7769_s12 + $0x40] sm:$0xff] %v5430_v34   ;;  %v7832_v39 = vadd.f32 %v5814_v5, %v3645_v13  ;;  %v3647_v11 = vpop.f32.mrb[85].mxu0  ;;  %v3847_v16 = vadd.f32 %v7688_v59, %v3846_v37  ;;  %v5657_v57 = vpop.f32.mrb[150].mxu1  ;;  %v5818_v59 = vadd.f32 %v7542_v26, %v7636_v32  ;;  %v5824_v13 = vadd.f32 %v7542_v26, %v7654_v60 }
 0x311   : > { %v3648_v38 = vpop.f32.mrb[86].mxu0  ;;  %v3858_v58 = vadd.f32 %v7704_v51, %v5657_v57  ;;  %v3849_v10 = vpop.f32.mrb[151].mxu1  ;;  %v4043_v30 = vmax.f32 %v3855_v48, 0.0 }
 0x312   : > { %v7836_v17 = vadd.f32 %v5816_v52, %v3648_v38  ;;  %v3650_v14 = vpop.f32.mrb[87].mxu0  ;;  %v3850_v49 = vadd.f32 %v7692_v63, %v3849_v10  ;;  %v4041_v6 = vmax.f32 %v3847_v16, 0.0  ;;  %v8177_v38 = vld [vmem:[#allocation17_spill] sm:$0xff] }
 0x313   : > { %v4044_v20 = vmax.f32 %v3858_v58, 0.0 }
 0x314   : > { %v4042_v24 = vmax.f32 %v3850_v49, 0.0 }
 0x315   : > { %v5445_v54 = vpack.c.bf16 %v4044_v20, %v4043_v30  ;;  %v8178_v20 = vld [vmem:[#allocation3_spill] sm:$0xff] }
 0x316   : > { %v5440_v15 = vpack.c.bf16 %v4042_v24, %v4041_v6  ;;  %v5660_v33 = vpop.f32.mrb[152].mxu1 }
 0x317   : > { %5557 = vst [vmem:[%s7769_s12 + $0x58] sm:$0xff] %v5445_v54   ;;  %v3653_v35 = vpop.f32.mrb[88].mxu0  ;;  %v3871_v51 = vadd.f32 %v7724_v22, %v5660_v33  ;;  %v3862_v47 = vpop.f32.mrb[153].mxu1 }
 0x318   : > { %5556 = vst [vmem:[%s7769_s12 + $0x50] sm:$0xff] %v5440_v15   ;;  %v7846_v63 = vadd.f32 %v5818_v59, %v3653_v35  ;;  %v3655_v3 = vpop.f32.mrb[89].mxu0  ;;  %v3863_v4 = vadd.f32 %v7712_v21, %v3862_v47  ;;  %v5661_v18 = vpop.f32.mrb[154].mxu1  ;;  %v5822_v21 = vadd.f32 %v7542_v26, %v7648_v62  ;;  %v8179_v15 = vld [vmem:[#allocation4_spill] sm:$0xff] }
 0x319   : > { %v3656_v28 = vpop.f32.mrb[90].mxu0  ;;  %v3874_v32 = vadd.f32 %v7728_v27, %v5661_v18  ;;  %v3865_v43 = vpop.f32.mrb[155].mxu1  ;;  %v4047_v0 = vmax.f32 %v3871_v51, 0.0  ;;  %v5828_v33 = vadd.f32 %v7542_v26, %v8179_v15 }
 0x31a   : > { %v7850_v44 = vadd.f32 %v5820_v40, %v3656_v28  ;;  %v3658_v22 = vpop.f32.mrb[91].mxu0  ;;  %v3866_v7 = vadd.f32 %v7716_v45, %v3865_v43  ;;  %v4045_v46 = vmax.f32 %v3863_v4, 0.0 }
 0x31b   : > { %v4048_v50 = vmax.f32 %v3874_v32, 0.0 }
 0x31c   : > { %v4046_v25 = vmax.f32 %v3866_v7, 0.0 }
 0x31d   : > { %v5455_v29 = vpack.c.bf16 %v4048_v50, %v4047_v0 }
 0x31e   : > { %v5450_v41 = vpack.c.bf16 %v4046_v25, %v4045_v46  ;;  %v5664_v5 = vpop.f32.mrb[156].mxu1  ;;  %v8180_v46 = vld [vmem:[#allocation5_spill] sm:$0xff] }
 0x31f   : > { %5559 = vst [vmem:[%s7769_s12 + $0x68] sm:$0xff] %v5455_v29   ;;  %v3661_v34 = vpop.f32.mrb[92].mxu0  ;;  %v3887_v27 = vadd.f32 %v7748_v12, %v5664_v5  ;;  %v3878_v1 = vpop.f32.mrb[157].mxu1  ;;  %v8181_v5 = vld [vmem:[#allocation6_spill] sm:$0xff] }
 0x320   : > { %5558 = vst [vmem:[%s7769_s12 + $0x60] sm:$0xff] %v5450_v41   ;;  %v7860_v45 = vadd.f32 %v5822_v21, %v3661_v34  ;;  %v3663_v48 = vpop.f32.mrb[93].mxu0  ;;  %v3879_v37 = vadd.f32 %v7736_v19, %v3878_v1  ;;  %v5665_v52 = vpop.f32.mrb[158].mxu1  ;;  %v5826_v19 = vadd.f32 %v7542_v26, %v8178_v20  ;;  %v5832_v34 = vadd.f32 %v7542_v26, %v8181_v5 }
 0x321   : > { %v3664_v11 = vpop.f32.mrb[94].mxu0  ;;  %v3890_v62 = vadd.f32 %v7752_v53, %v5665_v52  ;;  %v3881_v16 = vpop.f32.mrb[159].mxu1  ;;  %v4051_v10 = vmax.f32 %v3887_v27, 0.0 }
 0x322   : > { %v7864_v57 = vadd.f32 %v5824_v13, %v3664_v11  ;;  %v3666_v12 = vpop.f32.mrb[95].mxu0  ;;  %v3882_v58 = vadd.f32 %v8177_v38, %v3881_v16  ;;  %v4049_v14 = vmax.f32 %v3879_v37, 0.0 }
 0x323   : > { %v4052_v60 = vmax.f32 %v3890_v62, 0.0 }
 0x324   : > { %v4050_v49 = vmax.f32 %v3882_v58, 0.0 }
 0x325   : > { %v5465_v30 = vpack.c.bf16 %v4052_v60, %v4051_v10  ;;  %v8182_v60 = vld [vmem:[#allocation7_spill] sm:$0xff] }
 0x326   : > { %v5460_v6 = vpack.c.bf16 %v4050_v49, %v4049_v14  ;;  %v5668_v24 = vpop.f32.mrb[160].mxu1 }
 0x327   : > { %5561 = vst [vmem:[%s7769_s12 + $0x78] sm:$0xff] %v5465_v30   ;;  %v3669_v54 = vpop.f32.mrb[96].mxu0  ;;  %v3903_v53 = vadd.f32 %v7776_v23, %v5668_v24  ;;  %v3894_v59 = vpop.f32.mrb[161].mxu1 }
 0x328   : > { %5560 = vst [vmem:[%s7769_s12 + $0x70] sm:$0xff] %v5460_v6   ;;  %v7874_v35 = vadd.f32 %v5826_v19, %v3669_v54  ;;  %v3671_v51 = vpop.f32.mrb[97].mxu0  ;;  %v3895_v47 = vadd.f32 %v7760_v61, %v3894_v59  ;;  %v5669_v40 = vpop.f32.mrb[162].mxu1  ;;  %v5830_v61 = vadd.f32 %v7542_v26, %v8180_v46  ;;  %v8183_v19 = vld [vmem:[#allocation8_spill] sm:$0xff] }
 0x329   : > { %v3672_v3 = vpop.f32.mrb[98].mxu0  ;;  %v3906_v4 = vadd.f32 %v7780_v9, %v5669_v40  ;;  %v3897_v18 = vpop.f32.mrb[163].mxu1  ;;  %v4055_v43 = vmax.f32 %v3903_v53, 0.0  ;;  %v5836_v6 = vadd.f32 %v7542_v26, %v8183_v19 }
 0x32a   : > { %v7878_v28 = vadd.f32 %v5828_v33, %v3672_v3  ;;  %v3674_v23 = vpop.f32.mrb[99].mxu0  ;;  %v3898_v32 = vadd.f32 %v7764_v42, %v3897_v18  ;;  %v4053_v7 = vmax.f32 %v3895_v47, 0.0 }
 0x32b   : > { %v4056_v22 = vmax.f32 %v3906_v4, 0.0 }
 0x32c   : > { %v4054_v0 = vmax.f32 %v3898_v32, 0.0  ;;  %v8184_v32 = vld [vmem:[#allocation9_spill] sm:$0xff] }
 0x32d   : > { %v5475_v50 = vpack.c.bf16 %v4056_v22, %v4055_v43 }
 0x32e   : > { %v5470_v25 = vpack.c.bf16 %v4054_v0, %v4053_v7  ;;  %v5672_v29 = vpop.f32.mrb[164].mxu1 }
 0x32f   : > { %5563 = vst [vmem:[%s7769_s12 + $0x88] sm:$0xff] %v5475_v50   ;;  %v3677_v21 = vpop.f32.mrb[100].mxu0  ;;  %v3919_v9 = vadd.f32 %v7804_v55, %v5672_v29  ;;  %v3910_v41 = vpop.f32.mrb[165].mxu1  ;;  %v8185_v50 = vld [vmem:[#allocation10_spill] sm:$0xff] }
 0x330   : > { %5562 = vst [vmem:[%s7769_s12 + $0x80] sm:$0xff] %v5470_v25   ;;  %v7888_v42 = vadd.f32 %v5830_v61, %v3677_v21  ;;  %v3679_v27 = vpop.f32.mrb[101].mxu0  ;;  %v3911_v1 = vadd.f32 %v7790_v2, %v3910_v41  ;;  %v5673_v13 = vpop.f32.mrb[166].mxu1  ;;  %v5834_v2 = vadd.f32 %v7542_v26, %v8182_v60  ;;  %v5840_v46 = vadd.f32 %v7542_v26, %v8185_v50 }
 0x331   : > { %v3680_v48 = vpop.f32.mrb[102].mxu0  ;;  %v3922_v37 = vadd.f32 %v7808_v36, %v5673_v13  ;;  %v3913_v52 = vpop.f32.mrb[167].mxu1  ;;  %v4059_v16 = vmax.f32 %v3919_v9, 0.0 }
 0x332   : > { %v7892_v11 = vadd.f32 %v5832_v34, %v3680_v48  ;;  %v3682_v55 = vpop.f32.mrb[103].mxu0  ;;  %v3914_v62 = vadd.f32 %v7794_v8, %v3913_v52  ;;  %v4057_v38 = vmax.f32 %v3911_v1, 0.0 }
 0x333   : > { %v4060_v12 = vmax.f32 %v3922_v37, 0.0  ;;  %v8186_v37 = vld [vmem:[#allocation11_spill] sm:$0xff] }
 0x334   : > { %v4058_v58 = vmax.f32 %v3914_v62, 0.0 }
 0x335   : > { %v5485_v10 = vpack.c.bf16 %v4060_v12, %v4059_v16  ;;  %v8187_v12 = vld [vmem:[#allocation12_spill] sm:$0xff] }
 0x336   : > { %v5480_v14 = vpack.c.bf16 %v4058_v58, %v4057_v38  ;;  %v5676_v49 = vpop.f32.mrb[168].mxu1 }
 0x337   : > { %5565 = vst [vmem:[%s7769_s12 + $0x98] sm:$0xff] %v5485_v10   ;;  %v3685_v30 = vpop.f32.mrb[104].mxu0  ;;  %v3935_v36 = vadd.f32 %v7832_v39, %v5676_v49  ;;  %v3926_v20 = vpop.f32.mrb[169].mxu1 }
 0x338   : > { %5564 = vst [vmem:[%s7769_s12 + $0x90] sm:$0xff] %v5480_v14   ;;  %v7902_v8 = vadd.f32 %v5834_v2, %v3685_v30  ;;  %v3687_v24 = vpop.f32.mrb[105].mxu0  ;;  %v3927_v54 = vadd.f32 %v7818_v56, %v3926_v20  ;;  %v5677_v53 = vpop.f32.mrb[170].mxu1  ;;  %v5838_v56 = vadd.f32 %v7542_v26, %v8184_v32 }
 0x339   : > { %v3688_v59 = vpop.f32.mrb[106].mxu0  ;;  %v3938_v15 = vadd.f32 %v7836_v17, %v5677_v53  ;;  %v3929_v33 = vpop.f32.mrb[171].mxu1  ;;  %v4063_v40 = vmax.f32 %v3935_v36, 0.0 }
 0x33a   : > { %v7906_v51 = vadd.f32 %v5836_v6, %v3688_v59  ;;  %v3690_v39 = vpop.f32.mrb[107].mxu0  ;;  %v3930_v47 = vadd.f32 %v7822_v31, %v3929_v33  ;;  %v4061_v4 = vmax.f32 %v3927_v54, 0.0  ;;  %v8188_v59 = vld [vmem:[#allocation13_spill] sm:$0xff] }
 0x33b   : > { %v4064_v3 = vmax.f32 %v3938_v15, 0.0 }
 0x33c   : > { %v4062_v18 = vmax.f32 %v3930_v47, 0.0 }
 0x33d   : > { %v5495_v23 = vpack.c.bf16 %v4064_v3, %v4063_v40  ;;  %v8189_v40 = vld [vmem:[#allocation14_spill] sm:$0xff] }
 0x33e   : > { %v5490_v43 = vpack.c.bf16 %v4062_v18, %v4061_v4  ;;  %v5680_v22 = vpop.f32.mrb[172].mxu1 }
 0x33f   : > { %5567 = vst [vmem:[%s7769_s12 + $0xa8] sm:$0xff] %v5495_v23   ;;  %v3693_v7 = vpop.f32.mrb[108].mxu0  ;;  %v3951_v17 = vadd.f32 %v7860_v45, %v5680_v22  ;;  %v3942_v0 = vpop.f32.mrb[173].mxu1 }
 0x340   : > { %5566 = vst [vmem:[%s7769_s12 + $0xa0] sm:$0xff] %v5490_v43   ;;  %v5839_v31 = vadd.f32 %v5838_v56, %v3693_v7  ;;  %v3695_v61 = vpop.f32.mrb[109].mxu0  ;;  %v3943_v25 = vadd.f32 %v7846_v63, %v3942_v0  ;;  %v5681_v29 = vpop.f32.mrb[174].mxu1  ;;  %v7922_v63 = vld [vmem:[%s8157_s2] ss:$0 sm:$0xff] }
 0x341   : > { %v3696_v21 = vpop.f32.mrb[110].mxu0  ;;  %v3954_v9 = vadd.f32 %v7864_v57, %v5681_v29  ;;  %v3945_v41 = vpop.f32.mrb[175].mxu1  ;;  %v4067_v27 = vmax.f32 %v3951_v17, 0.0  ;;  %v5842_v52 = vadd.f32 %v7922_v63, %v8186_v37  ;;  %v5844_v38 = vadd.f32 %v7922_v63, %v8187_v12 }
 0x342   : > { %v5841_v5 = vadd.f32 %v5840_v46, %v3696_v21  ;;  %v3698_v34 = vpop.f32.mrb[111].mxu0  ;;  %v3946_v45 = vadd.f32 %v7850_v44, %v3945_v41  ;;  %v4065_v13 = vmax.f32 %v3943_v25, 0.0  ;;  %v5846_v15 = vadd.f32 %v7922_v63, %v8188_v59  ;;  %v8190_v25 = vld [vmem:[#allocation15_spill] sm:$0xff] }
 0x343   : > { %v4068_v1 = vmax.f32 %v3954_v9, 0.0  ;;  %v5848_v3 = vadd.f32 %v7922_v63, %v8189_v40  ;;  %v5850_v29 = vadd.f32 %v7922_v63, %v8190_v25  ;;  %v8191_v34 = vld [vmem:[#allocation16_spill] sm:$0xff] }
 0x344   : > { %v4066_v26 = vmax.f32 %v3946_v45, 0.0  ;;  %v5852_v45 = vadd.f32 %v7922_v63, %v8191_v34 }
 0x345   : > { %v5505_v48 = vpack.c.bf16 %v4068_v1, %v4067_v27 }
 0x346   : > { %v5500_v57 = vpack.c.bf16 %v4066_v26, %v4065_v13  ;;  %v5684_v55 = vpop.f32.mrb[176].mxu1 }
 0x347   : > { %5569 = vst [vmem:[%s7769_s12 + $0xb8] sm:$0xff] %v5505_v48   ;;  %v3701_v62 = vpop.f32.mrb[112].mxu0  ;;  %v3967_v16 = vadd.f32 %v7888_v42, %v5684_v55  ;;  %v3958_v44 = vpop.f32.mrb[177].mxu1 }
 0x348   : > { %5568 = vst [vmem:[%s7769_s12 + $0xb0] sm:$0xff] %v5500_v57   ;;  %v5843_v58 = vadd.f32 %v5842_v52, %v3701_v62  ;;  %v3703_v10 = vpop.f32.mrb[113].mxu0  ;;  %v3959_v60 = vadd.f32 %v7874_v35, %v3958_v44  ;;  %v5685_v2 = vpop.f32.mrb[178].mxu1 }
 0x349   : > { %v3704_v14 = vpop.f32.mrb[114].mxu0  ;;  %v3970_v49 = vadd.f32 %v7892_v11, %v5685_v2  ;;  %v3961_v30 = vpop.f32.mrb[179].mxu1  ;;  %v4071_v19 = vmax.f32 %v3967_v16, 0.0  ;;  %v8192_v10 = vld [vmem:[#allocation18_spill] sm:$0xff] }
 0x34a   : > { %v5845_v36 = vadd.f32 %v5844_v38, %v3704_v14  ;;  %v3706_v20 = vpop.f32.mrb[115].mxu0  ;;  %v3962_v42 = vadd.f32 %v7878_v28, %v3961_v30  ;;  %v4069_v24 = vmax.f32 %v3959_v60, 0.0  ;;  %v5854_v60 = vadd.f32 %v7922_v63, %v8192_v10  ;;  %v8193_v30 = vld [vmem:[#allocation19_spill] sm:$0xff] }
 0x34b   : > { %v4072_v6 = vmax.f32 %v3970_v49, 0.0  ;;  %v5856_v20 = vadd.f32 %v7922_v63, %v8193_v30 }
 0x34c   : > { %v4070_v54 = vmax.f32 %v3962_v42, 0.0 }
 0x34d   : > { %v5515_v53 = vpack.c.bf16 %v4072_v6, %v4071_v19 }
 0x34e   : > { %v5510_v35 = vpack.c.bf16 %v4070_v54, %v4069_v24  ;;  %v5688_v33 = vpop.f32.mrb[180].mxu1 }
 0x34f   : > { %5571 = vst [vmem:[%s7769_s12 + $0xc8] sm:$0xff] %v5515_v53   ;;  %v3709_v39 = vpop.f32.mrb[116].mxu0  ;;  %v3983_v47 = vadd.f32 %v5839_v31, %v5688_v33  ;;  %v3974_v11 = vpop.f32.mrb[181].mxu1 }
 0x350   : > { %5570 = vst [vmem:[%s7769_s12 + $0xc0] sm:$0xff] %v5510_v35   ;;  %v5847_v4 = vadd.f32 %v5846_v15, %v3709_v39  ;;  %v3711_v28 = vpop.f32.mrb[117].mxu0  ;;  %v3975_v18 = vadd.f32 %v7902_v8, %v3974_v11  ;;  %v5689_v23 = vpop.f32.mrb[182].mxu1 }
 0x351   : > { %v3712_v32 = vpop.f32.mrb[118].mxu0  ;;  %v3986_v56 = vadd.f32 %v5841_v5, %v5689_v23  ;;  %v3977_v43 = vpop.f32.mrb[183].mxu1  ;;  %v4075_v0 = vmax.f32 %v3983_v47, 0.0 }
 0x352   : > { %v5849_v22 = vadd.f32 %v5848_v3, %v3712_v32  ;;  %v3714_v7 = vpop.f32.mrb[119].mxu0  ;;  %v3978_v17 = vadd.f32 %v7906_v51, %v3977_v43  ;;  %v4073_v46 = vmax.f32 %v3975_v18, 0.0 }
 0x353   : > { %v4076_v50 = vmax.f32 %v3986_v56, 0.0 }
 0x354   : > { %v4074_v31 = vmax.f32 %v3978_v17, 0.0 }
 0x355   : > { %v5525_v61 = vpack.c.bf16 %v4076_v50, %v4075_v0 }
 0x356   : > { %v5520_v21 = vpack.c.bf16 %v4074_v31, %v4073_v46  ;;  %v5692_v8 = vpop.f32.mrb[184].mxu1 }
 0x357   : > { %5573 = vst [vmem:[%s7769_s12 + $0xd8] sm:$0xff] %v5525_v61   ;;  %v3717_v9 = vpop.f32.mrb[120].mxu0  ;;  %v3999_v41 = vadd.f32 %v5847_v4, %v5692_v8  ;;  %v3990_v5 = vpop.f32.mrb[185].mxu1 }
 0x358   : > { %5572 = vst [vmem:[%s7769_s12 + $0xd0] sm:$0xff] %v5520_v21   ;;  %v5851_v27 = vadd.f32 %v5850_v29, %v3717_v9  ;;  %v3719_v51 = vpop.f32.mrb[121].mxu0  ;;  %v3991_v1 = vadd.f32 %v5843_v58, %v3990_v5  ;;  %v5693_v13 = vpop.f32.mrb[186].mxu1 }
 0x359   : > { %v3720_v26 = vpop.f32.mrb[122].mxu0  ;;  %v4002_v48 = vadd.f32 %v5849_v22, %v5693_v13  ;;  %v3993_v37 = vpop.f32.mrb[187].mxu1  ;;  %v4079_v62 = vmax.f32 %v3999_v41, 0.0 }
 0x35a   : > { %v5853_v52 = vadd.f32 %v5852_v45, %v3720_v26  ;;  %v3722_v57 = vpop.f32.mrb[123].mxu0  ;;  %v3994_v55 = vadd.f32 %v5845_v36, %v3993_v37  ;;  %v4077_v44 = vmax.f32 %v3991_v1, 0.0 }
 0x35b   : > { %v4080_v16 = vmax.f32 %v4002_v48, 0.0 }
 0x35c   : > { %v4078_v12 = vmax.f32 %v3994_v55, 0.0 }
 0x35d   : > { %v5535_v38 = vpack.c.bf16 %v4080_v16, %v4079_v62 }
 0x35e   : > { %v5530_v2 = vpack.c.bf16 %v4078_v12, %v4077_v44  ;;  %v5696_v14 = vpop.f32.mrb[188].mxu1 }
 0x35f   : > { %5575 = vst [vmem:[%s7769_s12 + $0xe8] sm:$0xff] %v5535_v38   ;;  %v3725_v58 = vpop.f32.mrb[124].mxu0  ;;  %v4006_v49 = vpop.f32.mrb[189].mxu1 }
 0x360   : > { %5574 = vst [vmem:[%s7769_s12 + $0xe0] sm:$0xff] %v5530_v2   ;;  %v5855_v42 = vadd.f32 %v5854_v60, %v3725_v58  ;;  %v3727_v19 = vpop.f32.mrb[125].mxu0  ;;  %v4007_v36 = vadd.f32 %v5851_v27, %v4006_v49  ;;  %v5697_v6 = vpop.f32.mrb[190].mxu1 }
 0x361   : > { %v3728_v24 = vpop.f32.mrb[126].mxu0  ;;  %v4009_v54 = vpop.f32.mrb[191].mxu1 }
 0x362   : > { %v4015_v53 = vadd.f32 %v5855_v42, %v5696_v14  ;;  %v5857_v59 = vadd.f32 %v5856_v20, %v3728_v24  ;;  %v3730_v15 = vpop.f32.mrb[127].mxu0  ;;  %v4010_v35 = vadd.f32 %v5853_v52, %v4009_v54  ;;  %v4081_v33 = vmax.f32 %v4007_v36, 0.0 }
 0x364   : > { %v4018_v39 = vadd.f32 %v5857_v59, %v5697_v6  ;;  %v4082_v47 = vmax.f32 %v4010_v35, 0.0  ;;  %v4083_v11 = vmax.f32 %v4015_v53, 0.0  ;;  %4411 = sbr.rel (!%p6827_p4) target bundleno = 966 (0x3c6), region = 36 }
 0x366   : > { %v4084_v40 = vmax.f32 %v4018_v39, 0.0  ;;  %v5540_v3 = vpack.c.bf16 %v4082_v47, %v4081_v33 }
 0x368   : > { %v5545_v63 = vpack.c.bf16 %v4084_v40, %v4083_v11  ;;  %5576 = vst [vmem:[%s7769_s12 + $0xf0] sm:$0xff] %v5540_v3  }
 0x36a   : > { %5577 = vst [vmem:[%s7769_s12 + $0xf8] sm:$0xff] %v5545_v63  }
 0x36b   : > { %s8201_s21 = smov (!%p4414_p8, %s4413_s21), 64 }
 0x36c   : > { %s5305_s26 = sshll.u32 %s8201_s21, 6 }
 0x36d   : > { %p5308_p9 = scmp.eq.s32.totalorder %s5305_s26, 0 }
 0x36e   : > { %s7969_s27 = sshrl.u32 (!%p5308_p9), %s8201_s21, 6 }
 0x36f   : > { %4422 = sbr.rel (%p5308_p9) target bundleno = 966 (0x3c6), region = 40  ;;  %p5309_p10 = scmp.le.s32.totalorder (!%p5308_p9), %s7969_s27, 0 }
 0x376   : > { %4827 = sbr.rel (%p5309_p10) target bundleno = 945 (0x3b1), region = 112  ;;  %s8194_s15 = smov (!%p5309_p10), %s7963_s25 }
 0x377   : > { %s8195_s20 = smov (!%p5309_p10), %s7769_s12  ;;  %s7978_s18 = smov (!%p5309_p10), 0  }
 0x378   : > { %s7980_s28 = smov (!%p5309_p10), 0  }
 0x37d LB: >> { %v4438_v4 = vld [vmem:[%s6755_s20] sm:$0xf]  ;;  %v4440_v28 = vld [vmem:[%s6755_s20 + $0x4] sm:$0xf]  ;;  %v4442_v18 = vld [vmem:[%s6755_s20 + $0x8] sm:$0xf]  ;;  %s6763_s28 = sphi %s7980_s28, %s4432_s28   ;;  %s6759_s18 = sphi %s7978_s18, %s8196_s18   ;;  %s6755_s20 = sphi %s8195_s20, %s4571_s20   ;;  %s6751_s15 = sphi %s8194_s15, %s4572_s15  }
 0x37e   : >> { %4439 = vst [vmem:[%s6751_s15] sm:$0xf] %v4438_v4  ;;  %4441 = vst [vmem:[%s6751_s15 + $0x4] sm:$0xf] %v4440_v28  ;;  %v4444_v23 = vld [vmem:[%s6755_s20 + $0xc] sm:$0xf]  ;;  %s4566_s29 = sadd.s32 1, %s6759_s18 }
 0x37f   : >> { %4443 = vst [vmem:[%s6751_s15 + $0x8] sm:$0xf] %v4442_v18  ;;  %v4446_v32 = vld [vmem:[%s6755_s20 + $0x10] sm:$0xf]  ;;  %v4448_v56 = vld [vmem:[%s6755_s20 + $0x14] sm:$0xf]  ;;  %p4567_p11 = scmp.ge.s32.totalorder %s4566_s29, %s7969_s27 }
 0x380   : >> { %4445 = vst [vmem:[%s6751_s15 + $0xc] sm:$0xf] %v4444_v23  ;;  %4447 = vst [vmem:[%s6751_s15 + $0x10] sm:$0xf] %v4446_v32  ;;  %v4450_v43 = vld [vmem:[%s6755_s20 + $0x18] sm:$0xf] }
 0x381   : >> { %4449 = vst [vmem:[%s6751_s15 + $0x14] sm:$0xf] %v4448_v56  ;;  %v4452_v22 = vld [vmem:[%s6755_s20 + $0x1c] sm:$0xf]  ;;  %v4454_v7 = vld [vmem:[%s6755_s20 + $0x20] sm:$0xf] }
 0x382   : >> { %4451 = vst [vmem:[%s6751_s15 + $0x18] sm:$0xf] %v4450_v43  ;;  %4453 = vst [vmem:[%s6751_s15 + $0x1c] sm:$0xf] %v4452_v22  ;;  %v4456_v17 = vld [vmem:[%s6755_s20 + $0x24] sm:$0xf] }
 0x383   : >> { %4455 = vst [vmem:[%s6751_s15 + $0x20] sm:$0xf] %v4454_v7  ;;  %v4458_v0 = vld [vmem:[%s6755_s20 + $0x28] sm:$0xf]  ;;  %v4460_v50 = vld [vmem:[%s6755_s20 + $0x2c] sm:$0xf] }
 0x384   : >> { %4457 = vst [vmem:[%s6751_s15 + $0x24] sm:$0xf] %v4456_v17  ;;  %4459 = vst [vmem:[%s6751_s15 + $0x28] sm:$0xf] %v4458_v0  ;;  %v4462_v46 = vld [vmem:[%s6755_s20 + $0x30] sm:$0xf] }
 0x385   : >> { %4461 = vst [vmem:[%s6751_s15 + $0x2c] sm:$0xf] %v4460_v50  ;;  %v4464_v31 = vld [vmem:[%s6755_s20 + $0x34] sm:$0xf]  ;;  %v4466_v61 = vld [vmem:[%s6755_s20 + $0x38] sm:$0xf] }
 0x386   : >> { %4463 = vst [vmem:[%s6751_s15 + $0x30] sm:$0xf] %v4462_v46  ;;  %4465 = vst [vmem:[%s6751_s15 + $0x34] sm:$0xf] %v4464_v31  ;;  %v4468_v25 = vld [vmem:[%s6755_s20 + $0x3c] sm:$0xf] }
 0x387   : >> { %4467 = vst [vmem:[%s6751_s15 + $0x38] sm:$0xf] %v4466_v61  ;;  %v4470_v29 = vld [vmem:[%s6755_s20 + $0x40] sm:$0xf]  ;;  %v4472_v21 = vld [vmem:[%s6755_s20 + $0x44] sm:$0xf] }
 0x388   : >> { %4469 = vst [vmem:[%s6751_s15 + $0x3c] sm:$0xf] %v4468_v25  ;;  %4471 = vst [vmem:[%s6751_s15 + $0x40] sm:$0xf] %v4470_v29  ;;  %v4474_v8 = vld [vmem:[%s6755_s20 + $0x48] sm:$0xf] }
 0x389   : >> { %4473 = vst [vmem:[%s6751_s15 + $0x44] sm:$0xf] %v4472_v21  ;;  %v4476_v9 = vld [vmem:[%s6755_s20 + $0x4c] sm:$0xf]  ;;  %v4478_v41 = vld [vmem:[%s6755_s20 + $0x50] sm:$0xf] }
 0x38a   : >> { %4475 = vst [vmem:[%s6751_s15 + $0x48] sm:$0xf] %v4474_v8  ;;  %4477 = vst [vmem:[%s6751_s15 + $0x4c] sm:$0xf] %v4476_v9  ;;  %v4480_v5 = vld [vmem:[%s6755_s20 + $0x54] sm:$0xf] }
 0x38b   : >> { %4479 = vst [vmem:[%s6751_s15 + $0x50] sm:$0xf] %v4478_v41  ;;  %v4482_v34 = vld [vmem:[%s6755_s20 + $0x58] sm:$0xf]  ;;  %v4484_v45 = vld [vmem:[%s6755_s20 + $0x5c] sm:$0xf] }
 0x38c   : >> { %4481 = vst [vmem:[%s6751_s15 + $0x54] sm:$0xf] %v4480_v5  ;;  %4483 = vst [vmem:[%s6751_s15 + $0x58] sm:$0xf] %v4482_v34  ;;  %v4486_v27 = vld [vmem:[%s6755_s20 + $0x60] sm:$0xf] }
 0x38d   : >> { %4485 = vst [vmem:[%s6751_s15 + $0x5c] sm:$0xf] %v4484_v45  ;;  %v4488_v51 = vld [vmem:[%s6755_s20 + $0x64] sm:$0xf]  ;;  %v4490_v1 = vld [vmem:[%s6755_s20 + $0x68] sm:$0xf] }
 0x38e   : >> { %4487 = vst [vmem:[%s6751_s15 + $0x60] sm:$0xf] %v4486_v27  ;;  %4489 = vst [vmem:[%s6751_s15 + $0x64] sm:$0xf] %v4488_v51  ;;  %v4492_v13 = vld [vmem:[%s6755_s20 + $0x6c] sm:$0xf] }
 0x38f   : >> { %4491 = vst [vmem:[%s6751_s15 + $0x68] sm:$0xf] %v4490_v1  ;;  %v4494_v26 = vld [vmem:[%s6755_s20 + $0x70] sm:$0xf]  ;;  %v4496_v48 = vld [vmem:[%s6755_s20 + $0x74] sm:$0xf] }
 0x390   : >> { %4493 = vst [vmem:[%s6751_s15 + $0x6c] sm:$0xf] %v4492_v13  ;;  %4495 = vst [vmem:[%s6751_s15 + $0x70] sm:$0xf] %v4494_v26  ;;  %v4498_v37 = vld [vmem:[%s6755_s20 + $0x78] sm:$0xf] }
 0x391   : >> { %4497 = vst [vmem:[%s6751_s15 + $0x74] sm:$0xf] %v4496_v48  ;;  %v4500_v52 = vld [vmem:[%s6755_s20 + $0x7c] sm:$0xf]  ;;  %v4502_v57 = vld [vmem:[%s6755_s20 + $0x80] sm:$0xf] }
 0x392   : >> { %4499 = vst [vmem:[%s6751_s15 + $0x78] sm:$0xf] %v4498_v37  ;;  %4501 = vst [vmem:[%s6751_s15 + $0x7c] sm:$0xf] %v4500_v52  ;;  %v4504_v55 = vld [vmem:[%s6755_s20 + $0x84] sm:$0xf] }
 0x393   : >> { %4503 = vst [vmem:[%s6751_s15 + $0x80] sm:$0xf] %v4502_v57  ;;  %v4506_v62 = vld [vmem:[%s6755_s20 + $0x88] sm:$0xf]  ;;  %v4508_v16 = vld [vmem:[%s6755_s20 + $0x8c] sm:$0xf] }
 0x394   : >> { %4505 = vst [vmem:[%s6751_s15 + $0x84] sm:$0xf] %v4504_v55  ;;  %4507 = vst [vmem:[%s6751_s15 + $0x88] sm:$0xf] %v4506_v62  ;;  %v4510_v44 = vld [vmem:[%s6755_s20 + $0x90] sm:$0xf] }
 0x395   : >> { %4509 = vst [vmem:[%s6751_s15 + $0x8c] sm:$0xf] %v4508_v16  ;;  %v4512_v12 = vld [vmem:[%s6755_s20 + $0x94] sm:$0xf]  ;;  %v4514_v38 = vld [vmem:[%s6755_s20 + $0x98] sm:$0xf] }
 0x396   : >> { %4511 = vst [vmem:[%s6751_s15 + $0x90] sm:$0xf] %v4510_v44  ;;  %4513 = vst [vmem:[%s6751_s15 + $0x94] sm:$0xf] %v4512_v12  ;;  %v4516_v10 = vld [vmem:[%s6755_s20 + $0x9c] sm:$0xf] }
 0x397   : >> { %4515 = vst [vmem:[%s6751_s15 + $0x98] sm:$0xf] %v4514_v38  ;;  %v4518_v60 = vld [vmem:[%s6755_s20 + $0xa0] sm:$0xf]  ;;  %v4520_v2 = vld [vmem:[%s6755_s20 + $0xa4] sm:$0xf] }
 0x398   : >> { %4517 = vst [vmem:[%s6751_s15 + $0x9c] sm:$0xf] %v4516_v10  ;;  %4519 = vst [vmem:[%s6751_s15 + $0xa0] sm:$0xf] %v4518_v60  ;;  %v4522_v14 = vld [vmem:[%s6755_s20 + $0xa8] sm:$0xf] }
 0x399   : >> { %4521 = vst [vmem:[%s6751_s15 + $0xa4] sm:$0xf] %v4520_v2  ;;  %v4524_v58 = vld [vmem:[%s6755_s20 + $0xac] sm:$0xf]  ;;  %v4526_v49 = vld [vmem:[%s6755_s20 + $0xb0] sm:$0xf] }
 0x39a   : >> { %4523 = vst [vmem:[%s6751_s15 + $0xa8] sm:$0xf] %v4522_v14  ;;  %4525 = vst [vmem:[%s6751_s15 + $0xac] sm:$0xf] %v4524_v58  ;;  %v4528_v30 = vld [vmem:[%s6755_s20 + $0xb4] sm:$0xf] }
 0x39b   : >> { %4527 = vst [vmem:[%s6751_s15 + $0xb0] sm:$0xf] %v4526_v49  ;;  %v4530_v20 = vld [vmem:[%s6755_s20 + $0xb8] sm:$0xf]  ;;  %v4532_v42 = vld [vmem:[%s6755_s20 + $0xbc] sm:$0xf] }
 0x39c   : >> { %4529 = vst [vmem:[%s6751_s15 + $0xb4] sm:$0xf] %v4528_v30  ;;  %4531 = vst [vmem:[%s6751_s15 + $0xb8] sm:$0xf] %v4530_v20  ;;  %v4534_v19 = vld [vmem:[%s6755_s20 + $0xc0] sm:$0xf] }
 0x39d   : >> { %4533 = vst [vmem:[%s6751_s15 + $0xbc] sm:$0xf] %v4532_v42  ;;  %v4536_v36 = vld [vmem:[%s6755_s20 + $0xc4] sm:$0xf]  ;;  %v4538_v6 = vld [vmem:[%s6755_s20 + $0xc8] sm:$0xf] }
 0x39e   : >> { %4535 = vst [vmem:[%s6751_s15 + $0xc0] sm:$0xf] %v4534_v19  ;;  %4537 = vst [vmem:[%s6751_s15 + $0xc4] sm:$0xf] %v4536_v36  ;;  %v4540_v24 = vld [vmem:[%s6755_s20 + $0xcc] sm:$0xf] }
 0x39f   : >> { %4539 = vst [vmem:[%s6751_s15 + $0xc8] sm:$0xf] %v4538_v6  ;;  %v4542_v54 = vld [vmem:[%s6755_s20 + $0xd0] sm:$0xf]  ;;  %v4544_v53 = vld [vmem:[%s6755_s20 + $0xd4] sm:$0xf] }
 0x3a0   : >> { %4541 = vst [vmem:[%s6751_s15 + $0xcc] sm:$0xf] %v4540_v24  ;;  %4543 = vst [vmem:[%s6751_s15 + $0xd0] sm:$0xf] %v4542_v54  ;;  %v4546_v59 = vld [vmem:[%s6755_s20 + $0xd8] sm:$0xf] }
 0x3a1   : >> { %4545 = vst [vmem:[%s6751_s15 + $0xd4] sm:$0xf] %v4544_v53  ;;  %v4548_v15 = vld [vmem:[%s6755_s20 + $0xdc] sm:$0xf]  ;;  %v4550_v35 = vld [vmem:[%s6755_s20 + $0xe0] sm:$0xf] }
 0x3a2   : >> { %4547 = vst [vmem:[%s6751_s15 + $0xd8] sm:$0xf] %v4546_v59  ;;  %4549 = vst [vmem:[%s6751_s15 + $0xdc] sm:$0xf] %v4548_v15  ;;  %v4552_v33 = vld [vmem:[%s6755_s20 + $0xe4] sm:$0xf] }
 0x3a3   : >> { %4551 = vst [vmem:[%s6751_s15 + $0xe0] sm:$0xf] %v4550_v35  ;;  %v4554_v39 = vld [vmem:[%s6755_s20 + $0xe8] sm:$0xf]  ;;  %v4556_v47 = vld [vmem:[%s6755_s20 + $0xec] sm:$0xf] }
 0x3a4   : >> { %4553 = vst [vmem:[%s6751_s15 + $0xe4] sm:$0xf] %v4552_v33  ;;  %4555 = vst [vmem:[%s6751_s15 + $0xe8] sm:$0xf] %v4554_v39  ;;  %v4558_v11 = vld [vmem:[%s6755_s20 + $0xf0] sm:$0xf] }
 0x3a5   : >> { %4557 = vst [vmem:[%s6751_s15 + $0xec] sm:$0xf] %v4556_v47  ;;  %v4560_v40 = vld [vmem:[%s6755_s20 + $0xf4] sm:$0xf]  ;;  %v4562_v3 = vld [vmem:[%s6755_s20 + $0xf8] sm:$0xf] }
 0x3a6   : >> { %4559 = vst [vmem:[%s6751_s15 + $0xf0] sm:$0xf] %v4558_v11  ;;  %4561 = vst [vmem:[%s6751_s15 + $0xf4] sm:$0xf] %v4560_v40  ;;  %v4564_v63 = vld [vmem:[%s6755_s20 + $0xfc] sm:$0xf] }
 0x3a7   : >> { %4563 = vst [vmem:[%s6751_s15 + $0xf8] sm:$0xf] %v4562_v3  ;;  %4565 = vst [vmem:[%s6751_s15 + $0xfc] sm:$0xf] %v4564_v63  ;;  %s8203_s29 = smov (%p4567_p11, %s4566_s29), 0  ;;  %s4432_s28 = sadd.s32 1, %s6763_s28  }
 0x3a8   : >> { %s5310_s30 = sshll.u32 %s8203_s29, 8  ;;  %p4431_p12 = scmp.ge.s32.totalorder %s4432_s28, %s7969_s27 }
 0x3a9   : >> { %s4571_s20 = scalar_lea.vmem %s7769_s12, %s5310_s30 [#allocation2]   ;;  %s4572_s15 = scalar_lea.vmem %s7963_s25, %s5310_s30  }
 0x3aa   : >> { %s8196_s18 = smov %s8203_s29  ;;  %4434 = sbr.rel (!%p4431_p12) target bundleno = 893 (0x37d), region = 118 }
 0x3b1 PF: > { %s8137_s4 = sand.u32 63, %s8201_s21   ;;  %s5385_s5 = sshll.u32 %s7969_s27, 8 }
 0x3b2   : > { %s4577_s6 = scalar_lea.vmem %s7769_s12, %s5385_s5 [#allocation2]   ;;  %s4579_s7 = scalar_lea.vmem %s7963_s25, %s5385_s5  }
 0x3b3   : > { %p5315_p13 = scmp.le.s32.totalorder %s8137_s4, 0 }
 0x3b4   : > { %s6765_s8 = smov (!%p5315_p13), %s4579_s7   ;;  %s6769_s9 = smov (!%p5315_p13), %s4577_s6  }
 0x3b5   : > { %4841 = sbr.rel (%p5315_p13) target bundleno = 966 (0x3c6), region = 123  ;;  %s6773_s14 = smov (!%p5315_p13), 0  }
 0x3b6   : > { %s6777_s10 = smov (!%p5315_p13), 0  }
 0x3bc LB: >> { %v4589_v4 = vld [vmem:[%s6771_s9] sm:$0xf]  ;;  %s4591_s11 = sadd.s32 1, %s6775_s14  ;;  %s4583_s10 = sadd.s32 1, %s6779_s10   ;;  %s6779_s10 = sphi %s6777_s10, %s4583_s10   ;;  %s6775_s14 = sphi %s6773_s14, %s6774_s14   ;;  %s6771_s9 = sphi %s6769_s9, %s4596_s9   ;;  %s6767_s8 = sphi %s6765_s8, %s4597_s8  }
 0x3bd   : >> { %4590 = vst [vmem:[%s6767_s8] sm:$0xf] %v4589_v4  ;;  %p4592_p0 = scmp.ge.s32.totalorder %s4591_s11, %s8137_s4  ;;  %p4582_p1 = scmp.ge.s32.totalorder %s4583_s10, %s8137_s4 }
 0x3bf   : >> { %s8205_s11 = smov (%p4592_p0, %s4591_s11), 0  ;;  %4585 = sbr.rel (!%p4582_p1) target bundleno = 956 (0x3bc), region = 129 }
 0x3c0   : >> { %s5316_s12 = sshll.u32 %s8205_s11, 2  ;;  %s6774_s14 = smov %s8205_s11  }
 0x3c1   : >> { %s4596_s9 = scalar_lea.vmem %s4577_s6, %s5316_s12 [#allocation2]   ;;  %s4597_s8 = scalar_lea.vmem %s4579_s7, %s5316_s12  }
 0x3c6 PF: > { %p10_p2 = scmp.ge.s32.totalorder %s6817_s16, 8   ;;  %s8197_s12 = smov %s6743_s13 }
 0x3c7   : > { %s8198_s13 = smov %s6825_s19  ;;  %s8199_s14 = smov %s6817_s16 }
 0x3c8   :  { %12 = sbr.rel (!%p10_p2) target bundleno = 2 (0x2), region = 140 }

// kernel: convnet_forward.9
= control target key start
LH: loop header
LB: loop body
LE: loop exit
PB: predicated region body
PF: predicated region fallthrough
CT: control target
= control target key end

     0   :  { %s4475_s12 = smov 0   ;;  %s5365_s0 = inlined_call_operand.vmem [shape: bf16[512,1152], index: 0, kind: input, shape index: {}]   ;;  %s5366_s1 = inlined_call_operand.vmem [shape: bf16[1152,256], index: 1, kind: input, shape index: {}]   ;;  %s5367_s2 = inlined_call_operand.vmem [shape: f32[1,256], index: 2, kind: input, shape index: {}]   ;;  %s5368_s3 = inlined_call_operand.vmem [shape: bf16[512,256], index: 3, kind: output, shape index: {}]  }
   0x1 LB: > { %s3263_s13 = sadd.s32 4294967295, %s4452_s12   ;;  %p3267_p0 = scmp.ge.s32.totalorder %s4452_s12, 1  ;;  %s4452_s12 = sphi %s4475_s12, %s13_s12  }
   0x2   : > { %p139_p1 = scmp.lt.s32.totalorder %s4452_s12, 3 }
   0x4   : > { %p140_p2 = pnand %p3267_p0, %p139_p1 }
   0x5   : > { %v3990_v0 = vld [vmem:[%s5366_s1 + $0x4] ss:$8 sps:$4 sm:$0xff] (!%p140_p2)   ;;  %v3994_v2 = vld [vmem:[%s5366_s1] ss:$8 sps:$4 sm:$0xff] (!%p140_p2)   ;;  %v3996_v4 = vld [vmem:[%s5366_s1 + $0x14] ss:$8 sps:$4 sm:$0xff] (!%p140_p2)  }
   0x6   : > { %143 = sbr.rel (%p140_p2) target bundleno = 606 (0x25e), region = 32  ;;  %v3992_v1 = vld [vmem:[%s5366_s1 + $0x204] ss:$8 sps:$4 sm:$0xff] (!%p140_p2)   ;;  %1952 = vmatprep.subr.bf16.mxu1 (!%p140_p2), %v3990_v0  ;;  %v3995_v3 = vld [vmem:[%s5366_s1 + $0x200] ss:$8 sps:$4 sm:$0xff] (!%p140_p2)   ;;  %s3268_s24 = sshll.u32 (!%p140_p2), %s3263_s13, 5 }
   0x7   : > { %2338 = vmatprep.subr.bf16.mxu0 (!%p140_p2), %v3992_v1  ;;  %1953 = vmatpush1.bf16.msra.mxu1 (!%p140_p2), %v3994_v2  ;;  %v3998_v5 = vld [vmem:[%s5366_s1 + $0x214] ss:$8 sps:$4 sm:$0xff] (!%p140_p2)   ;;  %v4000_v6 = vld [vmem:[%s5366_s1 + $0x10] ss:$8 sps:$4 sm:$0xff] (!%p140_p2)   ;;  %v4002_v8 = vld [vmem:[%s5366_s1 + $0x24] ss:$8 sps:$4 sm:$0xff] (!%p140_p2)  }
   0x8   : > { %2339 = vmatpush1.bf16.msra.mxu0 (!%p140_p2), %v3995_v3  ;;  %1954 = vmatprep.subr.bf16.mxu1 (!%p140_p2), %v3996_v4  ;;  %v4001_v7 = vld [vmem:[%s5366_s1 + $0x210] ss:$8 sps:$4 sm:$0xff] (!%p140_p2)   ;;  %v4004_v9 = vld [vmem:[%s5366_s1 + $0x224] ss:$8 sps:$4 sm:$0xff] (!%p140_p2)   ;;  %v4006_v10 = vld [vmem:[%s5366_s1 + $0x20] ss:$8 sps:$4 sm:$0xff] (!%p140_p2)  }
   0x9   : > { %2340 = vmatprep.subr.bf16.mxu0 (!%p140_p2), %v3998_v5  ;;  %v4007_v11 = vld [vmem:[%s5366_s1 + $0x220] ss:$8 sps:$4 sm:$0xff] (!%p140_p2)   ;;  %v4008_v12 = vld [vmem:[%s5366_s1 + $0x34] ss:$8 sps:$4 sm:$0xff] (!%p140_p2)   ;;  %v4012_v14 = vld [vmem:[%s5366_s1 + $0x30] ss:$8 sps:$4 sm:$0xff] (!%p140_p2)  }
   0xa   : > { %v4010_v13 = vld [vmem:[%s5366_s1 + $0x234] ss:$8 sps:$4 sm:$0xff] (!%p140_p2)   ;;  %v4013_v15 = vld [vmem:[%s5366_s1 + $0x230] ss:$8 sps:$4 sm:$0xff] (!%p140_p2)   ;;  %v4014_v16 = vld [vmem:[%s5366_s1 + $0x44] ss:$8 sps:$4 sm:$0xff] (!%p140_p2)  }
   0xb   : > { %1955 = vmatpush1.bf16.msra.mxu1 (!%p140_p2), %v4000_v6  ;;  %v4016_v17 = vld [vmem:[%s5366_s1 + $0x244] ss:$8 sps:$4 sm:$0xff] (!%p140_p2)   ;;  %v4018_v18 = vld [vmem:[%s5366_s1 + $0x40] ss:$8 sps:$4 sm:$0xff] (!%p140_p2)   ;;  %v4020_v20 = vld [vmem:[%s5366_s1 + $0x54] ss:$8 sps:$4 sm:$0xff] (!%p140_p2)  }
   0xc   : > { %2341 = vmatpush1.bf16.msra.mxu0 (!%p140_p2), %v4001_v7  ;;  %1956 = vmatprep.subr.bf16.mxu1 (!%p140_p2), %v4002_v8  ;;  %v4019_v19 = vld [vmem:[%s5366_s1 + $0x240] ss:$8 sps:$4 sm:$0xff] (!%p140_p2)   ;;  %v4022_v21 = vld [vmem:[%s5366_s1 + $0x254] ss:$8 sps:$4 sm:$0xff] (!%p140_p2)   ;;  %v4024_v22 = vld [vmem:[%s5366_s1 + $0x50] ss:$8 sps:$4 sm:$0xff] (!%p140_p2)  }
   0xd   : > { %2342 = vmatprep.subr.bf16.mxu0 %v4004_v9  ;;  %v4025_v23 = vld [vmem:[%s5366_s1 + $0x250] ss:$8 sps:$4 sm:$0xff]   ;;  %v4026_v24 = vld [vmem:[%s5366_s1 + $0x64] ss:$8 sps:$4 sm:$0xff]   ;;  %v4030_v26 = vld [vmem:[%s5366_s1 + $0x60] ss:$8 sps:$4 sm:$0xff]  }
   0xe   : > { %v4028_v25 = vld [vmem:[%s5366_s1 + $0x264] ss:$8 sps:$4 sm:$0xff]   ;;  %v4031_v27 = vld [vmem:[%s5366_s1 + $0x260] ss:$8 sps:$4 sm:$0xff]   ;;  %v4032_v28 = vld [vmem:[%s5366_s1 + $0x74] ss:$8 sps:$4 sm:$0xff]  }
   0xf   : > { %1957 = vmatpush1.bf16.msra.mxu1 %v4006_v10  ;;  %v4034_v29 = vld [vmem:[%s5366_s1 + $0x274] ss:$8 sps:$4 sm:$0xff]   ;;  %v4036_v30 = vld [vmem:[%s5366_s1 + $0x70] ss:$8 sps:$4 sm:$0xff]   ;;  %v4038_v32 = vld [vmem:[%s5366_s1 + $0x84] ss:$8 sps:$4 sm:$0xff]  }
  0x10   : > { %2343 = vmatpush1.bf16.msra.mxu0 %v4007_v11  ;;  %1958 = vmatprep.subr.bf16.mxu1 %v4008_v12  ;;  %v4037_v31 = vld [vmem:[%s5366_s1 + $0x270] ss:$8 sps:$4 sm:$0xff]   ;;  %p166_p3 = scmp.lt.s32.totalorder %s3268_s24, 63  ;;  %v4040_v33 = vld [vmem:[%s5366_s1 + $0x284] ss:$8 sps:$4 sm:$0xff]  }
  0x11   : > { %2344 = vmatprep.subr.bf16.mxu0 %v4010_v13  ;;  %v4042_v34 = vld [vmem:[%s5366_s1 + $0x80] ss:$8 sps:$4 sm:$0xff]   ;;  %v4044_v36 = vld [vmem:[%s5366_s1 + $0x94] ss:$8 sps:$4 sm:$0xff]   ;;  %v4048_v38 = vld [vmem:[%s5366_s1 + $0x90] ss:$8 sps:$4 sm:$0xff]  }
  0x12   : > { %v4043_v35 = vld [vmem:[%s5366_s1 + $0x280] ss:$8 sps:$4 sm:$0xff]   ;;  %s5370_s24 = smov (!%p166_p3, %s3268_s24), 63  ;;  %v4046_v37 = vld [vmem:[%s5366_s1 + $0x294] ss:$8 sps:$4 sm:$0xff]  }
  0x13   : > { %1959 = vmatpush1.bf16.msra.mxu1 %v4012_v14  ;;  %v4049_v39 = vld [vmem:[%s5366_s1 + $0x290] ss:$8 sps:$4 sm:$0xff]   ;;  %v4050_v40 = vld [vmem:[%s5366_s1 + $0xa4] ss:$8 sps:$4 sm:$0xff]   ;;  %s3980_s21 = smul.u32 36, %s5370_s24  ;;  %s3595_s5 = sshll.u32 %s5370_s24, 3 }
  0x14   : > { %2345 = vmatpush1.bf16.msra.mxu0 %v4013_v15  ;;  %1960 = vmatprep.subr.bf16.mxu1 %v4014_v16  ;;  %v4052_v41 = vld [vmem:[%s5366_s1 + $0x2a4] ss:$8 sps:$4 sm:$0xff]   ;;  %v4054_v42 = vld [vmem:[%s5366_s1 + $0xa0] ss:$8 sps:$4 sm:$0xff]   ;;  %v4056_v44 = vld [vmem:[%s5366_s1 + $0xb4] ss:$8 sps:$4 sm:$0xff]   ;;  %s5244_s8 = scalar_lea.vmem %s5368_s3, %s3595_s5 }
  0x15   : > { %2346 = vmatprep.subr.bf16.mxu0 %v4016_v17  ;;  %v4055_v43 = vld [vmem:[%s5366_s1 + $0x2a0] ss:$8 sps:$4 sm:$0xff]   ;;  %s4626_s13 = scalar_lea.vmem %s5365_s0, %s3980_s21  ;;  %v4058_v45 = vld [vmem:[%s5366_s1 + $0x2b4] ss:$8 sps:$4 sm:$0xff]   ;;  %v4060_v46 = vld [vmem:[%s5366_s1 + $0xb0] ss:$8 sps:$4 sm:$0xff]  }
  0x16   : > { %v4061_v47 = vld [vmem:[%s5366_s1 + $0x2b0] ss:$8 sps:$4 sm:$0xff]   ;;  %v4062_v48 = vld [vmem:[%s5366_s1 + $0xc4] ss:$8 sps:$4 sm:$0xff]   ;;  %v4066_v52 = vld [vmem:[%s5366_s1 + $0xc0] ss:$8 sps:$4 sm:$0xff]  }
  0x17   : > { %1961 = vmatpush1.bf16.msra.mxu1 %v4018_v18  ;;  %v4088_v49 = vld [vmem:[%s4626_s13 + $0x4] ss:$36 sps:$4 sm:$0xff]   ;;  %v4091_v51 = vld [vmem:[%s4626_s13 + $0x14] ss:$36 sps:$4 sm:$0xff]   ;;  %v4101_v9 = vld [vmem:[%s4626_s13 + $0x4c] ss:$36 sps:$4 sm:$0xff]  }
  0x18   : > { %2347 = vmatpush1.bf16.msra.mxu0 %v4019_v19  ;;  %1962 = vmatprep.subr.bf16.mxu1 %v4020_v20  ;;  %v4064_v50 = vld [vmem:[%s5366_s1 + $0x2c4] ss:$8 sps:$4 sm:$0xff]   ;;  %v4067_v53 = vld [vmem:[%s5366_s1 + $0x2c0] ss:$8 sps:$4 sm:$0xff]   ;;  %v4068_v54 = vld [vmem:[%s5366_s1 + $0xd4] ss:$8 sps:$4 sm:$0xff]  }
  0x19   : > { %2348 = vmatprep.subr.bf16.mxu0 %v4022_v21  ;;  %1984 = vmatprep.mubr.bf16.mxu1 %v4088_v49  ;;  %v4070_v55 = vld [vmem:[%s5366_s1 + $0x2d4] ss:$8 sps:$4 sm:$0xff]   ;;  %v4072_v56 = vld [vmem:[%s5366_s1 + $0xd0] ss:$8 sps:$4 sm:$0xff]   ;;  %v4074_v58 = vld [vmem:[%s5366_s1 + $0xe4] ss:$8 sps:$4 sm:$0xff]  }
  0x1a   : > { %2370 = vmatprep.mubr.bf16.mxu0 %v4091_v51  ;;  %v4073_v57 = vld [vmem:[%s5366_s1 + $0x2d0] ss:$8 sps:$4 sm:$0xff]   ;;  %v4076_v59 = vld [vmem:[%s5366_s1 + $0x2e4] ss:$8 sps:$4 sm:$0xff]   ;;  %v4078_v60 = vld [vmem:[%s5366_s1 + $0xe0] ss:$8 sps:$4 sm:$0xff]  }
  0x1b   : > { %1963 = vmatpush1.bf16.msra.mxu1 %v4024_v22  ;;  %v4079_v61 = vld [vmem:[%s5366_s1 + $0x2e0] ss:$8 sps:$4 sm:$0xff]   ;;  %v4080_v62 = vld [vmem:[%s5366_s1 + $0xf4] ss:$8 sps:$4 sm:$0xff]   ;;  %v4084_v0 = vld [vmem:[%s5366_s1 + $0xf0] ss:$8 sps:$4 sm:$0xff]  }
  0x1c   : > { %2349 = vmatpush1.bf16.msra.mxu0 %v4025_v23  ;;  %1964 = vmatprep.subr.bf16.mxu1 %v4026_v24  ;;  %v4082_v63 = vld [vmem:[%s5366_s1 + $0x2f4] ss:$8 sps:$4 sm:$0xff]   ;;  %v4085_v1 = vld [vmem:[%s5366_s1 + $0x2f0] ss:$8 sps:$4 sm:$0xff]   ;;  %v4094_v2 = vld [vmem:[%s5366_s1 + $0x104] ss:$8 sps:$4 sm:$0xff]  }
  0x1d   : > { %2350 = vmatprep.subr.bf16.mxu0 %v4028_v25  ;;  %v4097_v3 = vld [vmem:[%s5366_s1 + $0x304] ss:$8 sps:$4 sm:$0xff]   ;;  %v4089_v5 = vld [vmem:[%s4626_s13 + $0x10] ss:$36 sps:$4 sm:$0xff]   ;;  %v4092_v6 = vld [vmem:[%s5366_s1 + $0x100] ss:$8 sps:$4 sm:$0xff]  }
  0x1e   : > { %v4086_v4 = vld [vmem:[%s4626_s13] ss:$36 sps:$4 sm:$0xff]   ;;  %v4100_v8 = vld [vmem:[%s5366_s1 + $0x314] ss:$8 sps:$4 sm:$0xff]   ;;  %v4098_v12 = vld [vmem:[%s5366_s1 + $0x310] ss:$8 sps:$4 sm:$0xff]  }
  0x1f   : > { %1965 = vmatpush1.bf16.msra.mxu1 %v4030_v26  ;;  %v4095_v7 = vld [vmem:[%s5366_s1 + $0x300] ss:$8 sps:$4 sm:$0xff]   ;;  %v4108_v11 = vld [vmem:[%s5366_s1 + $0x114] ss:$8 sps:$4 sm:$0xff]   ;;  %v4106_v13 = vld [vmem:[%s5366_s1 + $0x110] ss:$8 sps:$4 sm:$0xff]  }
  0x20   : > { %2351 = vmatpush1.bf16.msra.mxu0 %v4031_v27  ;;  %1966 = vmatprep.subr.bf16.mxu1 %v4032_v28  ;;  %v4103_v10 = vld [vmem:[%s4626_s13 + $0x5c] ss:$36 sps:$4 sm:$0xff]   ;;  %v4112_v14 = vld [vmem:[%s5366_s1 + $0x324] ss:$8 sps:$4 sm:$0xff]   ;;  %v4116_v20 = vld [vmem:[%s4626_s13 + $0x94] ss:$36 sps:$4 sm:$0xff]  }
  0x21   : > { %2352 = vmatprep.subr.bf16.mxu0 %v4034_v29  ;;  %v4123_v15 = vld [vmem:[%s5366_s1 + $0x124] ss:$8 sps:$4 sm:$0xff]   ;;  %v4109_v17 = vld [vmem:[%s4626_s13 + $0x58] ss:$36 sps:$4 sm:$0xff]   ;;  %v4110_v18 = vld [vmem:[%s5366_s1 + $0x320] ss:$8 sps:$4 sm:$0xff]  }
  0x22   : > { %v4105_v16 = vld [vmem:[%s4626_s13 + $0x48] ss:$36 sps:$4 sm:$0xff]   ;;  %v4115_v19 = vld [vmem:[%s5366_s1 + $0x334] ss:$8 sps:$4 sm:$0xff]   ;;  %v4113_v24 = vld [vmem:[%s5366_s1 + $0x330] ss:$8 sps:$4 sm:$0xff]  }
  0x23   : > { %1967 = vmatpush1.bf16.msra.mxu1 %v4036_v30  ;;  %v4118_v21 = vld [vmem:[%s4626_s13 + $0xa4] ss:$36 sps:$4 sm:$0xff]   ;;  %v4138_v23 = vld [vmem:[%s5366_s1 + $0x134] ss:$8 sps:$4 sm:$0xff]   ;;  %v4136_v27 = vld [vmem:[%s5366_s1 + $0x130] ss:$8 sps:$4 sm:$0xff]  }
  0x24   : > { %2353 = vmatpush1.bf16.msra.mxu0 %v4037_v31  ;;  %1968 = vmatprep.subr.bf16.mxu1 %v4038_v32  ;;  %v4121_v22 = vld [vmem:[%s5366_s1 + $0x120] ss:$8 sps:$4 sm:$0xff]   ;;  %v4120_v25 = vld [vmem:[%s4626_s13 + $0x90] ss:$36 sps:$4 sm:$0xff]   ;;  %v4127_v26 = vld [vmem:[%s5366_s1 + $0x344] ss:$8 sps:$4 sm:$0xff]  }
  0x25   : > { %2354 = vmatprep.subr.bf16.mxu0 %v4040_v33  ;;  %v4124_v28 = vld [vmem:[%s4626_s13 + $0xa0] ss:$36 sps:$4 sm:$0xff]   ;;  %v4130_v30 = vld [vmem:[%s5366_s1 + $0x354] ss:$8 sps:$4 sm:$0xff]   ;;  %v4133_v32 = vld [vmem:[%s4626_s13 + $0xec] ss:$36 sps:$4 sm:$0xff]  }
  0x26   : > { %v4125_v29 = vld [vmem:[%s5366_s1 + $0x340] ss:$8 sps:$4 sm:$0xff]   ;;  %v4153_v33 = vld [vmem:[%s5366_s1 + $0x144] ss:$8 sps:$4 sm:$0xff]   ;;  %v4154_v49 = vld [vmem:[%s4626_s13 + $0x130] ss:$36 sps:$4 sm:$0xff]  }
  0x27   : > { %1969 = vmatpush1.bf16.msra.mxu1 %v4042_v34  ;;  %v4131_v31 = vld [vmem:[%s4626_s13 + $0xdc] ss:$36 sps:$4 sm:$0xff]  }
  0x28   : > { %2355 = vmatpush1.bf16.msra.mxu0 %v4043_v35  ;;  %1970 = vmatprep.subr.bf16.mxu1 %v4044_v36  ;;  %v4151_v34 = vld [vmem:[%s5366_s1 + $0x140] ss:$8 sps:$4 sm:$0xff]   ;;  %v4128_v35 = vld [vmem:[%s5366_s1 + $0x350] ss:$8 sps:$4 sm:$0xff]   ;;  %v4168_v36 = vld [vmem:[%s5366_s1 + $0x154] ss:$8 sps:$4 sm:$0xff]  }
  0x29   : > { %2356 = vmatprep.subr.bf16.mxu0 %v4046_v37  ;;  %v4142_v37 = vld [vmem:[%s5366_s1 + $0x364] ss:$8 sps:$4 sm:$0xff]   ;;  %v4155_v51 = vld [vmem:[%s5366_s1 + $0x380] ss:$8 sps:$4 sm:$0xff]  }
  0x2b   : > { %1971 = vmatpush1.bf16.msra.mxu1 %v4048_v38  ;;  %v4135_v38 = vld [vmem:[%s4626_s13 + $0xd8] ss:$36 sps:$4 sm:$0xff]  }
  0x2c   : > { %2357 = vmatpush1.bf16.msra.mxu0 %v4049_v39  ;;  %1972 = vmatprep.subr.bf16.mxu1 %v4050_v40  ;;  %v4139_v39 = vld [vmem:[%s4626_s13 + $0xe8] ss:$36 sps:$4 sm:$0xff]  }
  0x2d   : > { %2358 = vmatprep.subr.bf16.mxu0 %v4052_v41  ;;  %v4140_v40 = vld [vmem:[%s5366_s1 + $0x360] ss:$8 sps:$4 sm:$0xff]   ;;  %v4145_v41 = vld [vmem:[%s5366_s1 + $0x374] ss:$8 sps:$4 sm:$0xff]  }
  0x2f   : > { %1973 = vmatpush1.bf16.msra.mxu1 %v4054_v42  ;;  %v4146_v42 = vld [vmem:[%s4626_s13 + $0x124] ss:$36 sps:$4 sm:$0xff]  }
  0x30   : > { %2359 = vmatpush1.bf16.msra.mxu0 %v4055_v43  ;;  %1974 = vmatprep.subr.bf16.mxu1 %v4056_v44  ;;  %v4148_v43 = vld [vmem:[%s4626_s13 + $0x134] ss:$36 sps:$4 sm:$0xff]  }
  0x31   : > { %2360 = vmatprep.subr.bf16.mxu0 %v4058_v45  ;;  %v4166_v44 = vld [vmem:[%s5366_s1 + $0x150] ss:$8 sps:$4 sm:$0xff]   ;;  %v4183_v45 = vld [vmem:[%s5366_s1 + $0x164] ss:$8 sps:$4 sm:$0xff]  }
  0x33   : > { %1975 = vmatpush1.bf16.msra.mxu1 %v4060_v46  ;;  %v4143_v46 = vld [vmem:[%s5366_s1 + $0x370] ss:$8 sps:$4 sm:$0xff]  }
  0x34   : > { %2361 = vmatpush1.bf16.msra.mxu0 %v4061_v47  ;;  %1976 = vmatprep.subr.bf16.mxu1 %v4062_v48  ;;  %v4150_v47 = vld [vmem:[%s4626_s13 + $0x120] ss:$36 sps:$4 sm:$0xff]  }
  0x35   : > { %2362 = vmatprep.subr.bf16.mxu0 %v4064_v50  ;;  %v4157_v48 = vld [vmem:[%s5366_s1 + $0x384] ss:$8 sps:$4 sm:$0xff]   ;;  %v4181_v50 = vld [vmem:[%s5366_s1 + $0x160] ss:$8 sps:$4 sm:$0xff]  }
  0x37   : > { %1977 = vmatpush1.bf16.msra.mxu1 %v4066_v52  ;;  %v4160_v52 = vld [vmem:[%s5366_s1 + $0x394] ss:$8 sps:$4 sm:$0xff]  }
  0x38   : > { %2363 = vmatpush1.bf16.msra.mxu0 %v4067_v53  ;;  %1978 = vmatprep.subr.bf16.mxu1 %v4068_v54  ;;  %v4161_v53 = vld [vmem:[%s4626_s13 + $0x16c] ss:$36 sps:$4 sm:$0xff]   ;;  %v4163_v54 = vld [vmem:[%s4626_s13 + $0x17c] ss:$36 sps:$4 sm:$0xff]  }
  0x39   : > { %2364 = vmatprep.subr.bf16.mxu0 %v4070_v55  ;;  %v4198_v55 = vld [vmem:[%s5366_s1 + $0x174] ss:$8 sps:$4 sm:$0xff]  }
  0x3b   : > { %1979 = vmatpush1.bf16.msra.mxu1 %v4072_v56  ;;  %v4158_v56 = vld [vmem:[%s5366_s1 + $0x390] ss:$8 sps:$4 sm:$0xff]  }
  0x3c   : > { %2365 = vmatpush1.bf16.msra.mxu0 %v4073_v57  ;;  %1980 = vmatprep.subr.bf16.mxu1 %v4074_v58  ;;  %v4196_v57 = vld [vmem:[%s5366_s1 + $0x170] ss:$8 sps:$4 sm:$0xff]   ;;  %v4214_v58 = vld [vmem:[%s5366_s1 + $0x184] ss:$8 sps:$4 sm:$0xff]  }
  0x3d   : > { %2366 = vmatprep.subr.bf16.mxu0 %v4076_v59  ;;  %v4172_v59 = vld [vmem:[%s5366_s1 + $0x3a4] ss:$8 sps:$4 sm:$0xff]  }
  0x3f   : > { %1981 = vmatpush1.bf16.msra.mxu1 %v4078_v60  ;;  %v4165_v60 = vld [vmem:[%s4626_s13 + $0x168] ss:$36 sps:$4 sm:$0xff]  }
  0x40   : > { %2367 = vmatpush1.bf16.msra.mxu0 %v4079_v61  ;;  %1982 = vmatprep.subr.bf16.mxu1 %v4080_v62  ;;  %v4169_v61 = vld [vmem:[%s4626_s13 + $0x178] ss:$36 sps:$4 sm:$0xff]   ;;  %v4170_v62 = vld [vmem:[%s5366_s1 + $0x3a0] ss:$8 sps:$4 sm:$0xff]  }
  0x41   : > { %2368 = vmatprep.subr.bf16.mxu0 %v4082_v63  ;;  %v4175_v63 = vld [vmem:[%s5366_s1 + $0x3b4] ss:$8 sps:$4 sm:$0xff]  }
  0x43   : > { %1983 = vmatpush1.bf16.msra.mxu1 %v4084_v0  ;;  %v4176_v0 = vld [vmem:[%s4626_s13 + $0x1b4] ss:$36 sps:$4 sm:$0xff]  }
  0x44   : > { %2369 = vmatpush1.bf16.msra.mxu0 %v4085_v1  ;;  %2145 = vmatprep.subr.bf16.mxu1 %v4094_v2  ;;  %v4178_v1 = vld [vmem:[%s4626_s13 + $0x1c4] ss:$36 sps:$4 sm:$0xff]  }
  0x45   : > { %2531 = vmatprep.subr.bf16.mxu0 %v4097_v3  ;;  %v4212_v2 = vld [vmem:[%s5366_s1 + $0x180] ss:$8 sps:$4 sm:$0xff]   ;;  %v4225_v3 = vld [vmem:[%s5366_s1 + $0x194] ss:$8 sps:$4 sm:$0xff]  }
  0x46   : > { %1985 = vmatmul.mubr.bf16.vlgmr.msra.gmra.mrb[0].mxu1 %v4086_v4  ;;  %v4173_v4 = vld [vmem:[%s5366_s1 + $0x3b0] ss:$8 sps:$4 sm:$0xff]  }
  0x47   : > { %2371 = vmatmul.mubr.bf16.vlgmr.msra.gmra.mrb[0].mxu0 %v4089_v5  ;;  %2146 = vmatpush1.bf16.msra.mxu1 %v4092_v6  ;;  %v4180_v5 = vld [vmem:[%s4626_s13 + $0x1b0] ss:$36 sps:$4 sm:$0xff]   ;;  %v4187_v6 = vld [vmem:[%s5366_s1 + $0x3c4] ss:$8 sps:$4 sm:$0xff]  }
  0x48   : > { %2532 = vmatpush1.bf16.msra.mxu0 %v4095_v7  ;;  %1994 = vmatprep.mubr.bf16.mxu1 %v4101_v9  ;;  %v4184_v7 = vld [vmem:[%s4626_s13 + $0x1c0] ss:$36 sps:$4 sm:$0xff]  }
  0x49   : > { %2533 = vmatprep.subr.bf16.mxu0 %v4100_v8  ;;  %2380 = vmatprep.mubr.bf16.mxu0 %v4103_v10  ;;  %v4223_v8 = vld [vmem:[%s5366_s1 + $0x190] ss:$8 sps:$4 sm:$0xff]   ;;  %v4185_v9 = vld [vmem:[%s5366_s1 + $0x3c0] ss:$8 sps:$4 sm:$0xff]   ;;  %v4190_v10 = vld [vmem:[%s5366_s1 + $0x3d4] ss:$8 sps:$4 sm:$0xff]  }
  0x4a   : > { %2147 = vmatprep.subr.bf16.mxu1 %v4108_v11  ;;  %v4191_v11 = vld [vmem:[%s4626_s13 + $0x1fc] ss:$36 sps:$4 sm:$0xff]  }
  0x4b   : > { %2148 = vmatpush1.bf16.msra.mxu1 %v4106_v13  ;;  %v4234_v13 = vld [vmem:[%s5366_s1 + $0x1a4] ss:$8 sps:$4 sm:$0xff]  }
  0x4c   : > { %2534 = vmatpush1.bf16.msra.mxu0 %v4098_v12  ;;  %2149 = vmatprep.subr.bf16.mxu1 %v4123_v15  ;;  %v4193_v12 = vld [vmem:[%s4626_s13 + $0x20c] ss:$36 sps:$4 sm:$0xff]  }
  0x4d   : > { %2535 = vmatprep.subr.bf16.mxu0 %v4112_v14  ;;  %v4232_v14 = vld [vmem:[%s5366_s1 + $0x1a0] ss:$8 sps:$4 sm:$0xff]   ;;  %v4188_v15 = vld [vmem:[%s5366_s1 + $0x3d0] ss:$8 sps:$4 sm:$0xff]  }
  0x4e   : > { %1995 = vmatmul.mubr.bf16.gmra.mrb[4].mxu1 %v4105_v16  ;;  %v4246_v16 = vld [vmem:[%s5366_s1 + $0x1b4] ss:$8 sps:$4 sm:$0xff]  }
  0x4f   : > { %2381 = vmatmul.mubr.bf16.gmra.mrb[4].mxu0 %v4109_v17  ;;  %2004 = vmatprep.mubr.bf16.mxu1 %v4116_v20  ;;  %v4202_v17 = vld [vmem:[%s5366_s1 + $0x3e4] ss:$8 sps:$4 sm:$0xff]   ;;  %v4200_v20 = vld [vmem:[%s5366_s1 + $0x3e0] ss:$8 sps:$4 sm:$0xff]  }
  0x50   : > { %2536 = vmatpush1.bf16.msra.mxu0 %v4110_v18  ;;  %2390 = vmatprep.mubr.bf16.mxu0 %v4118_v21  ;;  %v4195_v18 = vld [vmem:[%s4626_s13 + $0x1f8] ss:$36 sps:$4 sm:$0xff]  }
  0x51   : > { %2537 = vmatprep.subr.bf16.mxu0 %v4115_v19  ;;  %2150 = vmatpush1.bf16.msra.mxu1 %v4121_v22  ;;  %v4199_v19 = vld [vmem:[%s4626_s13 + $0x208] ss:$36 sps:$4 sm:$0xff]   ;;  %v4205_v21 = vld [vmem:[%s5366_s1 + $0x3f4] ss:$8 sps:$4 sm:$0xff]  }
  0x52   : > { %2151 = vmatprep.subr.bf16.mxu1 %v4138_v23  ;;  %v4206_v22 = vld [vmem:[%s4626_s13 + $0x244] ss:$36 sps:$4 sm:$0xff]   ;;  %v4210_v23 = vld [vmem:[%s4626_s13 + $0x1c] ss:$36 sps:$4 sm:$0xff]  }
  0x54   : > { %2538 = vmatpush1.bf16.msra.mxu0 %v4113_v24  ;;  %v4244_v24 = vld [vmem:[%s5366_s1 + $0x1b0] ss:$8 sps:$4 sm:$0xff]  }
  0x55   : > { %2539 = vmatprep.subr.bf16.mxu0 %v4127_v26  ;;  %2152 = vmatpush1.bf16.msra.mxu1 %v4136_v27  ;;  %v4203_v26 = vld [vmem:[%s5366_s1 + $0x3f0] ss:$8 sps:$4 sm:$0xff]  }
  0x56   : > { %2005 = vmatmul.mubr.bf16.gmra.mrb[8].mxu1 %v4120_v25  ;;  %2153 = vmatprep.subr.bf16.mxu1 %v4153_v33  ;;  %v4255_v25 = vld [vmem:[%s5366_s1 + $0x1c4] ss:$8 sps:$4 sm:$0xff]   ;;  %v4208_v27 = vld [vmem:[%s4626_s13 + $0x18] ss:$36 sps:$4 sm:$0xff]  }
  0x57   : > { %2391 = vmatmul.mubr.bf16.gmra.mrb[8].mxu0 %v4124_v28  ;;  %2014 = vmatprep.mubr.bf16.mxu1 %v4131_v31  ;;  %v4217_v28 = vld [vmem:[%s5366_s1 + $0x404] ss:$8 sps:$4 sm:$0xff]   ;;  %v4215_v31 = vld [vmem:[%s5366_s1 + $0x400] ss:$8 sps:$4 sm:$0xff]  }
  0x58   : > { %2540 = vmatpush1.bf16.msra.mxu0 %v4125_v29  ;;  %2400 = vmatprep.mubr.bf16.mxu0 %v4133_v32  ;;  %v4253_v29 = vld [vmem:[%s5366_s1 + $0x1c0] ss:$8 sps:$4 sm:$0xff]   ;;  %v4218_v32 = vld [vmem:[%s4626_s13 + $0x28c] ss:$36 sps:$4 sm:$0xff]  }
  0x59   : > { %2541 = vmatprep.subr.bf16.mxu0 %v4130_v30  ;;  %2154 = vmatpush1.bf16.msra.mxu1 %v4151_v34  ;;  %v4211_v30 = vld [vmem:[%s4626_s13 + $0x240] ss:$36 sps:$4 sm:$0xff]   ;;  %v4238_v34 = vld [vmem:[%s5366_s1 + $0x414] ss:$8 sps:$4 sm:$0xff]  }
  0x5a   : > { %2155 = vmatprep.subr.bf16.mxu1 %v4168_v36  ;;  %v4220_v33 = vld [vmem:[%s4626_s13 + $0x64] ss:$36 sps:$4 sm:$0xff]   ;;  %v4265_v36 = vld [vmem:[%s5366_s1 + $0x1d0] ss:$8 sps:$4 sm:$0xff]  }
  0x5c   : > { %2542 = vmatpush1.bf16.msra.mxu0 %v4128_v35  ;;  %v4267_v35 = vld [vmem:[%s5366_s1 + $0x1d4] ss:$8 sps:$4 sm:$0xff]  }
  0x5d   : > { %2543 = vmatprep.subr.bf16.mxu0 %v4142_v37  ;;  %2156 = vmatpush1.bf16.msra.mxu1 %v4166_v44  ;;  %v4236_v37 = vld [vmem:[%s5366_s1 + $0x410] ss:$8 sps:$4 sm:$0xff]   ;;  %v4257_v44 = vld [vmem:[%s5366_s1 + $0x420] ss:$8 sps:$4 sm:$0xff]  }
  0x5e   : > { %2015 = vmatmul.mubr.bf16.gmra.mrb[12].mxu1 %v4135_v38  ;;  %2157 = vmatprep.subr.bf16.mxu1 %v4183_v45  ;;  %v4276_v38 = vld [vmem:[%s5366_s1 + $0x1e4] ss:$8 sps:$4 sm:$0xff]   ;;  %v4274_v45 = vld [vmem:[%s5366_s1 + $0x1e0] ss:$8 sps:$4 sm:$0xff]  }
  0x5f   : > { %2401 = vmatmul.mubr.bf16.gmra.mrb[12].mxu0 %v4139_v39  ;;  %2024 = vmatprep.mubr.bf16.mxu1 %v4146_v42  ;;  %v4222_v39 = vld [vmem:[%s4626_s13 + $0x288] ss:$36 sps:$4 sm:$0xff]   ;;  %v4227_v42 = vld [vmem:[%s4626_s13 + $0x2d4] ss:$36 sps:$4 sm:$0xff]  }
  0x60   : > { %2544 = vmatpush1.bf16.msra.mxu0 %v4140_v40  ;;  %2410 = vmatprep.mubr.bf16.mxu0 %v4148_v43  ;;  %v4259_v40 = vld [vmem:[%s5366_s1 + $0x424] ss:$8 sps:$4 sm:$0xff]  }
  0x61   : > { %2545 = vmatprep.subr.bf16.mxu0 %v4145_v41  ;;  %2158 = vmatpush1.bf16.msra.mxu1 %v4181_v50  ;;  %v4226_v41 = vld [vmem:[%s4626_s13 + $0x60] ss:$36 sps:$4 sm:$0xff]   ;;  %v4229_v43 = vld [vmem:[%s4626_s13 + $0xac] ss:$36 sps:$4 sm:$0xff]  }
  0x62   : > { %2159 = vmatprep.subr.bf16.mxu1 %v4198_v55  ;;  %v4231_v50 = vld [vmem:[%s4626_s13 + $0x2d0] ss:$36 sps:$4 sm:$0xff]   ;;  %v4296_v55 = vld [vmem:[%s5366_s1 + $0x440] ss:$8 sps:$4 sm:$0xff]  }
  0x64   : > { %2546 = vmatpush1.bf16.msra.mxu0 %v4143_v46  ;;  %v4280_v46 = vld [vmem:[%s5366_s1 + $0x434] ss:$8 sps:$4 sm:$0xff]  }
  0x65   : > { %2547 = vmatprep.subr.bf16.mxu0 %v4157_v48  ;;  %2160 = vmatpush1.bf16.msra.mxu1 %v4196_v57  ;;  %v4278_v48 = vld [vmem:[%s5366_s1 + $0x430] ss:$8 sps:$4 sm:$0xff]   ;;  %v4313_v57 = vld [vmem:[%s5366_s1 + $0x454] ss:$8 sps:$4 sm:$0xff]  }
  0x66   : > { %2025 = vmatmul.mubr.bf16.gmra.mrb[16].mxu1 %v4150_v47  ;;  %2161 = vmatprep.subr.bf16.mxu1 %v4214_v58  ;;  %v4288_v47 = vld [vmem:[%s5366_s1 + $0x1f4] ss:$8 sps:$4 sm:$0xff]   ;;  %v4311_v58 = vld [vmem:[%s5366_s1 + $0x450] ss:$8 sps:$4 sm:$0xff]  }
  0x67   : > { %2411 = vmatmul.mubr.bf16.gmra.mrb[16].mxu0 %v4154_v49  ;;  %2034 = vmatprep.mubr.bf16.mxu1 %v4161_v53  ;;  %v4286_v49 = vld [vmem:[%s5366_s1 + $0x1f0] ss:$8 sps:$4 sm:$0xff]   ;;  %v4239_v53 = vld [vmem:[%s4626_s13 + $0x31c] ss:$36 sps:$4 sm:$0xff]  }
  0x68   : > { %2548 = vmatpush1.bf16.msra.mxu0 %v4155_v51  ;;  %2420 = vmatprep.mubr.bf16.mxu0 %v4163_v54  ;;  %v4298_v51 = vld [vmem:[%s5366_s1 + $0x444] ss:$8 sps:$4 sm:$0xff]   ;;  %v4241_v54 = vld [vmem:[%s4626_s13 + $0xf4] ss:$36 sps:$4 sm:$0xff]  }
  0x69   : > { %2549 = vmatprep.subr.bf16.mxu0 %v4160_v52  ;;  %2162 = vmatpush1.bf16.msra.mxu1 %v4212_v2  ;;  %v4235_v52 = vld [vmem:[%s4626_s13 + $0xa8] ss:$36 sps:$4 sm:$0xff]   ;;  %v4343_v2 = vld [vmem:[%s5366_s1 + $0x474] ss:$8 sps:$4 sm:$0xff]  }
  0x6a   : > { %2163 = vmatprep.subr.bf16.mxu1 %v4225_v3  ;;  %v4252_v3 = vld [vmem:[%s4626_s13 + $0x360] ss:$36 sps:$4 sm:$0xff]  }
  0x6c   : > { %2550 = vmatpush1.bf16.msra.mxu0 %v4158_v56  ;;  %v4414_v56 = vld [vmem:[%s5366_s1 + $0x204] ss:$8 sps:$4 sm:$0xff]  }
  0x6d   : > { %2551 = vmatprep.subr.bf16.mxu0 %v4172_v59  ;;  %2164 = vmatpush1.bf16.msra.mxu1 %v4223_v8  ;;  %v4243_v59 = vld [vmem:[%s4626_s13 + $0x318] ss:$36 sps:$4 sm:$0xff]   ;;  %v4268_v8 = vld [vmem:[%s4626_s13 + $0x180] ss:$36 sps:$4 sm:$0xff]  }
  0x6e   : > { %2035 = vmatmul.mubr.bf16.gmra.mrb[20].mxu1 %v4165_v60  ;;  %2165 = vmatprep.subr.bf16.mxu1 %v4234_v13  ;;  %v4328_v60 = vld [vmem:[%s5366_s1 + $0x464] ss:$8 sps:$4 sm:$0xff]   ;;  %v4281_v13 = vld [vmem:[%s4626_s13 + $0x43c] ss:$36 sps:$4 sm:$0xff]  }
  0x6f   : > { %2421 = vmatmul.mubr.bf16.gmra.mrb[20].mxu0 %v4169_v61  ;;  %2044 = vmatprep.mubr.bf16.mxu1 %v4176_v0  ;;  %v4247_v61 = vld [vmem:[%s4626_s13 + $0xf0] ss:$36 sps:$4 sm:$0xff]   ;;  %v4326_v0 = vld [vmem:[%s5366_s1 + $0x460] ss:$8 sps:$4 sm:$0xff]  }
  0x70   : > { %2552 = vmatpush1.bf16.msra.mxu0 %v4170_v62  ;;  %2430 = vmatprep.mubr.bf16.mxu0 %v4178_v1  ;;  %v4248_v62 = vld [vmem:[%s4626_s13 + $0x364] ss:$36 sps:$4 sm:$0xff]   ;;  %v4341_v1 = vld [vmem:[%s5366_s1 + $0x470] ss:$8 sps:$4 sm:$0xff]  }
  0x71   : > { %2553 = vmatprep.subr.bf16.mxu0 %v4175_v63  ;;  %2166 = vmatpush1.bf16.msra.mxu1 %v4232_v14  ;;  %v4250_v63 = vld [vmem:[%s4626_s13 + $0x13c] ss:$36 sps:$4 sm:$0xff]   ;;  %v4283_v14 = vld [vmem:[%s4626_s13 + $0x214] ss:$36 sps:$4 sm:$0xff]  }
  0x72   : > { %2167 = vmatprep.subr.bf16.mxu1 %v4246_v16  ;;  %v4289_v16 = vld [vmem:[%s4626_s13 + $0x210] ss:$36 sps:$4 sm:$0xff]  }
  0x74   : > { %2554 = vmatpush1.bf16.msra.mxu0 %v4173_v4  ;;  %v4256_v4 = vld [vmem:[%s4626_s13 + $0x138] ss:$36 sps:$4 sm:$0xff]  }
  0x75   : > { %2555 = vmatprep.subr.bf16.mxu0 %v4187_v6  ;;  %2168 = vmatpush1.bf16.msra.mxu1 %v4244_v24  ;;  %v4262_v6 = vld [vmem:[%s4626_s13 + $0x184] ss:$36 sps:$4 sm:$0xff]   ;;  %v4416_v24 = vld [vmem:[%s5366_s1 + $0x214] ss:$8 sps:$4 sm:$0xff]  }
  0x76   : > { %2045 = vmatmul.mubr.bf16.gmra.mrb[24].mxu1 %v4180_v5  ;;  %2169 = vmatprep.subr.bf16.mxu1 %v4255_v25  ;;  %v4260_v5 = vld [vmem:[%s4626_s13 + $0x3ac] ss:$36 sps:$4 sm:$0xff]  }
  0x77   : > { %2431 = vmatmul.mubr.bf16.gmra.mrb[24].mxu0 %v4184_v7  ;;  %2054 = vmatprep.mubr.bf16.mxu1 %v4191_v11  ;;  %v4264_v7 = vld [vmem:[%s4626_s13 + $0x3a8] ss:$36 sps:$4 sm:$0xff]   ;;  %v4273_v11 = vld [vmem:[%s4626_s13 + $0x3f0] ss:$36 sps:$4 sm:$0xff]  }
  0x78   : > { %2556 = vmatpush1.bf16.msra.mxu0 %v4185_v9  ;;  %2440 = vmatprep.mubr.bf16.mxu0 %v4193_v12  ;;  %v4269_v9 = vld [vmem:[%s4626_s13 + $0x3f4] ss:$36 sps:$4 sm:$0xff]   ;;  %v4277_v12 = vld [vmem:[%s4626_s13 + $0x1c8] ss:$36 sps:$4 sm:$0xff]  }
  0x79   : > { %2557 = vmatprep.subr.bf16.mxu0 %v4190_v10  ;;  %2170 = vmatpush1.bf16.msra.mxu1 %v4253_v29  ;;  %v4271_v10 = vld [vmem:[%s4626_s13 + $0x1cc] ss:$36 sps:$4 sm:$0xff]  }
  0x7a   : > { %2171 = vmatprep.subr.bf16.mxu1 %v4267_v35  ;;  %v4303_v25 = vld [vmem:[%s4626_s13 + $0x50] ss:$36 sps:$4 sm:$0xff]   ;;  %v4314_v35 = vld [vmem:[%s4626_s13 + $0xe4] ss:$36 sps:$4 sm:$0xff]  }
  0x7b   : > { %v4307_v29 = vld [vmem:[%s4626_s13 + $0x2ec] ss:$36 sps:$4 sm:$0xff]  }
  0x7c   : > { %2558 = vmatpush1.bf16.msra.mxu0 %v4188_v15  ;;  %v4285_v15 = vld [vmem:[%s4626_s13 + $0x438] ss:$36 sps:$4 sm:$0xff]  }
  0x7d   : > { %2559 = vmatprep.subr.bf16.mxu0 %v4202_v17  ;;  %2172 = vmatpush1.bf16.msra.mxu1 %v4265_v36  ;;  %v4292_v17 = vld [vmem:[%s4626_s13 + $0xc] ss:$36 sps:$4 sm:$0xff]   ;;  %v4316_v36 = vld [vmem:[%s4626_s13 + $0x334] ss:$36 sps:$4 sm:$0xff]  }
  0x7e   : > { %2055 = vmatmul.mubr.bf16.gmra.mrb[28].mxu1 %v4195_v18  ;;  %2173 = vmatprep.subr.bf16.mxu1 %v4276_v38  ;;  %v4293_v18 = vld [vmem:[%s4626_s13 + $0x25c] ss:$36 sps:$4 sm:$0xff]   ;;  %v4422_v38 = vld [vmem:[%s5366_s1 + $0x244] ss:$8 sps:$4 sm:$0xff]  }
  0x7f   : > { %2441 = vmatmul.mubr.bf16.gmra.mrb[28].mxu0 %v4199_v19  ;;  %2064 = vmatprep.mubr.bf16.mxu1 %v4206_v22  ;;  %v4290_v19 = vld [vmem:[%s4626_s13 + $0x8] ss:$36 sps:$4 sm:$0xff]  }
  0x80   : > { %2560 = vmatpush1.bf16.msra.mxu0 %v4200_v20  ;;  %2563 = vmatprep.mubr.bf16.mxu0 %v4210_v23  ;;  %v4295_v20 = vld [vmem:[%s4626_s13 + $0x258] ss:$36 sps:$4 sm:$0xff]   ;;  %v4301_v22 = vld [vmem:[%s4626_s13 + $0x2a4] ss:$36 sps:$4 sm:$0xff]  }
  0x81   : > { %2561 = vmatprep.subr.bf16.mxu0 %v4205_v21  ;;  %2174 = vmatpush1.bf16.msra.mxu1 %v4274_v45  ;;  %v4299_v21 = vld [vmem:[%s4626_s13 + $0x54] ss:$36 sps:$4 sm:$0xff]   ;;  %v4415_v23 = vld [vmem:[%s5366_s1 + $0x200] ss:$8 sps:$4 sm:$0xff]  }
  0x82   : > { %2175 = vmatprep.subr.bf16.mxu1 %v4288_v47  ;;  %v4425_v45 = vld [vmem:[%s5366_s1 + $0x250] ss:$8 sps:$4 sm:$0xff]   ;;  %v4427_v47 = vld [vmem:[%s5366_s1 + $0x260] ss:$8 sps:$4 sm:$0xff]  }
  0x84   : > { %2562 = vmatpush1.bf16.msra.mxu0 %v4203_v26  ;;  %v4304_v26 = vld [vmem:[%s4626_s13 + $0x2a0] ss:$36 sps:$4 sm:$0xff]  }
  0x85   : > { %2724 = vmatprep.subr.bf16.mxu0 %v4217_v28  ;;  %2176 = vmatpush1.bf16.msra.mxu1 %v4286_v49  ;;  %v4305_v28 = vld [vmem:[%s4626_s13 + $0x9c] ss:$36 sps:$4 sm:$0xff]   ;;  %v4324_v49 = vld [vmem:[%s4626_s13 + $0x128] ss:$36 sps:$4 sm:$0xff]  }
  0x86   : > { %2065 = vmatmul.mubr.bf16.gmra.mrb[32].mxu1 %v4211_v30  ;;  %3628 = vmatprep.subr.bf16.mxu1 %v4414_v56  ;;  %v4418_v30 = vld [vmem:[%s5366_s1 + $0x224] ss:$8 sps:$4 sm:$0xff]   ;;  %v4432_v56 = vld [vmem:[%s5366_s1 + $0x294] ss:$8 sps:$4 sm:$0xff]  }
  0x87   : > { %2564 = vmatmul.mubr.bf16.vlgmr.msra.gmra.mrb[0].mxu0 %v4208_v27  ;;  %2074 = vmatprep.mubr.bf16.mxu1 %v4218_v32  ;;  %v4417_v27 = vld [vmem:[%s5366_s1 + $0x210] ss:$8 sps:$4 sm:$0xff]   ;;  %v4420_v32 = vld [vmem:[%s5366_s1 + $0x234] ss:$8 sps:$4 sm:$0xff]  }
  0x88   : > { %2725 = vmatpush1.bf16.msra.mxu0 %v4215_v31  ;;  %2573 = vmatprep.mubr.bf16.mxu0 %v4220_v33  ;;  %v4419_v31 = vld [vmem:[%s5366_s1 + $0x220] ss:$8 sps:$4 sm:$0xff]   ;;  %v4309_v33 = vld [vmem:[%s4626_s13 + $0x98] ss:$36 sps:$4 sm:$0xff]  }
  0x89   : > { %2726 = vmatprep.subr.bf16.mxu0 %v4238_v34  ;;  %v4310_v34 = vld [vmem:[%s4626_s13 + $0x2e8] ss:$36 sps:$4 sm:$0xff]  }
  0x8c   : > { %2727 = vmatpush1.bf16.msra.mxu0 %v4236_v37  ;;  %v4421_v37 = vld [vmem:[%s5366_s1 + $0x230] ss:$8 sps:$4 sm:$0xff]  }
  0x8d   : > { %2728 = vmatprep.subr.bf16.mxu0 %v4259_v40  ;;  %v4424_v40 = vld [vmem:[%s5366_s1 + $0x254] ss:$8 sps:$4 sm:$0xff]  }
  0x8e   : > { %2075 = vmatmul.mubr.bf16.gmra.mrb[36].mxu1 %v4222_v39  ;;  %v4423_v39 = vld [vmem:[%s5366_s1 + $0x240] ss:$8 sps:$4 sm:$0xff]  }
  0x8f   : > { %2574 = vmatmul.mubr.bf16.gmra.mrb[4].mxu0 %v4226_v41  ;;  %2084 = vmatprep.mubr.bf16.mxu1 %v4227_v42  ;;  %v4318_v41 = vld [vmem:[%s4626_s13 + $0xe0] ss:$36 sps:$4 sm:$0xff]   ;;  %v4319_v42 = vld [vmem:[%s4626_s13 + $0x330] ss:$36 sps:$4 sm:$0xff]  }
  0x90   : > { %2583 = vmatprep.mubr.bf16.mxu0 %v4229_v43  ;;  %2729 = vmatpush1.bf16.msra.mxu0 %v4257_v44  ;;  %v4320_v43 = vld [vmem:[%s4626_s13 + $0x12c] ss:$36 sps:$4 sm:$0xff]   ;;  %v4322_v44 = vld [vmem:[%s4626_s13 + $0x37c] ss:$36 sps:$4 sm:$0xff]  }
  0x91   : > { %2730 = vmatprep.subr.bf16.mxu0 %v4280_v46  ;;  %v4426_v46 = vld [vmem:[%s5366_s1 + $0x264] ss:$8 sps:$4 sm:$0xff]  }
  0x94   : > { %2731 = vmatpush1.bf16.msra.mxu0 %v4278_v48  ;;  %v4428_v48 = vld [vmem:[%s5366_s1 + $0x274] ss:$8 sps:$4 sm:$0xff]  }
  0x95   : > { %2732 = vmatprep.subr.bf16.mxu0 %v4298_v51  ;;  %v4329_v51 = vld [vmem:[%s4626_s13 + $0x174] ss:$36 sps:$4 sm:$0xff]  }
  0x96   : > { %2085 = vmatmul.mubr.bf16.gmra.mrb[40].mxu1 %v4231_v50  ;;  %v4325_v50 = vld [vmem:[%s4626_s13 + $0x378] ss:$36 sps:$4 sm:$0xff]  }
  0x97   : > { %2584 = vmatmul.mubr.bf16.gmra.mrb[8].mxu0 %v4235_v52  ;;  %2094 = vmatprep.mubr.bf16.mxu1 %v4239_v53  ;;  %v4331_v52 = vld [vmem:[%s4626_s13 + $0x3c4] ss:$36 sps:$4 sm:$0xff]   ;;  %v4429_v53 = vld [vmem:[%s5366_s1 + $0x270] ss:$8 sps:$4 sm:$0xff]  }
  0x98   : > { %2593 = vmatprep.mubr.bf16.mxu0 %v4241_v54  ;;  %2733 = vmatpush1.bf16.msra.mxu0 %v4296_v55  ;;  %v4430_v54 = vld [vmem:[%s5366_s1 + $0x284] ss:$8 sps:$4 sm:$0xff]   ;;  %v4431_v55 = vld [vmem:[%s5366_s1 + $0x280] ss:$8 sps:$4 sm:$0xff]  }
  0x99   : > { %2734 = vmatprep.subr.bf16.mxu0 %v4313_v57  ;;  %v4333_v57 = vld [vmem:[%s4626_s13 + $0x170] ss:$36 sps:$4 sm:$0xff]  }
  0x9c   : > { %2735 = vmatpush1.bf16.msra.mxu0 %v4311_v58  ;;  %v4334_v58 = vld [vmem:[%s4626_s13 + $0x3c0] ss:$36 sps:$4 sm:$0xff]  }
  0x9d   : > { %2736 = vmatprep.subr.bf16.mxu0 %v4328_v60  ;;  %v4337_v60 = vld [vmem:[%s4626_s13 + $0x40c] ss:$36 sps:$4 sm:$0xff]  }
  0x9e   : > { %2095 = vmatmul.mubr.bf16.gmra.mrb[44].mxu1 %v4243_v59  ;;  %v4335_v59 = vld [vmem:[%s4626_s13 + $0x1bc] ss:$36 sps:$4 sm:$0xff]  }
  0x9f   : > { %2594 = vmatmul.mubr.bf16.gmra.mrb[12].mxu0 %v4247_v61  ;;  %2104 = vmatprep.mubr.bf16.mxu1 %v4248_v62  ;;  %v4433_v61 = vld [vmem:[%s5366_s1 + $0x290] ss:$8 sps:$4 sm:$0xff]   ;;  %v4434_v62 = vld [vmem:[%s5366_s1 + $0x2a4] ss:$8 sps:$4 sm:$0xff]  }
  0xa0   : > { %2603 = vmatprep.mubr.bf16.mxu0 %v4250_v63  ;;  %2737 = vmatpush1.bf16.msra.mxu0 %v4326_v0  ;;  %v4435_v63 = vld [vmem:[%s5366_s1 + $0x2a0] ss:$8 sps:$4 sm:$0xff]   ;;  %v4436_v0 = vld [vmem:[%s5366_s1 + $0x2b4] ss:$8 sps:$4 sm:$0xff]  }
  0xa1   : > { %2738 = vmatprep.subr.bf16.mxu0 %v4343_v2  ;;  %v4340_v2 = vld [vmem:[%s4626_s13 + $0x408] ss:$36 sps:$4 sm:$0xff]  }
  0xa4   : > { %2739 = vmatpush1.bf16.msra.mxu0 %v4341_v1  ;;  %v4339_v1 = vld [vmem:[%s4626_s13 + $0x1b8] ss:$36 sps:$4 sm:$0xff]  }
  0xa6   : > { %2105 = vmatmul.mubr.bf16.gmra.mrb[48].mxu1 %v4252_v3  ;;  %v4344_v3 = vld [vmem:[%s4626_s13 + $0x204] ss:$36 sps:$4 sm:$0xff]  }
  0xa7   : > { %2604 = vmatmul.mubr.bf16.gmra.mrb[16].mxu0 %v4256_v4  ;;  %2114 = vmatprep.mubr.bf16.mxu1 %v4260_v5  ;;  %v4346_v4 = vld [vmem:[%s4626_s13 + $0x454] ss:$36 sps:$4 sm:$0xff]  }
  0xa8   : > { %2613 = vmatprep.mubr.bf16.mxu0 %v4262_v6  ;;  %v4437_v5 = vld [vmem:[%s5366_s1 + $0x2b0] ss:$8 sps:$4 sm:$0xff]   ;;  %v4438_v6 = vld [vmem:[%s5366_s1 + $0x2c4] ss:$8 sps:$4 sm:$0xff]  }
  0xae   : > { %2115 = vmatmul.mubr.bf16.gmra.mrb[52].mxu1 %v4264_v7  ;;  %v4439_v7 = vld [vmem:[%s5366_s1 + $0x2c0] ss:$8 sps:$4 sm:$0xff]  }
  0xaf   : > { %2614 = vmatmul.mubr.bf16.gmra.mrb[20].mxu0 %v4268_v8  ;;  %2124 = vmatprep.mubr.bf16.mxu1 %v4269_v9  ;;  %v4440_v8 = vld [vmem:[%s5366_s1 + $0x2d4] ss:$8 sps:$4 sm:$0xff]   ;;  %v4348_v9 = vld [vmem:[%s4626_s13 + $0x200] ss:$36 sps:$4 sm:$0xff]  }
  0xb0   : > { %2623 = vmatprep.mubr.bf16.mxu0 %v4271_v10  ;;  %v4349_v10 = vld [vmem:[%s4626_s13 + $0x450] ss:$36 sps:$4 sm:$0xff]  }
  0xb6   : > { %2125 = vmatmul.mubr.bf16.gmra.mrb[56].mxu1 %v4273_v11  ;;  %v4350_v11 = vld [vmem:[%s4626_s13 + $0x24c] ss:$36 sps:$4 sm:$0xff]  }
  0xb7   : > { %2624 = vmatmul.mubr.bf16.gmra.mrb[24].mxu0 %v4277_v12  ;;  %2134 = vmatprep.mubr.bf16.mxu1 %v4281_v13  ;;  %v4441_v12 = vld [vmem:[%s5366_s1 + $0x2d0] ss:$8 sps:$4 sm:$0xff]   ;;  %v4442_v13 = vld [vmem:[%s5366_s1 + $0x2e4] ss:$8 sps:$4 sm:$0xff]  }
  0xb8   : > { %2633 = vmatprep.mubr.bf16.mxu0 %v4283_v14  ;;  %v4454_v14 = vmov 0  }
  0xbe   : > { %2135 = vmatmul.mubr.bf16.gmra.mrb[60].mxu1 %v4285_v15  ;;  %v4443_v15 = vld [vmem:[%s5366_s1 + $0x2e0] ss:$8 sps:$4 sm:$0xff]  }
  0xbf   : > { %2634 = vmatmul.mubr.bf16.gmra.mrb[28].mxu0 %v4289_v16  ;;  %2177 = vmatprep.mubr.bf16.mxu1 %v4292_v17  ;;  %v4444_v16 = vld [vmem:[%s5366_s1 + $0x2f4] ss:$8 sps:$4 sm:$0xff]   ;;  %v4352_v17 = vld [vmem:[%s4626_s13 + $0x248] ss:$36 sps:$4 sm:$0xff]  }
  0xc0   : > { %2643 = vmatprep.mubr.bf16.mxu0 %v4293_v18  ;;  %v4353_v18 = vld [vmem:[%s4626_s13 + $0x20] ss:$36 sps:$4 sm:$0xff]  }
  0xc6   : > { %2178 = vmatmul.mubr.bf16.vlgmr.msra.gmra.mrb[0].mxu1 %v4290_v19  ;;  %v4354_v19 = vld [vmem:[%s4626_s13 + $0x294] ss:$36 sps:$4 sm:$0xff]  }
  0xc7   : > { %2644 = vmatmul.mubr.bf16.gmra.mrb[32].mxu0 %v4295_v20  ;;  %3644 = vmatpush1.bf16.msra.mxu1 %v4415_v23  ;;  %v4445_v20 = vld [vmem:[%s5366_s1 + $0x2f0] ss:$8 sps:$4 sm:$0xff]   ;;  %v4358_v23 = vld [vmem:[%s4626_s13 + $0x2dc] ss:$36 sps:$4 sm:$0xff]  }
  0xc8   : > { %2187 = vmatprep.mubr.bf16.mxu1 %v4299_v21  ;;  %2653 = vmatprep.mubr.bf16.mxu0 %v4301_v22  ;;  %v4356_v21 = vld [vmem:[%s4626_s13 + $0x290] ss:$36 sps:$4 sm:$0xff]   ;;  %v4357_v22 = vld [vmem:[%s4626_s13 + $0x68] ss:$36 sps:$4 sm:$0xff]  }
  0xc9   : > { %3629 = vmatprep.subr.bf16.mxu1 %v4416_v24  ;;  %v4360_v24 = vld [vmem:[%s4626_s13 + $0x2d8] ss:$36 sps:$4 sm:$0xff]  }
  0xcb   : > { %3645 = vmatpush1.bf16.msra.mxu1 %v4417_v27  ;;  %v4364_v27 = vld [vmem:[%s4626_s13 + $0x320] ss:$36 sps:$4 sm:$0xff]  }
  0xcc   : > { %3630 = vmatprep.subr.bf16.mxu1 %v4418_v30  ;;  %v4368_v30 = vld [vmem:[%s4626_s13 + $0x368] ss:$36 sps:$4 sm:$0xff]  }
  0xce   : > { %2188 = vmatmul.mubr.bf16.gmra.mrb[4].mxu1 %v4303_v25  ;;  %v4361_v25 = vld [vmem:[%s4626_s13 + $0xb0] ss:$36 sps:$4 sm:$0xff]  }
  0xcf   : > { %2654 = vmatmul.mubr.bf16.gmra.mrb[36].mxu0 %v4304_v26  ;;  %2197 = vmatprep.mubr.bf16.mxu1 %v4305_v28  ;;  %v4362_v26 = vld [vmem:[%s4626_s13 + $0x324] ss:$36 sps:$4 sm:$0xff]   ;;  %v4365_v28 = vld [vmem:[%s4626_s13 + $0xf8] ss:$36 sps:$4 sm:$0xff]  }
  0xd0   : > { %2663 = vmatprep.mubr.bf16.mxu0 %v4307_v29  ;;  %3646 = vmatpush1.bf16.msra.mxu1 %v4419_v31  ;;  %v4366_v29 = vld [vmem:[%s4626_s13 + $0x36c] ss:$36 sps:$4 sm:$0xff]   ;;  %v4369_v31 = vld [vmem:[%s4626_s13 + $0x140] ss:$36 sps:$4 sm:$0xff]  }
  0xd1   : > { %3631 = vmatprep.subr.bf16.mxu1 %v4420_v32  ;;  %v4370_v32 = vld [vmem:[%s4626_s13 + $0x3b4] ss:$36 sps:$4 sm:$0xff]  }
  0xd4   : > { %3647 = vmatpush1.bf16.msra.mxu1 %v4421_v37  ;;  %v4377_v37 = vld [vmem:[%s4626_s13 + $0x1d0] ss:$36 sps:$4 sm:$0xff]  }
  0xd5   : > { %3632 = vmatprep.subr.bf16.mxu1 %v4422_v38  ;;  %v4378_v38 = vld [vmem:[%s4626_s13 + $0x444] ss:$36 sps:$4 sm:$0xff]  }
  0xd6   : > { %2198 = vmatmul.mubr.bf16.gmra.mrb[8].mxu1 %v4309_v33  ;;  %v4372_v33 = vld [vmem:[%s4626_s13 + $0x3b0] ss:$36 sps:$4 sm:$0xff]  }
  0xd7   : > { %2664 = vmatmul.mubr.bf16.gmra.mrb[40].mxu0 %v4310_v34  ;;  %2207 = vmatprep.mubr.bf16.mxu1 %v4314_v35  ;;  %v4373_v34 = vld [vmem:[%s4626_s13 + $0x188] ss:$36 sps:$4 sm:$0xff]   ;;  %v4374_v35 = vld [vmem:[%s4626_s13 + $0x3fc] ss:$36 sps:$4 sm:$0xff]  }
  0xd8   : > { %2673 = vmatprep.mubr.bf16.mxu0 %v4316_v36  ;;  %3648 = vmatpush1.bf16.msra.mxu1 %v4423_v39  ;;  %v4376_v36 = vld [vmem:[%s4626_s13 + $0x3f8] ss:$36 sps:$4 sm:$0xff]   ;;  %v4380_v39 = vld [vmem:[%s4626_s13 + $0x440] ss:$36 sps:$4 sm:$0xff]  }
  0xd9   : > { %3633 = vmatprep.subr.bf16.mxu1 %v4424_v40  ;;  %v4381_v40 = vld [vmem:[%s4626_s13 + $0x218] ss:$36 sps:$4 sm:$0xff]  }
  0xdc   : > { %3649 = vmatpush1.bf16.msra.mxu1 %v4425_v45  ;;  %v4388_v45 = vld [vmem:[%s4626_s13 + $0x298] ss:$36 sps:$4 sm:$0xff]  }
  0xdd   : > { %3634 = vmatprep.subr.bf16.mxu1 %v4426_v46  ;;  %v4389_v46 = vld [vmem:[%s4626_s13 + $0x2a8] ss:$36 sps:$4 sm:$0xff]  }
  0xde   : > { %2208 = vmatmul.mubr.bf16.gmra.mrb[12].mxu1 %v4318_v41  ;;  %v4384_v41 = vld [vmem:[%s4626_s13 + $0x254] ss:$36 sps:$4 sm:$0xff]  }
  0xdf   : > { %2674 = vmatmul.mubr.bf16.gmra.mrb[44].mxu0 %v4319_v42  ;;  %2217 = vmatprep.mubr.bf16.mxu1 %v4320_v43  ;;  %v4382_v42 = vld [vmem:[%s4626_s13 + $0x250] ss:$36 sps:$4 sm:$0xff]   ;;  %v4385_v43 = vld [vmem:[%s4626_s13 + $0x260] ss:$36 sps:$4 sm:$0xff]  }
  0xe0   : > { %2683 = vmatprep.mubr.bf16.mxu0 %v4322_v44  ;;  %3650 = vmatpush1.bf16.msra.mxu1 %v4427_v47  ;;  %v4386_v44 = vld [vmem:[%s4626_s13 + $0x29c] ss:$36 sps:$4 sm:$0xff]   ;;  %v4390_v47 = vld [vmem:[%s4626_s13 + $0x2e4] ss:$36 sps:$4 sm:$0xff]  }
  0xe1   : > { %3635 = vmatprep.subr.bf16.mxu1 %v4428_v48  ;;  %v4392_v48 = vld [vmem:[%s4626_s13 + $0x2e0] ss:$36 sps:$4 sm:$0xff]  }
  0xe4   : > { %3651 = vmatpush1.bf16.msra.mxu1 %v4429_v53  ;;  %v4398_v53 = vld [vmem:[%s4626_s13 + $0x374] ss:$36 sps:$4 sm:$0xff]  }
  0xe5   : > { %3636 = vmatprep.subr.bf16.mxu1 %v4430_v54  ;;  %v4400_v54 = vld [vmem:[%s4626_s13 + $0x370] ss:$36 sps:$4 sm:$0xff]  }
  0xe6   : > { %2218 = vmatmul.mubr.bf16.gmra.mrb[16].mxu1 %v4324_v49  ;;  %v4393_v49 = vld [vmem:[%s4626_s13 + $0x2f0] ss:$36 sps:$4 sm:$0xff]  }
  0xe7   : > { %2684 = vmatmul.mubr.bf16.gmra.mrb[48].mxu0 %v4325_v50  ;;  %2227 = vmatprep.mubr.bf16.mxu1 %v4329_v51  ;;  %v4394_v50 = vld [vmem:[%s4626_s13 + $0x32c] ss:$36 sps:$4 sm:$0xff]  }
  0xe8   : > { %2693 = vmatprep.mubr.bf16.mxu0 %v4331_v52  ;;  %3652 = vmatpush1.bf16.msra.mxu1 %v4431_v55  ;;  %v4396_v51 = vld [vmem:[%s4626_s13 + $0x328] ss:$36 sps:$4 sm:$0xff]   ;;  %v4397_v52 = vld [vmem:[%s4626_s13 + $0x338] ss:$36 sps:$4 sm:$0xff]   ;;  %v4401_v55 = vld [vmem:[%s4626_s13 + $0x380] ss:$36 sps:$4 sm:$0xff]  }
  0xe9   : > { %3637 = vmatprep.subr.bf16.mxu1 %v4432_v56  ;;  %v4402_v56 = vld [vmem:[%s4626_s13 + $0x3bc] ss:$36 sps:$4 sm:$0xff]  }
  0xec   : > { %3653 = vmatpush1.bf16.msra.mxu1 %v4433_v61  ;;  %v4409_v61 = vld [vmem:[%s4626_s13 + $0x410] ss:$36 sps:$4 sm:$0xff]  }
  0xed   : > { %3638 = vmatprep.subr.bf16.mxu1 %v4434_v62  ;;  %v4410_v62 = vld [vmem:[%s4626_s13 + $0x44c] ss:$36 sps:$4 sm:$0xff]  }
  0xee   : > { %2228 = vmatmul.mubr.bf16.gmra.mrb[20].mxu1 %v4333_v57  ;;  %v4404_v57 = vld [vmem:[%s4626_s13 + $0x3b8] ss:$36 sps:$4 sm:$0xff]  }
  0xef   : > { %2694 = vmatmul.mubr.bf16.gmra.mrb[52].mxu0 %v4334_v58  ;;  %2237 = vmatprep.mubr.bf16.mxu1 %v4335_v59  ;;  %v4405_v58 = vld [vmem:[%s4626_s13 + $0x3c8] ss:$36 sps:$4 sm:$0xff]  }
  0xf0   : > { %2703 = vmatprep.mubr.bf16.mxu0 %v4337_v60  ;;  %3654 = vmatpush1.bf16.msra.mxu1 %v4435_v63  ;;  %v4406_v59 = vld [vmem:[%s4626_s13 + $0x404] ss:$36 sps:$4 sm:$0xff]  }
  0xf1   : > { %3639 = vmatprep.subr.bf16.mxu1 %v4436_v0  ;;  %v4408_v60 = vld [vmem:[%s4626_s13 + $0x400] ss:$36 sps:$4 sm:$0xff]   ;;  %v4412_v63 = vld [vmem:[%s4626_s13 + $0x448] ss:$36 sps:$4 sm:$0xff]   ;;  %v4413_v0 = vld [vmem:[%s4626_s13 + $0x458] ss:$36 sps:$4 sm:$0xff]  }
  0xf4   : > { %3655 = vmatpush1.bf16.msra.mxu1 %v4437_v5 }
  0xf5   : > { %3640 = vmatprep.subr.bf16.mxu1 %v4438_v6 }
  0xf6   : > { %2238 = vmatmul.mubr.bf16.gmra.mrb[24].mxu1 %v4339_v1 }
  0xf7   : > { %2704 = vmatmul.mubr.bf16.gmra.mrb[56].mxu0 %v4340_v2  ;;  %2247 = vmatprep.mubr.bf16.mxu1 %v4344_v3 }
  0xf8   : > { %2713 = vmatprep.mubr.bf16.mxu0 %v4346_v4  ;;  %3656 = vmatpush1.bf16.msra.mxu1 %v4439_v7 }
  0xf9   : > { %3641 = vmatprep.subr.bf16.mxu1 %v4440_v8 }
  0xfc   : > { %3657 = vmatpush1.bf16.msra.mxu1 %v4441_v12 }
  0xfd   : > { %3642 = vmatprep.subr.bf16.mxu1 %v4442_v13 }
  0xfe   : > { %2248 = vmatmul.mubr.bf16.gmra.mrb[28].mxu1 %v4348_v9 }
  0xff   : > { %2714 = vmatmul.mubr.bf16.gmra.mrb[60].mxu0 %v4349_v10  ;;  %2257 = vmatprep.mubr.bf16.mxu1 %v4350_v11 }
 0x100   : > { %2756 = vmatprep.mubr.bf16.mxu0 %v4454_v14  ;;  %3658 = vmatpush1.bf16.msra.mxu1 %v4443_v15 }
 0x101   : > { %3643 = vmatprep.subr.bf16.mxu1 %v4444_v16 }
 0x104   : > { %3659 = vmatpush1.bf16.msra.mxu1 %v4445_v20 }
 0x106   : > { %2258 = vmatmul.mubr.bf16.gmra.mrb[32].mxu1 %v4352_v17 }
 0x107   : > { %2757 = vmatmul.mubr.bf16.vlgmr.msra.gmra.mrb[0].mxu0 %v4353_v18  ;;  %2267 = vmatprep.mubr.bf16.mxu1 %v4354_v19 }
 0x108   : > { %2766 = vmatprep.mubr.bf16.mxu0 %v4454_v14 }
 0x10e   : > { %2268 = vmatmul.mubr.bf16.gmra.mrb[36].mxu1 %v4356_v21 }
 0x10f   : > { %2767 = vmatmul.mubr.bf16.gmra.mrb[4].mxu0 %v4357_v22  ;;  %2277 = vmatprep.mubr.bf16.mxu1 %v4358_v23 }
 0x110   : > { %2776 = vmatprep.mubr.bf16.mxu0 %v4454_v14 }
 0x116   : > { %2278 = vmatmul.mubr.bf16.gmra.mrb[40].mxu1 %v4360_v24 }
 0x117   : > { %2777 = vmatmul.mubr.bf16.gmra.mrb[8].mxu0 %v4361_v25  ;;  %2287 = vmatprep.mubr.bf16.mxu1 %v4362_v26  ;;  %v486_v25 = vlaneseq }
 0x118   : > { %2786 = vmatprep.mubr.bf16.mxu0 %v4454_v14 }
 0x11e   : > { %2288 = vmatmul.mubr.bf16.gmra.mrb[44].mxu1 %v4364_v27 }
 0x11f   : > { %2787 = vmatmul.mubr.bf16.gmra.mrb[12].mxu0 %v4365_v28  ;;  %2297 = vmatprep.mubr.bf16.mxu1 %v4366_v29  ;;  %v487_v29 = vshrl.u32 %v486_v25, 7 }
 0x120   : > { %2796 = vmatprep.mubr.bf16.mxu0 %v4454_v14 }
 0x126   : > { %2298 = vmatmul.mubr.bf16.gmra.mrb[48].mxu1 %v4368_v30 }
 0x127   : > { %2797 = vmatmul.mubr.bf16.gmra.mrb[16].mxu0 %v4369_v31  ;;  %2307 = vmatprep.mubr.bf16.mxu1 %v4370_v32  ;;  %v488_v31 = vsub.s32 0, %v487_v29  ;;  %v484_v32 = vld [vmem:[%s5367_s2] sm:$0x3] }
 0x128   : > { %2806 = vmatprep.mubr.bf16.mxu0 %v4454_v14 }
 0x12e   : > { %2308 = vmatmul.mubr.bf16.gmra.mrb[52].mxu1 %v4372_v33  ;;  %v492_v33 = vsub.s32 1, %v487_v29 }
 0x12f   : > { %2807 = vmatmul.mubr.bf16.gmra.mrb[20].mxu0 %v4373_v34  ;;  %2317 = vmatprep.mubr.bf16.mxu1 %v4374_v35 }
 0x130   : > { %2816 = vmatprep.mubr.bf16.mxu0 %v4454_v14 }
 0x136   : > { %2318 = vmatmul.mubr.bf16.gmra.mrb[56].mxu1 %v4376_v36 }
 0x137   : > { %2817 = vmatmul.mubr.bf16.gmra.mrb[24].mxu0 %v4377_v37  ;;  %2327 = vmatprep.mubr.bf16.mxu1 %v4378_v38  ;;  %v5230_v37 = vrot.slane %v484_v32, %v488_v31 }
 0x138   : > { %2826 = vmatprep.mubr.bf16.mxu0 %v4454_v14 }
 0x13e   : > { %2328 = vmatmul.mubr.bf16.gmra.mrb[60].mxu1 %v4380_v39  ;;  %v5234_v39 = vrot.slane %v484_v32, %v492_v33 }
 0x13f   : > { %2827 = vmatmul.mubr.bf16.gmra.mrb[28].mxu0 %v4381_v40  ;;  %2450 = vmatprep.mubr.bf16.mxu1 %v4384_v41 }
 0x140   : > { %2836 = vmatprep.mubr.bf16.mxu0 %v4454_v14 }
 0x146   : > { %2451 = vmatmul.mubr.bf16.vlgmr.msra.gmra.mrb[32].mxu1 %v4382_v42 }
 0x147   : > { %2837 = vmatmul.mubr.bf16.gmra.mrb[32].mxu0 %v4385_v43  ;;  %2460 = vmatprep.mubr.bf16.mxu1 %v4386_v44 }
 0x148   : > { %2846 = vmatprep.mubr.bf16.mxu0 %v4454_v14 }
 0x14e   : > { %2461 = vmatmul.mubr.bf16.gmra.mrb[36].mxu1 %v4388_v45 }
 0x14f   : > { %2847 = vmatmul.mubr.bf16.gmra.mrb[36].mxu0 %v4389_v46  ;;  %2470 = vmatprep.mubr.bf16.mxu1 %v4390_v47 }
 0x150   : > { %2856 = vmatprep.mubr.bf16.mxu0 %v4454_v14 }
 0x156   : > { %2471 = vmatmul.mubr.bf16.gmra.mrb[40].mxu1 %v4392_v48 }
 0x157   : > { %2857 = vmatmul.mubr.bf16.gmra.mrb[40].mxu0 %v4393_v49  ;;  %2480 = vmatprep.mubr.bf16.mxu1 %v4394_v50 }
 0x158   : > { %2866 = vmatprep.mubr.bf16.mxu0 %v4454_v14 }
 0x15e   : > { %2481 = vmatmul.mubr.bf16.gmra.mrb[44].mxu1 %v4396_v51 }
 0x15f   : > { %2867 = vmatmul.mubr.bf16.gmra.mrb[44].mxu0 %v4397_v52  ;;  %2490 = vmatprep.mubr.bf16.mxu1 %v4398_v53 }
 0x160   : > { %2876 = vmatprep.mubr.bf16.mxu0 %v4454_v14 }
 0x166   : > { %2491 = vmatmul.mubr.bf16.gmra.mrb[48].mxu1 %v4400_v54 }
 0x167   : > { %2877 = vmatmul.mubr.bf16.gmra.mrb[48].mxu0 %v4401_v55  ;;  %2500 = vmatprep.mubr.bf16.mxu1 %v4402_v56 }
 0x168   : > { %2886 = vmatprep.mubr.bf16.mxu0 %v4454_v14 }
 0x16e   : > { %2501 = vmatmul.mubr.bf16.gmra.mrb[52].mxu1 %v4404_v57 }
 0x16f   : > { %2887 = vmatmul.mubr.bf16.gmra.mrb[52].mxu0 %v4405_v58  ;;  %2510 = vmatprep.mubr.bf16.mxu1 %v4406_v59 }
 0x170   : > { %2896 = vmatprep.mubr.bf16.mxu0 %v4454_v14 }
 0x176   : > { %2511 = vmatmul.mubr.bf16.gmra.mrb[56].mxu1 %v4408_v60 }
 0x177   : > { %2897 = vmatmul.mubr.bf16.gmra.mrb[56].mxu0 %v4409_v61  ;;  %2520 = vmatprep.mubr.bf16.mxu1 %v4410_v62 }
 0x178   : > { %2906 = vmatprep.mubr.bf16.mxu0 %v4454_v14 }
 0x17e   : > { %2521 = vmatmul.mubr.bf16.gmra.mrb[60].mxu1 %v4412_v63 }
 0x17f   : > { %2907 = vmatmul.mubr.bf16.gmra.mrb[60].mxu0 %v4413_v0 }
 0x199   : > { %v2179_v1 = vpop.f32.mrb[0].mxu1 }
 0x19a   : > { %v2181_v2 = vpop.f32.mrb[1].mxu1  ;;  %v3660_v40 = vadd.f32 %v2179_v1, %v5230_v37 }
 0x19b   : > { %v2183_v3 = vpop.f32.mrb[2].mxu1  ;;  %v3662_v41 = vadd.f32 %v2181_v2, %v5234_v39 }
 0x19c   : > { %v2185_v4 = vpop.f32.mrb[3].mxu1  ;;  %v3664_v43 = vadd.f32 %v2183_v3, %v5230_v37 }
 0x19d   : > { %v3666_v46 = vadd.f32 %v2185_v4, %v5234_v39 }
 0x1a1   : > { %v2189_v5 = vpop.f32.mrb[4].mxu1 }
 0x1a2   : > { %v2191_v6 = vpop.f32.mrb[5].mxu1  ;;  %v3668_v57 = vadd.f32 %v2189_v5, %v5230_v37 }
 0x1a3   : > { %v2193_v7 = vpop.f32.mrb[6].mxu1  ;;  %v3670_v58 = vadd.f32 %v2191_v6, %v5234_v39 }
 0x1a4   : > { %v2195_v8 = vpop.f32.mrb[7].mxu1  ;;  %v3672_v61 = vadd.f32 %v2193_v7, %v5230_v37 }
 0x1a5   : > { %v3674_v0 = vadd.f32 %v2195_v8, %v5234_v39 }
 0x1a9   : > { %v5181_v9 = vpop.f32.mrb[8].mxu1 }
 0x1aa   : > { %v5183_v10 = vpop.f32.mrb[9].mxu1  ;;  %v3676_v7 = vadd.f32 %v5181_v9, %v5230_v37 }
 0x1ab   : > { %v5185_v11 = vpop.f32.mrb[10].mxu1  ;;  %v3678_v33 = vadd.f32 %v5183_v10, %v5234_v39 }
 0x1ac   : > { %v5187_v12 = vpop.f32.mrb[11].mxu1 }
 0x1b1   : > { %v5189_v13 = vpop.f32.mrb[12].mxu1 }
 0x1b2   : > { %v5191_v14 = vpop.f32.mrb[13].mxu1 }
 0x1b3   : > { %v5193_v15 = vpop.f32.mrb[14].mxu1 }
 0x1b4   : > { %v5195_v16 = vpop.f32.mrb[15].mxu1 }
 0x1b9   : > { %v5197_v17 = vpop.f32.mrb[16].mxu1 }
 0x1ba   : > { %v5199_v18 = vpop.f32.mrb[17].mxu1 }
 0x1bb   : > { %v5201_v19 = vpop.f32.mrb[18].mxu1 }
 0x1bc   : > { %v5203_v20 = vpop.f32.mrb[19].mxu1 }
 0x1c1   : > { %v5205_v21 = vpop.f32.mrb[20].mxu1 }
 0x1c2   : > { %v5207_v22 = vpop.f32.mrb[21].mxu1 }
 0x1c3   : > { %v5209_v23 = vpop.f32.mrb[22].mxu1 }
 0x1c4   : > { %v5211_v24 = vpop.f32.mrb[23].mxu1 }
 0x1c9   : > { %v5213_v26 = vpop.f32.mrb[24].mxu1 }
 0x1ca   : > { %v5215_v27 = vpop.f32.mrb[25].mxu1 }
 0x1cb   : > { %v5217_v28 = vpop.f32.mrb[26].mxu1 }
 0x1cc   : > { %v5219_v30 = vpop.f32.mrb[27].mxu1 }
 0x1d1   : > { %v5224_v34 = vpop.f32.mrb[28].mxu1 }
 0x1d2   : > { %v5226_v35 = vpop.f32.mrb[29].mxu1 }
 0x1d3   : > { %v5228_v36 = vpop.f32.mrb[30].mxu1 }
 0x1d4   : > { %v5232_v38 = vpop.f32.mrb[31].mxu1 }
 0x1da   : > { %v2758_v42 = vpop.f32.mrb[0].mxu0 }
 0x1db   : > { %v3661_v44 = vadd.f32 %v3660_v40, %v2758_v42  ;;  %v2760_v45 = vpop.f32.mrb[1].mxu0 }
 0x1dc   : > { %v3663_v47 = vadd.f32 %v3662_v41, %v2760_v45  ;;  %v2762_v48 = vpop.f32.mrb[2].mxu0  ;;  %v3680_v41 = vadd.f32 %v5185_v11, %v5230_v37  ;;  %v3684_v11 = vadd.f32 %v5189_v13, %v5230_v37 }
 0x1dd   : > { %v2917_v49 = vmax.f32 %v3661_v44, 0.0  ;;  %v3665_v50 = vadd.f32 %v3664_v43, %v2762_v48  ;;  %v2764_v51 = vpop.f32.mrb[3].mxu0  ;;  %v3682_v44 = vadd.f32 %v5187_v12, %v5234_v39 }
 0x1de   : > { %v2918_v52 = vmax.f32 %v3663_v47, 0.0  ;;  %v3667_v53 = vadd.f32 %v3666_v46, %v2764_v51 }
 0x1df   : > { %v2919_v54 = vmax.f32 %v3665_v50, 0.0 }
 0x1e0   : > { %v3596_v55 = vpack.c.bf16 %v2918_v52, %v2917_v49  ;;  %v2920_v56 = vmax.f32 %v3667_v53, 0.0  ;;  %v3686_v53 = vadd.f32 %v5191_v14, %v5234_v39 }
 0x1e2   : > { %3173 = vst [vmem:[%s5244_s8] sm:$0xff] %v3596_v55  ;;  %v3597_v59 = vpack.c.bf16 %v2920_v56, %v2919_v54  ;;  %v2768_v60 = vpop.f32.mrb[4].mxu0  ;;  %v3688_v55 = vadd.f32 %v5193_v15, %v5230_v37  ;;  %v3692_v15 = vadd.f32 %v5197_v17, %v5230_v37 }
 0x1e3   : > { %v3669_v62 = vadd.f32 %v3668_v57, %v2768_v60  ;;  %v2770_v63 = vpop.f32.mrb[5].mxu0 }
 0x1e4   : > { %3174 = vst [vmem:[%s5244_s8 + $0x8] sm:$0xff] %v3597_v59  ;;  %v3671_v1 = vadd.f32 %v3670_v58, %v2770_v63  ;;  %v2772_v2 = vpop.f32.mrb[6].mxu0  ;;  %v3690_v58 = vadd.f32 %v5195_v16, %v5234_v39 }
 0x1e5   : > { %v2921_v3 = vmax.f32 %v3669_v62, 0.0  ;;  %v3673_v4 = vadd.f32 %v3672_v61, %v2772_v2  ;;  %v2774_v25 = vpop.f32.mrb[7].mxu0 }
 0x1e6   : > { %v2922_v5 = vmax.f32 %v3671_v1, 0.0  ;;  %v3675_v29 = vadd.f32 %v3674_v0, %v2774_v25  ;;  %v3696_v25 = vadd.f32 %v5201_v19, %v5230_v37  ;;  %v3700_v19 = vadd.f32 %v5205_v21, %v5230_v37 }
 0x1e7   : > { %v2923_v6 = vmax.f32 %v3673_v4, 0.0 }
 0x1e8   : > { %v3598_v31 = vpack.c.bf16 %v2922_v5, %v2921_v3  ;;  %v2924_v32 = vmax.f32 %v3675_v29, 0.0  ;;  %v3694_v3 = vadd.f32 %v5199_v18, %v5234_v39 }
 0x1ea   : > { %3175 = vst [vmem:[%s5244_s8 + $0x10] sm:$0xff] %v3598_v31  ;;  %v3599_v8 = vpack.c.bf16 %v2924_v32, %v2923_v6  ;;  %v2778_v40 = vpop.f32.mrb[8].mxu0  ;;  %v3698_v6 = vadd.f32 %v5203_v20, %v5234_v39 }
 0x1eb   : > { %v3677_v42 = vadd.f32 %v3676_v7, %v2778_v40  ;;  %v2780_v43 = vpop.f32.mrb[9].mxu0 }
 0x1ec   : > { %3176 = vst [vmem:[%s5244_s8 + $0x18] sm:$0xff] %v3599_v8  ;;  %v3679_v45 = vadd.f32 %v3678_v33, %v2780_v43  ;;  %v2782_v46 = vpop.f32.mrb[10].mxu0  ;;  %v3702_v43 = vadd.f32 %v5207_v22, %v5234_v39 }
 0x1ed   : > { %v2925_v47 = vmax.f32 %v3677_v42, 0.0  ;;  %v3681_v9 = vadd.f32 %v3680_v41, %v2782_v46  ;;  %v2784_v48 = vpop.f32.mrb[11].mxu0 }
 0x1ee   : > { %v2926_v10 = vmax.f32 %v3679_v45, 0.0  ;;  %v3683_v49 = vadd.f32 %v3682_v44, %v2784_v48  ;;  %v3704_v45 = vadd.f32 %v5209_v23, %v5230_v37  ;;  %v3708_v23 = vadd.f32 %v5213_v26, %v5230_v37 }
 0x1ef   : > { %v2927_v50 = vmax.f32 %v3681_v9, 0.0  ;;  %v3706_v9 = vadd.f32 %v5211_v24, %v5234_v39 }
 0x1f0   : > { %v3600_v51 = vpack.c.bf16 %v2926_v10, %v2925_v47  ;;  %v2928_v52 = vmax.f32 %v3683_v49, 0.0 }
 0x1f2   : > { %3177 = vst [vmem:[%s5244_s8 + $0x20] sm:$0xff] %v3600_v51  ;;  %v3601_v12 = vpack.c.bf16 %v2928_v52, %v2927_v50  ;;  %v2788_v54 = vpop.f32.mrb[12].mxu0 }
 0x1f3   : > { %v3685_v56 = vadd.f32 %v3684_v11, %v2788_v54  ;;  %v2790_v57 = vpop.f32.mrb[13].mxu0 }
 0x1f4   : > { %3178 = vst [vmem:[%s5244_s8 + $0x28] sm:$0xff] %v3601_v12  ;;  %v3687_v59 = vadd.f32 %v3686_v53, %v2790_v57  ;;  %v2792_v60 = vpop.f32.mrb[14].mxu0  ;;  %v3710_v12 = vadd.f32 %v5215_v27, %v5234_v39 }
 0x1f5   : > { %v2929_v61 = vmax.f32 %v3685_v56, 0.0  ;;  %v3689_v13 = vadd.f32 %v3688_v55, %v2792_v60  ;;  %v2794_v62 = vpop.f32.mrb[15].mxu0  ;;  %v3712_v55 = vadd.f32 %v5217_v28, %v5230_v37  ;;  %v3716_v28 = vadd.f32 %v5224_v34, %v5230_v37 }
 0x1f6   : > { %v2930_v14 = vmax.f32 %v3687_v59, 0.0  ;;  %v3691_v63 = vadd.f32 %v3690_v58, %v2794_v62  ;;  %v3714_v58 = vadd.f32 %v5219_v30, %v5234_v39 }
 0x1f7   : > { %v2931_v0 = vmax.f32 %v3689_v13, 0.0 }
 0x1f8   : > { %v3602_v1 = vpack.c.bf16 %v2930_v14, %v2929_v61  ;;  %v2932_v2 = vmax.f32 %v3691_v63, 0.0 }
 0x1fa   : > { %3179 = vst [vmem:[%s5244_s8 + $0x30] sm:$0xff] %v3602_v1  ;;  %v3603_v16 = vpack.c.bf16 %v2932_v2, %v2931_v0  ;;  %v2798_v4 = vpop.f32.mrb[16].mxu0  ;;  %v3718_v1 = vadd.f32 %v5226_v35, %v5234_v39 }
 0x1fb   : > { %v3693_v5 = vadd.f32 %v3692_v15, %v2798_v4  ;;  %v2800_v29 = vpop.f32.mrb[17].mxu0  ;;  %v3720_v15 = vadd.f32 %v5228_v36, %v5230_v37  ;;  %v3722_v4 = vadd.f32 %v5232_v38, %v5234_v39 }
 0x1fc   : > { %3180 = vst [vmem:[%s5244_s8 + $0x38] sm:$0xff] %v3603_v16  ;;  %v3695_v31 = vadd.f32 %v3694_v3, %v2800_v29  ;;  %v2802_v32 = vpop.f32.mrb[18].mxu0 }
 0x1fd   : > { %v2933_v7 = vmax.f32 %v3693_v5, 0.0  ;;  %v3697_v17 = vadd.f32 %v3696_v25, %v2802_v32  ;;  %v2804_v33 = vpop.f32.mrb[19].mxu0 }
 0x1fe   : > { %v2934_v18 = vmax.f32 %v3695_v31, 0.0  ;;  %v3699_v8 = vadd.f32 %v3698_v6, %v2804_v33 }
 0x1ff   : > { %v2935_v40 = vmax.f32 %v3697_v17, 0.0 }
 0x200   : > { %v3604_v41 = vpack.c.bf16 %v2934_v18, %v2933_v7  ;;  %v2936_v42 = vmax.f32 %v3699_v8, 0.0 }
 0x202   : > { %3181 = vst [vmem:[%s5244_s8 + $0x40] sm:$0xff] %v3604_v41  ;;  %v3605_v20 = vpack.c.bf16 %v2936_v42, %v2935_v40  ;;  %v2808_v44 = vpop.f32.mrb[20].mxu0 }
 0x203   : > { %v3701_v46 = vadd.f32 %v3700_v19, %v2808_v44  ;;  %v2810_v47 = vpop.f32.mrb[21].mxu0 }
 0x204   : > { %3182 = vst [vmem:[%s5244_s8 + $0x48] sm:$0xff] %v3605_v20  ;;  %v3703_v48 = vadd.f32 %v3702_v43, %v2810_v47  ;;  %v2812_v10 = vpop.f32.mrb[22].mxu0 }
 0x205   : > { %v2937_v49 = vmax.f32 %v3701_v46, 0.0  ;;  %v3705_v21 = vadd.f32 %v3704_v45, %v2812_v10  ;;  %v2814_v50 = vpop.f32.mrb[23].mxu0 }
 0x206   : > { %v2938_v22 = vmax.f32 %v3703_v48, 0.0  ;;  %v3707_v51 = vadd.f32 %v3706_v9, %v2814_v50 }
 0x207   : > { %v2939_v52 = vmax.f32 %v3705_v21, 0.0 }
 0x208   : > { %v3606_v11 = vpack.c.bf16 %v2938_v22, %v2937_v49  ;;  %v2940_v53 = vmax.f32 %v3707_v51, 0.0 }
 0x20a   : > { %3183 = vst [vmem:[%s5244_s8 + $0x50] sm:$0xff] %v3606_v11  ;;  %v3607_v24 = vpack.c.bf16 %v2940_v53, %v2939_v52  ;;  %v2818_v54 = vpop.f32.mrb[24].mxu0 }
 0x20b   : > { %v3709_v56 = vadd.f32 %v3708_v23, %v2818_v54  ;;  %v2820_v57 = vpop.f32.mrb[25].mxu0 }
 0x20c   : > { %3184 = vst [vmem:[%s5244_s8 + $0x58] sm:$0xff] %v3607_v24  ;;  %v3711_v59 = vadd.f32 %v3710_v12, %v2820_v57  ;;  %v2822_v60 = vpop.f32.mrb[26].mxu0 }
 0x20d   : > { %v2941_v61 = vmax.f32 %v3709_v56, 0.0  ;;  %v3713_v26 = vadd.f32 %v3712_v55, %v2822_v60  ;;  %v2824_v13 = vpop.f32.mrb[27].mxu0 }
 0x20e   : > { %v2942_v27 = vmax.f32 %v3711_v59, 0.0  ;;  %v3715_v62 = vadd.f32 %v3714_v58, %v2824_v13 }
 0x20f   : > { %v2943_v14 = vmax.f32 %v3713_v26, 0.0 }
 0x210   : > { %v3608_v63 = vpack.c.bf16 %v2942_v27, %v2941_v61  ;;  %v2944_v0 = vmax.f32 %v3715_v62, 0.0 }
 0x212   : > { %3185 = vst [vmem:[%s5244_s8 + $0x60] sm:$0xff] %v3608_v63  ;;  %v3609_v30 = vpack.c.bf16 %v2944_v0, %v2943_v14  ;;  %v2828_v2 = vpop.f32.mrb[28].mxu0 }
 0x213   : > { %v3717_v3 = vadd.f32 %v3716_v28, %v2828_v2  ;;  %v2830_v16 = vpop.f32.mrb[29].mxu0 }
 0x214   : > { %3186 = vst [vmem:[%s5244_s8 + $0x68] sm:$0xff] %v3609_v30  ;;  %v3719_v25 = vadd.f32 %v3718_v1, %v2830_v16  ;;  %v2832_v5 = vpop.f32.mrb[30].mxu0 }
 0x215   : > { %v2945_v34 = vmax.f32 %v3717_v3, 0.0  ;;  %v3721_v29 = vadd.f32 %v3720_v15, %v2832_v5  ;;  %v2834_v6 = vpop.f32.mrb[31].mxu0 }
 0x216   : > { %v2946_v35 = vmax.f32 %v3719_v25, 0.0  ;;  %v3723_v31 = vadd.f32 %v3722_v4, %v2834_v6 }
 0x217   : > { %v2947_v32 = vmax.f32 %v3721_v29, 0.0 }
 0x218   : > { %v3610_v7 = vpack.c.bf16 %v2946_v35, %v2945_v34  ;;  %v2948_v17 = vmax.f32 %v3723_v31, 0.0 }
 0x219   : > { %v2452_v36 = vpop.f32.mrb[32].mxu1 }
 0x21a   : > { %3187 = vst [vmem:[%s5244_s8 + $0x70] sm:$0xff] %v3610_v7  ;;  %v3611_v33 = vpack.c.bf16 %v2948_v17, %v2947_v32  ;;  %v2838_v18 = vpop.f32.mrb[32].mxu0  ;;  %v3724_v8 = vadd.f32 %v2452_v36, %v5230_v37  ;;  %v2454_v40 = vpop.f32.mrb[33].mxu1 }
 0x21b   : > { %v2840_v38 = vpop.f32.mrb[33].mxu0  ;;  %v3726_v41 = vadd.f32 %v2454_v40, %v5234_v39  ;;  %v2456_v42 = vpop.f32.mrb[34].mxu1 }
 0x21c   : > { %3188 = vst [vmem:[%s5244_s8 + $0x78] sm:$0xff] %v3611_v33  ;;  %v2842_v19 = vpop.f32.mrb[34].mxu0  ;;  %v3725_v43 = vadd.f32 %v3724_v8, %v2838_v18  ;;  %v3728_v20 = vadd.f32 %v2456_v42, %v5230_v37  ;;  %v2458_v44 = vpop.f32.mrb[35].mxu1 }
 0x21d   : > { %v2844_v45 = vpop.f32.mrb[35].mxu0  ;;  %v3727_v46 = vadd.f32 %v3726_v41, %v2840_v38  ;;  %v3730_v47 = vadd.f32 %v2458_v44, %v5234_v39 }
 0x21e   : > { %v2949_v9 = vmax.f32 %v3725_v43, 0.0  ;;  %v3729_v48 = vadd.f32 %v3728_v20, %v2842_v19 }
 0x21f   : > { %v2950_v10 = vmax.f32 %v3727_v46, 0.0  ;;  %v3731_v49 = vadd.f32 %v3730_v47, %v2844_v45 }
 0x220   : > { %v2951_v21 = vmax.f32 %v3729_v48, 0.0 }
 0x221   : > { %v3612_v50 = vpack.c.bf16 %v2950_v10, %v2949_v9  ;;  %v2952_v22 = vmax.f32 %v3731_v49, 0.0  ;;  %v2462_v51 = vpop.f32.mrb[36].mxu1 }
 0x222   : > { %v2848_v52 = vpop.f32.mrb[36].mxu0  ;;  %v3732_v11 = vadd.f32 %v2462_v51, %v5230_v37  ;;  %v2464_v53 = vpop.f32.mrb[37].mxu1 }
 0x223   : > { %v2850_v23 = vpop.f32.mrb[37].mxu0  ;;  %3189 = vst [vmem:[%s5244_s8 + $0x80] sm:$0xff] %v3612_v50  ;;  %v3613_v12 = vpack.c.bf16 %v2952_v22, %v2951_v21  ;;  %v3734_v24 = vadd.f32 %v2464_v53, %v5234_v39  ;;  %v2466_v54 = vpop.f32.mrb[38].mxu1 }
 0x224   : > { %v2852_v55 = vpop.f32.mrb[38].mxu0  ;;  %v3733_v56 = vadd.f32 %v3732_v11, %v2848_v52  ;;  %v3736_v57 = vadd.f32 %v2466_v54, %v5230_v37  ;;  %v2468_v58 = vpop.f32.mrb[39].mxu1 }
 0x225   : > { %v2854_v59 = vpop.f32.mrb[39].mxu0  ;;  %3190 = vst [vmem:[%s5244_s8 + $0x88] sm:$0xff] %v3613_v12  ;;  %v3735_v60 = vadd.f32 %v3734_v24, %v2850_v23  ;;  %v3738_v61 = vadd.f32 %v2468_v58, %v5234_v39 }
 0x226   : > { %v2953_v26 = vmax.f32 %v3733_v56, 0.0  ;;  %v3737_v13 = vadd.f32 %v3736_v57, %v2852_v55 }
 0x227   : > { %v2954_v27 = vmax.f32 %v3735_v60, 0.0  ;;  %v3739_v62 = vadd.f32 %v3738_v61, %v2854_v59 }
 0x228   : > { %v2955_v14 = vmax.f32 %v3737_v13, 0.0 }
 0x229   : > { %v3614_v63 = vpack.c.bf16 %v2954_v27, %v2953_v26  ;;  %v2956_v0 = vmax.f32 %v3739_v62, 0.0  ;;  %v2472_v28 = vpop.f32.mrb[40].mxu1 }
 0x22a   : > { %v2858_v1 = vpop.f32.mrb[40].mxu0  ;;  %v3740_v30 = vadd.f32 %v2472_v28, %v5230_v37  ;;  %v2474_v2 = vpop.f32.mrb[41].mxu1 }
 0x22b   : > { %v2860_v15 = vpop.f32.mrb[41].mxu0  ;;  %3191 = vst [vmem:[%s5244_s8 + $0x90] sm:$0xff] %v3614_v63  ;;  %v3615_v3 = vpack.c.bf16 %v2956_v0, %v2955_v14  ;;  %v3742_v16 = vadd.f32 %v2474_v2, %v5234_v39  ;;  %v2476_v4 = vpop.f32.mrb[42].mxu1 }
 0x22c   : > { %v2862_v25 = vpop.f32.mrb[42].mxu0  ;;  %v3741_v5 = vadd.f32 %v3740_v30, %v2858_v1  ;;  %v3744_v34 = vadd.f32 %v2476_v4, %v5230_v37  ;;  %v2478_v29 = vpop.f32.mrb[43].mxu1 }
 0x22d   : > { %v2864_v6 = vpop.f32.mrb[43].mxu0  ;;  %3192 = vst [vmem:[%s5244_s8 + $0x98] sm:$0xff] %v3615_v3  ;;  %v3743_v35 = vadd.f32 %v3742_v16, %v2860_v15  ;;  %v3746_v31 = vadd.f32 %v2478_v29, %v5234_v39 }
 0x22e   : > { %v2957_v32 = vmax.f32 %v3741_v5, 0.0  ;;  %v3745_v7 = vadd.f32 %v3744_v34, %v2862_v25 }
 0x22f   : > { %v2958_v17 = vmax.f32 %v3743_v35, 0.0  ;;  %v3747_v33 = vadd.f32 %v3746_v31, %v2864_v6 }
 0x230   : > { %v2959_v36 = vmax.f32 %v3745_v7, 0.0 }
 0x231   : > { %v3616_v18 = vpack.c.bf16 %v2958_v17, %v2957_v32  ;;  %v2960_v8 = vmax.f32 %v3747_v33, 0.0  ;;  %v2482_v40 = vpop.f32.mrb[44].mxu1 }
 0x232   : > { %v2868_v38 = vpop.f32.mrb[44].mxu0  ;;  %v3748_v41 = vadd.f32 %v2482_v40, %v5230_v37  ;;  %v2484_v42 = vpop.f32.mrb[45].mxu1 }
 0x233   : > { %v2870_v19 = vpop.f32.mrb[45].mxu0  ;;  %3193 = vst [vmem:[%s5244_s8 + $0xa0] sm:$0xff] %v3616_v18  ;;  %v3617_v43 = vpack.c.bf16 %v2960_v8, %v2959_v36  ;;  %v3750_v20 = vadd.f32 %v2484_v42, %v5234_v39  ;;  %v2486_v44 = vpop.f32.mrb[46].mxu1 }
 0x234   : > { %v2872_v45 = vpop.f32.mrb[46].mxu0  ;;  %v3749_v46 = vadd.f32 %v3748_v41, %v2868_v38  ;;  %v3752_v47 = vadd.f32 %v2486_v44, %v5230_v37  ;;  %v2488_v9 = vpop.f32.mrb[47].mxu1 }
 0x235   : > { %v2874_v48 = vpop.f32.mrb[47].mxu0  ;;  %3194 = vst [vmem:[%s5244_s8 + $0xa8] sm:$0xff] %v3617_v43  ;;  %v3751_v10 = vadd.f32 %v3750_v20, %v2870_v19  ;;  %v3754_v49 = vadd.f32 %v2488_v9, %v5234_v39 }
 0x236   : > { %v2961_v21 = vmax.f32 %v3749_v46, 0.0  ;;  %v3753_v50 = vadd.f32 %v3752_v47, %v2872_v45 }
 0x237   : > { %v2962_v22 = vmax.f32 %v3751_v10, 0.0  ;;  %v3755_v51 = vadd.f32 %v3754_v49, %v2874_v48 }
 0x238   : > { %v2963_v52 = vmax.f32 %v3753_v50, 0.0 }
 0x239   : > { %v3618_v11 = vpack.c.bf16 %v2962_v22, %v2961_v21  ;;  %v2964_v53 = vmax.f32 %v3755_v51, 0.0  ;;  %v2492_v23 = vpop.f32.mrb[48].mxu1 }
 0x23a   : > { %v2878_v12 = vpop.f32.mrb[48].mxu0  ;;  %v3756_v24 = vadd.f32 %v2492_v23, %v5230_v37  ;;  %v2494_v54 = vpop.f32.mrb[49].mxu1 }
 0x23b   : > { %v2880_v55 = vpop.f32.mrb[49].mxu0  ;;  %3195 = vst [vmem:[%s5244_s8 + $0xb0] sm:$0xff] %v3618_v11  ;;  %v3619_v56 = vpack.c.bf16 %v2964_v53, %v2963_v52  ;;  %v3758_v57 = vadd.f32 %v2494_v54, %v5234_v39  ;;  %v2496_v58 = vpop.f32.mrb[50].mxu1 }
 0x23c   : > { %v2882_v59 = vpop.f32.mrb[50].mxu0  ;;  %v3757_v60 = vadd.f32 %v3756_v24, %v2878_v12  ;;  %v3760_v61 = vadd.f32 %v2496_v58, %v5230_v37  ;;  %v2498_v26 = vpop.f32.mrb[51].mxu1 }
 0x23d   : > { %v2884_v13 = vpop.f32.mrb[51].mxu0  ;;  %3196 = vst [vmem:[%s5244_s8 + $0xb8] sm:$0xff] %v3619_v56  ;;  %v3759_v27 = vadd.f32 %v3758_v57, %v2880_v55  ;;  %v3762_v62 = vadd.f32 %v2498_v26, %v5234_v39 }
 0x23e   : > { %v2965_v14 = vmax.f32 %v3757_v60, 0.0  ;;  %v3761_v63 = vadd.f32 %v3760_v61, %v2882_v59 }
 0x23f   : > { %v2966_v0 = vmax.f32 %v3759_v27, 0.0  ;;  %v3763_v28 = vadd.f32 %v3762_v62, %v2884_v13 }
 0x240   : > { %v2967_v1 = vmax.f32 %v3761_v63, 0.0 }
 0x241   : > { %v3620_v30 = vpack.c.bf16 %v2966_v0, %v2965_v14  ;;  %v2968_v2 = vmax.f32 %v3763_v28, 0.0  ;;  %v2502_v15 = vpop.f32.mrb[52].mxu1 }
 0x242   : > { %v2888_v3 = vpop.f32.mrb[52].mxu0  ;;  %v3764_v16 = vadd.f32 %v2502_v15, %v5230_v37  ;;  %v2504_v4 = vpop.f32.mrb[53].mxu1 }
 0x243   : > { %v2890_v25 = vpop.f32.mrb[53].mxu0  ;;  %3197 = vst [vmem:[%s5244_s8 + $0xc0] sm:$0xff] %v3620_v30  ;;  %v3621_v5 = vpack.c.bf16 %v2968_v2, %v2967_v1  ;;  %v3766_v34 = vadd.f32 %v2504_v4, %v5234_v39  ;;  %v2506_v29 = vpop.f32.mrb[54].mxu1 }
 0x244   : > { %v2892_v6 = vpop.f32.mrb[54].mxu0  ;;  %v3765_v35 = vadd.f32 %v3764_v16, %v2888_v3  ;;  %v3768_v31 = vadd.f32 %v2506_v29, %v5230_v37  ;;  %v2508_v32 = vpop.f32.mrb[55].mxu1 }
 0x245   : > { %v2894_v7 = vpop.f32.mrb[55].mxu0  ;;  %3198 = vst [vmem:[%s5244_s8 + $0xc8] sm:$0xff] %v3621_v5  ;;  %v3767_v17 = vadd.f32 %v3766_v34, %v2890_v25  ;;  %v3770_v33 = vadd.f32 %v2508_v32, %v5234_v39 }
 0x246   : > { %v2969_v36 = vmax.f32 %v3765_v35, 0.0  ;;  %v3769_v18 = vadd.f32 %v3768_v31, %v2892_v6 }
 0x247   : > { %v2970_v8 = vmax.f32 %v3767_v17, 0.0  ;;  %v3771_v40 = vadd.f32 %v3770_v33, %v2894_v7 }
 0x248   : > { %v2971_v38 = vmax.f32 %v3769_v18, 0.0 }
 0x249   : > { %v3622_v41 = vpack.c.bf16 %v2970_v8, %v2969_v36  ;;  %v2972_v42 = vmax.f32 %v3771_v40, 0.0  ;;  %v2512_v19 = vpop.f32.mrb[56].mxu1 }
 0x24a   : > { %v2898_v43 = vpop.f32.mrb[56].mxu0  ;;  %v3772_v20 = vadd.f32 %v2512_v19, %v5230_v37  ;;  %v2514_v44 = vpop.f32.mrb[57].mxu1 }
 0x24b   : > { %v2900_v45 = vpop.f32.mrb[57].mxu0  ;;  %3199 = vst [vmem:[%s5244_s8 + $0xd0] sm:$0xff] %v3622_v41  ;;  %v3623_v46 = vpack.c.bf16 %v2972_v42, %v2971_v38  ;;  %v3774_v47 = vadd.f32 %v2514_v44, %v5234_v39  ;;  %v2516_v9 = vpop.f32.mrb[58].mxu1 }
 0x24c   : > { %v2902_v48 = vpop.f32.mrb[58].mxu0  ;;  %v3773_v10 = vadd.f32 %v3772_v20, %v2898_v43  ;;  %v3776_v49 = vadd.f32 %v2516_v9, %v5230_v37  ;;  %v2518_v21 = vpop.f32.mrb[59].mxu1 }
 0x24d   : > { %v2904_v50 = vpop.f32.mrb[59].mxu0  ;;  %3200 = vst [vmem:[%s5244_s8 + $0xd8] sm:$0xff] %v3623_v46  ;;  %v3775_v22 = vadd.f32 %v3774_v47, %v2900_v45  ;;  %v3778_v51 = vadd.f32 %v2518_v21, %v5234_v39 }
 0x24e   : > { %v2973_v52 = vmax.f32 %v3773_v10, 0.0  ;;  %v3777_v11 = vadd.f32 %v3776_v49, %v2902_v48 }
 0x24f   : > { %v2974_v53 = vmax.f32 %v3775_v22, 0.0  ;;  %v3779_v23 = vadd.f32 %v3778_v51, %v2904_v50 }
 0x250   : > { %v2975_v12 = vmax.f32 %v3777_v11, 0.0 }
 0x251   : > { %v3624_v24 = vpack.c.bf16 %v2974_v53, %v2973_v52  ;;  %v2976_v54 = vmax.f32 %v3779_v23, 0.0  ;;  %v2522_v55 = vpop.f32.mrb[60].mxu1 }
 0x252   : > { %v2908_v56 = vpop.f32.mrb[60].mxu0  ;;  %v3780_v57 = vadd.f32 %v2522_v55, %v5230_v37  ;;  %v2524_v58 = vpop.f32.mrb[61].mxu1 }
 0x253   : > { %v2910_v59 = vpop.f32.mrb[61].mxu0  ;;  %3201 = vst [vmem:[%s5244_s8 + $0xe0] sm:$0xff] %v3624_v24  ;;  %v3625_v60 = vpack.c.bf16 %v2976_v54, %v2975_v12  ;;  %v3782_v61 = vadd.f32 %v2524_v58, %v5234_v39  ;;  %v2526_v26 = vpop.f32.mrb[62].mxu1 }
 0x254   : > { %v2912_v13 = vpop.f32.mrb[62].mxu0  ;;  %v3781_v27 = vadd.f32 %v3780_v57, %v2908_v56  ;;  %v3784_v62 = vadd.f32 %v2526_v26, %v5230_v37  ;;  %v2528_v14 = vpop.f32.mrb[63].mxu1 }
 0x255   : > { %v2914_v63 = vpop.f32.mrb[63].mxu0  ;;  %3202 = vst [vmem:[%s5244_s8 + $0xe8] sm:$0xff] %v3625_v60  ;;  %v3783_v0 = vadd.f32 %v3782_v61, %v2910_v59  ;;  %v3786_v28 = vadd.f32 %v2528_v14, %v5234_v39 }
 0x256   : > { %v2977_v1 = vmax.f32 %v3781_v27, 0.0  ;;  %v3785_v30 = vadd.f32 %v3784_v62, %v2912_v13 }
 0x257   : > { %v2978_v2 = vmax.f32 %v3783_v0, 0.0  ;;  %v3787_v15 = vadd.f32 %v3786_v28, %v2914_v63 }
 0x258   : > { %v2979_v3 = vmax.f32 %v3785_v30, 0.0 }
 0x259   : > { %v3626_v16 = vpack.c.bf16 %v2978_v2, %v2977_v1  ;;  %v2980_v4 = vmax.f32 %v3787_v15, 0.0 }
 0x25b   : > { %3203 = vst [vmem:[%s5244_s8 + $0xf0] sm:$0xff] %v3626_v16  ;;  %v3627_v25 = vpack.c.bf16 %v2980_v4, %v2979_v3 }
 0x25d   : > { %3204 = vst [vmem:[%s5244_s8 + $0xf8] sm:$0xff] %v3627_v25 }
 0x25e PF: > { %s13_s12 = sadd.s32 1, %s4452_s12  }
 0x25f   : > { %p10_p4 = scmp.ge.s32.totalorder %s13_s12, 4  }
 0x261   :  { %12 = sbr.rel (!%p10_p4) target bundleno = 1 (0x1), region = 62 }

// kernel: convnet_forward.10
= control target key start
LH: loop header
LB: loop body
LE: loop exit
PB: predicated region body
PF: predicated region fallthrough
CT: control target
= control target key end

     0   :  { %s727_s12 = smov 0   ;;  %s809_s0 = inlined_call_operand.vmem [shape: bf16[128,256], index: 0, kind: input, shape index: {}]   ;;  %s810_s1 = inlined_call_operand.vmem [shape: bf16[256,128], index: 1, kind: input, shape index: {}]   ;;  %s811_s2 = inlined_call_operand.vmem [shape: f32[1,128], index: 2, kind: input, shape index: {}]   ;;  %s812_s3 = inlined_call_operand.vmem [shape: bf16[128,128], index: 3, kind: output, shape index: {}]  }
   0x1 LB: > { %s530_s13 = sadd.s32 4294967295, %s705_s12   ;;  %p534_p0 = scmp.ge.s32.totalorder %s705_s12, 1  ;;  %s705_s12 = sphi %s727_s12, %s13_s12  }
   0x2   : > { %p139_p1 = scmp.lt.s32.totalorder %s705_s12, 3 }
   0x4   : > { %p140_p2 = pnand %p534_p0, %p139_p1 }
   0x5   : > { %v671_v0 = vld [vmem:[%s810_s1 + $0x40] sm:$0xff] (!%p140_p2)   ;;  %s535_s16 = sshll.u32 (!%p140_p2), %s530_s13, 3  ;;  %v673_v2 = vld [vmem:[%s810_s1 + $0x48] sm:$0xff] (!%p140_p2)   ;;  %v675_v4 = vld [vmem:[%s810_s1 + $0x50] sm:$0xff] (!%p140_p2)  }
   0x6   : > { %143 = sbr.rel (%p140_p2) target bundleno = 271 (0x10f), region = 32  ;;  %v672_v1 = vld [vmem:[%s810_s1] sm:$0xff] (!%p140_p2)   ;;  %607 = vmatprep.subr.bf16.mxu0 (!%p140_p2), %v671_v0  ;;  %647 = vmatprep.subr.bf16.mxu1 (!%p140_p2), %v671_v0  ;;  %v674_v3 = vld [vmem:[%s810_s1 + $0x8] sm:$0xff] (!%p140_p2)   ;;  %p165_p3 = scmp.lt.s32.totalorder (!%p140_p2), %s535_s16, 15  ;;  %v676_v5 = vld [vmem:[%s810_s1 + $0x10] sm:$0xff] (!%p140_p2)  }
   0x7   : > { %608 = vmatpush3.bf16.msra.mxu0 (!%p140_p2), %v672_v1  ;;  %655 = vmatpush3.bf16.msra.mxu1 (!%p140_p2), %v672_v1  ;;  %v677_v6 = vld [vmem:[%s810_s1 + $0x58] sm:$0xff] (!%p140_p2)   ;;  %v679_v8 = vld [vmem:[%s810_s1 + $0x60] sm:$0xff] (!%p140_p2)   ;;  %v681_v10 = vld [vmem:[%s810_s1 + $0x68] sm:$0xff] (!%p140_p2)  }
   0x8   : > { %609 = vmatprep.subr.bf16.mxu0 (!%p140_p2), %v673_v2  ;;  %648 = vmatprep.subr.bf16.mxu1 (!%p140_p2), %v673_v2  ;;  %v678_v7 = vld [vmem:[%s810_s1 + $0x18] sm:$0xff] (!%p140_p2)   ;;  %v680_v9 = vld [vmem:[%s810_s1 + $0x20] sm:$0xff] (!%p140_p2)   ;;  %v682_v13 = vld [vmem:[%s810_s1 + $0x28] sm:$0xff] (!%p140_p2)  }
   0x9   : > { %v683_v14 = vld [vmem:[%s810_s1 + $0x70] sm:$0xff] (!%p140_p2)   ;;  %v685_v16 = vld [vmem:[%s810_s1 + $0x78] sm:$0xff] (!%p140_p2)   ;;  %v540_v26 = vld [vmem:[%s811_s2] ss:$0 sm:$0xff] (!%p140_p2) }
   0xa   : > { %v684_v15 = vld [vmem:[%s810_s1 + $0x30] sm:$0xff] (!%p140_p2)   ;;  %v686_v17 = vld [vmem:[%s810_s1 + $0x38] sm:$0xff] (!%p140_p2)  }
   0xb   : > { %610 = vmatpush3.bf16.msra.mxu0 (!%p140_p2), %v674_v3  ;;  %656 = vmatpush3.bf16.msra.mxu1 (!%p140_p2), %v674_v3 }
   0xc   : > { %611 = vmatprep.subr.bf16.mxu0 (!%p140_p2), %v675_v4  ;;  %649 = vmatprep.subr.bf16.mxu1 (!%p140_p2), %v675_v4 }
   0xd   : > { %s814_s16 = smov (!%p165_p3, %s535_s16), 15 }
   0xe   : > { %s575_s4 = sshll.u32 %s814_s16, 3  ;;  %s539_s28 = sshll.u32 %s814_s16, 2 }
   0xf   : > { %612 = vmatpush3.bf16.msra.mxu0 %v676_v5  ;;  %657 = vmatpush3.bf16.msra.mxu1 %v676_v5  ;;  %s768_s9 = scalar_lea.vmem %s809_s0, %s575_s4  ;;  %s175_s4 = scalar_lea.vmem %s812_s3, %s539_s28 }
  0x10   : > { %613 = vmatprep.subr.bf16.mxu0 %v677_v6  ;;  %650 = vmatprep.subr.bf16.mxu1 %v677_v6  ;;  %v689_v11 = vld [vmem:[%s768_s9 + $0x4] ss:$8 sps:$4 sm:$0xff]   ;;  %v687_v18 = vld [vmem:[%s768_s9] ss:$8 sps:$4 sm:$0xff]   ;;  %v693_v20 = vld [vmem:[%s768_s9 + $0x14] ss:$8 sps:$4 sm:$0xff]  }
  0x11   : > { %v692_v12 = vld [vmem:[%s768_s9 + $0x24] ss:$8 sps:$4 sm:$0xff]   ;;  %393 = vmatprep.mubr.bf16.mxu0 %v689_v11  ;;  %v690_v19 = vld [vmem:[%s768_s9 + $0x20] ss:$8 sps:$4 sm:$0xff]   ;;  %v695_v21 = vld [vmem:[%s768_s9 + $0x34] ss:$8 sps:$4 sm:$0xff]  }
  0x12   : > { %409 = vmatprep.mubr.bf16.mxu1 %v692_v12  ;;  %v697_v22 = vld [vmem:[%s768_s9 + $0x10] ss:$8 sps:$4 sm:$0xff]  }
  0x13   : > { %614 = vmatpush3.bf16.msra.mxu0 %v678_v7  ;;  %658 = vmatpush3.bf16.msra.mxu1 %v678_v7  ;;  %v698_v23 = vld [vmem:[%s768_s9 + $0x30] ss:$8 sps:$4 sm:$0xff]  }
  0x14   : > { %615 = vmatprep.subr.bf16.mxu0 %v679_v8  ;;  %651 = vmatprep.subr.bf16.mxu1 %v679_v8 }
  0x17   : > { %616 = vmatpush3.bf16.msra.mxu0 %v680_v9  ;;  %659 = vmatpush3.bf16.msra.mxu1 %v680_v9 }
  0x18   : > { %617 = vmatprep.subr.bf16.mxu0 %v681_v10  ;;  %652 = vmatprep.subr.bf16.mxu1 %v681_v10 }
  0x1b   : > { %618 = vmatpush3.bf16.msra.mxu0 %v682_v13  ;;  %660 = vmatpush3.bf16.msra.mxu1 %v682_v13 }
  0x1c   : > { %619 = vmatprep.subr.bf16.mxu0 %v683_v14  ;;  %653 = vmatprep.subr.bf16.mxu1 %v683_v14 }
  0x1f   : > { %620 = vmatpush3.bf16.msra.mxu0 %v684_v15  ;;  %661 = vmatpush3.bf16.msra.mxu1 %v684_v15 }
  0x20   : > { %621 = vmatprep.subr.bf16.mxu0 %v685_v16  ;;  %654 = vmatprep.subr.bf16.mxu1 %v685_v16 }
  0x23   : > { %622 = vmatpush3.bf16.msra.mxu0 %v686_v17  ;;  %662 = vmatpush3.bf16.msra.mxu1 %v686_v17 }
  0x26   : > { %394 = vmatmul.mubr.bf16.vlgmr.msra.gmra.mrb[0].mxu0 %v687_v18  ;;  %410 = vmatmul.mubr.bf16.vlgmr.msra.gmra.mrb[0].mxu1 %v690_v19 }
  0x27   : > { %401 = vmatprep.mubr.bf16.mxu0 %v693_v20  ;;  %417 = vmatprep.mubr.bf16.mxu1 %v695_v21 }
  0x2e   : > { %402 = vmatmul.mubr.bf16.gmra.mrb[4].mxu0 %v697_v22  ;;  %418 = vmatmul.mubr.bf16.gmra.mrb[4].mxu1 %v698_v23 }
  0xf9   : > { %v623_v24 = vpop.f32.mrb[0].mxu0  ;;  %v635_v25 = vpop.f32.mrb[0].mxu1 }
  0xfa   : > { %v624_v27 = vpop.f32.mrb[1].mxu0  ;;  %v636_v28 = vpop.f32.mrb[1].mxu1 }
  0xfb   : > { %v625_v29 = vadd.f32 %v624_v27, %v623_v24  ;;  %v637_v30 = vadd.f32 %v636_v28, %v635_v25  ;;  %v626_v31 = vpop.f32.mrb[2].mxu0  ;;  %v638_v32 = vpop.f32.mrb[2].mxu1 }
  0xfc   : > { %v627_v33 = vpop.f32.mrb[3].mxu0  ;;  %v639_v34 = vpop.f32.mrb[3].mxu1 }
  0xfd   : > { %v396_v35 = vadd.f32 %v625_v29, %v540_v26  ;;  %v412_v36 = vadd.f32 %v637_v30, %v540_v26  ;;  %v628_v37 = vadd.f32 %v627_v33, %v626_v31  ;;  %v640_v38 = vadd.f32 %v639_v34, %v638_v32 }
  0xff   : > { %v399_v39 = vadd.f32 %v628_v37, %v540_v26  ;;  %v415_v40 = vadd.f32 %v640_v38, %v540_v26  ;;  %v426_v41 = vmax.f32 %v396_v35, 0.0  ;;  %v430_v42 = vmax.f32 %v412_v36, 0.0 }
 0x101   : > { %v427_v43 = vmax.f32 %v399_v39, 0.0  ;;  %v431_v44 = vmax.f32 %v415_v40, 0.0  ;;  %v629_v45 = vpop.f32.mrb[4].mxu0  ;;  %v641_v46 = vpop.f32.mrb[4].mxu1 }
 0x102   : > { %v630_v47 = vpop.f32.mrb[5].mxu0  ;;  %v642_v48 = vpop.f32.mrb[5].mxu1 }
 0x103   : > { %v587_v49 = vpack.c.bf16 %v427_v43, %v426_v41  ;;  %v597_v50 = vpack.c.bf16 %v431_v44, %v430_v42  ;;  %v631_v51 = vadd.f32 %v630_v47, %v629_v45  ;;  %v643_v52 = vadd.f32 %v642_v48, %v641_v46  ;;  %v632_v53 = vpop.f32.mrb[6].mxu0  ;;  %v644_v54 = vpop.f32.mrb[6].mxu1 }
 0x104   : > { %v633_v55 = vpop.f32.mrb[7].mxu0  ;;  %v645_v56 = vpop.f32.mrb[7].mxu1 }
 0x105   : > { %588 = vst [vmem:[%s175_s4] sm:$0xff] %v587_v49   ;;  %605 = vst [vmem:[%s175_s4 + $0x10] sm:$0xff] %v597_v50   ;;  %v404_v57 = vadd.f32 %v631_v51, %v540_v26  ;;  %v420_v58 = vadd.f32 %v643_v52, %v540_v26  ;;  %v634_v59 = vadd.f32 %v633_v55, %v632_v53 }
 0x106   : > { %v646_v60 = vadd.f32 %v645_v56, %v644_v54 }
 0x107   : > { %v407_v61 = vadd.f32 %v634_v59, %v540_v26  ;;  %v428_v63 = vmax.f32 %v404_v57, 0.0  ;;  %v432_v0 = vmax.f32 %v420_v58, 0.0 }
 0x108   : > { %v423_v62 = vadd.f32 %v646_v60, %v540_v26 }
 0x109   : > { %v429_v1 = vmax.f32 %v407_v61, 0.0 }
 0x10a   : > { %v433_v2 = vmax.f32 %v423_v62, 0.0 }
 0x10b   : > { %v592_v3 = vpack.c.bf16 %v429_v1, %v428_v63 }
 0x10c   : > { %v602_v4 = vpack.c.bf16 %v433_v2, %v432_v0 }
 0x10d   : > { %604 = vst [vmem:[%s175_s4 + $0x8] sm:$0xff] %v592_v3  }
 0x10e   : > { %606 = vst [vmem:[%s175_s4 + $0x18] sm:$0xff] %v602_v4  }
 0x10f PF: > { %s13_s12 = sadd.s32 1, %s705_s12  }
 0x110   : > { %p10_p4 = scmp.ge.s32.totalorder %s13_s12, 4  }
 0x112   :  { %12 = sbr.rel (!%p10_p4) target bundleno = 1 (0x1), region = 62 }

// kernel: convnet_forward.11
= control target key start
LH: loop header
LB: loop body
LE: loop exit
PB: predicated region body
PF: predicated region fallthrough
CT: control target
= control target key end

     0   :  { %s2596_s12 = smov 0   ;;  %s2598_s13 = smov 0   ;;  %s3162_s0 = inlined_call_operand.vmem [shape: bf16[72,1152], index: 0, kind: input, shape index: {}]   ;;  %s3163_s1 = inlined_call_operand.vmem [shape: bf16[1152,256], index: 1, kind: input, shape index: {}]   ;;  %s3164_s2 = inlined_call_operand.vmem [shape: f32[1,256], index: 2, kind: input, shape index: {}]   ;;  %s3165_s3 = inlined_call_operand.vmem [shape: bf16[72,256], index: 3, kind: output, shape index: {}]  }
   0x1   :  { %s2600_s14 = smov 0  }
   0x2 LB: > { %s2609_s15 = sadd.s32 4294967295, %s2541_s14   ;;  %s2611_s16 = sadd.s32 1, %s2541_s14   ;;  %s2541_s14 = sphi %s2600_s14, %s3172_s14   ;;  %s2537_s13 = sphi %s2598_s13, %s3171_s13   ;;  %s2533_s12 = sphi %s2596_s12, %s3170_s12  }
   0x3   : > { %s85_s17 = ssub.s32 %s2541_s14, %s2611_s16  ;;  %s88_s18 = sadd.s32 1, %s2537_s13 }
   0x4   : > { %p86_p0 = scmp.eq.s32.totalorder %s85_s17, 0  ;;  %p98_p1 = scmp.ne.s32.totalorder %s2537_s13, %s2533_s12 }
   0x5   : > { %p99_p2 = scmp.eq.s32.totalorder %s2609_s15, 1  ;;  %p1857_p3 = scmp.ge.s32.totalorder %s2541_s14, 1 }
   0x6   : > { %s2619_s19 = scalar_select %p86_p0, %s2537_s13, %s88_s18  }
   0x7   : > { %p2621_p4 = por %p99_p2, %p98_p1  ;;  %p149_p5 = scmp.lt.s32.totalorder %s2541_s14, 3 }
   0x9   : > { %p150_p6 = pnand %p1857_p3, %p149_p5 }
   0xa   : > { %v2228_v0 = vld [vmem:[%s3163_s1 + $0x4] ss:$8 sps:$4 sm:$0xff] (!%p150_p6)   ;;  %v2232_v2 = vld [vmem:[%s3163_s1] ss:$8 sps:$4 sm:$0xff] (!%p150_p6)   ;;  %v2234_v4 = vld [vmem:[%s3163_s1 + $0x14] ss:$8 sps:$4 sm:$0xff] (!%p150_p6)  }
   0xb   : > { %153 = sbr.rel (%p150_p6) target bundleno = 462 (0x1ce), region = 32  ;;  %v2230_v1 = vld [vmem:[%s3163_s1 + $0x204] ss:$8 sps:$4 sm:$0xff] (!%p150_p6)   ;;  %1246 = vmatprep.subr.bf16.mxu1 (!%p150_p6), %v2228_v0  ;;  %v2233_v3 = vld [vmem:[%s3163_s1 + $0x200] ss:$8 sps:$4 sm:$0xff] (!%p150_p6)  }
   0xc   : > { %1372 = vmatprep.subr.bf16.mxu0 (!%p150_p6), %v2230_v1  ;;  %1247 = vmatpush1.bf16.msra.mxu1 (!%p150_p6), %v2232_v2  ;;  %v2236_v5 = vld [vmem:[%s3163_s1 + $0x214] ss:$8 sps:$4 sm:$0xff] (!%p150_p6)   ;;  %v2238_v6 = vld [vmem:[%s3163_s1 + $0x10] ss:$8 sps:$4 sm:$0xff] (!%p150_p6)   ;;  %v2240_v8 = vld [vmem:[%s3163_s1 + $0x24] ss:$8 sps:$4 sm:$0xff] (!%p150_p6)  }
   0xd   : > { %1373 = vmatpush1.bf16.msra.mxu0 (!%p150_p6), %v2233_v3  ;;  %1248 = vmatprep.subr.bf16.mxu1 (!%p150_p6), %v2234_v4  ;;  %v2239_v7 = vld [vmem:[%s3163_s1 + $0x210] ss:$8 sps:$4 sm:$0xff] (!%p150_p6)   ;;  %v2242_v9 = vld [vmem:[%s3163_s1 + $0x224] ss:$8 sps:$4 sm:$0xff] (!%p150_p6)   ;;  %v2244_v10 = vld [vmem:[%s3163_s1 + $0x20] ss:$8 sps:$4 sm:$0xff] (!%p150_p6)  }
   0xe   : > { %1374 = vmatprep.subr.bf16.mxu0 (!%p150_p6), %v2236_v5  ;;  %v2245_v11 = vld [vmem:[%s3163_s1 + $0x220] ss:$8 sps:$4 sm:$0xff] (!%p150_p6)   ;;  %v2246_v12 = vld [vmem:[%s3163_s1 + $0x34] ss:$8 sps:$4 sm:$0xff] (!%p150_p6)   ;;  %v2250_v14 = vld [vmem:[%s3163_s1 + $0x30] ss:$8 sps:$4 sm:$0xff] (!%p150_p6)  }
   0xf   : > { %v2248_v13 = vld [vmem:[%s3163_s1 + $0x234] ss:$8 sps:$4 sm:$0xff] (!%p150_p6)   ;;  %v2251_v15 = vld [vmem:[%s3163_s1 + $0x230] ss:$8 sps:$4 sm:$0xff] (!%p150_p6)   ;;  %v2252_v16 = vld [vmem:[%s3163_s1 + $0x44] ss:$8 sps:$4 sm:$0xff] (!%p150_p6)  }
  0x10   : > { %1249 = vmatpush1.bf16.msra.mxu1 (!%p150_p6), %v2238_v6  ;;  %v2254_v17 = vld [vmem:[%s3163_s1 + $0x244] ss:$8 sps:$4 sm:$0xff] (!%p150_p6)   ;;  %v2256_v18 = vld [vmem:[%s3163_s1 + $0x40] ss:$8 sps:$4 sm:$0xff] (!%p150_p6)   ;;  %v2258_v20 = vld [vmem:[%s3163_s1 + $0x54] ss:$8 sps:$4 sm:$0xff] (!%p150_p6)  }
  0x11   : > { %1375 = vmatpush1.bf16.msra.mxu0 (!%p150_p6), %v2239_v7  ;;  %1250 = vmatprep.subr.bf16.mxu1 (!%p150_p6), %v2240_v8  ;;  %v2257_v19 = vld [vmem:[%s3163_s1 + $0x240] ss:$8 sps:$4 sm:$0xff] (!%p150_p6)   ;;  %v2260_v21 = vld [vmem:[%s3163_s1 + $0x254] ss:$8 sps:$4 sm:$0xff] (!%p150_p6)   ;;  %v2262_v22 = vld [vmem:[%s3163_s1 + $0x50] ss:$8 sps:$4 sm:$0xff] (!%p150_p6)  }
  0x12   : > { %1376 = vmatprep.subr.bf16.mxu0 %v2242_v9  ;;  %v2263_v23 = vld [vmem:[%s3163_s1 + $0x250] ss:$8 sps:$4 sm:$0xff]   ;;  %v2264_v24 = vld [vmem:[%s3163_s1 + $0x64] ss:$8 sps:$4 sm:$0xff]   ;;  %v2268_v26 = vld [vmem:[%s3163_s1 + $0x60] ss:$8 sps:$4 sm:$0xff]  }
  0x13   : > { %v2266_v25 = vld [vmem:[%s3163_s1 + $0x264] ss:$8 sps:$4 sm:$0xff]   ;;  %v2269_v27 = vld [vmem:[%s3163_s1 + $0x260] ss:$8 sps:$4 sm:$0xff]   ;;  %v2270_v28 = vld [vmem:[%s3163_s1 + $0x74] ss:$8 sps:$4 sm:$0xff]  }
  0x14   : > { %1251 = vmatpush1.bf16.msra.mxu1 %v2244_v10  ;;  %s2713_s10 = smul.u32 6, %s2609_s15  ;;  %v2272_v29 = vld [vmem:[%s3163_s1 + $0x274] ss:$8 sps:$4 sm:$0xff]   ;;  %v2274_v30 = vld [vmem:[%s3163_s1 + $0x70] ss:$8 sps:$4 sm:$0xff]  }
  0x15   : > { %1377 = vmatpush1.bf16.msra.mxu0 %v2245_v11  ;;  %1252 = vmatprep.subr.bf16.mxu1 %v2246_v12  ;;  %v2275_v31 = vld [vmem:[%s3163_s1 + $0x270] ss:$8 sps:$4 sm:$0xff]   ;;  %v2276_v32 = vld [vmem:[%s3163_s1 + $0x84] ss:$8 sps:$4 sm:$0xff]   ;;  %v2280_v34 = vld [vmem:[%s3163_s1 + $0x80] ss:$8 sps:$4 sm:$0xff]  }
  0x16   : > { %1378 = vmatprep.subr.bf16.mxu0 %v2248_v13  ;;  %p184_p7 = scmp.lt.s32.totalorder %s2713_s10, 8  ;;  %v2278_v33 = vld [vmem:[%s3163_s1 + $0x284] ss:$8 sps:$4 sm:$0xff]   ;;  %v2281_v35 = vld [vmem:[%s3163_s1 + $0x280] ss:$8 sps:$4 sm:$0xff]   ;;  %s1623_s25 = ssub.s32 (%p2621_p4), 9, %s2713_s10 }
  0x17   : > { %v2282_v36 = vld [vmem:[%s3163_s1 + $0x94] ss:$8 sps:$4 sm:$0xff]   ;;  %v2286_v38 = vld [vmem:[%s3163_s1 + $0x90] ss:$8 sps:$4 sm:$0xff]   ;;  %v2288_v40 = vld [vmem:[%s3163_s1 + $0xa4] ss:$8 sps:$4 sm:$0xff]  }
  0x18   : > { %1253 = vmatpush1.bf16.msra.mxu1 %v2250_v14  ;;  %s185_s6 = scalar_select %p184_p7, %s2713_s10, 8  ;;  %v2284_v37 = vld [vmem:[%s3163_s1 + $0x294] ss:$8 sps:$4 sm:$0xff]   ;;  %v2287_v39 = vld [vmem:[%s3163_s1 + $0x290] ss:$8 sps:$4 sm:$0xff]  }
  0x19   : > { %1379 = vmatpush1.bf16.msra.mxu0 %v2251_v15  ;;  %1254 = vmatprep.subr.bf16.mxu1 %v2252_v16  ;;  %v2290_v41 = vld [vmem:[%s3163_s1 + $0x2a4] ss:$8 sps:$4 sm:$0xff]   ;;  %v2292_v42 = vld [vmem:[%s3163_s1 + $0xa0] ss:$8 sps:$4 sm:$0xff]   ;;  %v2294_v44 = vld [vmem:[%s3163_s1 + $0xb4] ss:$8 sps:$4 sm:$0xff]  }
  0x1a   : > { %1380 = vmatprep.subr.bf16.mxu0 %v2254_v17  ;;  %s2137_s22 = smul.u32 36, %s185_s6  ;;  %v2293_v43 = vld [vmem:[%s3163_s1 + $0x2a0] ss:$8 sps:$4 sm:$0xff]   ;;  %v2296_v45 = vld [vmem:[%s3163_s1 + $0x2b4] ss:$8 sps:$4 sm:$0xff]   ;;  %p1624_p8 = scmp.lt.s32.totalorder (%p2621_p4), %s1623_s25, 6 }
  0x1b   : > { %v2298_v46 = vld [vmem:[%s3163_s1 + $0xb0] ss:$8 sps:$4 sm:$0xff]   ;;  %v2300_v49 = vld [vmem:[%s3163_s1 + $0xc4] ss:$8 sps:$4 sm:$0xff]   ;;  %v2304_v52 = vld [vmem:[%s3163_s1 + $0xc0] ss:$8 sps:$4 sm:$0xff]  }
  0x1c   : > { %1255 = vmatpush1.bf16.msra.mxu1 %v2256_v18  ;;  %s2768_s6 = scalar_lea.vmem %s3162_s0, %s2137_s22  ;;  %v2299_v47 = vld [vmem:[%s3163_s1 + $0x2b0] ss:$8 sps:$4 sm:$0xff]   ;;  %v2302_v50 = vld [vmem:[%s3163_s1 + $0x2c4] ss:$8 sps:$4 sm:$0xff]   ;;  %v2305_v53 = vld [vmem:[%s3163_s1 + $0x2c0] ss:$8 sps:$4 sm:$0xff]  }
  0x1d   : > { %1381 = vmatpush1.bf16.msra.mxu0 %v2257_v19  ;;  %1256 = vmatprep.subr.bf16.mxu1 %v2258_v20  ;;  %v2326_v48 = vld [vmem:[%s2768_s6 + $0x4] ss:$36 sps:$4 sm:$0xff]   ;;  %v2332_v51 = vld [vmem:[%s2768_s6 + $0x14] ss:$36 sps:$4 sm:$0xff]   ;;  %s2059_s26 = smul.u32 (%p2621_p4), 48, %s2609_s15 }
  0x1e   : > { %1382 = vmatprep.subr.bf16.mxu0 %v2260_v21  ;;  %1278 = vmatprep.mubr.bf16.mxu1 %v2326_v48  ;;  %v2306_v54 = vld [vmem:[%s3163_s1 + $0xd4] ss:$8 sps:$4 sm:$0xff]   ;;  %v2310_v56 = vld [vmem:[%s3163_s1 + $0xd0] ss:$8 sps:$4 sm:$0xff]   ;;  %v2312_v58 = vld [vmem:[%s3163_s1 + $0xe4] ss:$8 sps:$4 sm:$0xff]  }
  0x1f   : > { %v2308_v55 = vld [vmem:[%s3163_s1 + $0x2d4] ss:$8 sps:$4 sm:$0xff]   ;;  %1404 = vmatprep.mubr.bf16.mxu0 %v2332_v51  ;;  %v2311_v57 = vld [vmem:[%s3163_s1 + $0x2d0] ss:$8 sps:$4 sm:$0xff]   ;;  %v2314_v59 = vld [vmem:[%s3163_s1 + $0x2e4] ss:$8 sps:$4 sm:$0xff]   ;;  %s3113_s29 = scalar_lea.vmem (%p2621_p4), %s3165_s3, %s2059_s26  }
  0x20   : > { %1257 = vmatpush1.bf16.msra.mxu1 %v2262_v22  ;;  %v2316_v60 = vld [vmem:[%s3163_s1 + $0xe0] ss:$8 sps:$4 sm:$0xff]   ;;  %v2318_v62 = vld [vmem:[%s3163_s1 + $0xf4] ss:$8 sps:$4 sm:$0xff]   ;;  %v2322_v0 = vld [vmem:[%s3163_s1 + $0xf0] ss:$8 sps:$4 sm:$0xff]  }
  0x21   : > { %1383 = vmatpush1.bf16.msra.mxu0 %v2263_v23  ;;  %1258 = vmatprep.subr.bf16.mxu1 %v2264_v24  ;;  %v2317_v61 = vld [vmem:[%s3163_s1 + $0x2e0] ss:$8 sps:$4 sm:$0xff]   ;;  %v2320_v63 = vld [vmem:[%s3163_s1 + $0x2f4] ss:$8 sps:$4 sm:$0xff]   ;;  %v2323_v1 = vld [vmem:[%s3163_s1 + $0x2f0] ss:$8 sps:$4 sm:$0xff]  }
  0x22   : > { %1384 = vmatprep.subr.bf16.mxu0 %v2266_v25  ;;  %v2329_v2 = vld [vmem:[%s3163_s1 + $0x104] ss:$8 sps:$4 sm:$0xff]   ;;  %v2327_v5 = vld [vmem:[%s3163_s1 + $0x100] ss:$8 sps:$4 sm:$0xff]   ;;  %v2330_v6 = vld [vmem:[%s2768_s6 + $0x10] ss:$36 sps:$4 sm:$0xff]  }
  0x23   : > { %v2335_v3 = vld [vmem:[%s3163_s1 + $0x304] ss:$8 sps:$4 sm:$0xff]   ;;  %v2333_v7 = vld [vmem:[%s3163_s1 + $0x300] ss:$8 sps:$4 sm:$0xff]   ;;  %v2338_v8 = vld [vmem:[%s3163_s1 + $0x114] ss:$8 sps:$4 sm:$0xff]  }
  0x24   : > { %1259 = vmatpush1.bf16.msra.mxu1 %v2268_v26  ;;  %v2324_v4 = vld [vmem:[%s2768_s6] ss:$36 sps:$4 sm:$0xff]   ;;  %v2341_v9 = vld [vmem:[%s3163_s1 + $0x314] ss:$8 sps:$4 sm:$0xff]   ;;  %v2336_v10 = vld [vmem:[%s3163_s1 + $0x110] ss:$8 sps:$4 sm:$0xff]  }
  0x25   : > { %1385 = vmatpush1.bf16.msra.mxu0 %v2269_v27  ;;  %1260 = vmatprep.subr.bf16.mxu1 %v2270_v28  ;;  %v2339_v11 = vld [vmem:[%s3163_s1 + $0x310] ss:$8 sps:$4 sm:$0xff]   ;;  %v2344_v12 = vld [vmem:[%s3163_s1 + $0x124] ss:$8 sps:$4 sm:$0xff]   ;;  %v2342_v14 = vld [vmem:[%s3163_s1 + $0x120] ss:$8 sps:$4 sm:$0xff]  }
  0x26   : > { %1386 = vmatprep.subr.bf16.mxu0 %v2272_v29  ;;  %v2347_v13 = vld [vmem:[%s3163_s1 + $0x324] ss:$8 sps:$4 sm:$0xff]   ;;  %v2345_v15 = vld [vmem:[%s3163_s1 + $0x320] ss:$8 sps:$4 sm:$0xff]   ;;  %v2350_v16 = vld [vmem:[%s3163_s1 + $0x134] ss:$8 sps:$4 sm:$0xff]  }
  0x27   : > { %v2353_v17 = vld [vmem:[%s3163_s1 + $0x334] ss:$8 sps:$4 sm:$0xff]   ;;  %v2348_v18 = vld [vmem:[%s3163_s1 + $0x130] ss:$8 sps:$4 sm:$0xff]   ;;  %v2356_v20 = vld [vmem:[%s3163_s1 + $0x144] ss:$8 sps:$4 sm:$0xff]  }
  0x28   : > { %1261 = vmatpush1.bf16.msra.mxu1 %v2274_v30  ;;  %v2351_v19 = vld [vmem:[%s3163_s1 + $0x330] ss:$8 sps:$4 sm:$0xff]   ;;  %v2359_v21 = vld [vmem:[%s3163_s1 + $0x344] ss:$8 sps:$4 sm:$0xff]   ;;  %v2354_v22 = vld [vmem:[%s3163_s1 + $0x140] ss:$8 sps:$4 sm:$0xff]  }
  0x29   : > { %1387 = vmatpush1.bf16.msra.mxu0 %v2275_v31  ;;  %1262 = vmatprep.subr.bf16.mxu1 %v2276_v32  ;;  %v2357_v23 = vld [vmem:[%s3163_s1 + $0x340] ss:$8 sps:$4 sm:$0xff]   ;;  %v2402_v24 = vld [vmem:[%s2768_s6 + $0x4c] ss:$36 sps:$4 sm:$0xff]   ;;  %v2362_v27 = vld [vmem:[%s3163_s1 + $0x154] ss:$8 sps:$4 sm:$0xff]  }
  0x2a   : > { %1388 = vmatprep.subr.bf16.mxu0 %v2278_v33  ;;  %v2404_v25 = vld [vmem:[%s2768_s6 + $0x5c] ss:$36 sps:$4 sm:$0xff]   ;;  %v2406_v26 = vld [vmem:[%s2768_s6 + $0x48] ss:$36 sps:$4 sm:$0xff]   ;;  %v2360_v30 = vld [vmem:[%s3163_s1 + $0x150] ss:$8 sps:$4 sm:$0xff]  }
  0x2b   : > { %v2365_v28 = vld [vmem:[%s3163_s1 + $0x354] ss:$8 sps:$4 sm:$0xff]   ;;  %v2363_v31 = vld [vmem:[%s3163_s1 + $0x350] ss:$8 sps:$4 sm:$0xff]   ;;  %v2368_v32 = vld [vmem:[%s3163_s1 + $0x164] ss:$8 sps:$4 sm:$0xff]  }
  0x2c   : > { %1263 = vmatpush1.bf16.msra.mxu1 %v2280_v34  ;;  %v2410_v29 = vld [vmem:[%s2768_s6 + $0x58] ss:$36 sps:$4 sm:$0xff]   ;;  %v2371_v33 = vld [vmem:[%s3163_s1 + $0x364] ss:$8 sps:$4 sm:$0xff]   ;;  %v2366_v34 = vld [vmem:[%s3163_s1 + $0x160] ss:$8 sps:$4 sm:$0xff]  }
  0x2d   : > { %1389 = vmatpush1.bf16.msra.mxu0 %v2281_v35  ;;  %1264 = vmatprep.subr.bf16.mxu1 %v2282_v36  ;;  %v2369_v35 = vld [vmem:[%s3163_s1 + $0x360] ss:$8 sps:$4 sm:$0xff]   ;;  %v2420_v36 = vld [vmem:[%s2768_s6 + $0x94] ss:$36 sps:$4 sm:$0xff]  }
  0x2e   : > { %1390 = vmatprep.subr.bf16.mxu0 %v2284_v37  ;;  %v2422_v37 = vld [vmem:[%s2768_s6 + $0xa4] ss:$36 sps:$4 sm:$0xff]   ;;  %v2389_v51 = vld [vmem:[%s3163_s1 + $0x394] ss:$8 sps:$4 sm:$0xff]  }
  0x2f   : > { %v2381_v48 = vld [vmem:[%s3163_s1 + $0x380] ss:$8 sps:$4 sm:$0xff]  }
  0x30   : > { %1265 = vmatpush1.bf16.msra.mxu1 %v2286_v38  ;;  %v2424_v38 = vld [vmem:[%s2768_s6 + $0x90] ss:$36 sps:$4 sm:$0xff]  }
  0x31   : > { %1391 = vmatpush1.bf16.msra.mxu0 %v2287_v39  ;;  %1266 = vmatprep.subr.bf16.mxu1 %v2288_v40  ;;  %v2374_v39 = vld [vmem:[%s3163_s1 + $0x174] ss:$8 sps:$4 sm:$0xff]  }
  0x32   : > { %1392 = vmatprep.subr.bf16.mxu0 %v2290_v41  ;;  %v2377_v40 = vld [vmem:[%s3163_s1 + $0x374] ss:$8 sps:$4 sm:$0xff]   ;;  %v2428_v41 = vld [vmem:[%s2768_s6 + $0xa0] ss:$36 sps:$4 sm:$0xff]  }
  0x34   : > { %1267 = vmatpush1.bf16.msra.mxu1 %v2292_v42  ;;  %v2372_v42 = vld [vmem:[%s3163_s1 + $0x170] ss:$8 sps:$4 sm:$0xff]  }
  0x35   : > { %1393 = vmatpush1.bf16.msra.mxu0 %v2293_v43  ;;  %1268 = vmatprep.subr.bf16.mxu1 %v2294_v44  ;;  %v2375_v43 = vld [vmem:[%s3163_s1 + $0x370] ss:$8 sps:$4 sm:$0xff]   ;;  %v2380_v44 = vld [vmem:[%s3163_s1 + $0x184] ss:$8 sps:$4 sm:$0xff]  }
  0x36   : > { %1394 = vmatprep.subr.bf16.mxu0 %v2296_v45  ;;  %v2383_v45 = vld [vmem:[%s3163_s1 + $0x384] ss:$8 sps:$4 sm:$0xff]  }
  0x38   : > { %1269 = vmatpush1.bf16.msra.mxu1 %v2298_v46  ;;  %v2378_v46 = vld [vmem:[%s3163_s1 + $0x180] ss:$8 sps:$4 sm:$0xff]  }
  0x39   : > { %1395 = vmatpush1.bf16.msra.mxu0 %v2299_v47  ;;  %1270 = vmatprep.subr.bf16.mxu1 %v2300_v49  ;;  %v2440_v47 = vld [vmem:[%s2768_s6 + $0xc] ss:$36 sps:$4 sm:$0xff]   ;;  %v2443_v49 = vld [vmem:[%s2768_s6 + $0x1c] ss:$36 sps:$4 sm:$0xff]  }
  0x3a   : > { %1396 = vmatprep.subr.bf16.mxu0 %v2302_v50  ;;  %v2386_v50 = vld [vmem:[%s3163_s1 + $0x194] ss:$8 sps:$4 sm:$0xff]  }
  0x3c   : > { %1271 = vmatpush1.bf16.msra.mxu1 %v2304_v52  ;;  %v2384_v52 = vld [vmem:[%s3163_s1 + $0x190] ss:$8 sps:$4 sm:$0xff]  }
  0x3d   : > { %1397 = vmatpush1.bf16.msra.mxu0 %v2305_v53  ;;  %1272 = vmatprep.subr.bf16.mxu1 %v2306_v54  ;;  %v2387_v53 = vld [vmem:[%s3163_s1 + $0x390] ss:$8 sps:$4 sm:$0xff]   ;;  %v2392_v54 = vld [vmem:[%s3163_s1 + $0x1a4] ss:$8 sps:$4 sm:$0xff]  }
  0x3e   : > { %1398 = vmatprep.subr.bf16.mxu0 %v2308_v55  ;;  %v2395_v55 = vld [vmem:[%s3163_s1 + $0x3a4] ss:$8 sps:$4 sm:$0xff]  }
  0x40   : > { %1273 = vmatpush1.bf16.msra.mxu1 %v2310_v56  ;;  %v2390_v56 = vld [vmem:[%s3163_s1 + $0x1a0] ss:$8 sps:$4 sm:$0xff]  }
  0x41   : > { %1399 = vmatpush1.bf16.msra.mxu0 %v2311_v57  ;;  %1274 = vmatprep.subr.bf16.mxu1 %v2312_v58  ;;  %v2393_v57 = vld [vmem:[%s3163_s1 + $0x3a0] ss:$8 sps:$4 sm:$0xff]   ;;  %v2398_v58 = vld [vmem:[%s3163_s1 + $0x1b4] ss:$8 sps:$4 sm:$0xff]  }
  0x42   : > { %1400 = vmatprep.subr.bf16.mxu0 %v2314_v59  ;;  %v2401_v59 = vld [vmem:[%s3163_s1 + $0x3b4] ss:$8 sps:$4 sm:$0xff]  }
  0x44   : > { %1275 = vmatpush1.bf16.msra.mxu1 %v2316_v60  ;;  %v2396_v60 = vld [vmem:[%s3163_s1 + $0x1b0] ss:$8 sps:$4 sm:$0xff]  }
  0x45   : > { %1401 = vmatpush1.bf16.msra.mxu0 %v2317_v61  ;;  %1276 = vmatprep.subr.bf16.mxu1 %v2318_v62  ;;  %v2399_v61 = vld [vmem:[%s3163_s1 + $0x3b0] ss:$8 sps:$4 sm:$0xff]   ;;  %v2409_v62 = vld [vmem:[%s3163_s1 + $0x1c4] ss:$8 sps:$4 sm:$0xff]  }
  0x46   : > { %1402 = vmatprep.subr.bf16.mxu0 %v2320_v63  ;;  %v2413_v63 = vld [vmem:[%s3163_s1 + $0x3c4] ss:$8 sps:$4 sm:$0xff]  }
  0x48   : > { %1277 = vmatpush1.bf16.msra.mxu1 %v2322_v0  ;;  %v2407_v0 = vld [vmem:[%s3163_s1 + $0x1c0] ss:$8 sps:$4 sm:$0xff]  }
  0x49   : > { %1403 = vmatpush1.bf16.msra.mxu0 %v2323_v1  ;;  %1309 = vmatprep.subr.bf16.mxu1 %v2329_v2  ;;  %v2411_v1 = vld [vmem:[%s3163_s1 + $0x3c0] ss:$8 sps:$4 sm:$0xff]   ;;  %v2416_v2 = vld [vmem:[%s3163_s1 + $0x1d4] ss:$8 sps:$4 sm:$0xff]  }
  0x4a   : > { %1435 = vmatprep.subr.bf16.mxu0 %v2335_v3  ;;  %v2419_v3 = vld [vmem:[%s3163_s1 + $0x3d4] ss:$8 sps:$4 sm:$0xff]  }
  0x4b   : > { %1279 = vmatmul.mubr.bf16.vlgmr.msra.gmra.mrb[0].mxu1 %v2324_v4  ;;  %v2414_v4 = vld [vmem:[%s3163_s1 + $0x1d0] ss:$8 sps:$4 sm:$0xff]  }
  0x4c   : > { %1405 = vmatmul.mubr.bf16.vlgmr.msra.gmra.mrb[0].mxu0 %v2330_v6  ;;  %1310 = vmatpush1.bf16.msra.mxu1 %v2327_v5  ;;  %v2417_v5 = vld [vmem:[%s3163_s1 + $0x3d0] ss:$8 sps:$4 sm:$0xff]   ;;  %v2427_v6 = vld [vmem:[%s3163_s1 + $0x1e4] ss:$8 sps:$4 sm:$0xff]  }
  0x4d   : > { %1436 = vmatpush1.bf16.msra.mxu0 %v2333_v7  ;;  %1311 = vmatprep.subr.bf16.mxu1 %v2338_v8  ;;  %v2431_v7 = vld [vmem:[%s3163_s1 + $0x3e4] ss:$8 sps:$4 sm:$0xff]   ;;  %v2425_v8 = vld [vmem:[%s3163_s1 + $0x1e0] ss:$8 sps:$4 sm:$0xff]  }
  0x4e   : > { %1437 = vmatprep.subr.bf16.mxu0 %v2341_v9  ;;  %1288 = vmatprep.mubr.bf16.mxu1 %v2402_v24  ;;  %v2429_v9 = vld [vmem:[%s3163_s1 + $0x3e0] ss:$8 sps:$4 sm:$0xff]  }
  0x4f   : > { %1414 = vmatprep.mubr.bf16.mxu0 %v2404_v25  ;;  %v2455_v24 = vld [vmem:[%s2768_s6 + $0x60] ss:$36 sps:$4 sm:$0xff]  }
  0x50   : > { %1312 = vmatpush1.bf16.msra.mxu1 %v2336_v10  ;;  %v2434_v10 = vld [vmem:[%s3163_s1 + $0x1f4] ss:$8 sps:$4 sm:$0xff]   ;;  %v2456_v25 = vld [vmem:[%s3163_s1 + $0x420] ss:$8 sps:$4 sm:$0xff]  }
  0x51   : > { %1438 = vmatpush1.bf16.msra.mxu0 %v2339_v11  ;;  %1313 = vmatprep.subr.bf16.mxu1 %v2344_v12  ;;  %v2437_v11 = vld [vmem:[%s3163_s1 + $0x3f4] ss:$8 sps:$4 sm:$0xff]   ;;  %v2432_v12 = vld [vmem:[%s3163_s1 + $0x1f0] ss:$8 sps:$4 sm:$0xff]  }
  0x52   : > { %1439 = vmatprep.subr.bf16.mxu0 %v2347_v13  ;;  %v2435_v13 = vld [vmem:[%s3163_s1 + $0x3f0] ss:$8 sps:$4 sm:$0xff]  }
  0x53   : > { %1289 = vmatmul.mubr.bf16.gmra.mrb[4].mxu1 %v2406_v26  ;;  %v2461_v26 = vld [vmem:[%s3163_s1 + $0x434] ss:$8 sps:$4 sm:$0xff]  }
  0x54   : > { %1314 = vmatpush1.bf16.msra.mxu1 %v2342_v14  ;;  %1415 = vmatmul.mubr.bf16.gmra.mrb[4].mxu0 %v2410_v29  ;;  %v2446_v14 = vld [vmem:[%s3163_s1 + $0x404] ss:$8 sps:$4 sm:$0xff]   ;;  %v2459_v29 = vld [vmem:[%s3163_s1 + $0x430] ss:$8 sps:$4 sm:$0xff]  }
  0x55   : > { %1440 = vmatpush1.bf16.msra.mxu0 %v2345_v15  ;;  %1315 = vmatprep.subr.bf16.mxu1 %v2350_v16  ;;  %v2438_v15 = vld [vmem:[%s2768_s6 + $0x8] ss:$36 sps:$4 sm:$0xff]   ;;  %v2441_v16 = vld [vmem:[%s2768_s6 + $0x18] ss:$36 sps:$4 sm:$0xff]  }
  0x56   : > { %1441 = vmatprep.subr.bf16.mxu0 %v2353_v17  ;;  %1298 = vmatprep.mubr.bf16.mxu1 %v2420_v36  ;;  %v2444_v17 = vld [vmem:[%s3163_s1 + $0x400] ss:$8 sps:$4 sm:$0xff]   ;;  %v2476_v36 = vld [vmem:[%s3163_s1 + $0x464] ss:$8 sps:$4 sm:$0xff]  }
  0x57   : > { %1424 = vmatprep.mubr.bf16.mxu0 %v2422_v37  ;;  %v2575_v37 = vmov 0  }
  0x58   : > { %1316 = vmatpush1.bf16.msra.mxu1 %v2348_v18  ;;  %v2449_v18 = vld [vmem:[%s3163_s1 + $0x414] ss:$8 sps:$4 sm:$0xff]  }
  0x59   : > { %1442 = vmatpush1.bf16.msra.mxu0 %v2351_v19  ;;  %1317 = vmatprep.subr.bf16.mxu1 %v2356_v20  ;;  %v2450_v19 = vld [vmem:[%s2768_s6 + $0x54] ss:$36 sps:$4 sm:$0xff]   ;;  %v2452_v20 = vld [vmem:[%s2768_s6 + $0x64] ss:$36 sps:$4 sm:$0xff]  }
  0x5a   : > { %1443 = vmatprep.subr.bf16.mxu0 %v2359_v21  ;;  %v2447_v21 = vld [vmem:[%s3163_s1 + $0x410] ss:$8 sps:$4 sm:$0xff]  }
  0x5b   : > { %1299 = vmatmul.mubr.bf16.gmra.mrb[8].mxu1 %v2424_v38  ;;  %v2474_v38 = vld [vmem:[%s3163_s1 + $0x460] ss:$8 sps:$4 sm:$0xff]  }
  0x5c   : > { %1318 = vmatpush1.bf16.msra.mxu1 %v2354_v22  ;;  %1425 = vmatmul.mubr.bf16.gmra.mrb[8].mxu0 %v2428_v41  ;;  %v2458_v22 = vld [vmem:[%s3163_s1 + $0x424] ss:$8 sps:$4 sm:$0xff]  }
  0x5d   : > { %1444 = vmatpush1.bf16.msra.mxu0 %v2357_v23  ;;  %1319 = vmatprep.subr.bf16.mxu1 %v2362_v27  ;;  %v2454_v23 = vld [vmem:[%s2768_s6 + $0x50] ss:$36 sps:$4 sm:$0xff]   ;;  %v2462_v27 = vld [vmem:[%s2768_s6 + $0x9c] ss:$36 sps:$4 sm:$0xff]  }
  0x5e   : > { %1445 = vmatprep.subr.bf16.mxu0 %v2365_v28  ;;  %1341 = vmatprep.mubr.bf16.mxu1 %v2440_v47  ;;  %v2464_v28 = vld [vmem:[%s2768_s6 + $0xac] ss:$36 sps:$4 sm:$0xff]   ;;  %v2480_v41 = vld [vmem:[%s2768_s6 + $0x20] ss:$36 sps:$4 sm:$0xff]  }
  0x5f   : > { %1467 = vmatprep.mubr.bf16.mxu0 %v2443_v49 }
  0x60   : > { %1320 = vmatpush1.bf16.msra.mxu1 %v2360_v30  ;;  %v2470_v30 = vld [vmem:[%s3163_s1 + $0x444] ss:$8 sps:$4 sm:$0xff]  }
  0x61   : > { %1446 = vmatpush1.bf16.msra.mxu0 %v2363_v31  ;;  %1321 = vmatprep.subr.bf16.mxu1 %v2368_v32  ;;  %v2466_v31 = vld [vmem:[%s2768_s6 + $0x98] ss:$36 sps:$4 sm:$0xff]   ;;  %v2467_v32 = vld [vmem:[%s2768_s6 + $0xa8] ss:$36 sps:$4 sm:$0xff]  }
  0x62   : > { %1447 = vmatprep.subr.bf16.mxu0 %v2371_v33  ;;  %v2468_v33 = vld [vmem:[%s3163_s1 + $0x440] ss:$8 sps:$4 sm:$0xff]  }
  0x64   : > { %1322 = vmatpush1.bf16.msra.mxu1 %v2366_v34  ;;  %v2473_v34 = vld [vmem:[%s3163_s1 + $0x454] ss:$8 sps:$4 sm:$0xff]  }
  0x65   : > { %1448 = vmatpush1.bf16.msra.mxu0 %v2369_v35  ;;  %1323 = vmatprep.subr.bf16.mxu1 %v2374_v39  ;;  %v2471_v35 = vld [vmem:[%s3163_s1 + $0x450] ss:$8 sps:$4 sm:$0xff]   ;;  %v2479_v39 = vld [vmem:[%s3163_s1 + $0x474] ss:$8 sps:$4 sm:$0xff]  }
  0x66   : > { %1449 = vmatprep.subr.bf16.mxu0 %v2377_v40  ;;  %v2477_v40 = vld [vmem:[%s3163_s1 + $0x470] ss:$8 sps:$4 sm:$0xff]  }
  0x68   : > { %1324 = vmatpush1.bf16.msra.mxu1 %v2372_v42  ;;  %v2481_v42 = vld [vmem:[%s2768_s6 + $0x68] ss:$36 sps:$4 sm:$0xff]  }
  0x69   : > { %1450 = vmatpush1.bf16.msra.mxu0 %v2375_v43  ;;  %1325 = vmatprep.subr.bf16.mxu1 %v2380_v44  ;;  %v2482_v43 = vld [vmem:[%s2768_s6 + $0xb0] ss:$36 sps:$4 sm:$0xff]   ;;  %v378_v44 = vlaneseq  ;;  %s175_s6 = sand.u32 1, %s2533_s12  }
  0x6a   : > { %1451 = vmatprep.subr.bf16.mxu0 %v2383_v45  ;;  %s2136_s24 = smul.u32 48, %s175_s6 }
  0x6b   : > { %v379_v45 = vshrl.u32 %v378_v44, 7 }
  0x6c   : > { %1326 = vmatpush1.bf16.msra.mxu1 %v2378_v46  ;;  %s3098_s12 = scalar_lea.vmem [#allocation2], %s2136_s24  }
  0x6d   : > { %1452 = vmatpush1.bf16.msra.mxu0 %v2381_v48  ;;  %1327 = vmatprep.subr.bf16.mxu1 %v2386_v50  ;;  %v380_v49 = vsub.s32 0, %v379_v45 }
  0x6e   : > { %1453 = vmatprep.subr.bf16.mxu0 %v2389_v51  ;;  %v376_v51 = vld [vmem:[%s3164_s2] sm:$0x3] }
  0x70   : > { %1328 = vmatpush1.bf16.msra.mxu1 %v2384_v52  ;;  %v384_v52 = vsub.s32 1, %v379_v45 }
  0x71   : > { %1454 = vmatpush1.bf16.msra.mxu0 %v2387_v53  ;;  %1329 = vmatprep.subr.bf16.mxu1 %v2392_v54  ;;  %v381_v53 = vrot.slane %v376_v51, %v380_v49 }
  0x72   : > { %1455 = vmatprep.subr.bf16.mxu0 %v2395_v55  ;;  %v385_v54 = vrot.slane %v376_v51, %v384_v52 }
  0x74   : > { %1330 = vmatpush1.bf16.msra.mxu1 %v2390_v56 }
  0x75   : > { %1456 = vmatpush1.bf16.msra.mxu0 %v2393_v57  ;;  %1331 = vmatprep.subr.bf16.mxu1 %v2398_v58 }
  0x76   : > { %1457 = vmatprep.subr.bf16.mxu0 %v2401_v59 }
  0x78   : > { %1332 = vmatpush1.bf16.msra.mxu1 %v2396_v60 }
  0x79   : > { %1458 = vmatpush1.bf16.msra.mxu0 %v2399_v61  ;;  %1333 = vmatprep.subr.bf16.mxu1 %v2409_v62 }
  0x7a   : > { %1459 = vmatprep.subr.bf16.mxu0 %v2413_v63 }
  0x7c   : > { %1334 = vmatpush1.bf16.msra.mxu1 %v2407_v0 }
  0x7d   : > { %1460 = vmatpush1.bf16.msra.mxu0 %v2411_v1  ;;  %1335 = vmatprep.subr.bf16.mxu1 %v2416_v2 }
  0x7e   : > { %1461 = vmatprep.subr.bf16.mxu0 %v2419_v3 }
  0x80   : > { %1336 = vmatpush1.bf16.msra.mxu1 %v2414_v4 }
  0x81   : > { %1462 = vmatpush1.bf16.msra.mxu0 %v2417_v5  ;;  %1337 = vmatprep.subr.bf16.mxu1 %v2427_v6 }
  0x82   : > { %1463 = vmatprep.subr.bf16.mxu0 %v2431_v7 }
  0x84   : > { %1338 = vmatpush1.bf16.msra.mxu1 %v2425_v8 }
  0x85   : > { %1464 = vmatpush1.bf16.msra.mxu0 %v2429_v9  ;;  %1339 = vmatprep.subr.bf16.mxu1 %v2434_v10 }
  0x86   : > { %1465 = vmatprep.subr.bf16.mxu0 %v2437_v11 }
  0x88   : > { %1340 = vmatpush1.bf16.msra.mxu1 %v2432_v12 }
  0x89   : > { %1466 = vmatpush1.bf16.msra.mxu0 %v2435_v13  ;;  %2060 = vmatprep.subr.bf16.mxu1 %v2446_v14 }
  0x8a   : > { %1498 = vmatprep.subr.bf16.mxu0 %v2446_v14 }
  0x8b   : > { %1342 = vmatmul.mubr.bf16.vlgmr.msra.gmra.mrb[0].mxu1 %v2438_v15 }
  0x8c   : > { %1468 = vmatmul.mubr.bf16.vlgmr.msra.gmra.mrb[0].mxu0 %v2441_v16  ;;  %2068 = vmatpush1.bf16.msra.mxu1 %v2444_v17 }
  0x8d   : > { %1499 = vmatpush1.bf16.msra.mxu0 %v2444_v17  ;;  %2061 = vmatprep.subr.bf16.mxu1 %v2449_v18 }
  0x8e   : > { %1500 = vmatprep.subr.bf16.mxu0 %v2449_v18  ;;  %1351 = vmatprep.mubr.bf16.mxu1 %v2450_v19 }
  0x8f   : > { %1477 = vmatprep.mubr.bf16.mxu0 %v2452_v20 }
  0x90   : > { %2069 = vmatpush1.bf16.msra.mxu1 %v2447_v21 }
  0x91   : > { %1501 = vmatpush1.bf16.msra.mxu0 %v2447_v21  ;;  %2062 = vmatprep.subr.bf16.mxu1 %v2458_v22 }
  0x92   : > { %1502 = vmatprep.subr.bf16.mxu0 %v2458_v22 }
  0x93   : > { %1352 = vmatmul.mubr.bf16.gmra.mrb[4].mxu1 %v2454_v23 }
  0x94   : > { %1478 = vmatmul.mubr.bf16.gmra.mrb[4].mxu0 %v2455_v24  ;;  %2070 = vmatpush1.bf16.msra.mxu1 %v2456_v25 }
  0x95   : > { %1503 = vmatpush1.bf16.msra.mxu0 %v2456_v25  ;;  %2063 = vmatprep.subr.bf16.mxu1 %v2461_v26 }
  0x96   : > { %1504 = vmatprep.subr.bf16.mxu0 %v2461_v26  ;;  %1361 = vmatprep.mubr.bf16.mxu1 %v2462_v27 }
  0x97   : > { %1487 = vmatprep.mubr.bf16.mxu0 %v2464_v28 }
  0x98   : > { %2071 = vmatpush1.bf16.msra.mxu1 %v2459_v29 }
  0x99   : > { %1505 = vmatpush1.bf16.msra.mxu0 %v2459_v29  ;;  %2064 = vmatprep.subr.bf16.mxu1 %v2470_v30 }
  0x9a   : > { %1506 = vmatprep.subr.bf16.mxu0 %v2470_v30 }
  0x9b   : > { %1362 = vmatmul.mubr.bf16.gmra.mrb[8].mxu1 %v2466_v31 }
  0x9c   : > { %1488 = vmatmul.mubr.bf16.gmra.mrb[8].mxu0 %v2467_v32  ;;  %2072 = vmatpush1.bf16.msra.mxu1 %v2468_v33 }
  0x9d   : > { %1507 = vmatpush1.bf16.msra.mxu0 %v2468_v33  ;;  %2065 = vmatprep.subr.bf16.mxu1 %v2473_v34 }
  0x9e   : > { %1508 = vmatprep.subr.bf16.mxu0 %v2473_v34  ;;  %1530 = vmatprep.mubr.bf16.mxu0 %v2575_v37 }
  0x9f   : > { %1540 = vmatprep.mubr.bf16.mxu1 %v2575_v37 }
  0xa0   : > { %2073 = vmatpush1.bf16.msra.mxu1 %v2471_v35 }
  0xa1   : > { %1509 = vmatpush1.bf16.msra.mxu0 %v2471_v35  ;;  %2066 = vmatprep.subr.bf16.mxu1 %v2476_v36 }
  0xa2   : > { %1510 = vmatprep.subr.bf16.mxu0 %v2476_v36 }
  0xa4   : > { %2074 = vmatpush1.bf16.msra.mxu1 %v2474_v38 }
  0xa5   : > { %1511 = vmatpush1.bf16.msra.mxu0 %v2474_v38  ;;  %2067 = vmatprep.subr.bf16.mxu1 %v2479_v39 }
  0xa6   : > { %1512 = vmatprep.subr.bf16.mxu0 %v2479_v39 }
  0xa8   : > { %2075 = vmatpush1.bf16.msra.mxu1 %v2477_v40 }
  0xa9   : > { %1513 = vmatpush1.bf16.msra.mxu0 %v2477_v40 }
  0xab   : > { %1541 = vmatmul.mubr.bf16.vlgmr.msra.gmra.mrb[12].mxu1 %v2481_v42 }
  0xac   : > { %1531 = vmatmul.mubr.bf16.vlgmr.msra.gmra.mrb[0].mxu0 %v2480_v41  ;;  %1550 = vmatprep.mubr.bf16.mxu1 %v2575_v37 }
  0xb3   : > { %1551 = vmatmul.mubr.bf16.gmra.mrb[16].mxu1 %v2482_v43 }
 0x15e   : > { %v1343_v46 = vpop.f32.mrb[0].mxu1 }
 0x15f   : > { %v1345_v47 = vpop.f32.mrb[1].mxu1  ;;  %v2076_v23 = vadd.f32 %v1343_v46, %v381_v53 }
 0x160   : > { %v1347_v48 = vpop.f32.mrb[2].mxu1  ;;  %v2078_v24 = vadd.f32 %v1345_v47, %v385_v54 }
 0x161   : > { %v1349_v50 = vpop.f32.mrb[3].mxu1  ;;  %v2080_v27 = vadd.f32 %v1347_v48, %v381_v53 }
 0x162   : > { %v2082_v32 = vadd.f32 %v1349_v50, %v385_v54 }
 0x166   : > { %v1353_v55 = vpop.f32.mrb[4].mxu1 }
 0x167   : > { %v1479_v56 = vpop.f32.mrb[4].mxu0  ;;  %v2084_v57 = vadd.f32 %v1353_v55, %v381_v53  ;;  %v1355_v58 = vpop.f32.mrb[5].mxu1 }
 0x168   : > { %v1481_v59 = vpop.f32.mrb[5].mxu0  ;;  %v2087_v60 = vadd.f32 %v1355_v58, %v385_v54  ;;  %v1357_v61 = vpop.f32.mrb[6].mxu1 }
 0x169   : > { %v1483_v62 = vpop.f32.mrb[6].mxu0  ;;  %v2085_v63 = vadd.f32 %v2084_v57, %v1479_v56  ;;  %v2090_v0 = vadd.f32 %v1357_v61, %v381_v53  ;;  %v1359_v1 = vpop.f32.mrb[7].mxu1 }
 0x16a   : > { %v1485_v2 = vpop.f32.mrb[7].mxu0  ;;  %v2088_v3 = vadd.f32 %v2087_v60, %v1481_v59  ;;  %v2093_v4 = vadd.f32 %v1359_v1, %v385_v54 }
 0x16b   : > { %v2091_v5 = vadd.f32 %v2090_v0, %v1483_v62 }
 0x16c   : > { %v2094_v6 = vadd.f32 %v2093_v4, %v1485_v2 }
 0x16e   : > { %v1363_v7 = vpop.f32.mrb[8].mxu1 }
 0x16f   : > { %v1489_v8 = vpop.f32.mrb[8].mxu0  ;;  %v2096_v9 = vadd.f32 %v1363_v7, %v381_v53  ;;  %v1365_v10 = vpop.f32.mrb[9].mxu1 }
 0x170   : > { %v1491_v11 = vpop.f32.mrb[9].mxu0  ;;  %v2099_v12 = vadd.f32 %v1365_v10, %v385_v54  ;;  %v1367_v13 = vpop.f32.mrb[10].mxu1 }
 0x171   : > { %v1493_v14 = vpop.f32.mrb[10].mxu0  ;;  %v2097_v15 = vadd.f32 %v2096_v9, %v1489_v8  ;;  %v2102_v16 = vadd.f32 %v1367_v13, %v381_v53  ;;  %v1369_v17 = vpop.f32.mrb[11].mxu1 }
 0x172   : > { %v1495_v18 = vpop.f32.mrb[11].mxu0  ;;  %v2100_v19 = vadd.f32 %v2099_v12, %v1491_v11  ;;  %v2105_v20 = vadd.f32 %v1369_v17, %v385_v54 }
 0x173   : > { %v2103_v21 = vadd.f32 %v2102_v16, %v1493_v14 }
 0x174   : > { %v2106_v22 = vadd.f32 %v2105_v20, %v1495_v18 }
 0x17e   : > { %v1542_v26 = vpop.f32.mrb[12].mxu1 }
 0x17f   : > { %v1532_v25 = vpop.f32.mrb[0].mxu0  ;;  %v2086_v29 = vadd.f32 %v2085_v63, %v1542_v26  ;;  %v1544_v31 = vpop.f32.mrb[13].mxu1 }
 0x180   : > { %v2077_v28 = vadd.f32 %v2076_v23, %v1532_v25  ;;  %v1534_v30 = vpop.f32.mrb[1].mxu0  ;;  %v2089_v34 = vadd.f32 %v2088_v3, %v1544_v31  ;;  %v1546_v36 = vpop.f32.mrb[14].mxu1 }
 0x181   : > { %v2079_v33 = vadd.f32 %v2078_v24, %v1534_v30  ;;  %v1536_v35 = vpop.f32.mrb[2].mxu0  ;;  %v1565_v38 = vmax.f32 %v2086_v29, 0.0  ;;  %v2092_v40 = vadd.f32 %v2091_v5, %v1546_v36  ;;  %v1548_v42 = vpop.f32.mrb[15].mxu1 }
 0x182   : > { %v1561_v37 = vmax.f32 %v2077_v28, 0.0  ;;  %v2081_v39 = vadd.f32 %v2080_v27, %v1536_v35  ;;  %v1538_v41 = vpop.f32.mrb[3].mxu0  ;;  %v1566_v44 = vmax.f32 %v2089_v34, 0.0  ;;  %v2095_v46 = vadd.f32 %v2094_v6, %v1548_v42 }
 0x183   : > { %v1562_v43 = vmax.f32 %v2079_v33, 0.0  ;;  %v2083_v45 = vadd.f32 %v2082_v32, %v1538_v41  ;;  %v1567_v48 = vmax.f32 %v2092_v40, 0.0 }
 0x184   : > { %v1563_v47 = vmax.f32 %v2081_v39, 0.0  ;;  %v2052_v51 = vpack.c.bf16 %v1566_v44, %v1565_v38  ;;  %v1568_v50 = vmax.f32 %v2095_v46, 0.0 }
 0x185   : > { %v2050_v49 = vpack.c.bf16 %v1562_v43, %v1561_v37  ;;  %v1564_v52 = vmax.f32 %v2083_v45, 0.0 }
 0x186   : > { %1611 = vst [vmem:[%s3098_s12 + $0x10] sm:$0xff] %v2052_v51  ;;  %v2053_v54 = vpack.c.bf16 %v1568_v50, %v1567_v48  ;;  %v1552_v55 = vpop.f32.mrb[16].mxu1 }
 0x187   : > { %1609 = vst [vmem:[%s3098_s12] sm:$0xff] %v2050_v49  ;;  %v2051_v53 = vpack.c.bf16 %v1564_v52, %v1563_v47  ;;  %v2098_v56 = vadd.f32 %v2097_v15, %v1552_v55  ;;  %v1554_v57 = vpop.f32.mrb[17].mxu1 }
 0x188   : > { %1612 = vst [vmem:[%s3098_s12 + $0x18] sm:$0xff] %v2053_v54  ;;  %v2101_v58 = vadd.f32 %v2100_v19, %v1554_v57  ;;  %v1556_v59 = vpop.f32.mrb[18].mxu1 }
 0x189   : > { %1610 = vst [vmem:[%s3098_s12 + $0x8] sm:$0xff] %v2051_v53  ;;  %v1569_v60 = vmax.f32 %v2098_v56, 0.0  ;;  %v2104_v61 = vadd.f32 %v2103_v21, %v1556_v59  ;;  %v1558_v62 = vpop.f32.mrb[19].mxu1 }
 0x18a   : > { %v1570_v63 = vmax.f32 %v2101_v58, 0.0  ;;  %v2107_v0 = vadd.f32 %v2106_v22, %v1558_v62  ;;  %1621 = sbr.rel (!%p2621_p4) target bundleno = 462 (0x1ce), region = 36 }
 0x18b   : > { %v1571_v1 = vmax.f32 %v2104_v61, 0.0 }
 0x18c   : > { %v2054_v2 = vpack.c.bf16 %v1570_v63, %v1569_v60  ;;  %v1572_v3 = vmax.f32 %v2107_v0, 0.0 }
 0x18e   : > { %1613 = vst [vmem:[%s3098_s12 + $0x20] sm:$0xff] %v2054_v2  ;;  %v2055_v4 = vpack.c.bf16 %v1572_v3, %v1571_v1 }
 0x190   : > { %1614 = vst [vmem:[%s3098_s12 + $0x28] sm:$0xff] %v2055_v4 }
 0x191   : > { %s3174_s25 = smov (!%p1624_p8, %s1623_s25), 6 }
 0x192   : > { %s2056_s30 = sshll.u32 %s3174_s25, 7 }
 0x193   : > { %p2041_p9 = scmp.eq.s32.totalorder %s2056_s30, 0 }
 0x194   : > { %2483 = sdivrem.u32 (!%p2041_p9), %s3174_s25, 6 }
 0x195   : > { %1634 = sbr.rel (%p2041_p9) target bundleno = 462 (0x1ce), region = 40 }
 0x19d   : > { %s3119_s20 = spop.drf %2483 }
 0x19e   : > { %p2042_p10 = scmp.le.s32.totalorder %s3119_s20, 0 }
 0x19f   : > { %s3167_s15 = smov (!%p2042_p10), %s3113_s29  ;;  %s3168_s10 = smov (!%p2042_p10), %s3098_s12 }
 0x1a0   : > { %1810 = sbr.rel (%p2042_p10) target bundleno = 433 (0x1b1), region = 116  ;;  %s3128_s4 = smov (!%p2042_p10), 0  }
 0x1a1   : > { %s3130_s5 = smov (!%p2042_p10), 0  }
 0x1a7 LB: >> { %v1708_v5 = vld [vmem:[%s2549_s10] sm:$0xff]  ;;  %v1710_v6 = vld [vmem:[%s2549_s10 + $0x8] sm:$0xff]  ;;  %v1712_v7 = vld [vmem:[%s2549_s10 + $0x10] sm:$0xff]  ;;  %s1720_s7 = sadd.s32 1, %s2553_s4  ;;  %s1702_s5 = sadd.s32 1, %s2557_s5   ;;  %s2557_s5 = sphi %s3130_s5, %s1702_s5   ;;  %s2553_s4 = sphi %s3128_s4, %s3169_s4   ;;  %s2549_s10 = sphi %s3168_s10, %s1725_s10   ;;  %s2545_s15 = sphi %s3167_s15, %s1726_s15  }
 0x1a8   : >> { %1709 = vst [vmem:[%s2545_s15] sm:$0xff] %v1708_v5  ;;  %1711 = vst [vmem:[%s2545_s15 + $0x8] sm:$0xff] %v1710_v6  ;;  %v1714_v8 = vld [vmem:[%s2549_s10 + $0x18] sm:$0xff]  ;;  %v1716_v9 = vld [vmem:[%s2549_s10 + $0x20] sm:$0xff]  ;;  %p1721_p11 = scmp.ge.s32.totalorder %s1720_s7, %s3119_s20  ;;  %p1701_p12 = scmp.ge.s32.totalorder %s1702_s5, %s3119_s20 }
 0x1a9   : >> { %1713 = vst [vmem:[%s2545_s15 + $0x10] sm:$0xff] %v1712_v7  ;;  %v1718_v10 = vld [vmem:[%s2549_s10 + $0x28] sm:$0xff]  ;;  %1715 = vst [vmem:[%s2545_s15 + $0x18] sm:$0xff] %v1714_v8 }
 0x1aa   : >> { %1717 = vst [vmem:[%s2545_s15 + $0x20] sm:$0xff] %v1716_v9  ;;  %1719 = vst [vmem:[%s2545_s15 + $0x28] sm:$0xff] %v1718_v10  ;;  %s3176_s7 = smov (%p1721_p11, %s1720_s7), 0  ;;  %1704 = sbr.rel (!%p1701_p12) target bundleno = 423 (0x1a7), region = 122 }
 0x1ab   : >> { %s1723_s8 = smul.u32 48, %s3176_s7  ;;  %s3169_s4 = smov %s3176_s7 }
 0x1ad   : >> { %s1725_s10 = scalar_lea.vmem %s3098_s12, %s1723_s8 [#allocation2]   ;;  %s1726_s15 = scalar_lea.vmem %s3113_s29, %s1723_s8  }
 0x1b1 PF: > { %2485 = sdivrem.u32 %s3174_s25, 6 }
 0x1b2   : > { %s2043_s9 = smul.u32 48, %s3119_s20 }
 0x1b4   : > { %s1731_s11 = scalar_lea.vmem %s3098_s12, %s2043_s9 [#allocation2]   ;;  %s1733_s14 = scalar_lea.vmem %s3113_s29, %s2043_s9  }
 0x1ba   : > { %s2486_s17 = spop.drf %2485 }
 0x1bb   : > { %p2045_p13 = scmp.le.s32.totalorder %s2486_s17, 0 }
 0x1bc   : > { %s2559_s18 = smov (!%p2045_p13), %s1733_s14   ;;  %s2563_s21 = smov (!%p2045_p13), %s1731_s11  }
 0x1bd   : > { %1824 = sbr.rel (%p2045_p13) target bundleno = 462 (0x1ce), region = 127  ;;  %s2567_s22 = smov (!%p2045_p13), 0  }
 0x1be   : > { %s2571_s23 = smov (!%p2045_p13), 0  }
 0x1c4 LB: >> { %v1743_v11 = vld [vmem:[%s2565_s21] sm:$0xff]  ;;  %s1745_s6 = sadd.s32 1, %s2569_s22  ;;  %s1737_s23 = sadd.s32 1, %s2573_s23   ;;  %s2573_s23 = sphi %s2571_s23, %s1737_s23   ;;  %s2569_s22 = sphi %s2567_s22, %s2568_s22   ;;  %s2565_s21 = sphi %s2563_s21, %s1750_s21   ;;  %s2561_s18 = sphi %s2559_s18, %s1751_s18  }
 0x1c5   : >> { %1744 = vst [vmem:[%s2561_s18] sm:$0xff] %v1743_v11  ;;  %p1746_p0 = scmp.ge.s32.totalorder %s1745_s6, %s2486_s17  ;;  %p1736_p1 = scmp.ge.s32.totalorder %s1737_s23, %s2486_s17 }
 0x1c7   : >> { %s3178_s6 = smov (%p1746_p0, %s1745_s6), 0  ;;  %1739 = sbr.rel (!%p1736_p1) target bundleno = 452 (0x1c4), region = 133 }
 0x1c8   : >> { %s2046_s24 = sshll.u32 %s3178_s6, 3  ;;  %s2568_s22 = smov %s3178_s6  }
 0x1c9   : >> { %s1750_s21 = scalar_lea.vmem %s1731_s11, %s2046_s24 [#allocation2]   ;;  %s1751_s18 = scalar_lea.vmem %s1733_s14, %s2046_s24  }
 0x1ce PF: > { %p10_p2 = scmp.ge.s32.totalorder %s2611_s16, 4   ;;  %s3170_s12 = smov %s2537_s13 }
 0x1cf   : > { %s3171_s13 = smov %s2619_s19  ;;  %s3172_s14 = smov %s2611_s16 }
 0x1d0   :  { %12 = sbr.rel (!%p10_p2) target bundleno = 2 (0x2), region = 144 }

// kernel: convnet_forward.13
= control target key start
LH: loop header
LB: loop body
LE: loop exit
PB: predicated region body
PF: predicated region fallthrough
CT: control target
= control target key end

     0   :  { %v497_v2 = vmov 0.0   ;;  %v74_v10 = vlaneseq  ;;  %v498_v14 = vmov 1966171168   ;;  %s636_s0 = inlined_call_operand.vmem [shape: bf16[2,256], index: 0, kind: input, shape index: {}]   ;;  %s637_s1 = inlined_call_operand.vmem [shape: bf16[256,128], index: 1, kind: input, shape index: {}]   ;;  %s638_s2 = inlined_call_operand.vmem [shape: f32[1,128], index: 2, kind: input, shape index: {}]   ;;  %s639_s3 = inlined_call_operand.vmem [shape: bf16[128,10], index: 3, kind: input, shape index: {}]   ;;  %s640_s4 = inlined_call_operand.vmem [shape: f32[1,10], index: 4, kind: input, shape index: {}]   ;;  %s641_s5 = inlined_call_operand.hbm [shape: f32[2,10], index: 5, kind: output, shape index: {}]  }
   0x1   :  { %v445_v0 = vld [vmem:[%s637_s1 + $0x40] sm:$0xff]   ;;  %421 = vmatprep.subr.bf16.mxu1 %v497_v2  ;;  %v447_v3 = vld [vmem:[%s637_s1 + $0x48] sm:$0xff]   ;;  %v449_v5 = vld [vmem:[%s637_s1 + $0x50] sm:$0xff]   ;;  %v72_v15 = vunpack.c.l.s4 %v498_v14 }
   0x2   :  { %v446_v1 = vld [vmem:[%s637_s1] sm:$0xff]   ;;  %390 = vmatprep.subr.bf16.mxu0 %v445_v0  ;;  %v448_v4 = vld [vmem:[%s637_s1 + $0x8] sm:$0xff]   ;;  %v450_v6 = vld [vmem:[%s637_s1 + $0x10] sm:$0xff]   ;;  %v75_v16 = vshrl.u32 %v74_v10, 7 }
   0x3   :  { %391 = vmatpush3.bf16.msra.mxu0 %v446_v1  ;;  %v451_v7 = vld [vmem:[%s637_s1 + $0x58] sm:$0xff]   ;;  %v453_v9 = vld [vmem:[%s637_s1 + $0x60] sm:$0xff]   ;;  %v455_v12 = vld [vmem:[%s637_s1 + $0x68] sm:$0xff]   ;;  %v73_v20 = vunpack.c.0.s8 %v72_v15 }
   0x4   :  { %392 = vmatprep.subr.bf16.mxu0 %v447_v3  ;;  %v452_v8 = vld [vmem:[%s637_s1 + $0x18] sm:$0xff]   ;;  %v454_v11 = vld [vmem:[%s637_s1 + $0x20] sm:$0xff]   ;;  %v456_v18 = vld [vmem:[%s637_s1 + $0x28] sm:$0xff]  }
   0x5   :  { %v364_v13 = vld.sshfl [vmem:[%s636_s0] sm:$0x11 pattern:$0x75316420]  ;;  %v462_v21 = vld [vmem:[%s639_s3 + $0x8] sm:$0xff]   ;;  %v457_v22 = vld [vmem:[%s637_s1 + $0x70] sm:$0xff]   ;;  %v76_v24 = vsub.s32 %v73_v20, %v75_v16 }
   0x6   :  { %v461_v17 = vld [vmem:[%s639_s3] sm:$0xff]   ;;  %v70_v19 = vcombine.high %v364_v13, %v364_v13  ;;  %v458_v23 = vld [vmem:[%s637_s1 + $0x30] sm:$0xff]   ;;  %v459_v27 = vld [vmem:[%s637_s1 + $0x78] sm:$0xff]  }
   0x7   :  { %393 = vmatpush3.bf16.msra.mxu0 %v448_v4  ;;  %422 = vmatpush3.bf16.msra.mxu1 %v461_v17  ;;  %v463_v25 = vld [vmem:[%s639_s3 + $0x10] sm:$0xff]  }
   0x8   :  { %394 = vmatprep.subr.bf16.mxu0 %v449_v5  ;;  %423 = vmatprep.subr.bf16.mxu1 %v497_v2  ;;  %v84_v26 = vrot.slane %v70_v19, %v76_v24 }
   0xb   :  { %395 = vmatpush3.bf16.msra.mxu0 %v450_v6  ;;  %424 = vmatpush3.bf16.msra.mxu1 %v462_v21 }
   0xc   :  { %396 = vmatprep.subr.bf16.mxu0 %v451_v7  ;;  %425 = vmatprep.subr.bf16.mxu1 %v497_v2 }
   0xf   :  { %397 = vmatpush3.bf16.msra.mxu0 %v452_v8 }
  0x10   :  { %398 = vmatprep.subr.bf16.mxu0 %v453_v9 }
  0x13   :  { %399 = vmatpush3.bf16.msra.mxu0 %v454_v11 }
  0x14   :  { %400 = vmatprep.subr.bf16.mxu0 %v455_v12 }
  0x17   :  { %401 = vmatpush3.bf16.msra.mxu0 %v456_v18 }
  0x18   :  { %402 = vmatprep.subr.bf16.mxu0 %v457_v22 }
  0x19   :  { %10 = vsyncpa [#allocation3], 0  ;;  %215 = vmatprep.mubr.bf16.mxu0 %v84_v26  ;;  %v460_v28 = vld [vmem:[%s637_s1 + $0x38] sm:$0xff]   ;;  %426 = vmatpush3.bf16.msra.mxu1 %v463_v25  ;;  %v77_v30 = vrot.slane %v364_v13, %v76_v24  ;;  %v465_v31 = vld [vmem:[%s639_s3 + $0x20] sm:$0xff]   ;;  %vm499_vm0 = vmmov 0   ;;  %vm336_vm1 = vcmask 74752  }
  0x1a   :  { %v464_v29 = vld [vmem:[%s639_s3 + $0x18] sm:$0xff]   ;;  %427 = vmatprep.subr.bf16.mxu1 %v497_v2  ;;  %v466_v32 = vld [vmem:[%s639_s3 + $0x28] sm:$0xff]   ;;  %v467_v33 = vld [vmem:[%s639_s3 + $0x30] sm:$0xff]   ;;  %437 = vmatprep.mubr.msk.bf16.mxu1 %vm499_vm0, %v497_v2 }
  0x1b   :  { %403 = vmatpush3.bf16.msra.mxu0 %v458_v23  ;;  %v468_v34 = vld [vmem:[%s639_s3 + $0x38] sm:$0xff]   ;;  %v363_v36 = vld [vmem:[%s638_s2] ss:$0 sm:$0xff]  ;;  %s500_s2 = smov [#allocation2]  }
  0x1c   :  { %404 = vmatprep.subr.bf16.mxu0 %v459_v27  ;;  %v381_v44 = vld [vmem:[%s640_s4] ss:$0 sm:$0xff]  ;;  %s355_s3 = sshll.u32 %s500_s2, 4  ;;  %s356_s3 = int_to_ptr.vmem [resolvable:$true] %s355_s3 }
  0x1d   :  { %428 = vmatpush3.bf16.msra.mxu1 %v464_v29  ;;  %s473_s4 = scalar_lea.vmem %s356_s3, 32  ;;  %p478_p1 = scmp.lt.s32.totalorder %s356_s3, %s356_s3 }
  0x1e   :  { %429 = vmatprep.subr.bf16.mxu1 %v497_v2  ;;  %p474_p0 = scmp.ne.s32.totalorder %s356_s3, %s473_s4  ;;  %p479_p2 = scmp.lt.s32.totalorder %s473_s4, %s473_s4 }
  0x1f   :  { %405 = vmatpush3.bf16.msra.mxu0 %v460_v28 }
  0x20   :  { %p480_p3 = por %p479_p2, %p478_p1 }
  0x21   :  { %430 = vmatpush3.bf16.msra.mxu1 %v465_v31 }
  0x22   :  { %216 = vmatmul.mubr.bf16.vlgmr.msra.gmra.mrb[0].mxu0 %v77_v30  ;;  %431 = vmatprep.subr.bf16.mxu1 %v497_v2  ;;  %p481_p4 = pnand %p480_p3, %p474_p0 }
  0x25   :  { %432 = vmatpush3.bf16.msra.mxu1 %v466_v32 }
  0x26   :  { %433 = vmatprep.subr.bf16.mxu1 %v497_v2 }
  0x29   :  { %434 = vmatpush3.bf16.msra.mxu1 %v467_v33 }
  0x2a   :  { %435 = vmatprep.subr.bf16.mxu1 %v497_v2 }
  0x2d   :  { %436 = vmatpush3.bf16.msra.mxu1 %v468_v34 }
  0xf5   :  { %v406_v35 = vpop.f32.mrb[0].mxu0 }
  0xf6   :  { %v407_v37 = vpop.f32.mrb[1].mxu0 }
  0xf7   :  { %v408_v38 = vadd.f32 %v407_v37, %v406_v35  ;;  %v409_v39 = vpop.f32.mrb[2].mxu0 }
  0xf8   :  { %v410_v40 = vpop.f32.mrb[3].mxu0 }
  0xf9   :  { %v218_v41 = vadd.f32 %v408_v38, %v363_v36 }
  0xfb   :  { %v223_v42 = vmax.f32 %v218_v41, 0.0 }
  0xfd   :  { %v224_v43 = vpack.c.bf16 %v223_v42, %v223_v42 }
  0xff   :  { %438 = vmatmul.mubr.bf16.vlgmr.msra.gmra.mrb[0].mxu1 %v224_v43 }
 0x1d2   :  { %v330_v45 = vpop.f32.mrb[0].mxu1 }
 0x1d3   :  { %v331_v46 = vadd.f32 %v381_v44, %v330_v45  ;;  %v439_v47 = vpop.f32.mrb[1].mxu1 }
 0x1d4   :  { %v333_v48 = vpop.f32.mrb[2].mxu1 }
 0x1d5   :  { %v440_v49 = vpop.f32.mrb[3].mxu1  ;;  %v337_v50 = vsel %vm336_vm1, %v331_v46, -inf }
 0x1d6   :  { %338 = vmax.xlane.f32.xlu0 %v337_v50 }
 0x263   :  { %v339_v51 = vpop.xlane.xlu0 %338 }
 0x264   :  { %v340_v52 = vsub.f32 %v331_v46, %v339_v51 }
 0x266   :  { %v341_v53 = vmul.f32 1.442695, %v340_v52 }
 0x268   :  { %469 = vpow2.f32 %v341_v53 }
 0x272   :  { %v470_v54 = vpop.eup %469 }
 0x273   :  { %v343_v55 = vsel %vm336_vm1, %v470_v54, 0.0 }
 0x274   :  { %344 = vadd.xlane.f32.xlu0 %v343_v55 }
 0x301   :  { %v345_v56 = vpop.xlane.xlu0 %344 }
 0x302   :  { %471 = vrcp.f32 %v345_v56 }
 0x30c   :  { %v472_v57 = vpop.eup %471 }
 0x30d   :  { %v347_v58 = vmul.f32 %v472_v57, %v470_v54 }
 0x30f   :  { %348 = vst.msk [vmem:[#allocation2] sm:$0x3] %vm336_vm1, %v347_v58 }
 0x310   :  { %484 = shalt.err (!%p481_p4)
}
 0x311   :  { %s485_s22 = scalar_lea.hbm %s641_s5, 32 }
 0x312   :  { %p486_p5 = scmp.ne.s32.totalorder %s641_s5, %s485_s22  ;;  %p489_p6 = scmp.lt.u32.totalorder %s485_s22, %s641_s5 }
 0x314   :  { %p491_p7 = pnand %p489_p6, %p486_p5 }
 0x316   :  { %494 = shalt.err (!%p491_p7)
}
 0x317   :  { %358 = dma.vmem_to_hbm [thread:$0]  %s356_s3, 32, %s641_s5, [#allocation3]  }
 0x318   :  { %495 = dma.done.wait [#allocation3], 32  }
 0x319   :  { %496 = vsyncadd [#allocation3], 4294967264 }
 0x31a   :  { %362 = vsyncpa [#allocation3], 1 }

// kernel: convnet_forward.12
= control target key start
LH: loop header
LB: loop body
LE: loop exit
PB: predicated region body
PF: predicated region fallthrough
CT: control target
= control target key end

     0   :  { %v328_v39 = vlaneseq  ;;  %v3449_v40 = vmov 1966171168   ;;  %s4543_s0 = inlined_call_operand.vmem [shape: bf16[2,2304], index: 0, kind: input, shape index: {}]   ;;  %s4544_s1 = inlined_call_operand.vmem [shape: bf16[2304,256], index: 1, kind: input, shape index: {}]   ;;  %s4545_s2 = inlined_call_operand.vmem [shape: f32[1,256], index: 2, kind: input, shape index: {}]   ;;  %s4546_s3 = inlined_call_operand.vmem [shape: bf16[2,256], index: 3, kind: output, shape index: {}]  }
   0x1   :  { %v2989_v0 = vld [vmem:[%s4544_s1 + $0x4] ss:$8 sps:$4 sm:$0xff]   ;;  %v2993_v2 = vld [vmem:[%s4544_s1] ss:$8 sps:$4 sm:$0xff]   ;;  %v2995_v4 = vld [vmem:[%s4544_s1 + $0x14] ss:$8 sps:$4 sm:$0xff]   ;;  %v371_v41 = vunpack.c.l.s4 %v3449_v40 }
   0x2   :  { %v2991_v1 = vld [vmem:[%s4544_s1 + $0x404] ss:$8 sps:$4 sm:$0xff]   ;;  %2158 = vmatprep.subr.bf16.mxu1 %v2989_v0  ;;  %v2994_v3 = vld [vmem:[%s4544_s1 + $0x400] ss:$8 sps:$4 sm:$0xff]   ;;  %v2997_v5 = vld [vmem:[%s4544_s1 + $0x414] ss:$8 sps:$4 sm:$0xff]  }
   0x3   :  { %2330 = vmatprep.subr.bf16.mxu0 %v2991_v1  ;;  %2159 = vmatpush1.bf16.msra.mxu1 %v2993_v2  ;;  %v2999_v6 = vld [vmem:[%s4544_s1 + $0x10] ss:$8 sps:$4 sm:$0xff]   ;;  %v3001_v8 = vld [vmem:[%s4544_s1 + $0x24] ss:$8 sps:$4 sm:$0xff]   ;;  %v3005_v10 = vld [vmem:[%s4544_s1 + $0x20] ss:$8 sps:$4 sm:$0xff]   ;;  %v372_v48 = vunpack.c.0.s8 %v371_v41 }
   0x4   :  { %2331 = vmatpush1.bf16.msra.mxu0 %v2994_v3  ;;  %2160 = vmatprep.subr.bf16.mxu1 %v2995_v4  ;;  %v3000_v7 = vld [vmem:[%s4544_s1 + $0x410] ss:$8 sps:$4 sm:$0xff]   ;;  %v3003_v9 = vld [vmem:[%s4544_s1 + $0x424] ss:$8 sps:$4 sm:$0xff]   ;;  %v3006_v11 = vld [vmem:[%s4544_s1 + $0x420] ss:$8 sps:$4 sm:$0xff]  }
   0x5   :  { %2332 = vmatprep.subr.bf16.mxu0 %v2997_v5  ;;  %v3007_v12 = vld [vmem:[%s4544_s1 + $0x34] ss:$8 sps:$4 sm:$0xff]   ;;  %v3011_v14 = vld [vmem:[%s4544_s1 + $0x30] ss:$8 sps:$4 sm:$0xff]   ;;  %v3013_v16 = vld [vmem:[%s4544_s1 + $0x44] ss:$8 sps:$4 sm:$0xff]  }
   0x6   :  { %v3009_v13 = vld [vmem:[%s4544_s1 + $0x434] ss:$8 sps:$4 sm:$0xff]   ;;  %v3012_v15 = vld [vmem:[%s4544_s1 + $0x430] ss:$8 sps:$4 sm:$0xff]   ;;  %v3015_v17 = vld [vmem:[%s4544_s1 + $0x444] ss:$8 sps:$4 sm:$0xff]  }
   0x7   :  { %2161 = vmatpush1.bf16.msra.mxu1 %v2999_v6  ;;  %v3017_v18 = vld [vmem:[%s4544_s1 + $0x40] ss:$8 sps:$4 sm:$0xff]   ;;  %v3019_v20 = vld [vmem:[%s4544_s1 + $0x54] ss:$8 sps:$4 sm:$0xff]   ;;  %v3023_v22 = vld [vmem:[%s4544_s1 + $0x50] ss:$8 sps:$4 sm:$0xff]  }
   0x8   :  { %2333 = vmatpush1.bf16.msra.mxu0 %v3000_v7  ;;  %2162 = vmatprep.subr.bf16.mxu1 %v3001_v8  ;;  %v3018_v19 = vld [vmem:[%s4544_s1 + $0x440] ss:$8 sps:$4 sm:$0xff]   ;;  %v3021_v21 = vld [vmem:[%s4544_s1 + $0x454] ss:$8 sps:$4 sm:$0xff]   ;;  %v3024_v23 = vld [vmem:[%s4544_s1 + $0x450] ss:$8 sps:$4 sm:$0xff]  }
   0x9   :  { %2334 = vmatprep.subr.bf16.mxu0 %v3003_v9  ;;  %v3025_v24 = vld [vmem:[%s4544_s1 + $0x64] ss:$8 sps:$4 sm:$0xff]   ;;  %v3029_v26 = vld [vmem:[%s4544_s1 + $0x60] ss:$8 sps:$4 sm:$0xff]   ;;  %v3031_v28 = vld [vmem:[%s4544_s1 + $0x74] ss:$8 sps:$4 sm:$0xff]  }
   0xa   :  { %v3027_v25 = vld [vmem:[%s4544_s1 + $0x464] ss:$8 sps:$4 sm:$0xff]   ;;  %v3030_v27 = vld [vmem:[%s4544_s1 + $0x460] ss:$8 sps:$4 sm:$0xff]   ;;  %v3033_v29 = vld [vmem:[%s4544_s1 + $0x474] ss:$8 sps:$4 sm:$0xff]  }
   0xb   :  { %2163 = vmatpush1.bf16.msra.mxu1 %v3005_v10  ;;  %v3035_v30 = vld [vmem:[%s4544_s1 + $0x70] ss:$8 sps:$4 sm:$0xff]   ;;  %v3037_v32 = vld [vmem:[%s4544_s1 + $0x84] ss:$8 sps:$4 sm:$0xff]   ;;  %v3041_v34 = vld [vmem:[%s4544_s1 + $0x80] ss:$8 sps:$4 sm:$0xff]  }
   0xc   :  { %2335 = vmatpush1.bf16.msra.mxu0 %v3006_v11  ;;  %2164 = vmatprep.subr.bf16.mxu1 %v3007_v12  ;;  %v3036_v31 = vld [vmem:[%s4544_s1 + $0x470] ss:$8 sps:$4 sm:$0xff]   ;;  %v3039_v33 = vld [vmem:[%s4544_s1 + $0x484] ss:$8 sps:$4 sm:$0xff]   ;;  %v3042_v35 = vld [vmem:[%s4544_s1 + $0x480] ss:$8 sps:$4 sm:$0xff]  }
   0xd   :  { %2336 = vmatprep.subr.bf16.mxu0 %v3009_v13  ;;  %v3043_v36 = vld [vmem:[%s4544_s1 + $0x94] ss:$8 sps:$4 sm:$0xff]   ;;  %v3047_v38 = vld [vmem:[%s4544_s1 + $0x90] ss:$8 sps:$4 sm:$0xff]   ;;  %v3049_v43 = vld [vmem:[%s4544_s1 + $0xa4] ss:$8 sps:$4 sm:$0xff]  }
   0xe   :  { %v3045_v37 = vld [vmem:[%s4544_s1 + $0x494] ss:$8 sps:$4 sm:$0xff]   ;;  %v3048_v42 = vld [vmem:[%s4544_s1 + $0x490] ss:$8 sps:$4 sm:$0xff]   ;;  %v3051_v44 = vld [vmem:[%s4544_s1 + $0x4a4] ss:$8 sps:$4 sm:$0xff]  }
   0xf   :  { %2165 = vmatpush1.bf16.msra.mxu1 %v3011_v14  ;;  %v3053_v45 = vld [vmem:[%s4544_s1 + $0xa0] ss:$8 sps:$4 sm:$0xff]   ;;  %v3602_v47 = vshrl.u32 %v328_v39, 7  ;;  %v3055_v49 = vld [vmem:[%s4544_s1 + $0xb4] ss:$8 sps:$4 sm:$0xff]  }
  0x10   :  { %2337 = vmatpush1.bf16.msra.mxu0 %v3012_v15  ;;  %2166 = vmatprep.subr.bf16.mxu1 %v3013_v16  ;;  %v3054_v46 = vld [vmem:[%s4544_s1 + $0x4a0] ss:$8 sps:$4 sm:$0xff]   ;;  %v3057_v50 = vld [vmem:[%s4544_s1 + $0x4b4] ss:$8 sps:$4 sm:$0xff]   ;;  %v3059_v51 = vld [vmem:[%s4544_s1 + $0xb0] ss:$8 sps:$4 sm:$0xff]  }
  0x11   :  { %2338 = vmatprep.subr.bf16.mxu0 %v3015_v17  ;;  %v3060_v52 = vld [vmem:[%s4544_s1 + $0x4b0] ss:$8 sps:$4 sm:$0xff]   ;;  %v3061_v53 = vld [vmem:[%s4544_s1 + $0xc4] ss:$8 sps:$4 sm:$0xff]   ;;  %v3620_v54 = vsub.s32 %v372_v48, %v3602_v47  ;;  %v3065_v59 = vld [vmem:[%s4544_s1 + $0xc0] ss:$8 sps:$4 sm:$0xff]  }
  0x12   :  { %v3063_v55 = vld [vmem:[%s4544_s1 + $0x4c4] ss:$8 sps:$4 sm:$0xff]   ;;  %v3085_v56 = vld [vmem:[%s4543_s0] ss:$18 sps:$4 sm:$0xff]   ;;  %v3091_v58 = vld [vmem:[%s4543_s0 + $0x48] ss:$18 sps:$4 sm:$0xff]  }
  0x13   :  { %2167 = vmatpush1.bf16.msra.mxu1 %v3017_v18  ;;  %v3088_v57 = vld [vmem:[%s4543_s0 + $0x24] ss:$18 sps:$4 sm:$0xff]   ;;  %v3066_v60 = vld [vmem:[%s4544_s1 + $0x4c0] ss:$8 sps:$4 sm:$0xff]   ;;  %v376_v62 = vrot.slane %v3085_v56, %v3620_v54  ;;  %v404_v1 = vrot.slane %v3091_v58, %v3620_v54 }
  0x14   :  { %2339 = vmatpush1.bf16.msra.mxu0 %v3018_v19  ;;  %2168 = vmatprep.subr.bf16.mxu1 %v3019_v20  ;;  %v3094_v61 = vld [vmem:[%s4543_s0 + $0x6c] ss:$18 sps:$4 sm:$0xff]   ;;  %v390_v0 = vrot.slane %v3088_v57, %v3620_v54  ;;  %v3071_v4 = vld [vmem:[%s4544_s1 + $0xd0] ss:$8 sps:$4 sm:$0xff]   ;;  %v3109_v17 = vld [vmem:[%s4543_s0 + $0x74] ss:$18 sps:$4 sm:$0xff]  }
  0x15   :  { %2340 = vmatprep.subr.bf16.mxu0 %v3021_v21  ;;  %v3067_v63 = vld [vmem:[%s4544_s1 + $0xd4] ss:$8 sps:$4 sm:$0xff]   ;;  %v418_v3 = vrot.slane %v3094_v61, %v3620_v54  ;;  %v3072_v9 = vld [vmem:[%s4544_s1 + $0x4d0] ss:$8 sps:$4 sm:$0xff]   ;;  %v3073_v13 = vld [vmem:[%s4544_s1 + $0xe4] ss:$8 sps:$4 sm:$0xff]  }
  0x16   :  { %v3069_v2 = vld [vmem:[%s4544_s1 + $0x4d4] ss:$8 sps:$4 sm:$0xff]   ;;  %v427_v5 = vcombine.high %v376_v62, %v390_v0  ;;  %v426_v7 = vcombine.low %v376_v62, %v390_v0  ;;  %v3075_v14 = vld [vmem:[%s4544_s1 + $0x4e4] ss:$8 sps:$4 sm:$0xff]   ;;  %v3077_v20 = vld [vmem:[%s4544_s1 + $0xe0] ss:$8 sps:$4 sm:$0xff]  }
  0x17   :  { %2169 = vmatpush1.bf16.msra.mxu1 %v3023_v22  ;;  %v431_v6 = vcombine.high %v404_v1, %v418_v3  ;;  %v430_v8 = vcombine.low %v404_v1, %v418_v3  ;;  %v3100_v11 = vld [vmem:[%s4543_s0 + $0x8] ss:$18 sps:$4 sm:$0xff]   ;;  %v3103_v12 = vld [vmem:[%s4543_s0 + $0x2c] ss:$18 sps:$4 sm:$0xff]   ;;  %v3106_v16 = vld [vmem:[%s4543_s0 + $0x50] ss:$18 sps:$4 sm:$0xff]  }
  0x18   :  { %2341 = vmatpush1.bf16.msra.mxu0 %v3024_v23  ;;  %2170 = vmatprep.subr.bf16.mxu1 %v3025_v24  ;;  %v3660_v10 = vrot.slane %v427_v5, %v3620_v54  ;;  %v512_v18 = vrot.slane %v3100_v11, %v3620_v54  ;;  %v526_v19 = vrot.slane %v3103_v12, %v3620_v54  ;;  %v3078_v21 = vld [vmem:[%s4544_s1 + $0x4e0] ss:$8 sps:$4 sm:$0xff]   ;;  %v3099_v40 = vld [vmem:[%s4544_s1 + $0x104] ss:$8 sps:$4 sm:$0xff]   ;;  %v3132_v61 = vld [vmem:[%s4544_s1 + $0x534] ss:$8 sps:$4 sm:$0xff]  }
  0x19   :  { %2342 = vmatprep.subr.bf16.mxu0 %v3027_v25  ;;  %v482_v15 = vrot.slane %v431_v6, %v3620_v54  ;;  %v540_v23 = vrot.slane %v3106_v16, %v3620_v54  ;;  %v3692_v24 = vrot.slane %v426_v7, %v3620_v54  ;;  %v3695_v25 = vrot.slane %v430_v8, %v3620_v54  ;;  %v3123_v56 = vld [vmem:[%s4544_s1 + $0x124] ss:$8 sps:$4 sm:$0xff]   ;;  %v3121_v58 = vld [vmem:[%s4544_s1 + $0x120] ss:$8 sps:$4 sm:$0xff]   ;;  %v3127_v62 = vld [vmem:[%s4544_s1 + $0x130] ss:$8 sps:$4 sm:$0xff]  }
  0x1a   :  { %v3126_v57 = vld [vmem:[%s4544_s1 + $0x524] ss:$8 sps:$4 sm:$0xff]   ;;  %v3136_v3 = vld [vmem:[%s4544_s1 + $0x540] ss:$8 sps:$4 sm:$0xff]   ;;  %v3144_v5 = vld [vmem:[%s4544_s1 + $0x554] ss:$8 sps:$4 sm:$0xff]  }
  0x1b   :  { %2171 = vmatpush1.bf16.msra.mxu1 %v3029_v26  ;;  %v494_v22 = vcombine.low %v3660_v10, %v482_v15  ;;  %v3079_v26 = vld [vmem:[%s4544_s1 + $0xf4] ss:$8 sps:$4 sm:$0xff]   ;;  %v3135_v0 = vld [vmem:[%s4544_s1 + $0x144] ss:$8 sps:$4 sm:$0xff]   ;;  %v3139_v6 = vld [vmem:[%s4544_s1 + $0x150] ss:$8 sps:$4 sm:$0xff]  }
  0x1c   :  { %2343 = vmatpush1.bf16.msra.mxu0 %v3030_v27  ;;  %2172 = vmatprep.subr.bf16.mxu1 %v3031_v28  ;;  %v554_v27 = vrot.slane %v3109_v17, %v3620_v54  ;;  %v563_v28 = vcombine.high %v512_v18, %v526_v19  ;;  %v3138_v1 = vld [vmem:[%s4544_s1 + $0x544] ss:$8 sps:$4 sm:$0xff]   ;;  %v3142_v7 = vld [vmem:[%s4544_s1 + $0x550] ss:$8 sps:$4 sm:$0xff]   ;;  %v3148_v11 = vld [vmem:[%s4544_s1 + $0x560] ss:$8 sps:$4 sm:$0xff]  }
  0x1d   :  { %2344 = vmatprep.subr.bf16.mxu0 %v3033_v29  ;;  %v562_v29 = vcombine.low %v512_v18, %v526_v19  ;;  %2190 = vmatprep.mubr.bf16.mxu1 %v494_v22  ;;  %v3147_v8 = vld [vmem:[%s4544_s1 + $0x164] ss:$8 sps:$4 sm:$0xff]   ;;  %v3153_v12 = vld [vmem:[%s4544_s1 + $0x174] ss:$8 sps:$4 sm:$0xff]   ;;  %v3157_v18 = vld [vmem:[%s4544_s1 + $0x180] ss:$8 sps:$4 sm:$0xff]  }
  0x1e   :  { %v3159_v16 = vld [vmem:[%s4544_s1 + $0x184] ss:$8 sps:$4 sm:$0xff]   ;;  %v3160_v19 = vld [vmem:[%s4544_s1 + $0x580] ss:$8 sps:$4 sm:$0xff]   ;;  %v3163_v22 = vld [vmem:[%s4544_s1 + $0x190] ss:$8 sps:$4 sm:$0xff]  }
  0x1f   :  { %2173 = vmatpush1.bf16.msra.mxu1 %v3035_v30  ;;  %v3081_v30 = vld [vmem:[%s4544_s1 + $0x4f4] ss:$8 sps:$4 sm:$0xff]   ;;  %v3162_v17 = vld [vmem:[%s4544_s1 + $0x584] ss:$8 sps:$4 sm:$0xff]  }
  0x20   :  { %2345 = vmatpush1.bf16.msra.mxu0 %v3036_v31  ;;  %2174 = vmatprep.subr.bf16.mxu1 %v3037_v32  ;;  %v491_v31 = vcombine.high %v3692_v24, %v3695_v25  ;;  %v567_v32 = vcombine.high %v540_v23, %v554_v27 }
  0x21   :  { %2346 = vmatprep.subr.bf16.mxu0 %v3039_v33  ;;  %v590_v33 = vrot.slane %v563_v28, %v3620_v54  ;;  %v3169_v28 = vld [vmem:[%s4544_s1 + $0x1a0] ss:$8 sps:$4 sm:$0xff]  }
  0x23   :  { %2175 = vmatpush1.bf16.msra.mxu1 %v3041_v34  ;;  %v566_v34 = vcombine.low %v540_v23, %v554_v27  ;;  %v3166_v23 = vld [vmem:[%s4544_s1 + $0x590] ss:$8 sps:$4 sm:$0xff]   ;;  %v3174_v27 = vld [vmem:[%s4544_s1 + $0x5a4] ss:$8 sps:$4 sm:$0xff]  }
  0x24   :  { %2347 = vmatpush1.bf16.msra.mxu0 %v3042_v35  ;;  %2176 = vmatprep.subr.bf16.mxu1 %v3043_v36  ;;  %v3083_v35 = vld [vmem:[%s4544_s1 + $0xf0] ss:$8 sps:$4 sm:$0xff]   ;;  %v3711_v36 = vrot.slane %v562_v29, %v3620_v54  ;;  %v3172_v29 = vld [vmem:[%s4544_s1 + $0x5a0] ss:$8 sps:$4 sm:$0xff]  }
  0x25   :  { %2348 = vmatprep.subr.bf16.mxu0 %v3045_v37  ;;  %v3084_v37 = vld [vmem:[%s4544_s1 + $0x4f0] ss:$8 sps:$4 sm:$0xff]   ;;  %v3718_v39 = vrot.slane %v566_v34, %v3620_v54 }
  0x26   :  { %v3178_v34 = vld [vmem:[%s4544_s1 + $0x5b0] ss:$8 sps:$4 sm:$0xff]  }
  0x27   :  { %2177 = vmatpush1.bf16.msra.mxu1 %v3047_v38  ;;  %v618_v38 = vrot.slane %v567_v32, %v3620_v54  ;;  %v626_v48 = vcombine.low %v3711_v36, %v3718_v39  ;;  %v3180_v32 = vld [vmem:[%s4544_s1 + $0x5b4] ss:$8 sps:$4 sm:$0xff]  }
  0x28   :  { %2349 = vmatpush1.bf16.msra.mxu0 %v3048_v42  ;;  %2178 = vmatprep.subr.bf16.mxu1 %v3049_v43  ;;  %v3114_v42 = vld [vmem:[%s4544_s1 + $0x504] ss:$8 sps:$4 sm:$0xff]   ;;  %v627_v43 = vcombine.high %v3711_v36, %v3718_v39  ;;  %v3225_v36 = vld [vmem:[%s4544_s1 + $0x234] ss:$8 sps:$4 sm:$0xff]  }
  0x29   :  { %2350 = vmatprep.subr.bf16.mxu0 %v3051_v44  ;;  %v630_v41 = vcombine.low %v590_v33, %v618_v38  ;;  %v3097_v44 = vld [vmem:[%s4544_s1 + $0x100] ss:$8 sps:$4 sm:$0xff]   ;;  %v3228_v39 = vld [vmem:[%s4544_s1 + $0x634] ss:$8 sps:$4 sm:$0xff]  }
  0x2b   :  { %2179 = vmatpush1.bf16.msra.mxu1 %v3053_v45  ;;  %v3112_v45 = vld [vmem:[%s4544_s1 + $0x500] ss:$8 sps:$4 sm:$0xff]   ;;  %2362 = vmatprep.mubr.bf16.mxu0 %v630_v41 }
  0x2c   :  { %2351 = vmatpush1.bf16.msra.mxu0 %v3054_v46  ;;  %2180 = vmatprep.subr.bf16.mxu1 %v3055_v49  ;;  %v490_v46 = vcombine.low %v3692_v24, %v3695_v25  ;;  %v3117_v49 = vld [vmem:[%s4544_s1 + $0x114] ss:$8 sps:$4 sm:$0xff]   ;;  %v3222_v24 = vld [vmem:[%s4544_s1 + $0x624] ss:$8 sps:$4 sm:$0xff]   ;;  %v3217_v25 = vld [vmem:[%s4544_s1 + $0x220] ss:$8 sps:$4 sm:$0xff]  }
  0x2d   :  { %2352 = vmatprep.subr.bf16.mxu0 %v3057_v50  ;;  %v3120_v50 = vld [vmem:[%s4544_s1 + $0x514] ss:$8 sps:$4 sm:$0xff]  }
  0x2e   :  { %v3093_v41 = vld [vmem:[%s4543_s0 + $0x4c] ss:$18 sps:$4 sm:$0xff]  }
  0x2f   :  { %2181 = vmatpush1.bf16.msra.mxu1 %v3059_v51  ;;  %v495_v51 = vcombine.high %v3660_v10, %v482_v15  ;;  %v3145_v10 = vld [vmem:[%s4544_s1 + $0x160] ss:$8 sps:$4 sm:$0xff]   ;;  %v3154_v15 = vld [vmem:[%s4544_s1 + $0x570] ss:$8 sps:$4 sm:$0xff]  }
  0x30   :  { %2353 = vmatpush1.bf16.msra.mxu0 %v3060_v52  ;;  %2182 = vmatprep.subr.bf16.mxu1 %v3061_v53  ;;  %v631_v52 = vcombine.high %v590_v33, %v618_v38  ;;  %v3115_v53 = vld [vmem:[%s4544_s1 + $0x110] ss:$8 sps:$4 sm:$0xff]  }
  0x31   :  { %2354 = vmatprep.subr.bf16.mxu0 %v3063_v55  ;;  %v3118_v55 = vld [vmem:[%s4544_s1 + $0x510] ss:$8 sps:$4 sm:$0xff]  }
  0x32   :  { %v3175_v33 = vld [vmem:[%s4544_s1 + $0x1b0] ss:$8 sps:$4 sm:$0xff]  }
  0x33   :  { %2183 = vmatpush1.bf16.msra.mxu1 %v3065_v59  ;;  %v3124_v59 = vld [vmem:[%s4544_s1 + $0x520] ss:$8 sps:$4 sm:$0xff]   ;;  %v3087_v38 = vld [vmem:[%s4543_s0 + $0x4] ss:$18 sps:$4 sm:$0xff]  }
  0x34   :  { %2355 = vmatpush1.bf16.msra.mxu0 %v3066_v60  ;;  %2184 = vmatprep.subr.bf16.mxu1 %v3067_v63  ;;  %v3129_v60 = vld [vmem:[%s4544_s1 + $0x134] ss:$8 sps:$4 sm:$0xff]   ;;  %v3130_v63 = vld [vmem:[%s4544_s1 + $0x530] ss:$8 sps:$4 sm:$0xff]  }
  0x35   :  { %2356 = vmatprep.subr.bf16.mxu0 %v3069_v2  ;;  %v3133_v2 = vld [vmem:[%s4544_s1 + $0x140] ss:$8 sps:$4 sm:$0xff]  }
  0x37   :  { %2185 = vmatpush1.bf16.msra.mxu1 %v3071_v4  ;;  %v3141_v4 = vld [vmem:[%s4544_s1 + $0x154] ss:$8 sps:$4 sm:$0xff]  }
  0x38   :  { %2357 = vmatpush1.bf16.msra.mxu0 %v3072_v9  ;;  %2186 = vmatprep.subr.bf16.mxu1 %v3073_v13  ;;  %v3150_v9 = vld [vmem:[%s4544_s1 + $0x564] ss:$8 sps:$4 sm:$0xff]   ;;  %v3156_v13 = vld [vmem:[%s4544_s1 + $0x574] ss:$8 sps:$4 sm:$0xff]  }
  0x39   :  { %2358 = vmatprep.subr.bf16.mxu0 %v3075_v14  ;;  %v3151_v14 = vld [vmem:[%s4544_s1 + $0x170] ss:$8 sps:$4 sm:$0xff]  }
  0x3b   :  { %2187 = vmatpush1.bf16.msra.mxu1 %v3077_v20  ;;  %v3165_v20 = vld [vmem:[%s4544_s1 + $0x194] ss:$8 sps:$4 sm:$0xff]  }
  0x3c   :  { %2359 = vmatpush1.bf16.msra.mxu0 %v3078_v21  ;;  %2188 = vmatprep.subr.bf16.mxu1 %v3079_v26  ;;  %v3168_v21 = vld [vmem:[%s4544_s1 + $0x594] ss:$8 sps:$4 sm:$0xff]   ;;  %v3171_v26 = vld [vmem:[%s4544_s1 + $0x1a4] ss:$8 sps:$4 sm:$0xff]  }
  0x3d   :  { %2360 = vmatprep.subr.bf16.mxu0 %v3081_v30  ;;  %v3177_v30 = vld [vmem:[%s4544_s1 + $0x1b4] ss:$8 sps:$4 sm:$0xff]  }
  0x3f   :  { %2189 = vmatpush1.bf16.msra.mxu1 %v3083_v35  ;;  %v3183_v35 = vld [vmem:[%s4544_s1 + $0x1c4] ss:$8 sps:$4 sm:$0xff]  }
  0x40   :  { %2361 = vmatpush1.bf16.msra.mxu0 %v3084_v37  ;;  %2201 = vmatprep.subr.bf16.mxu1 %v3099_v40  ;;  %v3186_v37 = vld [vmem:[%s4544_s1 + $0x5c4] ss:$8 sps:$4 sm:$0xff]   ;;  %v3090_v40 = vld [vmem:[%s4543_s0 + $0x28] ss:$18 sps:$4 sm:$0xff]  }
  0x41   :  { %2373 = vmatprep.subr.bf16.mxu0 %v3114_v42  ;;  %v3096_v42 = vld [vmem:[%s4543_s0 + $0x70] ss:$18 sps:$4 sm:$0xff]  }
  0x42   :  { %2191 = vmatmul.mubr.bf16.vlgmr.msra.gmra.mrb[0].mxu1 %v490_v46  ;;  %v3102_v46 = vld [vmem:[%s4543_s0 + $0xc] ss:$18 sps:$4 sm:$0xff]  }
  0x43   :  { %2363 = vmatmul.mubr.bf16.vlgmr.msra.gmra.mrb[0].mxu0 %v626_v48  ;;  %2202 = vmatpush1.bf16.msra.mxu1 %v3097_v44  ;;  %v3181_v44 = vld [vmem:[%s4544_s1 + $0x1c0] ss:$8 sps:$4 sm:$0xff]  }
  0x44   :  { %2374 = vmatpush1.bf16.msra.mxu0 %v3112_v45  ;;  %2203 = vmatprep.subr.bf16.mxu1 %v3117_v49  ;;  %v3184_v45 = vld [vmem:[%s4544_s1 + $0x5c0] ss:$8 sps:$4 sm:$0xff]   ;;  %v3189_v49 = vld [vmem:[%s4544_s1 + $0x1d4] ss:$8 sps:$4 sm:$0xff]  }
  0x45   :  { %2375 = vmatprep.subr.bf16.mxu0 %v3120_v50  ;;  %2233 = vmatprep.mubr.bf16.mxu1 %v495_v51  ;;  %v3105_v48 = vld [vmem:[%s4543_s0 + $0x30] ss:$18 sps:$4 sm:$0xff]   ;;  %v3192_v50 = vld [vmem:[%s4544_s1 + $0x5d4] ss:$8 sps:$4 sm:$0xff]  }
  0x46   :  { %2405 = vmatprep.mubr.bf16.mxu0 %v631_v52  ;;  %v3108_v51 = vld [vmem:[%s4543_s0 + $0x54] ss:$18 sps:$4 sm:$0xff]   ;;  %v3111_v52 = vld [vmem:[%s4543_s0 + $0x78] ss:$18 sps:$4 sm:$0xff]  }
  0x47   :  { %2204 = vmatpush1.bf16.msra.mxu1 %v3115_v53  ;;  %v3187_v53 = vld [vmem:[%s4544_s1 + $0x1d0] ss:$8 sps:$4 sm:$0xff]  }
  0x48   :  { %2376 = vmatpush1.bf16.msra.mxu0 %v3118_v55  ;;  %2205 = vmatprep.subr.bf16.mxu1 %v3123_v56  ;;  %v3190_v55 = vld [vmem:[%s4544_s1 + $0x5d0] ss:$8 sps:$4 sm:$0xff]   ;;  %v3195_v56 = vld [vmem:[%s4544_s1 + $0x1e4] ss:$8 sps:$4 sm:$0xff]  }
  0x49   :  { %2377 = vmatprep.subr.bf16.mxu0 %v3126_v57  ;;  %v383_v57 = vrot.slane %v3087_v38, %v3620_v54 }
  0x4b   :  { %2206 = vmatpush1.bf16.msra.mxu1 %v3121_v58  ;;  %v3198_v58 = vld [vmem:[%s4544_s1 + $0x5e4] ss:$8 sps:$4 sm:$0xff]  }
  0x4c   :  { %2378 = vmatpush1.bf16.msra.mxu0 %v3124_v59  ;;  %2207 = vmatprep.subr.bf16.mxu1 %v3129_v60  ;;  %v397_v59 = vrot.slane %v3090_v40, %v3620_v54  ;;  %v411_v60 = vrot.slane %v3093_v41, %v3620_v54  ;;  %v3211_v41 = vld [vmem:[%s4544_s1 + $0x210] ss:$8 sps:$4 sm:$0xff]  }
  0x4d   :  { %2379 = vmatprep.subr.bf16.mxu0 %v3132_v61  ;;  %v425_v61 = vrot.slane %v3096_v42, %v3620_v54  ;;  %v3214_v42 = vld [vmem:[%s4544_s1 + $0x610] ss:$8 sps:$4 sm:$0xff]  }
  0x4f   :  { %2208 = vmatpush1.bf16.msra.mxu1 %v3127_v62  ;;  %v519_v62 = vrot.slane %v3102_v46, %v3620_v54  ;;  %v3231_v46 = vld [vmem:[%s4544_s1 + $0x244] ss:$8 sps:$4 sm:$0xff]  }
  0x50   :  { %2380 = vmatpush1.bf16.msra.mxu0 %v3130_v63  ;;  %2209 = vmatprep.subr.bf16.mxu1 %v3135_v0  ;;  %v533_v63 = vrot.slane %v3105_v48, %v3620_v54  ;;  %v547_v0 = vrot.slane %v3108_v51, %v3620_v54  ;;  %v3234_v48 = vld [vmem:[%s4544_s1 + $0x644] ss:$8 sps:$4 sm:$0xff]   ;;  %v3237_v51 = vld [vmem:[%s4544_s1 + $0x254] ss:$8 sps:$4 sm:$0xff]  }
  0x51   :  { %2381 = vmatprep.subr.bf16.mxu0 %v3138_v1  ;;  %v561_v1 = vrot.slane %v3111_v52, %v3620_v54  ;;  %v3240_v52 = vld [vmem:[%s4544_s1 + $0x654] ss:$8 sps:$4 sm:$0xff]  }
  0x53   :  { %2210 = vmatpush1.bf16.msra.mxu1 %v3133_v2  ;;  %v3193_v2 = vld [vmem:[%s4544_s1 + $0x1e0] ss:$8 sps:$4 sm:$0xff]  }
  0x54   :  { %2382 = vmatpush1.bf16.msra.mxu0 %v3136_v3  ;;  %2211 = vmatprep.subr.bf16.mxu1 %v3141_v4  ;;  %v3196_v3 = vld [vmem:[%s4544_s1 + $0x5e0] ss:$8 sps:$4 sm:$0xff]   ;;  %v3201_v4 = vld [vmem:[%s4544_s1 + $0x1f4] ss:$8 sps:$4 sm:$0xff]  }
  0x55   :  { %2383 = vmatprep.subr.bf16.mxu0 %v3144_v5  ;;  %v3204_v5 = vld [vmem:[%s4544_s1 + $0x5f4] ss:$8 sps:$4 sm:$0xff]  }
  0x57   :  { %2212 = vmatpush1.bf16.msra.mxu1 %v3139_v6  ;;  %v429_v6 = vcombine.high %v383_v57, %v397_v59 }
  0x58   :  { %2384 = vmatpush1.bf16.msra.mxu0 %v3142_v7  ;;  %2213 = vmatprep.subr.bf16.mxu1 %v3147_v8  ;;  %v433_v7 = vcombine.high %v411_v60, %v425_v61  ;;  %v565_v8 = vcombine.high %v519_v62, %v533_v63 }
  0x59   :  { %2385 = vmatprep.subr.bf16.mxu0 %v3150_v9  ;;  %v569_v9 = vcombine.high %v547_v0, %v561_v1 }
  0x5b   :  { %2214 = vmatpush1.bf16.msra.mxu1 %v3145_v10  ;;  %v428_v10 = vcombine.low %v383_v57, %v397_v59  ;;  %v3246_v57 = vld [vmem:[%s4544_s1 + $0x664] ss:$8 sps:$4 sm:$0xff]   ;;  %v3244_v59 = vld [vmem:[%s4544_s1 + $0x660] ss:$8 sps:$4 sm:$0xff]  }
  0x5c   :  { %2386 = vmatpush1.bf16.msra.mxu0 %v3148_v11  ;;  %2215 = vmatprep.subr.bf16.mxu1 %v3153_v12  ;;  %v432_v11 = vcombine.low %v411_v60, %v425_v61  ;;  %v3199_v12 = vld [vmem:[%s4544_s1 + $0x1f0] ss:$8 sps:$4 sm:$0xff]   ;;  %v3249_v60 = vld [vmem:[%s4544_s1 + $0x274] ss:$8 sps:$4 sm:$0xff]  }
  0x5d   :  { %2387 = vmatprep.subr.bf16.mxu0 %v3156_v13  ;;  %v3202_v13 = vld [vmem:[%s4544_s1 + $0x5f0] ss:$8 sps:$4 sm:$0xff]   ;;  %v3252_v61 = vld [vmem:[%s4544_s1 + $0x674] ss:$8 sps:$4 sm:$0xff]  }
  0x5f   :  { %2216 = vmatpush1.bf16.msra.mxu1 %v3151_v14  ;;  %v564_v14 = vcombine.low %v519_v62, %v533_v63  ;;  %v3247_v62 = vld [vmem:[%s4544_s1 + $0x270] ss:$8 sps:$4 sm:$0xff]  }
  0x60   :  { %2388 = vmatpush1.bf16.msra.mxu0 %v3154_v15  ;;  %2217 = vmatprep.subr.bf16.mxu1 %v3159_v16  ;;  %v3207_v15 = vld [vmem:[%s4544_s1 + $0x204] ss:$8 sps:$4 sm:$0xff]   ;;  %v568_v16 = vcombine.low %v547_v0, %v561_v1  ;;  %v3250_v63 = vld [vmem:[%s4544_s1 + $0x670] ss:$8 sps:$4 sm:$0xff]  }
  0x61   :  { %2389 = vmatprep.subr.bf16.mxu0 %v3162_v17  ;;  %v3210_v17 = vld [vmem:[%s4544_s1 + $0x604] ss:$8 sps:$4 sm:$0xff]  }
  0x62   :  { %v3255_v0 = vld [vmem:[%s4544_s1 + $0x284] ss:$8 sps:$4 sm:$0xff]  }
  0x63   :  { %2218 = vmatpush1.bf16.msra.mxu1 %v3157_v18  ;;  %v3958_v18 = vrot.slane %v429_v6, %v3620_v54  ;;  %v3258_v1 = vld [vmem:[%s4544_s1 + $0x684] ss:$8 sps:$4 sm:$0xff]   ;;  %v3259_v6 = vld [vmem:[%s4544_s1 + $0x290] ss:$8 sps:$4 sm:$0xff]  }
  0x64   :  { %2390 = vmatpush1.bf16.msra.mxu0 %v3160_v19  ;;  %2219 = vmatprep.subr.bf16.mxu1 %v3165_v20  ;;  %v3961_v19 = vrot.slane %v433_v7, %v3620_v54  ;;  %v3964_v20 = vrot.slane %v565_v8, %v3620_v54  ;;  %v3262_v7 = vld [vmem:[%s4544_s1 + $0x690] ss:$8 sps:$4 sm:$0xff]   ;;  %v3267_v8 = vld [vmem:[%s4544_s1 + $0x2a4] ss:$8 sps:$4 sm:$0xff]  }
  0x65   :  { %2391 = vmatprep.subr.bf16.mxu0 %v3168_v21  ;;  %v3967_v21 = vrot.slane %v569_v9, %v3620_v54  ;;  %v3270_v9 = vld [vmem:[%s4544_s1 + $0x6a4] ss:$8 sps:$4 sm:$0xff]  }
  0x67   :  { %2220 = vmatpush1.bf16.msra.mxu1 %v3163_v22  ;;  %v3970_v22 = vrot.slane %v428_v10, %v3620_v54  ;;  %v632_v38 = vcombine.low %v3964_v20, %v3967_v21  ;;  %v3265_v10 = vld [vmem:[%s4544_s1 + $0x2a0] ss:$8 sps:$4 sm:$0xff]  }
  0x68   :  { %2392 = vmatpush1.bf16.msra.mxu0 %v3166_v23  ;;  %2221 = vmatprep.subr.bf16.mxu1 %v3171_v26  ;;  %v3973_v23 = vrot.slane %v432_v11, %v3620_v54  ;;  %v3205_v26 = vld [vmem:[%s4544_s1 + $0x200] ss:$8 sps:$4 sm:$0xff]  }
  0x69   :  { %2393 = vmatprep.subr.bf16.mxu0 %v3174_v27  ;;  %v3208_v27 = vld [vmem:[%s4544_s1 + $0x600] ss:$8 sps:$4 sm:$0xff]  }
  0x6a   :  { %v3268_v11 = vld [vmem:[%s4544_s1 + $0x6a0] ss:$8 sps:$4 sm:$0xff]  }
  0x6b   :  { %2222 = vmatpush1.bf16.msra.mxu1 %v3169_v28  ;;  %v3982_v28 = vrot.slane %v564_v14, %v3620_v54  ;;  %v3271_v14 = vld [vmem:[%s4544_s1 + $0x2b0] ss:$8 sps:$4 sm:$0xff]  }
  0x6c   :  { %2394 = vmatpush1.bf16.msra.mxu0 %v3172_v29  ;;  %2223 = vmatprep.subr.bf16.mxu1 %v3177_v30  ;;  %v3213_v29 = vld [vmem:[%s4544_s1 + $0x214] ss:$8 sps:$4 sm:$0xff]   ;;  %v3988_v30 = vrot.slane %v568_v16, %v3620_v54  ;;  %v3279_v16 = vld [vmem:[%s4544_s1 + $0x2c4] ss:$8 sps:$4 sm:$0xff]  }
  0x6d   :  { %2395 = vmatprep.subr.bf16.mxu0 %v3180_v32  ;;  %v497_v32 = vcombine.high %v3958_v18, %v3961_v19 }
  0x6e   :  { %v629_v40 = vcombine.high %v3982_v28, %v3988_v30 }
  0x6f   :  { %2224 = vmatpush1.bf16.msra.mxu1 %v3175_v33  ;;  %v493_v33 = vcombine.high %v3970_v22, %v3973_v23 }
  0x70   :  { %2396 = vmatpush1.bf16.msra.mxu0 %v3178_v34  ;;  %2225 = vmatprep.subr.bf16.mxu1 %v3183_v35  ;;  %v3216_v34 = vld [vmem:[%s4544_s1 + $0x614] ss:$8 sps:$4 sm:$0xff]   ;;  %v633_v35 = vcombine.high %v3964_v20, %v3967_v21  ;;  %v3322_v20 = vld [vmem:[%s4544_s1 + $0x730] ss:$8 sps:$4 sm:$0xff]   ;;  %v3327_v21 = vld [vmem:[%s4544_s1 + $0x344] ss:$8 sps:$4 sm:$0xff]  }
  0x71   :  { %2397 = vmatprep.subr.bf16.mxu0 %v3186_v37  ;;  %v496_v37 = vcombine.low %v3958_v18, %v3961_v19  ;;  %v3324_v18 = vld [vmem:[%s4544_s1 + $0x734] ss:$8 sps:$4 sm:$0xff]   ;;  %v3319_v19 = vld [vmem:[%s4544_s1 + $0x330] ss:$8 sps:$4 sm:$0xff]  }
  0x73   :  { %2226 = vmatpush1.bf16.msra.mxu1 %v3181_v44  ;;  %v3219_v44 = vld [vmem:[%s4544_s1 + $0x224] ss:$8 sps:$4 sm:$0xff]  }
  0x74   :  { %2398 = vmatpush1.bf16.msra.mxu0 %v3184_v45  ;;  %2227 = vmatprep.subr.bf16.mxu1 %v3189_v49  ;;  %v3226_v45 = vld [vmem:[%s4544_s1 + $0x630] ss:$8 sps:$4 sm:$0xff]   ;;  %v3229_v49 = vld [vmem:[%s4544_s1 + $0x240] ss:$8 sps:$4 sm:$0xff]  }
  0x75   :  { %2399 = vmatprep.subr.bf16.mxu0 %v3192_v50  ;;  %v3232_v50 = vld [vmem:[%s4544_s1 + $0x640] ss:$8 sps:$4 sm:$0xff]  }
  0x77   :  { %2228 = vmatpush1.bf16.msra.mxu1 %v3187_v53  ;;  %v3235_v53 = vld [vmem:[%s4544_s1 + $0x250] ss:$8 sps:$4 sm:$0xff]  }
  0x78   :  { %2400 = vmatpush1.bf16.msra.mxu0 %v3190_v55  ;;  %2229 = vmatprep.subr.bf16.mxu1 %v3195_v56  ;;  %v3238_v55 = vld [vmem:[%s4544_s1 + $0x650] ss:$8 sps:$4 sm:$0xff]   ;;  %v3243_v56 = vld [vmem:[%s4544_s1 + $0x264] ss:$8 sps:$4 sm:$0xff]  }
  0x79   :  { %2401 = vmatprep.subr.bf16.mxu0 %v3198_v58  ;;  %v3241_v58 = vld [vmem:[%s4544_s1 + $0x260] ss:$8 sps:$4 sm:$0xff]  }
  0x7b   :  { %2230 = vmatpush1.bf16.msra.mxu1 %v3193_v2  ;;  %v3253_v2 = vld [vmem:[%s4544_s1 + $0x280] ss:$8 sps:$4 sm:$0xff]  }
  0x7c   :  { %2402 = vmatpush1.bf16.msra.mxu0 %v3196_v3  ;;  %2231 = vmatprep.subr.bf16.mxu1 %v3201_v4  ;;  %v3256_v3 = vld [vmem:[%s4544_s1 + $0x680] ss:$8 sps:$4 sm:$0xff]   ;;  %v3261_v4 = vld [vmem:[%s4544_s1 + $0x294] ss:$8 sps:$4 sm:$0xff]  }
  0x7d   :  { %2403 = vmatprep.subr.bf16.mxu0 %v3204_v5  ;;  %v3264_v5 = vld [vmem:[%s4544_s1 + $0x694] ss:$8 sps:$4 sm:$0xff]  }
  0x7f   :  { %2232 = vmatpush1.bf16.msra.mxu1 %v3199_v12  ;;  %v3273_v12 = vld [vmem:[%s4544_s1 + $0x2b4] ss:$8 sps:$4 sm:$0xff]  }
  0x80   :  { %2404 = vmatpush1.bf16.msra.mxu0 %v3202_v13  ;;  %2244 = vmatprep.subr.bf16.mxu1 %v3207_v15  ;;  %v3276_v13 = vld [vmem:[%s4544_s1 + $0x6b4] ss:$8 sps:$4 sm:$0xff]   ;;  %v3274_v15 = vld [vmem:[%s4544_s1 + $0x6b0] ss:$8 sps:$4 sm:$0xff]  }
  0x81   :  { %2416 = vmatprep.subr.bf16.mxu0 %v3210_v17  ;;  %v3282_v17 = vld [vmem:[%s4544_s1 + $0x6c4] ss:$8 sps:$4 sm:$0xff]  }
  0x82   :  { %2234 = vmatmul.mubr.bf16.vlgmr.msra.gmra.mrb[0].mxu1 %v491_v31  ;;  %v3220_v31 = vld [vmem:[%s4544_s1 + $0x620] ss:$8 sps:$4 sm:$0xff]  }
  0x83   :  { %2406 = vmatmul.mubr.bf16.vlgmr.msra.gmra.mrb[0].mxu0 %v627_v43  ;;  %2245 = vmatpush1.bf16.msra.mxu1 %v3205_v26  ;;  %v3223_v43 = vld [vmem:[%s4544_s1 + $0x230] ss:$8 sps:$4 sm:$0xff]   ;;  %v3277_v26 = vld [vmem:[%s4544_s1 + $0x2c0] ss:$8 sps:$4 sm:$0xff]  }
  0x84   :  { %2417 = vmatpush1.bf16.msra.mxu0 %v3208_v27  ;;  %2246 = vmatprep.subr.bf16.mxu1 %v3213_v29  ;;  %v3280_v27 = vld [vmem:[%s4544_s1 + $0x6c0] ss:$8 sps:$4 sm:$0xff]   ;;  %v3285_v29 = vld [vmem:[%s4544_s1 + $0x2d4] ss:$8 sps:$4 sm:$0xff]  }
  0x85   :  { %2418 = vmatprep.subr.bf16.mxu0 %v3216_v34  ;;  %2276 = vmatprep.mubr.bf16.mxu1 %v496_v37  ;;  %v3288_v34 = vld [vmem:[%s4544_s1 + $0x6d4] ss:$8 sps:$4 sm:$0xff]   ;;  %v3283_v37 = vld [vmem:[%s4544_s1 + $0x2d0] ss:$8 sps:$4 sm:$0xff]  }
  0x86   :  { %2448 = vmatprep.mubr.bf16.mxu0 %v632_v38  ;;  %v3286_v38 = vld [vmem:[%s4544_s1 + $0x6d0] ss:$8 sps:$4 sm:$0xff]  }
  0x87   :  { %2247 = vmatpush1.bf16.msra.mxu1 %v3211_v41  ;;  %v3291_v41 = vld [vmem:[%s4544_s1 + $0x2e4] ss:$8 sps:$4 sm:$0xff]  }
  0x88   :  { %2419 = vmatpush1.bf16.msra.mxu0 %v3214_v42  ;;  %2248 = vmatprep.subr.bf16.mxu1 %v3219_v44  ;;  %v3294_v42 = vld [vmem:[%s4544_s1 + $0x6e4] ss:$8 sps:$4 sm:$0xff]   ;;  %v3289_v44 = vld [vmem:[%s4544_s1 + $0x2e0] ss:$8 sps:$4 sm:$0xff]  }
  0x89   :  { %2420 = vmatprep.subr.bf16.mxu0 %v3222_v24  ;;  %v3292_v24 = vld [vmem:[%s4544_s1 + $0x6e0] ss:$8 sps:$4 sm:$0xff]  }
  0x8b   :  { %2249 = vmatpush1.bf16.msra.mxu1 %v3217_v25  ;;  %v3297_v25 = vld [vmem:[%s4544_s1 + $0x2f4] ss:$8 sps:$4 sm:$0xff]  }
  0x8c   :  { %2421 = vmatpush1.bf16.msra.mxu0 %v3220_v31  ;;  %2250 = vmatprep.subr.bf16.mxu1 %v3225_v36  ;;  %v3300_v31 = vld [vmem:[%s4544_s1 + $0x6f4] ss:$8 sps:$4 sm:$0xff]   ;;  %v3295_v36 = vld [vmem:[%s4544_s1 + $0x2f0] ss:$8 sps:$4 sm:$0xff]  }
  0x8d   :  { %2422 = vmatprep.subr.bf16.mxu0 %v3228_v39  ;;  %v3298_v39 = vld [vmem:[%s4544_s1 + $0x6f0] ss:$8 sps:$4 sm:$0xff]  }
  0x8f   :  { %2251 = vmatpush1.bf16.msra.mxu1 %v3223_v43  ;;  %v3303_v43 = vld [vmem:[%s4544_s1 + $0x304] ss:$8 sps:$4 sm:$0xff]  }
  0x90   :  { %2423 = vmatpush1.bf16.msra.mxu0 %v3226_v45  ;;  %2252 = vmatprep.subr.bf16.mxu1 %v3231_v46  ;;  %v3306_v45 = vld [vmem:[%s4544_s1 + $0x704] ss:$8 sps:$4 sm:$0xff]   ;;  %v3301_v46 = vld [vmem:[%s4544_s1 + $0x300] ss:$8 sps:$4 sm:$0xff]  }
  0x91   :  { %2424 = vmatprep.subr.bf16.mxu0 %v3234_v48  ;;  %v3304_v48 = vld [vmem:[%s4544_s1 + $0x700] ss:$8 sps:$4 sm:$0xff]  }
  0x93   :  { %2253 = vmatpush1.bf16.msra.mxu1 %v3229_v49  ;;  %v492_v49 = vcombine.low %v3970_v22, %v3973_v23  ;;  %v3403_v22 = vld [vmem:[%s4544_s1 + $0x820] ss:$8 sps:$4 sm:$0xff]   ;;  %v3408_v23 = vld [vmem:[%s4544_s1 + $0x834] ss:$8 sps:$4 sm:$0xff]  }
  0x94   :  { %2425 = vmatpush1.bf16.msra.mxu0 %v3232_v50  ;;  %2254 = vmatprep.subr.bf16.mxu1 %v3237_v51  ;;  %v628_v50 = vcombine.low %v3982_v28, %v3988_v30  ;;  %v3309_v51 = vld [vmem:[%s4544_s1 + $0x314] ss:$8 sps:$4 sm:$0xff]   ;;  %v3406_v28 = vld [vmem:[%s4544_s1 + $0x830] ss:$8 sps:$4 sm:$0xff]   ;;  %v3411_v30 = vld [vmem:[%s4544_s1 + $0x844] ss:$8 sps:$4 sm:$0xff]  }
  0x95   :  { %2426 = vmatprep.subr.bf16.mxu0 %v3240_v52  ;;  %v3312_v52 = vld [vmem:[%s4544_s1 + $0x714] ss:$8 sps:$4 sm:$0xff]  }
  0x97   :  { %2255 = vmatpush1.bf16.msra.mxu1 %v3235_v53  ;;  %v3307_v53 = vld [vmem:[%s4544_s1 + $0x310] ss:$8 sps:$4 sm:$0xff]  }
  0x98   :  { %2427 = vmatpush1.bf16.msra.mxu0 %v3238_v55  ;;  %2256 = vmatprep.subr.bf16.mxu1 %v3243_v56  ;;  %v3310_v55 = vld [vmem:[%s4544_s1 + $0x710] ss:$8 sps:$4 sm:$0xff]   ;;  %v3315_v56 = vld [vmem:[%s4544_s1 + $0x324] ss:$8 sps:$4 sm:$0xff]  }
  0x99   :  { %2428 = vmatprep.subr.bf16.mxu0 %v3246_v57  ;;  %v3318_v57 = vld [vmem:[%s4544_s1 + $0x724] ss:$8 sps:$4 sm:$0xff]  }
  0x9b   :  { %2257 = vmatpush1.bf16.msra.mxu1 %v3241_v58  ;;  %v3313_v58 = vld [vmem:[%s4544_s1 + $0x320] ss:$8 sps:$4 sm:$0xff]  }
  0x9c   :  { %2429 = vmatpush1.bf16.msra.mxu0 %v3244_v59  ;;  %2258 = vmatprep.subr.bf16.mxu1 %v3249_v60  ;;  %v3316_v59 = vld [vmem:[%s4544_s1 + $0x720] ss:$8 sps:$4 sm:$0xff]   ;;  %v3321_v60 = vld [vmem:[%s4544_s1 + $0x334] ss:$8 sps:$4 sm:$0xff]  }
  0x9d   :  { %2430 = vmatprep.subr.bf16.mxu0 %v3252_v61  ;;  %v3446_v61 = vld [vmem:[%s4543_s0 + $0x34] ss:$18 sps:$4 sm:$0x33]  }
  0x9f   :  { %2259 = vmatpush1.bf16.msra.mxu1 %v3247_v62  ;;  %v3447_v62 = vld [vmem:[%s4543_s0 + $0x58] ss:$18 sps:$4 sm:$0x33]  }
  0xa0   :  { %2431 = vmatpush1.bf16.msra.mxu0 %v3250_v63  ;;  %2260 = vmatprep.subr.bf16.mxu1 %v3255_v0  ;;  %v3448_v63 = vld [vmem:[%s4543_s0 + $0x7c] ss:$18 sps:$4 sm:$0x33]  }
  0xa1   :  { %2432 = vmatprep.subr.bf16.mxu0 %v3258_v1  ;;  %v3325_v1 = vld [vmem:[%s4544_s1 + $0x340] ss:$8 sps:$4 sm:$0xff]  }
  0xa3   :  { %2261 = vmatpush1.bf16.msra.mxu1 %v3253_v2  ;;  %v3328_v2 = vld [vmem:[%s4544_s1 + $0x740] ss:$8 sps:$4 sm:$0xff]  }
  0xa4   :  { %2433 = vmatpush1.bf16.msra.mxu0 %v3256_v3  ;;  %2262 = vmatprep.subr.bf16.mxu1 %v3261_v4  ;;  %v4271_v3 = vrot.slane %v3446_v61, %v3620_v54  ;;  %v4274_v4 = vrot.slane %v3447_v62, %v3620_v54  ;;  %v3393_v61 = vld [vmem:[%s4544_s1 + $0x3f4] ss:$8 sps:$4 sm:$0xff]  }
  0xa5   :  { %2434 = vmatprep.subr.bf16.mxu0 %v3264_v5  ;;  %v3333_v5 = vld [vmem:[%s4544_s1 + $0x354] ss:$8 sps:$4 sm:$0xff]  }
  0xa6   :  { %v3396_v62 = vld [vmem:[%s4544_s1 + $0x7f4] ss:$8 sps:$4 sm:$0xff]  }
  0xa7   :  { %2263 = vmatpush1.bf16.msra.mxu1 %v3259_v6  ;;  %v3336_v6 = vld [vmem:[%s4544_s1 + $0x754] ss:$8 sps:$4 sm:$0xff]  }
  0xa8   :  { %2435 = vmatpush1.bf16.msra.mxu0 %v3262_v7  ;;  %2264 = vmatprep.subr.bf16.mxu1 %v3267_v8  ;;  %v4283_v7 = vrot.slane %v3448_v63, %v3620_v54  ;;  %v3391_v63 = vld [vmem:[%s4544_s1 + $0x3f0] ss:$8 sps:$4 sm:$0xff]  }
  0xa9   :  { %2436 = vmatprep.subr.bf16.mxu0 %v3270_v9 }
  0xaa   :  { %v668_v9 = vcombine.low %v4274_v4, %v4283_v7 }
  0xab   :  { %2265 = vmatpush1.bf16.msra.mxu1 %v3265_v10  ;;  %v3331_v10 = vld [vmem:[%s4544_s1 + $0x350] ss:$8 sps:$4 sm:$0xff]  }
  0xac   :  { %2437 = vmatpush1.bf16.msra.mxu0 %v3268_v11  ;;  %2266 = vmatprep.subr.bf16.mxu1 %v3273_v12  ;;  %v3334_v11 = vld [vmem:[%s4544_s1 + $0x750] ss:$8 sps:$4 sm:$0xff]  }
  0xad   :  { %2438 = vmatprep.subr.bf16.mxu0 %v3276_v13  ;;  %v3339_v13 = vld [vmem:[%s4544_s1 + $0x364] ss:$8 sps:$4 sm:$0xff]  }
  0xaf   :  { %2267 = vmatpush1.bf16.msra.mxu1 %v3271_v14  ;;  %v3342_v14 = vld [vmem:[%s4544_s1 + $0x764] ss:$8 sps:$4 sm:$0xff]  }
  0xb0   :  { %2439 = vmatpush1.bf16.msra.mxu0 %v3274_v15  ;;  %2268 = vmatprep.subr.bf16.mxu1 %v3279_v16  ;;  %v4305_v15 = vrot.slane %v668_v9, %v3620_v54  ;;  %v3412_v9 = vld [vmem:[%s4544_s1 + $0x850] ss:$8 sps:$4 sm:$0xff]  }
  0xb1   :  { %2440 = vmatprep.subr.bf16.mxu0 %v3282_v17  ;;  %v3337_v17 = vld [vmem:[%s4544_s1 + $0x360] ss:$8 sps:$4 sm:$0xff]  }
  0xb3   :  { %2269 = vmatpush1.bf16.msra.mxu1 %v3277_v26  ;;  %v3340_v26 = vld [vmem:[%s4544_s1 + $0x760] ss:$8 sps:$4 sm:$0xff]  }
  0xb4   :  { %2441 = vmatpush1.bf16.msra.mxu0 %v3280_v27  ;;  %2270 = vmatprep.subr.bf16.mxu1 %v3285_v29  ;;  %v3345_v27 = vld [vmem:[%s4544_s1 + $0x374] ss:$8 sps:$4 sm:$0xff]  }
  0xb5   :  { %2442 = vmatprep.subr.bf16.mxu0 %v3288_v34  ;;  %v3348_v29 = vld [vmem:[%s4544_s1 + $0x774] ss:$8 sps:$4 sm:$0xff]   ;;  %v3343_v34 = vld [vmem:[%s4544_s1 + $0x370] ss:$8 sps:$4 sm:$0xff]  }
  0xb7   :  { %2271 = vmatpush1.bf16.msra.mxu1 %v3283_v37  ;;  %v3346_v37 = vld [vmem:[%s4544_s1 + $0x770] ss:$8 sps:$4 sm:$0xff]  }
  0xb8   :  { %2443 = vmatpush1.bf16.msra.mxu0 %v3286_v38  ;;  %2272 = vmatprep.subr.bf16.mxu1 %v3291_v41  ;;  %v3351_v38 = vld [vmem:[%s4544_s1 + $0x384] ss:$8 sps:$4 sm:$0xff]  }
  0xb9   :  { %2444 = vmatprep.subr.bf16.mxu0 %v3294_v42  ;;  %v3354_v41 = vld [vmem:[%s4544_s1 + $0x784] ss:$8 sps:$4 sm:$0xff]   ;;  %v3349_v42 = vld [vmem:[%s4544_s1 + $0x380] ss:$8 sps:$4 sm:$0xff]  }
  0xbb   :  { %2273 = vmatpush1.bf16.msra.mxu1 %v3289_v44  ;;  %v3352_v44 = vld [vmem:[%s4544_s1 + $0x780] ss:$8 sps:$4 sm:$0xff]  }
  0xbc   :  { %2445 = vmatpush1.bf16.msra.mxu0 %v3292_v24  ;;  %2274 = vmatprep.subr.bf16.mxu1 %v3297_v25  ;;  %v3357_v24 = vld [vmem:[%s4544_s1 + $0x394] ss:$8 sps:$4 sm:$0xff]  }
  0xbd   :  { %2446 = vmatprep.subr.bf16.mxu0 %v3300_v31  ;;  %v3360_v25 = vld [vmem:[%s4544_s1 + $0x794] ss:$8 sps:$4 sm:$0xff]   ;;  %v3355_v31 = vld [vmem:[%s4544_s1 + $0x390] ss:$8 sps:$4 sm:$0xff]  }
  0xbf   :  { %2275 = vmatpush1.bf16.msra.mxu1 %v3295_v36  ;;  %v3358_v36 = vld [vmem:[%s4544_s1 + $0x790] ss:$8 sps:$4 sm:$0xff]  }
  0xc0   :  { %2447 = vmatpush1.bf16.msra.mxu0 %v3298_v39  ;;  %2287 = vmatprep.subr.bf16.mxu1 %v3303_v43  ;;  %v3363_v39 = vld [vmem:[%s4544_s1 + $0x3a4] ss:$8 sps:$4 sm:$0xff]  }
  0xc1   :  { %2459 = vmatprep.subr.bf16.mxu0 %v3306_v45  ;;  %v3366_v43 = vld [vmem:[%s4544_s1 + $0x7a4] ss:$8 sps:$4 sm:$0xff]   ;;  %v3361_v45 = vld [vmem:[%s4544_s1 + $0x3a0] ss:$8 sps:$4 sm:$0xff]  }
  0xc2   :  { %2277 = vmatmul.mubr.bf16.vlgmr.msra.gmra.mrb[0].mxu1 %v492_v49  ;;  %v3372_v49 = vld [vmem:[%s4544_s1 + $0x7b4] ss:$8 sps:$4 sm:$0xff]  }
  0xc3   :  { %2449 = vmatmul.mubr.bf16.vlgmr.msra.gmra.mrb[0].mxu0 %v628_v50  ;;  %2288 = vmatpush1.bf16.msra.mxu1 %v3301_v46  ;;  %v3364_v46 = vld [vmem:[%s4544_s1 + $0x7a0] ss:$8 sps:$4 sm:$0xff]   ;;  %v3367_v50 = vld [vmem:[%s4544_s1 + $0x3b0] ss:$8 sps:$4 sm:$0xff]  }
  0xc4   :  { %2460 = vmatpush1.bf16.msra.mxu0 %v3304_v48  ;;  %2289 = vmatprep.subr.bf16.mxu1 %v3309_v51  ;;  %v3369_v48 = vld [vmem:[%s4544_s1 + $0x3b4] ss:$8 sps:$4 sm:$0xff]   ;;  %v3370_v51 = vld [vmem:[%s4544_s1 + $0x7b0] ss:$8 sps:$4 sm:$0xff]  }
  0xc5   :  { %2461 = vmatprep.subr.bf16.mxu0 %v3312_v52  ;;  %2319 = vmatprep.mubr.bf16.mxu1 %v497_v32  ;;  %v3330_v32 = vld [vmem:[%s4544_s1 + $0x744] ss:$8 sps:$4 sm:$0xff]  }
  0xc6   :  { %2491 = vmatprep.mubr.bf16.mxu0 %v633_v35  ;;  %v3445_v35 = vld [vmem:[%s4543_s0 + $0x10] ss:$18 sps:$4 sm:$0x33]   ;;  %v3375_v52 = vld [vmem:[%s4544_s1 + $0x3c4] ss:$8 sps:$4 sm:$0xff]  }
  0xc7   :  { %2290 = vmatpush1.bf16.msra.mxu1 %v3307_v53  ;;  %v4262_v0 = vrot.slane %v3445_v35, %v3620_v54  ;;  %v3378_v53 = vld [vmem:[%s4544_s1 + $0x7c4] ss:$8 sps:$4 sm:$0xff]   ;;  %v669_v35 = vcombine.high %v4274_v4, %v4283_v7  ;;  %v3397_v4 = vld [vmem:[%s4544_s1 + $0x800] ss:$8 sps:$4 sm:$0xff]   ;;  %v3400_v7 = vld [vmem:[%s4544_s1 + $0x810] ss:$8 sps:$4 sm:$0xff]  }
  0xc8   :  { %2462 = vmatpush1.bf16.msra.mxu0 %v3310_v55  ;;  %2291 = vmatprep.subr.bf16.mxu1 %v3315_v56  ;;  %v3373_v55 = vld [vmem:[%s4544_s1 + $0x3c0] ss:$8 sps:$4 sm:$0xff]  }
  0xc9   :  { %2463 = vmatprep.subr.bf16.mxu0 %v3318_v57  ;;  %v666_v8 = vcombine.low %v4262_v0, %v4271_v3  ;;  %v3376_v56 = vld [vmem:[%s4544_s1 + $0x7c0] ss:$8 sps:$4 sm:$0xff]   ;;  %v3381_v57 = vld [vmem:[%s4544_s1 + $0x3d4] ss:$8 sps:$4 sm:$0xff]  }
  0xcb   :  { %2292 = vmatpush1.bf16.msra.mxu1 %v3313_v58  ;;  %v4296_v12 = vrot.slane %v666_v8, %v3620_v54  ;;  %v3384_v58 = vld [vmem:[%s4544_s1 + $0x7d4] ss:$8 sps:$4 sm:$0xff]   ;;  %v3405_v8 = vld [vmem:[%s4544_s1 + $0x824] ss:$8 sps:$4 sm:$0xff]  }
  0xcc   :  { %2464 = vmatpush1.bf16.msra.mxu0 %v3316_v59  ;;  %2293 = vmatprep.subr.bf16.mxu1 %v3321_v60  ;;  %v3379_v59 = vld [vmem:[%s4544_s1 + $0x3d0] ss:$8 sps:$4 sm:$0xff]  }
  0xcd   :  { %2465 = vmatprep.subr.bf16.mxu0 %v3324_v18  ;;  %v698_v16 = vcombine.low %v4296_v12, %v4305_v15  ;;  %v3382_v60 = vld [vmem:[%s4544_s1 + $0x7d0] ss:$8 sps:$4 sm:$0xff]   ;;  %v3387_v18 = vld [vmem:[%s4544_s1 + $0x3e4] ss:$8 sps:$4 sm:$0xff]  }
  0xcf   :  { %2294 = vmatpush1.bf16.msra.mxu1 %v3319_v19  ;;  %v3390_v19 = vld [vmem:[%s4544_s1 + $0x7e4] ss:$8 sps:$4 sm:$0xff]  }
  0xd0   :  { %2466 = vmatpush1.bf16.msra.mxu0 %v3322_v20  ;;  %2295 = vmatprep.subr.bf16.mxu1 %v3327_v21  ;;  %v3385_v20 = vld [vmem:[%s4544_s1 + $0x3e0] ss:$8 sps:$4 sm:$0xff]  }
  0xd1   :  { %2467 = vmatprep.subr.bf16.mxu0 %v3330_v32  ;;  %v3388_v21 = vld [vmem:[%s4544_s1 + $0x7e0] ss:$8 sps:$4 sm:$0xff]   ;;  %v667_v32 = vcombine.high %v4262_v0, %v4271_v3  ;;  %v3394_v0 = vld [vmem:[%s4544_s1 + $0x7f0] ss:$8 sps:$4 sm:$0xff]   ;;  %v3399_v3 = vld [vmem:[%s4544_s1 + $0x804] ss:$8 sps:$4 sm:$0xff]  }
  0xd3   :  { %2296 = vmatpush1.bf16.msra.mxu1 %v3325_v1  ;;  %v683_v1 = vrot.slane %v667_v32, %v3620_v54 }
  0xd4   :  { %2468 = vmatpush1.bf16.msra.mxu0 %v3328_v2  ;;  %2297 = vmatprep.subr.bf16.mxu1 %v3333_v5  ;;  %v697_v2 = vrot.slane %v669_v35, %v3620_v54 }
  0xd5   :  { %2469 = vmatprep.subr.bf16.mxu0 %v3336_v6  ;;  %v3402_v6 = vld [vmem:[%s4544_s1 + $0x814] ss:$8 sps:$4 sm:$0xff]  }
  0xd6   :  { %v699_v5 = vcombine.low %v683_v1, %v697_v2 }
  0xd7   :  { %2298 = vmatpush1.bf16.msra.mxu1 %v3331_v10  ;;  %v3417_v10 = vld [vmem:[%s4544_s1 + $0x864] ss:$8 sps:$4 sm:$0xff]  }
  0xd8   :  { %2470 = vmatpush1.bf16.msra.mxu0 %v3334_v11  ;;  %2299 = vmatprep.subr.bf16.mxu1 %v3339_v13  ;;  %v3415_v11 = vld [vmem:[%s4544_s1 + $0x860] ss:$8 sps:$4 sm:$0xff]   ;;  %v3420_v13 = vld [vmem:[%s4544_s1 + $0x874] ss:$8 sps:$4 sm:$0xff]  }
  0xd9   :  { %2471 = vmatprep.subr.bf16.mxu0 %v3342_v14  ;;  %v3418_v14 = vld [vmem:[%s4544_s1 + $0x870] ss:$8 sps:$4 sm:$0xff]  }
  0xdb   :  { %2300 = vmatpush1.bf16.msra.mxu1 %v3337_v17  ;;  %v3423_v17 = vld [vmem:[%s4544_s1 + $0x884] ss:$8 sps:$4 sm:$0xff]  }
  0xdc   :  { %2472 = vmatpush1.bf16.msra.mxu0 %v3340_v26  ;;  %2301 = vmatprep.subr.bf16.mxu1 %v3345_v27  ;;  %v3421_v26 = vld [vmem:[%s4544_s1 + $0x880] ss:$8 sps:$4 sm:$0xff]   ;;  %v3426_v27 = vld [vmem:[%s4544_s1 + $0x894] ss:$8 sps:$4 sm:$0xff]  }
  0xdd   :  { %2473 = vmatprep.subr.bf16.mxu0 %v3348_v29  ;;  %v3424_v29 = vld [vmem:[%s4544_s1 + $0x890] ss:$8 sps:$4 sm:$0xff]  }
  0xdf   :  { %2302 = vmatpush1.bf16.msra.mxu1 %v3343_v34  ;;  %v3429_v34 = vld [vmem:[%s4544_s1 + $0x8a4] ss:$8 sps:$4 sm:$0xff]  }
  0xe0   :  { %2474 = vmatpush1.bf16.msra.mxu0 %v3346_v37  ;;  %2303 = vmatprep.subr.bf16.mxu1 %v3351_v38  ;;  %v3427_v37 = vld [vmem:[%s4544_s1 + $0x8a0] ss:$8 sps:$4 sm:$0xff]   ;;  %v3432_v38 = vld [vmem:[%s4544_s1 + $0x8b4] ss:$8 sps:$4 sm:$0xff]  }
  0xe1   :  { %2475 = vmatprep.subr.bf16.mxu0 %v3354_v41  ;;  %v3430_v41 = vld [vmem:[%s4544_s1 + $0x8b0] ss:$8 sps:$4 sm:$0xff]  }
  0xe3   :  { %2304 = vmatpush1.bf16.msra.mxu1 %v3349_v42  ;;  %v3435_v42 = vld [vmem:[%s4544_s1 + $0x8c4] ss:$8 sps:$4 sm:$0xff]  }
  0xe4   :  { %2476 = vmatpush1.bf16.msra.mxu0 %v3352_v44  ;;  %2305 = vmatprep.subr.bf16.mxu1 %v3357_v24  ;;  %v3433_v44 = vld [vmem:[%s4544_s1 + $0x8c0] ss:$8 sps:$4 sm:$0xff]   ;;  %v3438_v24 = vld [vmem:[%s4544_s1 + $0x8d4] ss:$8 sps:$4 sm:$0xff]  }
  0xe5   :  { %2477 = vmatprep.subr.bf16.mxu0 %v3360_v25  ;;  %v3436_v25 = vld [vmem:[%s4544_s1 + $0x8d0] ss:$8 sps:$4 sm:$0xff]  }
  0xe7   :  { %2306 = vmatpush1.bf16.msra.mxu1 %v3355_v31  ;;  %v3441_v31 = vld [vmem:[%s4544_s1 + $0x8e4] ss:$8 sps:$4 sm:$0xff]  }
  0xe8   :  { %2478 = vmatpush1.bf16.msra.mxu0 %v3358_v36  ;;  %2307 = vmatprep.subr.bf16.mxu1 %v3363_v39  ;;  %v3439_v36 = vld [vmem:[%s4544_s1 + $0x8e0] ss:$8 sps:$4 sm:$0xff]   ;;  %v3444_v39 = vld [vmem:[%s4544_s1 + $0x8f4] ss:$8 sps:$4 sm:$0xff]  }
  0xe9   :  { %2479 = vmatprep.subr.bf16.mxu0 %v3366_v43  ;;  %v3442_v43 = vld [vmem:[%s4544_s1 + $0x8f0] ss:$8 sps:$4 sm:$0xff]  }
  0xeb   :  { %2308 = vmatpush1.bf16.msra.mxu1 %v3361_v45 }
  0xec   :  { %2480 = vmatpush1.bf16.msra.mxu0 %v3364_v46  ;;  %2309 = vmatprep.subr.bf16.mxu1 %v3369_v48 }
  0xed   :  { %2481 = vmatprep.subr.bf16.mxu0 %v3372_v49 }
  0xef   :  { %2310 = vmatpush1.bf16.msra.mxu1 %v3367_v50  ;;  %v330_v50 = vsub.s32 0, %v3602_v47 }
  0xf0   :  { %2482 = vmatpush1.bf16.msra.mxu0 %v3370_v51  ;;  %2311 = vmatprep.subr.bf16.mxu1 %v3375_v52  ;;  %v326_v51 = vld [vmem:[%s4545_s2] sm:$0x3]  ;;  %v334_v52 = vsub.s32 1, %v3602_v47 }
  0xf1   :  { %2483 = vmatprep.subr.bf16.mxu0 %v3378_v53  ;;  %v331_v53 = vrot.slane %v326_v51, %v330_v50 }
  0xf3   :  { %2312 = vmatpush1.bf16.msra.mxu1 %v3373_v55  ;;  %v335_v55 = vrot.slane %v326_v51, %v334_v52 }
  0xf4   :  { %2484 = vmatpush1.bf16.msra.mxu0 %v3376_v56  ;;  %2313 = vmatprep.subr.bf16.mxu1 %v3381_v57 }
  0xf5   :  { %2485 = vmatprep.subr.bf16.mxu0 %v3384_v58 }
  0xf7   :  { %2314 = vmatpush1.bf16.msra.mxu1 %v3379_v59 }
  0xf8   :  { %2486 = vmatpush1.bf16.msra.mxu0 %v3382_v60  ;;  %2315 = vmatprep.subr.bf16.mxu1 %v3387_v18 }
  0xf9   :  { %2487 = vmatprep.subr.bf16.mxu0 %v3390_v19 }
  0xfb   :  { %2316 = vmatpush1.bf16.msra.mxu1 %v3385_v20 }
  0xfc   :  { %2488 = vmatpush1.bf16.msra.mxu0 %v3388_v21  ;;  %2317 = vmatprep.subr.bf16.mxu1 %v3393_v61 }
  0xfd   :  { %2489 = vmatprep.subr.bf16.mxu0 %v3396_v62 }
  0xff   :  { %2318 = vmatpush1.bf16.msra.mxu1 %v3391_v63 }
 0x100   :  { %2490 = vmatpush1.bf16.msra.mxu0 %v3394_v0 }
 0x101   :  { %2502 = vmatprep.subr.bf16.mxu0 %v3399_v3 }
 0x102   :  { %2320 = vmatmul.mubr.bf16.vlgmr.msra.gmra.mrb[0].mxu1 %v493_v33  ;;  %v3409_v33 = vld [vmem:[%s4544_s1 + $0x840] ss:$8 sps:$4 sm:$0xff]  }
 0x103   :  { %2492 = vmatmul.mubr.bf16.vlgmr.msra.gmra.mrb[0].mxu0 %v629_v40  ;;  %v3414_v40 = vld [vmem:[%s4544_s1 + $0x854] ss:$8 sps:$4 sm:$0xff]  }
 0x104   :  { %2503 = vmatpush1.bf16.msra.mxu0 %v3397_v4  ;;  %2534 = vmatprep.mubr.bf16.mxu0 %v699_v5 }
 0x105   :  { %2504 = vmatprep.subr.bf16.mxu0 %v3402_v6 }
 0x108   :  { %2505 = vmatpush1.bf16.msra.mxu0 %v3400_v7 }
 0x109   :  { %2506 = vmatprep.subr.bf16.mxu0 %v3405_v8 }
 0x10c   :  { %2507 = vmatpush1.bf16.msra.mxu0 %v3403_v22 }
 0x10d   :  { %2508 = vmatprep.subr.bf16.mxu0 %v3408_v23 }
 0x110   :  { %2509 = vmatpush1.bf16.msra.mxu0 %v3406_v28 }
 0x111   :  { %2510 = vmatprep.subr.bf16.mxu0 %v3411_v30 }
 0x114   :  { %2511 = vmatpush1.bf16.msra.mxu0 %v3409_v33 }
 0x115   :  { %2512 = vmatprep.subr.bf16.mxu0 %v3414_v40 }
 0x118   :  { %2513 = vmatpush1.bf16.msra.mxu0 %v3412_v9 }
 0x119   :  { %2514 = vmatprep.subr.bf16.mxu0 %v3417_v10 }
 0x11c   :  { %2515 = vmatpush1.bf16.msra.mxu0 %v3415_v11 }
 0x11d   :  { %2516 = vmatprep.subr.bf16.mxu0 %v3420_v13 }
 0x120   :  { %2517 = vmatpush1.bf16.msra.mxu0 %v3418_v14 }
 0x121   :  { %2518 = vmatprep.subr.bf16.mxu0 %v3423_v17 }
 0x124   :  { %2519 = vmatpush1.bf16.msra.mxu0 %v3421_v26 }
 0x125   :  { %2520 = vmatprep.subr.bf16.mxu0 %v3426_v27 }
 0x128   :  { %2521 = vmatpush1.bf16.msra.mxu0 %v3424_v29 }
 0x129   :  { %2522 = vmatprep.subr.bf16.mxu0 %v3429_v34 }
 0x12c   :  { %2523 = vmatpush1.bf16.msra.mxu0 %v3427_v37 }
 0x12d   :  { %2524 = vmatprep.subr.bf16.mxu0 %v3432_v38 }
 0x130   :  { %2525 = vmatpush1.bf16.msra.mxu0 %v3430_v41 }
 0x131   :  { %2526 = vmatprep.subr.bf16.mxu0 %v3435_v42 }
 0x134   :  { %2527 = vmatpush1.bf16.msra.mxu0 %v3433_v44 }
 0x135   :  { %2528 = vmatprep.subr.bf16.mxu0 %v3438_v24 }
 0x138   :  { %2529 = vmatpush1.bf16.msra.mxu0 %v3436_v25 }
 0x139   :  { %2530 = vmatprep.subr.bf16.mxu0 %v3441_v31 }
 0x13c   :  { %2531 = vmatpush1.bf16.msra.mxu0 %v3439_v36 }
 0x13d   :  { %2532 = vmatprep.subr.bf16.mxu0 %v3444_v39 }
 0x140   :  { %2533 = vmatpush1.bf16.msra.mxu0 %v3442_v43 }
 0x143   :  { %2535 = vmatmul.mubr.bf16.vlgmr.msra.gmra.mrb[0].mxu0 %v698_v16 }
 0x1d5   :  { %v2321_v45 = vpop.f32.mrb[0].mxu1 }
 0x1d6   :  { %v2323_v46 = vpop.f32.mrb[1].mxu1  ;;  %v2952_v56 = vadd.f32 %v2321_v45, %v331_v53 }
 0x1d7   :  { %v2325_v48 = vpop.f32.mrb[2].mxu1  ;;  %v2954_v57 = vadd.f32 %v2323_v46, %v335_v55 }
 0x1d8   :  { %v2327_v49 = vpop.f32.mrb[3].mxu1 }
 0x216   :  { %v2536_v58 = vpop.f32.mrb[0].mxu0 }
 0x217   :  { %v2953_v59 = vadd.f32 %v2952_v56, %v2536_v58  ;;  %v2538_v12 = vpop.f32.mrb[1].mxu0 }
 0x218   :  { %v2955_v15 = vadd.f32 %v2954_v57, %v2538_v12  ;;  %v2540_v16 = vpop.f32.mrb[2].mxu0 }
 0x219   :  { %v2545_v60 = vmax.f32 %v2953_v59, 0.0  ;;  %v2542_v18 = vpop.f32.mrb[3].mxu0 }
 0x21a   :  { %v2546_v19 = vmax.f32 %v2955_v15, 0.0 }
 0x21c   :  { %v2946_v20 = vpack.c.bf16 %v2546_v19, %v2545_v60 }
 0x21e   :  { %v2561_v21 = vrot.slane %v2946_v20, %v3620_v54 }
 0x220   :  { %2948 = vst.sshfl [vmem:[#allocation2] sm:$0x5 pattern:$0x73625140] %v2561_v21 }
 0x227   :  { %v2636_v32 = vld [vmem:[#allocation2] sm:$0x3] }
 0x228   :  { %2637 = vst [vmem:[%s4546_s3] sm:$0x3] %v2636_v32 }

</bundles_post_ra>
